<compile_context>
chip_gen: v7x
topology: tpu7x:2x2x1
jax: 0.10.0
libtpu: 0.0.40
codegen_flags: <defaults>
</compile_context>

<pallas_src>
import jax
import jax.numpy as jnp
from jax.experimental import pallas as pl
from jax.experimental.pallas import tpu as pltpu

EPS = 1e-5
KSZ = 7                                   # conv kernel size (both layers)
STRIDE = 2
PAD = 3
CIN = 3                                   # layer-1 input channels
C = 64                                    # conv output channels (kept at the real 64, un-padded)
K1P = 256                                 # layer-1 contraction 7*7*3 = 147, padded to a lane multiple
KROW = ((KSZ * C + 127) // 128) * 128     # 512: per-kh column stride in the flattened layer-2 K
K2P = KSZ * KROW                          # 3584: flattened layer-2 contraction (49*64 real + pads)


def _fused_kernel(p1_ref, w1_ref, g1_ref, b1_ref, w2_ref, g2_ref, b2_ref,
                  out_ref, y1p_ref, p2_ref):
    """Fused conv1+bn1+conv2+bn2.

    p1 : [M1, K1P]        bf16  layer-1 im2col patches, rows ordered (n, wo1, ho1)
    w1 : [K1P, C]         bf16  layer-1 weights, (kh,kw,cin)-major rows (tail rows zero)
    g1,b1,g2,b2 : [1, C]  f32   BN affine
    w2 : [K2P, C]         bf16  layer-2 weights, rows r = kh*512 + kw*64 + cin (pad rows zero)
    out: [M2, C]          f32   rows ordered (ho2, wo2, n)
    y1p: scratch (N, HO1+2*PAD, (WO1+2*PAD)*C) bf16 -- layer-1 activations, (W,C) on lanes
    p2 : scratch (M2, K2P) bf16                     -- layer-2 im2col, K flattened on lanes
    """
    N, HPm, WCL = y1p_ref.shape
    WPm = WCL // C
    HO1, WO1 = HPm - 2 * PAD, WPm - 2 * PAD
    HO2 = (HPm - KSZ) // STRIDE + 1
    WO2 = (WPm - KSZ) // STRIDE + 1
    M1 = p1_ref.shape[0]
    M2 = out_ref.shape[0]
    WC = KSZ * C                                   # 448 real columns per tap-row group

    # ---- layer 1: conv as one MXU matmul (bias cancelled by BN mean) + training-mode BN1 ----
    y1 = jnp.dot(p1_ref[...], w1_ref[...], preferred_element_type=jnp.float32)   # (M1, C) f32
    mean1 = jnp.sum(y1, axis=0, keepdims=True) * (1.0 / M1)
    d1 = y1 - mean1
    var1 = jnp.sum(d1 * d1, axis=0, keepdims=True) * (1.0 / M1)                  # two-pass, biased
    y1 = (d1 * jax.lax.rsqrt(var1 + EPS) * g1_ref[...] + b1_ref[...]).astype(jnp.bfloat16)

    # ---- stage y1 in VMEM, (W*C)-on-lanes, zeroing only the 3-wide halo ----
    zrow = jnp.zeros((N, PAD, WCL), jnp.bfloat16)
    y1p_ref[:, :PAD, :] = zrow                                    # top halo rows
    y1p_ref[:, PAD + HO1:, :] = zrow                              # bottom halo rows
    zlr = jnp.zeros((N, HO1, PAD * C), jnp.bfloat16)
    y1p_ref[:, PAD:PAD + HO1, :PAD * C] = zlr                     # left halo lanes
    y1p_ref[:, PAD:PAD + HO1, (PAD + WO1) * C:] = zlr             # right halo lanes
    # interior: rows of y1 are (n, wo1, ho1)-ordered, so each (n, wo1) block is HO1 contiguous rows
    for n in range(N):
        for w in range(WO1):
            blk = y1[(n * WO1 + w) * HO1:(n * WO1 + w + 1) * HO1, :]             # (HO1, C)
            y1p_ref[n, PAD:PAD + HO1, (PAD + w) * C:(PAD + w + 1) * C] = blk

    # ---- layer-2 im2col in VMEM: contiguous, lane-aligned 448-wide tap-row copies ----
    for ho in range(HO2):
        for kh in range(KSZ):
            row = y1p_ref[:, STRIDE * ho + kh, :]                                # (N, WPm*C)
            for wo in range(WO2):
                m0 = (ho * WO2 + wo) * N
                p2_ref[m0:m0 + N, kh * KROW:kh * KROW + WC] = \
                    row[:, STRIDE * wo * C:STRIDE * wo * C + WC]                 # lane start = 128*wo
    zpad = jnp.zeros((M2, KROW - WC), jnp.bfloat16)
    for kh in range(KSZ):                          # pad columns (their w2 rows are zero too)
        p2_ref[:, kh * KROW + WC:(kh + 1) * KROW] = zpad

    # ---- layer 2: a single K-flattened MXU contraction + training-mode BN2 ----
    y2 = jnp.dot(p2_ref[...], w2_ref[...], preferred_element_type=jnp.float32)   # (M2, C) f32
    mean2 = jnp.sum(y2, axis=0, keepdims=True) * (1.0 / M2)
    d2 = y2 - mean2
    var2 = jnp.sum(d2 * d2, axis=0, keepdims=True) * (1.0 / M2)
    out_ref[...] = d2 * jax.lax.rsqrt(var2 + EPS) * g2_ref[...] + b2_ref[...]


def _im2col_l1(x_nhwc):
    """Layer-1 patch extraction (host-side layout glue on ~6 KB of data).

    Returns ([N*WO1*HO1, 7*7*CIN] with rows ordered (n, wo1, ho1), HO1, WO1).  The (n, wo1, ho1)
    order lets the kernel stage y1 into its (W*C)-on-lanes layout with contiguous row blocks.
    """
    N, H, W, Cc = x_nhwc.shape
    xp = jnp.pad(x_nhwc, ((0, 0), (PAD, PAD), (PAD, PAD), (0, 0)))
    HO1 = (H + 2 * PAD - KSZ) // STRIDE + 1
    WO1 = (W + 2 * PAD - KSZ) // STRIDE + 1
    cols = [xp[:, kh:kh + STRIDE * HO1:STRIDE, kw:kw + STRIDE * WO1:STRIDE, :]
            for kh in range(KSZ) for kw in range(KSZ)]
    p = jnp.stack(cols, axis=3)                           # (N, HO1, WO1, 49, CIN)
    p = jnp.transpose(p, (0, 2, 1, 3, 4))                 # rows will be (n, wo1, ho1)
    return p.reshape(N * WO1 * HO1, KSZ * KSZ * Cc), HO1, WO1


def basic_model_forward(x_nchw, params):
    x = jnp.transpose(x_nchw, (0, 2, 3, 1)).astype(jnp.float32)   # NCHW -> NHWC
    N = x.shape[0]

    p1, HO1, WO1 = _im2col_l1(x)                                  # (N*WO1*HO1, 147)
    p1 = jnp.pad(p1, ((0, 0), (0, K1P - p1.shape[1]))).astype(jnp.bfloat16)

    HPm, WPm = HO1 + 2 * PAD, WO1 + 2 * PAD
    HO2 = (HPm - KSZ) // STRIDE + 1
    WO2 = (WPm - KSZ) // STRIDE + 1
    M1, M2 = N * HO1 * WO1, HO2 * WO2 * N

    cost = pl.CostEstimate(
        flops=2 * M1 * K1P * C + 2 * M2 * K2P * C,
        transcendentals=2 * C,
        bytes_accessed=2 * (p1.size + params["w1"].size + params["w2"].size)
                       + 4 * M2 * C + 4 * 4 * C,
    )
    vspec = pl.BlockSpec(memory_space=pltpu.MemorySpace.VMEM)
    out = pl.pallas_call(
        _fused_kernel,
        out_shape=jax.ShapeDtypeStruct((M2, C), jnp.float32),
        in_specs=[vspec] * 7,
        out_specs=vspec,
        scratch_shapes=[pltpu.VMEM((N, HPm, WPm * C), jnp.bfloat16),   # y1 staging (halo-padded)
                        pltpu.VMEM((M2, K2P), jnp.bfloat16)],          # layer-2 im2col (K-flat)
        cost_estimate=cost,
    )(p1, params["w1"], params["g1"], params["beta1"],
      params["w2"], params["g2"], params["beta2"])

    out = out.reshape(HO2, WO2, N, C)                             # rows are (ho2, wo2, n)
    return jnp.transpose(out, (2, 3, 0, 1))                       # -> NCHW like PyTorch


def make_params(key):
    """Deterministic synthetic parameters in the PyTorch layouts, re-laid out for the kernel."""
    k1, k2 = jax.random.split(key)

    # layer1: torch (Cout=64, Cin=3, 7, 7) -> (kh,kw,cin)-major rows [147, 64] -> K padded to 256.
    w1_t = jax.random.normal(k1, (C, CIN, KSZ, KSZ), jnp.float32) * (CIN * KSZ * KSZ) ** -0.5
    w1 = jnp.transpose(w1_t, (2, 3, 1, 0)).reshape(KSZ * KSZ * CIN, C)
    w1 = jnp.pad(w1, ((0, K1P - w1.shape[0]), (0, 0))).astype(jnp.bfloat16)

    # layer2: torch (Cout=64, Cin=64, 7, 7) -> rows r = kh*512 + kw*64 + cin, pad rows zero,
    #         cout kept at the real 64 lanes -> (3584, 64) bf16 (~0.46 MB in HBM).
    w2_t = jax.random.normal(k2, (C, C, KSZ, KSZ), jnp.float32) * (C * KSZ * KSZ) ** -0.5
    w2 = jnp.transpose(w2_t, (2, 3, 1, 0))                         # (kh, kw, cin, cout)
    w2 = jnp.pad(w2.reshape(KSZ, KSZ * C, C), ((0, 0), (0, KROW - KSZ * C), (0, 0)))
    w2 = w2.reshape(K2P, C).astype(jnp.bfloat16)

    # Fresh nn.BatchNorm2d affine: gamma=1, beta=0.
    gamma = jnp.ones((1, C), jnp.float32)
    beta = jnp.zeros((1, C), jnp.float32)

    # Conv biases intentionally not created: cancelled exactly by training-mode BN mean subtraction.
    # TODO(synk): BatchNorm running_mean/running_var state updates are not produced (forward only).
    return {"w1": w1, "g1": gamma, "beta1": beta, "w2": w2, "g2": gamma, "beta2": beta}


if __name__ == "__main__":
    key = jax.random.PRNGKey(0)
    k_x, k_p = jax.random.split(key)

    # Small input consistent with the module: batch=2, in_channels=3, spatial=16x16.
    x = jax.random.normal(k_x, (2, 3, 16, 16), jnp.float32)
    params = make_params(k_p)

    out = jax.block_until_ready(jax.jit(basic_model_forward)(x, params))
    assert out.shape == (2, 64, 4, 4), out.shape
    assert bool(jnp.all(jnp.isfinite(out)))
    print("KERNEL_OK")
</pallas_src>

<mosaic_0001>
module attributes {stable_mosaic.version = 11 : i64} {
  func.func @_fused_kernel(%arg0: memref<128x256xbf16, #tpu.memory_space<vmem>>, %arg1: memref<256x64xbf16, #tpu.memory_space<vmem>>, %arg2: memref<1x64xf32, #tpu.memory_space<vmem>>, %arg3: memref<1x64xf32, #tpu.memory_space<vmem>>, %arg4: memref<3584x64xbf16, #tpu.memory_space<vmem>>, %arg5: memref<1x64xf32, #tpu.memory_space<vmem>>, %arg6: memref<1x64xf32, #tpu.memory_space<vmem>>, %arg7: memref<32x64xf32, #tpu.memory_space<vmem>>, %arg8: memref<2x14x896xbf16, #tpu.memory_space<vmem>>, %arg9: memref<32x3584xbf16, #tpu.memory_space<vmem>>) attributes {dimension_semantics = [], scalar_prefetch = 0 : i64, scratch_operands = 2 : i64, tpu.core_type = #tpu.core_type<tc>} {
    %c0 = arith.constant 0 : index
    %c0_0 = arith.constant 0 : index
    %0 = vector.load %arg0[%c0, %c0_0] : memref<128x256xbf16, #tpu.memory_space<vmem>>, vector<128x256xbf16>
    %c0_1 = arith.constant 0 : index
    %c0_2 = arith.constant 0 : index
    %1 = vector.load %arg1[%c0_1, %c0_2] : memref<256x64xbf16, #tpu.memory_space<vmem>>, vector<256x64xbf16>
    %cst = arith.constant dense<0.000000e+00> : vector<128x64xf32>
    %2 = tpu.matmul %0, %1, %cst {dimension_numbers = #tpu.dot_dimension_numbers<[1], [0], [0], [1], [0, 0, 1, 1], [], []>} : vector<128x256xbf16>, vector<256x64xbf16>, vector<128x64xf32> -> vector<128x64xf32>
    %cst_3 = arith.constant dense<0.000000e+00> : vector<64xf32>
    %3 = vector.multi_reduction <add>, %2, %cst_3 [0] : vector<128x64xf32> to vector<64xf32>
    %4 = vector.shape_cast %3 : vector<64xf32> to vector<1x64xf32>
    %cst_4 = arith.constant 7.812500e-03 : f32
    %5 = vector.broadcast %cst_4 : f32 to vector<1x64xf32>
    %6 = arith.mulf %4, %5 : vector<1x64xf32>
    %7 = vector.broadcast %6 : vector<1x64xf32> to vector<128x64xf32>
    %8 = arith.subf %2, %7 : vector<128x64xf32>
    %9 = arith.mulf %8, %8 : vector<128x64xf32>
    %cst_5 = arith.constant dense<0.000000e+00> : vector<64xf32>
    %10 = vector.multi_reduction <add>, %9, %cst_5 [0] : vector<128x64xf32> to vector<64xf32>
    %11 = vector.shape_cast %10 : vector<64xf32> to vector<1x64xf32>
    %cst_6 = arith.constant 7.812500e-03 : f32
    %12 = vector.broadcast %cst_6 : f32 to vector<1x64xf32>
    %13 = arith.mulf %11, %12 : vector<1x64xf32>
    %cst_7 = arith.constant 9.99999974E-6 : f32
    %14 = vector.broadcast %cst_7 : f32 to vector<1x64xf32>
    %15 = arith.addf %13, %14 : vector<1x64xf32>
    %16 = math.rsqrt %15 : vector<1x64xf32>
    %17 = vector.broadcast %16 : vector<1x64xf32> to vector<128x64xf32>
    %18 = arith.mulf %8, %17 : vector<128x64xf32>
    %c0_8 = arith.constant 0 : index
    %c0_9 = arith.constant 0 : index
    %19 = vector.load %arg2[%c0_8, %c0_9] : memref<1x64xf32, #tpu.memory_space<vmem>>, vector<1x64xf32>
    %20 = vector.broadcast %19 : vector<1x64xf32> to vector<128x64xf32>
    %21 = arith.mulf %18, %20 : vector<128x64xf32>
    %c0_10 = arith.constant 0 : index
    %c0_11 = arith.constant 0 : index
    %22 = vector.load %arg3[%c0_10, %c0_11] : memref<1x64xf32, #tpu.memory_space<vmem>>, vector<1x64xf32>
    %23 = vector.broadcast %22 : vector<1x64xf32> to vector<128x64xf32>
    %24 = arith.addf %21, %23 : vector<128x64xf32>
    %25 = arith.truncf %24 : vector<128x64xf32> to vector<128x64xbf16>
    %cst_12 = arith.constant 0.000000e+00 : bf16
    %26 = vector.broadcast %cst_12 : bf16 to vector<2x3x896xbf16>
    %c0_13 = arith.constant 0 : index
    %c0_14 = arith.constant 0 : index
    %c0_15 = arith.constant 0 : index
    %27 = vector.load %arg8[%c0_13, %c0_14, %c0_15] : memref<2x14x896xbf16, #tpu.memory_space<vmem>>, vector<2x3x896xbf16>
    tpu.vector_store %arg8[%c0_13, %c0_14, %c0_15], %26 {strides = array<i32>} : memref<2x14x896xbf16, #tpu.memory_space<vmem>>, vector<2x3x896xbf16>,
    %c0_16 = arith.constant 0 : index
    %c11 = arith.constant 11 : index
    %c0_17 = arith.constant 0 : index
    %28 = vector.load %arg8[%c0_16, %c11, %c0_17] : memref<2x14x896xbf16, #tpu.memory_space<vmem>>, vector<2x3x896xbf16>
    tpu.vector_store %arg8[%c0_16, %c11, %c0_17], %26 {strides = array<i32>} : memref<2x14x896xbf16, #tpu.memory_space<vmem>>, vector<2x3x896xbf16>,
    %cst_18 = arith.constant 0.000000e+00 : bf16
    %29 = vector.broadcast %cst_18 : bf16 to vector<2x8x192xbf16>
    %c0_19 = arith.constant 0 : index
    %c3 = arith.constant 3 : index
    %c0_20 = arith.constant 0 : index
    %30 = vector.load %arg8[%c0_19, %c3, %c0_20] : memref<2x14x896xbf16, #tpu.memory_space<vmem>>, vector<2x8x192xbf16>
    tpu.vector_store %arg8[%c0_19, %c3, %c0_20], %29 {strides = array<i32>} : memref<2x14x896xbf16, #tpu.memory_space<vmem>>, vector<2x8x192xbf16>,
    %c0_21 = arith.constant 0 : index
    %c3_22 = arith.constant 3 : index
    %c704 = arith.constant 704 : index
    %31 = vector.load %arg8[%c0_21, %c3_22, %c704] : memref<2x14x896xbf16, #tpu.memory_space<vmem>>, vector<2x8x192xbf16>
    tpu.vector_store %arg8[%c0_21, %c3_22, %c704], %29 {strides = array<i32>} : memref<2x14x896xbf16, #tpu.memory_space<vmem>>, vector<2x8x192xbf16>,
    %32 = vector.extract_strided_slice %25 {offsets = [0, 0], sizes = [8, 64], strides = [1, 1]} : vector<128x64xbf16> to vector<8x64xbf16>
    %c0_23 = arith.constant 0 : index
    %c3_24 = arith.constant 3 : index
    %c192 = arith.constant 192 : index
    %33 = vector.load %arg8[%c0_23, %c3_24, %c192] : memref<2x14x896xbf16, #tpu.memory_space<vmem>>, vector<1x8x64xbf16>
    %34 = vector.shape_cast %33 : vector<1x8x64xbf16> to vector<8x64xbf16>
    %35 = vector.shape_cast %32 : vector<8x64xbf16> to vector<1x8x64xbf16>
    tpu.vector_store %arg8[%c0_23, %c3_24, %c192], %35 {strides = array<i32>} : memref<2x14x896xbf16, #tpu.memory_space<vmem>>, vector<1x8x64xbf16>,
    %36 = vector.extract_strided_slice %25 {offsets = [8, 0], sizes = [8, 64], strides = [1, 1]} : vector<128x64xbf16> to vector<8x64xbf16>
    %c0_25 = arith.constant 0 : index
    %c3_26 = arith.constant 3 : index
    %c256 = arith.constant 256 : index
    %37 = vector.load %arg8[%c0_25, %c3_26, %c256] : memref<2x14x896xbf16, #tpu.memory_space<vmem>>, vector<1x8x64xbf16>
    %38 = vector.shape_cast %37 : vector<1x8x64xbf16> to vector<8x64xbf16>
    %39 = vector.shape_cast %36 : vector<8x64xbf16> to vector<1x8x64xbf16>
    tpu.vector_store %arg8[%c0_25, %c3_26, %c256], %39 {strides = array<i32>} : memref<2x14x896xbf16, #tpu.memory_space<vmem>>, vector<1x8x64xbf16>,
    %40 = vector.extract_strided_slice %25 {offsets = [16, 0], sizes = [8, 64], strides = [1, 1]} : vector<128x64xbf16> to vector<8x64xbf16>
    %c0_27 = arith.constant 0 : index
    %c3_28 = arith.constant 3 : index
    %c320 = arith.constant 320 : index
    %41 = vector.load %arg8[%c0_27, %c3_28, %c320] : memref<2x14x896xbf16, #tpu.memory_space<vmem>>, vector<1x8x64xbf16>
    %42 = vector.shape_cast %41 : vector<1x8x64xbf16> to vector<8x64xbf16>
    %43 = vector.shape_cast %40 : vector<8x64xbf16> to vector<1x8x64xbf16>
    tpu.vector_store %arg8[%c0_27, %c3_28, %c320], %43 {strides = array<i32>} : memref<2x14x896xbf16, #tpu.memory_space<vmem>>, vector<1x8x64xbf16>,
    %44 = vector.extract_strided_slice %25 {offsets = [24, 0], sizes = [8, 64], strides = [1, 1]} : vector<128x64xbf16> to vector<8x64xbf16>
    %c0_29 = arith.constant 0 : index
    %c3_30 = arith.constant 3 : index
    %c384 = arith.constant 384 : index
    %45 = vector.load %arg8[%c0_29, %c3_30, %c384] : memref<2x14x896xbf16, #tpu.memory_space<vmem>>, vector<1x8x64xbf16>
    %46 = vector.shape_cast %45 : vector<1x8x64xbf16> to vector<8x64xbf16>
    %47 = vector.shape_cast %44 : vector<8x64xbf16> to vector<1x8x64xbf16>
    tpu.vector_store %arg8[%c0_29, %c3_30, %c384], %47 {strides = array<i32>} : memref<2x14x896xbf16, #tpu.memory_space<vmem>>, vector<1x8x64xbf16>,
    %48 = vector.extract_strided_slice %25 {offsets = [32, 0], sizes = [8, 64], strides = [1, 1]} : vector<128x64xbf16> to vector<8x64xbf16>
    %c0_31 = arith.constant 0 : index
    %c3_32 = arith.constant 3 : index
    %c448 = arith.constant 448 : index
    %49 = vector.load %arg8[%c0_31, %c3_32, %c448] : memref<2x14x896xbf16, #tpu.memory_space<vmem>>, vector<1x8x64xbf16>
    %50 = vector.shape_cast %49 : vector<1x8x64xbf16> to vector<8x64xbf16>
    %51 = vector.shape_cast %48 : vector<8x64xbf16> to vector<1x8x64xbf16>
    tpu.vector_store %arg8[%c0_31, %c3_32, %c448], %51 {strides = array<i32>} : memref<2x14x896xbf16, #tpu.memory_space<vmem>>, vector<1x8x64xbf16>,
    %52 = vector.extract_strided_slice %25 {offsets = [40, 0], sizes = [8, 64], strides = [1, 1]} : vector<128x64xbf16> to vector<8x64xbf16>
    %c0_33 = arith.constant 0 : index
    %c3_34 = arith.constant 3 : index
    %c512 = arith.constant 512 : index
    %53 = vector.load %arg8[%c0_33, %c3_34, %c512] : memref<2x14x896xbf16, #tpu.memory_space<vmem>>, vector<1x8x64xbf16>
    %54 = vector.shape_cast %53 : vector<1x8x64xbf16> to vector<8x64xbf16>
    %55 = vector.shape_cast %52 : vector<8x64xbf16> to vector<1x8x64xbf16>
    tpu.vector_store %arg8[%c0_33, %c3_34, %c512], %55 {strides = array<i32>} : memref<2x14x896xbf16, #tpu.memory_space<vmem>>, vector<1x8x64xbf16>,
    %56 = vector.extract_strided_slice %25 {offsets = [48, 0], sizes = [8, 64], strides = [1, 1]} : vector<128x64xbf16> to vector<8x64xbf16>
    %c0_35 = arith.constant 0 : index
    %c3_36 = arith.constant 3 : index
    %c576 = arith.constant 576 : index
    %57 = vector.load %arg8[%c0_35, %c3_36, %c576] : memref<2x14x896xbf16, #tpu.memory_space<vmem>>, vector<1x8x64xbf16>
    %58 = vector.shape_cast %57 : vector<1x8x64xbf16> to vector<8x64xbf16>
    %59 = vector.shape_cast %56 : vector<8x64xbf16> to vector<1x8x64xbf16>
    tpu.vector_store %arg8[%c0_35, %c3_36, %c576], %59 {strides = array<i32>} : memref<2x14x896xbf16, #tpu.memory_space<vmem>>, vector<1x8x64xbf16>,
    %60 = vector.extract_strided_slice %25 {offsets = [56, 0], sizes = [8, 64], strides = [1, 1]} : vector<128x64xbf16> to vector<8x64xbf16>
    %c0_37 = arith.constant 0 : index
    %c3_38 = arith.constant 3 : index
    %c640 = arith.constant 640 : index
    %61 = vector.load %arg8[%c0_37, %c3_38, %c640] : memref<2x14x896xbf16, #tpu.memory_space<vmem>>, vector<1x8x64xbf16>
    %62 = vector.shape_cast %61 : vector<1x8x64xbf16> to vector<8x64xbf16>
    %63 = vector.shape_cast %60 : vector<8x64xbf16> to vector<1x8x64xbf16>
    tpu.vector_store %arg8[%c0_37, %c3_38, %c640], %63 {strides = array<i32>} : memref<2x14x896xbf16, #tpu.memory_space<vmem>>, vector<1x8x64xbf16>,
    %64 = vector.extract_strided_slice %25 {offsets = [64, 0], sizes = [8, 64], strides = [1, 1]} : vector<128x64xbf16> to vector<8x64xbf16>
    %c1 = arith.constant 1 : index
    %c3_39 = arith.constant 3 : index
    %c192_40 = arith.constant 192 : index
    %65 = vector.load %arg8[%c1, %c3_39, %c192_40] : memref<2x14x896xbf16, #tpu.memory_space<vmem>>, vector<1x8x64xbf16>
    %66 = vector.shape_cast %65 : vector<1x8x64xbf16> to vector<8x64xbf16>
    %67 = vector.shape_cast %64 : vector<8x64xbf16> to vector<1x8x64xbf16>
    tpu.vector_store %arg8[%c1, %c3_39, %c192_40], %67 {strides = array<i32>} : memref<2x14x896xbf16, #tpu.memory_space<vmem>>, vector<1x8x64xbf16>,
    %68 = vector.extract_strided_slice %25 {offsets = [72, 0], sizes = [8, 64], strides = [1, 1]} : vector<128x64xbf16> to vector<8x64xbf16>
    %c1_41 = arith.constant 1 : index
    %c3_42 = arith.constant 3 : index
    %c256_43 = arith.constant 256 : index
    %69 = vector.load %arg8[%c1_41, %c3_42, %c256_43] : memref<2x14x896xbf16, #tpu.memory_space<vmem>>, vector<1x8x64xbf16>
    %70 = vector.shape_cast %69 : vector<1x8x64xbf16> to vector<8x64xbf16>
    %71 = vector.shape_cast %68 : vector<8x64xbf16> to vector<1x8x64xbf16>
    tpu.vector_store %arg8[%c1_41, %c3_42, %c256_43], %71 {strides = array<i32>} : memref<2x14x896xbf16, #tpu.memory_space<vmem>>, vector<1x8x64xbf16>,
    %72 = vector.extract_strided_slice %25 {offsets = [80, 0], sizes = [8, 64], strides = [1, 1]} : vector<128x64xbf16> to vector<8x64xbf16>
    %c1_44 = arith.constant 1 : index
    %c3_45 = arith.constant 3 : index
    %c320_46 = arith.constant 320 : index
    %73 = vector.load %arg8[%c1_44, %c3_45, %c320_46] : memref<2x14x896xbf16, #tpu.memory_space<vmem>>, vector<1x8x64xbf16>
    %74 = vector.shape_cast %73 : vector<1x8x64xbf16> to vector<8x64xbf16>
    %75 = vector.shape_cast %72 : vector<8x64xbf16> to vector<1x8x64xbf16>
    tpu.vector_store %arg8[%c1_44, %c3_45, %c320_46], %75 {strides = array<i32>} : memref<2x14x896xbf16, #tpu.memory_space<vmem>>, vector<1x8x64xbf16>,
    %76 = vector.extract_strided_slice %25 {offsets = [88, 0], sizes = [8, 64], strides = [1, 1]} : vector<128x64xbf16> to vector<8x64xbf16>
    %c1_47 = arith.constant 1 : index
    %c3_48 = arith.constant 3 : index
    %c384_49 = arith.constant 384 : index
    %77 = vector.load %arg8[%c1_47, %c3_48, %c384_49] : memref<2x14x896xbf16, #tpu.memory_space<vmem>>, vector<1x8x64xbf16>
    %78 = vector.shape_cast %77 : vector<1x8x64xbf16> to vector<8x64xbf16>
    %79 = vector.shape_cast %76 : vector<8x64xbf16> to vector<1x8x64xbf16>
    tpu.vector_store %arg8[%c1_47, %c3_48, %c384_49], %79 {strides = array<i32>} : memref<2x14x896xbf16, #tpu.memory_space<vmem>>, vector<1x8x64xbf16>,
    %80 = vector.extract_strided_slice %25 {offsets = [96, 0], sizes = [8, 64], strides = [1, 1]} : vector<128x64xbf16> to vector<8x64xbf16>
    %c1_50 = arith.constant 1 : index
    %c3_51 = arith.constant 3 : index
    %c448_52 = arith.constant 448 : index
    %81 = vector.load %arg8[%c1_50, %c3_51, %c448_52] : memref<2x14x896xbf16, #tpu.memory_space<vmem>>, vector<1x8x64xbf16>
    %82 = vector.shape_cast %81 : vector<1x8x64xbf16> to vector<8x64xbf16>
    %83 = vector.shape_cast %80 : vector<8x64xbf16> to vector<1x8x64xbf16>
    tpu.vector_store %arg8[%c1_50, %c3_51, %c448_52], %83 {strides = array<i32>} : memref<2x14x896xbf16, #tpu.memory_space<vmem>>, vector<1x8x64xbf16>,
    %84 = vector.extract_strided_slice %25 {offsets = [104, 0], sizes = [8, 64], strides = [1, 1]} : vector<128x64xbf16> to vector<8x64xbf16>
    %c1_53 = arith.constant 1 : index
    %c3_54 = arith.constant 3 : index
    %c512_55 = arith.constant 512 : index
    %85 = vector.load %arg8[%c1_53, %c3_54, %c512_55] : memref<2x14x896xbf16, #tpu.memory_space<vmem>>, vector<1x8x64xbf16>
    %86 = vector.shape_cast %85 : vector<1x8x64xbf16> to vector<8x64xbf16>
    %87 = vector.shape_cast %84 : vector<8x64xbf16> to vector<1x8x64xbf16>
    tpu.vector_store %arg8[%c1_53, %c3_54, %c512_55], %87 {strides = array<i32>} : memref<2x14x896xbf16, #tpu.memory_space<vmem>>, vector<1x8x64xbf16>,
    %88 = vector.extract_strided_slice %25 {offsets = [112, 0], sizes = [8, 64], strides = [1, 1]} : vector<128x64xbf16> to vector<8x64xbf16>
    %c1_56 = arith.constant 1 : index
    %c3_57 = arith.constant 3 : index
    %c576_58 = arith.constant 576 : index
    %89 = vector.load %arg8[%c1_56, %c3_57, %c576_58] : memref<2x14x896xbf16, #tpu.memory_space<vmem>>, vector<1x8x64xbf16>
    %90 = vector.shape_cast %89 : vector<1x8x64xbf16> to vector<8x64xbf16>
    %91 = vector.shape_cast %88 : vector<8x64xbf16> to vector<1x8x64xbf16>
    tpu.vector_store %arg8[%c1_56, %c3_57, %c576_58], %91 {strides = array<i32>} : memref<2x14x896xbf16, #tpu.memory_space<vmem>>, vector<1x8x64xbf16>,
    %92 = vector.extract_strided_slice %25 {offsets = [120, 0], sizes = [8, 64], strides = [1, 1]} : vector<128x64xbf16> to vector<8x64xbf16>
    %c1_59 = arith.constant 1 : index
    %c3_60 = arith.constant 3 : index
    %c640_61 = arith.constant 640 : index
    %93 = vector.load %arg8[%c1_59, %c3_60, %c640_61] : memref<2x14x896xbf16, #tpu.memory_space<vmem>>, vector<1x8x64xbf16>
    %94 = vector.shape_cast %93 : vector<1x8x64xbf16> to vector<8x64xbf16>
    %95 = vector.shape_cast %92 : vector<8x64xbf16> to vector<1x8x64xbf16>
    tpu.vector_store %arg8[%c1_59, %c3_60, %c640_61], %95 {strides = array<i32>} : memref<2x14x896xbf16, #tpu.memory_space<vmem>>, vector<1x8x64xbf16>,
    %c0_62 = arith.constant 0 : index
    %c0_63 = arith.constant 0 : index
    %c0_64 = arith.constant 0 : index
    %96 = vector.load %arg8[%c0_62, %c0_63, %c0_64] : memref<2x14x896xbf16, #tpu.memory_space<vmem>>, vector<2x1x896xbf16>
    %97 = vector.shape_cast %96 : vector<2x1x896xbf16> to vector<2x896xbf16>
    %98 = vector.extract_strided_slice %97 {offsets = [0, 0], sizes = [2, 448], strides = [1, 1]} : vector<2x896xbf16> to vector<2x448xbf16>
    %c0_65 = arith.constant 0 : index
    %c0_66 = arith.constant 0 : index
    %99 = vector.load %arg9[%c0_65, %c0_66] : memref<32x3584xbf16, #tpu.memory_space<vmem>>, vector<2x448xbf16>
    tpu.vector_store %arg9[%c0_65, %c0_66], %98 {strides = array<i32>} : memref<32x3584xbf16, #tpu.memory_space<vmem>>, vector<2x448xbf16>,
    %100 = vector.extract_strided_slice %97 {offsets = [0, 128], sizes = [2, 448], strides = [1, 1]} : vector<2x896xbf16> to vector<2x448xbf16>
    %c2 = arith.constant 2 : index
    %c0_67 = arith.constant 0 : index
    %101 = vector.load %arg9[%c2, %c0_67] : memref<32x3584xbf16, #tpu.memory_space<vmem>>, vector<2x448xbf16>
    tpu.vector_store %arg9[%c2, %c0_67], %100 {strides = array<i32>} : memref<32x3584xbf16, #tpu.memory_space<vmem>>, vector<2x448xbf16>,
    %102 = vector.extract_strided_slice %97 {offsets = [0, 256], sizes = [2, 448], strides = [1, 1]} : vector<2x896xbf16> to vector<2x448xbf16>
    %c4 = arith.constant 4 : index
    %c0_68 = arith.constant 0 : index
    %103 = vector.load %arg9[%c4, %c0_68] : memref<32x3584xbf16, #tpu.memory_space<vmem>>, vector<2x448xbf16>
    tpu.vector_store %arg9[%c4, %c0_68], %102 {strides = array<i32>} : memref<32x3584xbf16, #tpu.memory_space<vmem>>, vector<2x448xbf16>,
    %104 = vector.extract_strided_slice %97 {offsets = [0, 384], sizes = [2, 448], strides = [1, 1]} : vector<2x896xbf16> to vector<2x448xbf16>
    %c6 = arith.constant 6 : index
    %c0_69 = arith.constant 0 : index
    %105 = vector.load %arg9[%c6, %c0_69] : memref<32x3584xbf16, #tpu.memory_space<vmem>>, vector<2x448xbf16>
    tpu.vector_store %arg9[%c6, %c0_69], %104 {strides = array<i32>} : memref<32x3584xbf16, #tpu.memory_space<vmem>>, vector<2x448xbf16>,
    %c0_70 = arith.constant 0 : index
    %c1_71 = arith.constant 1 : index
    %c0_72 = arith.constant 0 : index
    %106 = vector.load %arg8[%c0_70, %c1_71, %c0_72] : memref<2x14x896xbf16, #tpu.memory_space<vmem>>, vector<2x1x896xbf16>
    %107 = vector.shape_cast %106 : vector<2x1x896xbf16> to vector<2x896xbf16>
    %108 = vector.extract_strided_slice %107 {offsets = [0, 0], sizes = [2, 448], strides = [1, 1]} : vector<2x896xbf16> to vector<2x448xbf16>
    %c0_73 = arith.constant 0 : index
    %c512_74 = arith.constant 512 : index
    %109 = vector.load %arg9[%c0_73, %c512_74] : memref<32x3584xbf16, #tpu.memory_space<vmem>>, vector<2x448xbf16>
    tpu.vector_store %arg9[%c0_73, %c512_74], %108 {strides = array<i32>} : memref<32x3584xbf16, #tpu.memory_space<vmem>>, vector<2x448xbf16>,
    %110 = vector.extract_strided_slice %107 {offsets = [0, 128], sizes = [2, 448], strides = [1, 1]} : vector<2x896xbf16> to vector<2x448xbf16>
    %c2_75 = arith.constant 2 : index
    %c512_76 = arith.constant 512 : index
    %111 = vector.load %arg9[%c2_75, %c512_76] : memref<32x3584xbf16, #tpu.memory_space<vmem>>, vector<2x448xbf16>
    tpu.vector_store %arg9[%c2_75, %c512_76], %110 {strides = array<i32>} : memref<32x3584xbf16, #tpu.memory_space<vmem>>, vector<2x448xbf16>,
    %112 = vector.extract_strided_slice %107 {offsets = [0, 256], sizes = [2, 448], strides = [1, 1]} : vector<2x896xbf16> to vector<2x448xbf16>
    %c4_77 = arith.constant 4 : index
    %c512_78 = arith.constant 512 : index
    %113 = vector.load %arg9[%c4_77, %c512_78] : memref<32x3584xbf16, #tpu.memory_space<vmem>>, vector<2x448xbf16>
    tpu.vector_store %arg9[%c4_77, %c512_78], %112 {strides = array<i32>} : memref<32x3584xbf16, #tpu.memory_space<vmem>>, vector<2x448xbf16>,
    %114 = vector.extract_strided_slice %107 {offsets = [0, 384], sizes = [2, 448], strides = [1, 1]} : vector<2x896xbf16> to vector<2x448xbf16>
    %c6_79 = arith.constant 6 : index
    %c512_80 = arith.constant 512 : index
    %115 = vector.load %arg9[%c6_79, %c512_80] : memref<32x3584xbf16, #tpu.memory_space<vmem>>, vector<2x448xbf16>
    tpu.vector_store %arg9[%c6_79, %c512_80], %114 {strides = array<i32>} : memref<32x3584xbf16, #tpu.memory_space<vmem>>, vector<2x448xbf16>,
    %c0_81 = arith.constant 0 : index
    %c2_82 = arith.constant 2 : index
    %c0_83 = arith.constant 0 : index
    %116 = vector.load %arg8[%c0_81, %c2_82, %c0_83] : memref<2x14x896xbf16, #tpu.memory_space<vmem>>, vector<2x1x896xbf16>
    %117 = vector.shape_cast %116 : vector<2x1x896xbf16> to vector<2x896xbf16>
    %118 = vector.extract_strided_slice %117 {offsets = [0, 0], sizes = [2, 448], strides = [1, 1]} : vector<2x896xbf16> to vector<2x448xbf16>
    %c0_84 = arith.constant 0 : index
    %c1024 = arith.constant 1024 : index
    %119 = vector.load %arg9[%c0_84, %c1024] : memref<32x3584xbf16, #tpu.memory_space<vmem>>, vector<2x448xbf16>
    tpu.vector_store %arg9[%c0_84, %c1024], %118 {strides = array<i32>} : memref<32x3584xbf16, #tpu.memory_space<vmem>>, vector<2x448xbf16>,
    %120 = vector.extract_strided_slice %117 {offsets = [0, 128], sizes = [2, 448], strides = [1, 1]} : vector<2x896xbf16> to vector<2x448xbf16>
    %c2_85 = arith.constant 2 : index
    %c1024_86 = arith.constant 1024 : index
    %121 = vector.load %arg9[%c2_85, %c1024_86] : memref<32x3584xbf16, #tpu.memory_space<vmem>>, vector<2x448xbf16>
    tpu.vector_store %arg9[%c2_85, %c1024_86], %120 {strides = array<i32>} : memref<32x3584xbf16, #tpu.memory_space<vmem>>, vector<2x448xbf16>,
    %122 = vector.extract_strided_slice %117 {offsets = [0, 256], sizes = [2, 448], strides = [1, 1]} : vector<2x896xbf16> to vector<2x448xbf16>
    %c4_87 = arith.constant 4 : index
    %c1024_88 = arith.constant 1024 : index
    %123 = vector.load %arg9[%c4_87, %c1024_88] : memref<32x3584xbf16, #tpu.memory_space<vmem>>, vector<2x448xbf16>
    tpu.vector_store %arg9[%c4_87, %c1024_88], %122 {strides = array<i32>} : memref<32x3584xbf16, #tpu.memory_space<vmem>>, vector<2x448xbf16>,
    %124 = vector.extract_strided_slice %117 {offsets = [0, 384], sizes = [2, 448], strides = [1, 1]} : vector<2x896xbf16> to vector<2x448xbf16>
    %c6_89 = arith.constant 6 : index
    %c1024_90 = arith.constant 1024 : index
    %125 = vector.load %arg9[%c6_89, %c1024_90] : memref<32x3584xbf16, #tpu.memory_space<vmem>>, vector<2x448xbf16>
    tpu.vector_store %arg9[%c6_89, %c1024_90], %124 {strides = array<i32>} : memref<32x3584xbf16, #tpu.memory_space<vmem>>, vector<2x448xbf16>,
    %c0_91 = arith.constant 0 : index
    %c3_92 = arith.constant 3 : index
    %c0_93 = arith.constant 0 : index
    %126 = vector.load %arg8[%c0_91, %c3_92, %c0_93] : memref<2x14x896xbf16, #tpu.memory_space<vmem>>, vector<2x1x896xbf16>
    %127 = vector.shape_cast %126 : vector<2x1x896xbf16> to vector<2x896xbf16>
    %128 = vector.extract_strided_slice %127 {offsets = [0, 0], sizes = [2, 448], strides = [1, 1]} : vector<2x896xbf16> to vector<2x448xbf16>
    %c0_94 = arith.constant 0 : index
    %c1536 = arith.constant 1536 : index
    %129 = vector.load %arg9[%c0_94, %c1536] : memref<32x3584xbf16, #tpu.memory_space<vmem>>, vector<2x448xbf16>
    tpu.vector_store %arg9[%c0_94, %c1536], %128 {strides = array<i32>} : memref<32x3584xbf16, #tpu.memory_space<vmem>>, vector<2x448xbf16>,
    %130 = vector.extract_strided_slice %127 {offsets = [0, 128], sizes = [2, 448], strides = [1, 1]} : vector<2x896xbf16> to vector<2x448xbf16>
    %c2_95 = arith.constant 2 : index
    %c1536_96 = arith.constant 1536 : index
    %131 = vector.load %arg9[%c2_95, %c1536_96] : memref<32x3584xbf16, #tpu.memory_space<vmem>>, vector<2x448xbf16>
    tpu.vector_store %arg9[%c2_95, %c1536_96], %130 {strides = array<i32>} : memref<32x3584xbf16, #tpu.memory_space<vmem>>, vector<2x448xbf16>,
    %132 = vector.extract_strided_slice %127 {offsets = [0, 256], sizes = [2, 448], strides = [1, 1]} : vector<2x896xbf16> to vector<2x448xbf16>
    %c4_97 = arith.constant 4 : index
    %c1536_98 = arith.constant 1536 : index
    %133 = vector.load %arg9[%c4_97, %c1536_98] : memref<32x3584xbf16, #tpu.memory_space<vmem>>, vector<2x448xbf16>
    tpu.vector_store %arg9[%c4_97, %c1536_98], %132 {strides = array<i32>} : memref<32x3584xbf16, #tpu.memory_space<vmem>>, vector<2x448xbf16>,
    %134 = vector.extract_strided_slice %127 {offsets = [0, 384], sizes = [2, 448], strides = [1, 1]} : vector<2x896xbf16> to vector<2x448xbf16>
    %c6_99 = arith.constant 6 : index
    %c1536_100 = arith.constant 1536 : index
    %135 = vector.load %arg9[%c6_99, %c1536_100] : memref<32x3584xbf16, #tpu.memory_space<vmem>>, vector<2x448xbf16>
    tpu.vector_store %arg9[%c6_99, %c1536_100], %134 {strides = array<i32>} : memref<32x3584xbf16, #tpu.memory_space<vmem>>, vector<2x448xbf16>,
    %c0_101 = arith.constant 0 : index
    %c4_102 = arith.constant 4 : index
    %c0_103 = arith.constant 0 : index
    %136 = vector.load %arg8[%c0_101, %c4_102, %c0_103] : memref<2x14x896xbf16, #tpu.memory_space<vmem>>, vector<2x1x896xbf16>
    %137 = vector.shape_cast %136 : vector<2x1x896xbf16> to vector<2x896xbf16>
    %138 = vector.extract_strided_slice %137 {offsets = [0, 0], sizes = [2, 448], strides = [1, 1]} : vector<2x896xbf16> to vector<2x448xbf16>
    %c0_104 = arith.constant 0 : index
    %c2048 = arith.constant 2048 : index
    %139 = vector.load %arg9[%c0_104, %c2048] : memref<32x3584xbf16, #tpu.memory_space<vmem>>, vector<2x448xbf16>
    tpu.vector_store %arg9[%c0_104, %c2048], %138 {strides = array<i32>} : memref<32x3584xbf16, #tpu.memory_space<vmem>>, vector<2x448xbf16>,
    %140 = vector.extract_strided_slice %137 {offsets = [0, 128], sizes = [2, 448], strides = [1, 1]} : vector<2x896xbf16> to vector<2x448xbf16>
    %c2_105 = arith.constant 2 : index
    %c2048_106 = arith.constant 2048 : index
    %141 = vector.load %arg9[%c2_105, %c2048_106] : memref<32x3584xbf16, #tpu.memory_space<vmem>>, vector<2x448xbf16>
    tpu.vector_store %arg9[%c2_105, %c2048_106], %140 {strides = array<i32>} : memref<32x3584xbf16, #tpu.memory_space<vmem>>, vector<2x448xbf16>,
    %142 = vector.extract_strided_slice %137 {offsets = [0, 256], sizes = [2, 448], strides = [1, 1]} : vector<2x896xbf16> to vector<2x448xbf16>
    %c4_107 = arith.constant 4 : index
    %c2048_108 = arith.constant 2048 : index
    %143 = vector.load %arg9[%c4_107, %c2048_108] : memref<32x3584xbf16, #tpu.memory_space<vmem>>, vector<2x448xbf16>
    tpu.vector_store %arg9[%c4_107, %c2048_108], %142 {strides = array<i32>} : memref<32x3584xbf16, #tpu.memory_space<vmem>>, vector<2x448xbf16>,
    %144 = vector.extract_strided_slice %137 {offsets = [0, 384], sizes = [2, 448], strides = [1, 1]} : vector<2x896xbf16> to vector<2x448xbf16>
    %c6_109 = arith.constant 6 : index
    %c2048_110 = arith.constant 2048 : index
    %145 = vector.load %arg9[%c6_109, %c2048_110] : memref<32x3584xbf16, #tpu.memory_space<vmem>>, vector<2x448xbf16>
    tpu.vector_store %arg9[%c6_109, %c2048_110], %144 {strides = array<i32>} : memref<32x3584xbf16, #tpu.memory_space<vmem>>, vector<2x448xbf16>,
    %c0_111 = arith.constant 0 : index
    %c5 = arith.constant 5 : index
    %c0_112 = arith.constant 0 : index
    %146 = vector.load %arg8[%c0_111, %c5, %c0_112] : memref<2x14x896xbf16, #tpu.memory_space<vmem>>, vector<2x1x896xbf16>
    %147 = vector.shape_cast %146 : vector<2x1x896xbf16> to vector<2x896xbf16>
    %148 = vector.extract_strided_slice %147 {offsets = [0, 0], sizes = [2, 448], strides = [1, 1]} : vector<2x896xbf16> to vector<2x448xbf16>
    %c0_113 = arith.constant 0 : index
    %c2560 = arith.constant 2560 : index
    %149 = vector.load %arg9[%c0_113, %c2560] : memref<32x3584xbf16, #tpu.memory_space<vmem>>, vector<2x448xbf16>
    tpu.vector_store %arg9[%c0_113, %c2560], %148 {strides = array<i32>} : memref<32x3584xbf16, #tpu.memory_space<vmem>>, vector<2x448xbf16>,
    %150 = vector.extract_strided_slice %147 {offsets = [0, 128], sizes = [2, 448], strides = [1, 1]} : vector<2x896xbf16> to vector<2x448xbf16>
    %c2_114 = arith.constant 2 : index
    %c2560_115 = arith.constant 2560 : index
    %151 = vector.load %arg9[%c2_114, %c2560_115] : memref<32x3584xbf16, #tpu.memory_space<vmem>>, vector<2x448xbf16>
    tpu.vector_store %arg9[%c2_114, %c2560_115], %150 {strides = array<i32>} : memref<32x3584xbf16, #tpu.memory_space<vmem>>, vector<2x448xbf16>,
    %152 = vector.extract_strided_slice %147 {offsets = [0, 256], sizes = [2, 448], strides = [1, 1]} : vector<2x896xbf16> to vector<2x448xbf16>
    %c4_116 = arith.constant 4 : index
    %c2560_117 = arith.constant 2560 : index
    %153 = vector.load %arg9[%c4_116, %c2560_117] : memref<32x3584xbf16, #tpu.memory_space<vmem>>, vector<2x448xbf16>
    tpu.vector_store %arg9[%c4_116, %c2560_117], %152 {strides = array<i32>} : memref<32x3584xbf16, #tpu.memory_space<vmem>>, vector<2x448xbf16>,
    %154 = vector.extract_strided_slice %147 {offsets = [0, 384], sizes = [2, 448], strides = [1, 1]} : vector<2x896xbf16> to vector<2x448xbf16>
    %c6_118 = arith.constant 6 : index
    %c2560_119 = arith.constant 2560 : index
    %155 = vector.load %arg9[%c6_118, %c2560_119] : memref<32x3584xbf16, #tpu.memory_space<vmem>>, vector<2x448xbf16>
    tpu.vector_store %arg9[%c6_118, %c2560_119], %154 {strides = array<i32>} : memref<32x3584xbf16, #tpu.memory_space<vmem>>, vector<2x448xbf16>,
    %c0_120 = arith.constant 0 : index
    %c6_121 = arith.constant 6 : index
    %c0_122 = arith.constant 0 : index
    %156 = vector.load %arg8[%c0_120, %c6_121, %c0_122] : memref<2x14x896xbf16, #tpu.memory_space<vmem>>, vector<2x1x896xbf16>
    %157 = vector.shape_cast %156 : vector<2x1x896xbf16> to vector<2x896xbf16>
    %158 = vector.extract_strided_slice %157 {offsets = [0, 0], sizes = [2, 448], strides = [1, 1]} : vector<2x896xbf16> to vector<2x448xbf16>
    %c0_123 = arith.constant 0 : index
    %c3072 = arith.constant 3072 : index
    %159 = vector.load %arg9[%c0_123, %c3072] : memref<32x3584xbf16, #tpu.memory_space<vmem>>, vector<2x448xbf16>
    tpu.vector_store %arg9[%c0_123, %c3072], %158 {strides = array<i32>} : memref<32x3584xbf16, #tpu.memory_space<vmem>>, vector<2x448xbf16>,
    %160 = vector.extract_strided_slice %157 {offsets = [0, 128], sizes = [2, 448], strides = [1, 1]} : vector<2x896xbf16> to vector<2x448xbf16>
    %c2_124 = arith.constant 2 : index
    %c3072_125 = arith.constant 3072 : index
    %161 = vector.load %arg9[%c2_124, %c3072_125] : memref<32x3584xbf16, #tpu.memory_space<vmem>>, vector<2x448xbf16>
    tpu.vector_store %arg9[%c2_124, %c3072_125], %160 {strides = array<i32>} : memref<32x3584xbf16, #tpu.memory_space<vmem>>, vector<2x448xbf16>,
    %162 = vector.extract_strided_slice %157 {offsets = [0, 256], sizes = [2, 448], strides = [1, 1]} : vector<2x896xbf16> to vector<2x448xbf16>
    %c4_126 = arith.constant 4 : index
    %c3072_127 = arith.constant 3072 : index
    %163 = vector.load %arg9[%c4_126, %c3072_127] : memref<32x3584xbf16, #tpu.memory_space<vmem>>, vector<2x448xbf16>
    tpu.vector_store %arg9[%c4_126, %c3072_127], %162 {strides = array<i32>} : memref<32x3584xbf16, #tpu.memory_space<vmem>>, vector<2x448xbf16>,
    %164 = vector.extract_strided_slice %157 {offsets = [0, 384], sizes = [2, 448], strides = [1, 1]} : vector<2x896xbf16> to vector<2x448xbf16>
    %c6_128 = arith.constant 6 : index
    %c3072_129 = arith.constant 3072 : index
    %165 = vector.load %arg9[%c6_128, %c3072_129] : memref<32x3584xbf16, #tpu.memory_space<vmem>>, vector<2x448xbf16>
    tpu.vector_store %arg9[%c6_128, %c3072_129], %164 {strides = array<i32>} : memref<32x3584xbf16, #tpu.memory_space<vmem>>, vector<2x448xbf16>,
    %c0_130 = arith.constant 0 : index
    %c2_131 = arith.constant 2 : index
    %c0_132 = arith.constant 0 : index
    %166 = vector.load %arg8[%c0_130, %c2_131, %c0_132] : memref<2x14x896xbf16, #tpu.memory_space<vmem>>, vector<2x1x896xbf16>
    %167 = vector.shape_cast %166 : vector<2x1x896xbf16> to vector<2x896xbf16>
    %168 = vector.extract_strided_slice %167 {offsets = [0, 0], sizes = [2, 448], strides = [1, 1]} : vector<2x896xbf16> to vector<2x448xbf16>
    %c8 = arith.constant 8 : index
    %c0_133 = arith.constant 0 : index
    %169 = vector.load %arg9[%c8, %c0_133] : memref<32x3584xbf16, #tpu.memory_space<vmem>>, vector<2x448xbf16>
    tpu.vector_store %arg9[%c8, %c0_133], %168 {strides = array<i32>} : memref<32x3584xbf16, #tpu.memory_space<vmem>>, vector<2x448xbf16>,
    %170 = vector.extract_strided_slice %167 {offsets = [0, 128], sizes = [2, 448], strides = [1, 1]} : vector<2x896xbf16> to vector<2x448xbf16>
    %c10 = arith.constant 10 : index
    %c0_134 = arith.constant 0 : index
    %171 = vector.load %arg9[%c10, %c0_134] : memref<32x3584xbf16, #tpu.memory_space<vmem>>, vector<2x448xbf16>
    tpu.vector_store %arg9[%c10, %c0_134], %170 {strides = array<i32>} : memref<32x3584xbf16, #tpu.memory_space<vmem>>, vector<2x448xbf16>,
    %172 = vector.extract_strided_slice %167 {offsets = [0, 256], sizes = [2, 448], strides = [1, 1]} : vector<2x896xbf16> to vector<2x448xbf16>
    %c12 = arith.constant 12 : index
    %c0_135 = arith.constant 0 : index
    %173 = vector.load %arg9[%c12, %c0_135] : memref<32x3584xbf16, #tpu.memory_space<vmem>>, vector<2x448xbf16>
    tpu.vector_store %arg9[%c12, %c0_135], %172 {strides = array<i32>} : memref<32x3584xbf16, #tpu.memory_space<vmem>>, vector<2x448xbf16>,
    %174 = vector.extract_strided_slice %167 {offsets = [0, 384], sizes = [2, 448], strides = [1, 1]} : vector<2x896xbf16> to vector<2x448xbf16>
    %c14 = arith.constant 14 : index
    %c0_136 = arith.constant 0 : index
    %175 = vector.load %arg9[%c14, %c0_136] : memref<32x3584xbf16, #tpu.memory_space<vmem>>, vector<2x448xbf16>
    tpu.vector_store %arg9[%c14, %c0_136], %174 {strides = array<i32>} : memref<32x3584xbf16, #tpu.memory_space<vmem>>, vector<2x448xbf16>,
    %c0_137 = arith.constant 0 : index
    %c3_138 = arith.constant 3 : index
    %c0_139 = arith.constant 0 : index
    %176 = vector.load %arg8[%c0_137, %c3_138, %c0_139] : memref<2x14x896xbf16, #tpu.memory_space<vmem>>, vector<2x1x896xbf16>
    %177 = vector.shape_cast %176 : vector<2x1x896xbf16> to vector<2x896xbf16>
    %178 = vector.extract_strided_slice %177 {offsets = [0, 0], sizes = [2, 448], strides = [1, 1]} : vector<2x896xbf16> to vector<2x448xbf16>
    %c8_140 = arith.constant 8 : index
    %c512_141 = arith.constant 512 : index
    %179 = vector.load %arg9[%c8_140, %c512_141] : memref<32x3584xbf16, #tpu.memory_space<vmem>>, vector<2x448xbf16>
    tpu.vector_store %arg9[%c8_140, %c512_141], %178 {strides = array<i32>} : memref<32x3584xbf16, #tpu.memory_space<vmem>>, vector<2x448xbf16>,
    %180 = vector.extract_strided_slice %177 {offsets = [0, 128], sizes = [2, 448], strides = [1, 1]} : vector<2x896xbf16> to vector<2x448xbf16>
    %c10_142 = arith.constant 10 : index
    %c512_143 = arith.constant 512 : index
    %181 = vector.load %arg9[%c10_142, %c512_143] : memref<32x3584xbf16, #tpu.memory_space<vmem>>, vector<2x448xbf16>
    tpu.vector_store %arg9[%c10_142, %c512_143], %180 {strides = array<i32>} : memref<32x3584xbf16, #tpu.memory_space<vmem>>, vector<2x448xbf16>,
    %182 = vector.extract_strided_slice %177 {offsets = [0, 256], sizes = [2, 448], strides = [1, 1]} : vector<2x896xbf16> to vector<2x448xbf16>
    %c12_144 = arith.constant 12 : index
    %c512_145 = arith.constant 512 : index
    %183 = vector.load %arg9[%c12_144, %c512_145] : memref<32x3584xbf16, #tpu.memory_space<vmem>>, vector<2x448xbf16>
    tpu.vector_store %arg9[%c12_144, %c512_145], %182 {strides = array<i32>} : memref<32x3584xbf16, #tpu.memory_space<vmem>>, vector<2x448xbf16>,
    %184 = vector.extract_strided_slice %177 {offsets = [0, 384], sizes = [2, 448], strides = [1, 1]} : vector<2x896xbf16> to vector<2x448xbf16>
    %c14_146 = arith.constant 14 : index
    %c512_147 = arith.constant 512 : index
    %185 = vector.load %arg9[%c14_146, %c512_147] : memref<32x3584xbf16, #tpu.memory_space<vmem>>, vector<2x448xbf16>
    tpu.vector_store %arg9[%c14_146, %c512_147], %184 {strides = array<i32>} : memref<32x3584xbf16, #tpu.memory_space<vmem>>, vector<2x448xbf16>,
    %c0_148 = arith.constant 0 : index
    %c4_149 = arith.constant 4 : index
    %c0_150 = arith.constant 0 : index
    %186 = vector.load %arg8[%c0_148, %c4_149, %c0_150] : memref<2x14x896xbf16, #tpu.memory_space<vmem>>, vector<2x1x896xbf16>
    %187 = vector.shape_cast %186 : vector<2x1x896xbf16> to vector<2x896xbf16>
    %188 = vector.extract_strided_slice %187 {offsets = [0, 0], sizes = [2, 448], strides = [1, 1]} : vector<2x896xbf16> to vector<2x448xbf16>
    %c8_151 = arith.constant 8 : index
    %c1024_152 = arith.constant 1024 : index
    %189 = vector.load %arg9[%c8_151, %c1024_152] : memref<32x3584xbf16, #tpu.memory_space<vmem>>, vector<2x448xbf16>
    tpu.vector_store %arg9[%c8_151, %c1024_152], %188 {strides = array<i32>} : memref<32x3584xbf16, #tpu.memory_space<vmem>>, vector<2x448xbf16>,
    %190 = vector.extract_strided_slice %187 {offsets = [0, 128], sizes = [2, 448], strides = [1, 1]} : vector<2x896xbf16> to vector<2x448xbf16>
    %c10_153 = arith.constant 10 : index
    %c1024_154 = arith.constant 1024 : index
    %191 = vector.load %arg9[%c10_153, %c1024_154] : memref<32x3584xbf16, #tpu.memory_space<vmem>>, vector<2x448xbf16>
    tpu.vector_store %arg9[%c10_153, %c1024_154], %190 {strides = array<i32>} : memref<32x3584xbf16, #tpu.memory_space<vmem>>, vector<2x448xbf16>,
    %192 = vector.extract_strided_slice %187 {offsets = [0, 256], sizes = [2, 448], strides = [1, 1]} : vector<2x896xbf16> to vector<2x448xbf16>
    %c12_155 = arith.constant 12 : index
    %c1024_156 = arith.constant 1024 : index
    %193 = vector.load %arg9[%c12_155, %c1024_156] : memref<32x3584xbf16, #tpu.memory_space<vmem>>, vector<2x448xbf16>
    tpu.vector_store %arg9[%c12_155, %c1024_156], %192 {strides = array<i32>} : memref<32x3584xbf16, #tpu.memory_space<vmem>>, vector<2x448xbf16>,
    %194 = vector.extract_strided_slice %187 {offsets = [0, 384], sizes = [2, 448], strides = [1, 1]} : vector<2x896xbf16> to vector<2x448xbf16>
    %c14_157 = arith.constant 14 : index
    %c1024_158 = arith.constant 1024 : index
    %195 = vector.load %arg9[%c14_157, %c1024_158] : memref<32x3584xbf16, #tpu.memory_space<vmem>>, vector<2x448xbf16>
    tpu.vector_store %arg9[%c14_157, %c1024_158], %194 {strides = array<i32>} : memref<32x3584xbf16, #tpu.memory_space<vmem>>, vector<2x448xbf16>,
    %c0_159 = arith.constant 0 : index
    %c5_160 = arith.constant 5 : index
    %c0_161 = arith.constant 0 : index
    %196 = vector.load %arg8[%c0_159, %c5_160, %c0_161] : memref<2x14x896xbf16, #tpu.memory_space<vmem>>, vector<2x1x896xbf16>
    %197 = vector.shape_cast %196 : vector<2x1x896xbf16> to vector<2x896xbf16>
    %198 = vector.extract_strided_slice %197 {offsets = [0, 0], sizes = [2, 448], strides = [1, 1]} : vector<2x896xbf16> to vector<2x448xbf16>
    %c8_162 = arith.constant 8 : index
    %c1536_163 = arith.constant 1536 : index
    %199 = vector.load %arg9[%c8_162, %c1536_163] : memref<32x3584xbf16, #tpu.memory_space<vmem>>, vector<2x448xbf16>
    tpu.vector_store %arg9[%c8_162, %c1536_163], %198 {strides = array<i32>} : memref<32x3584xbf16, #tpu.memory_space<vmem>>, vector<2x448xbf16>,
    %200 = vector.extract_strided_slice %197 {offsets = [0, 128], sizes = [2, 448], strides = [1, 1]} : vector<2x896xbf16> to vector<2x448xbf16>
    %c10_164 = arith.constant 10 : index
    %c1536_165 = arith.constant 1536 : index
    %201 = vector.load %arg9[%c10_164, %c1536_165] : memref<32x3584xbf16, #tpu.memory_space<vmem>>, vector<2x448xbf16>
    tpu.vector_store %arg9[%c10_164, %c1536_165], %200 {strides = array<i32>} : memref<32x3584xbf16, #tpu.memory_space<vmem>>, vector<2x448xbf16>,
    %202 = vector.extract_strided_slice %197 {offsets = [0, 256], sizes = [2, 448], strides = [1, 1]} : vector<2x896xbf16> to vector<2x448xbf16>
    %c12_166 = arith.constant 12 : index
    %c1536_167 = arith.constant 1536 : index
    %203 = vector.load %arg9[%c12_166, %c1536_167] : memref<32x3584xbf16, #tpu.memory_space<vmem>>, vector<2x448xbf16>
    tpu.vector_store %arg9[%c12_166, %c1536_167], %202 {strides = array<i32>} : memref<32x3584xbf16, #tpu.memory_space<vmem>>, vector<2x448xbf16>,
    %204 = vector.extract_strided_slice %197 {offsets = [0, 384], sizes = [2, 448], strides = [1, 1]} : vector<2x896xbf16> to vector<2x448xbf16>
    %c14_168 = arith.constant 14 : index
    %c1536_169 = arith.constant 1536 : index
    %205 = vector.load %arg9[%c14_168, %c1536_169] : memref<32x3584xbf16, #tpu.memory_space<vmem>>, vector<2x448xbf16>
    tpu.vector_store %arg9[%c14_168, %c1536_169], %204 {strides = array<i32>} : memref<32x3584xbf16, #tpu.memory_space<vmem>>, vector<2x448xbf16>,
    %c0_170 = arith.constant 0 : index
    %c6_171 = arith.constant 6 : index
    %c0_172 = arith.constant 0 : index
    %206 = vector.load %arg8[%c0_170, %c6_171, %c0_172] : memref<2x14x896xbf16, #tpu.memory_space<vmem>>, vector<2x1x896xbf16>
    %207 = vector.shape_cast %206 : vector<2x1x896xbf16> to vector<2x896xbf16>
    %208 = vector.extract_strided_slice %207 {offsets = [0, 0], sizes = [2, 448], strides = [1, 1]} : vector<2x896xbf16> to vector<2x448xbf16>
    %c8_173 = arith.constant 8 : index
    %c2048_174 = arith.constant 2048 : index
    %209 = vector.load %arg9[%c8_173, %c2048_174] : memref<32x3584xbf16, #tpu.memory_space<vmem>>, vector<2x448xbf16>
    tpu.vector_store %arg9[%c8_173, %c2048_174], %208 {strides = array<i32>} : memref<32x3584xbf16, #tpu.memory_space<vmem>>, vector<2x448xbf16>,
    %210 = vector.extract_strided_slice %207 {offsets = [0, 128], sizes = [2, 448], strides = [1, 1]} : vector<2x896xbf16> to vector<2x448xbf16>
    %c10_175 = arith.constant 10 : index
    %c2048_176 = arith.constant 2048 : index
    %211 = vector.load %arg9[%c10_175, %c2048_176] : memref<32x3584xbf16, #tpu.memory_space<vmem>>, vector<2x448xbf16>
    tpu.vector_store %arg9[%c10_175, %c2048_176], %210 {strides = array<i32>} : memref<32x3584xbf16, #tpu.memory_space<vmem>>, vector<2x448xbf16>,
    %212 = vector.extract_strided_slice %207 {offsets = [0, 256], sizes = [2, 448], strides = [1, 1]} : vector<2x896xbf16> to vector<2x448xbf16>
    %c12_177 = arith.constant 12 : index
    %c2048_178 = arith.constant 2048 : index
    %213 = vector.load %arg9[%c12_177, %c2048_178] : memref<32x3584xbf16, #tpu.memory_space<vmem>>, vector<2x448xbf16>
    tpu.vector_store %arg9[%c12_177, %c2048_178], %212 {strides = array<i32>} : memref<32x3584xbf16, #tpu.memory_space<vmem>>, vector<2x448xbf16>,
    %214 = vector.extract_strided_slice %207 {offsets = [0, 384], sizes = [2, 448], strides = [1, 1]} : vector<2x896xbf16> to vector<2x448xbf16>
    %c14_179 = arith.constant 14 : index
    %c2048_180 = arith.constant 2048 : index
    %215 = vector.load %arg9[%c14_179, %c2048_180] : memref<32x3584xbf16, #tpu.memory_space<vmem>>, vector<2x448xbf16>
    tpu.vector_store %arg9[%c14_179, %c2048_180], %214 {strides = array<i32>} : memref<32x3584xbf16, #tpu.memory_space<vmem>>, vector<2x448xbf16>,
    %c0_181 = arith.constant 0 : index
    %c7 = arith.constant 7 : index
    %c0_182 = arith.constant 0 : index
    %216 = vector.load %arg8[%c0_181, %c7, %c0_182] : memref<2x14x896xbf16, #tpu.memory_space<vmem>>, vector<2x1x896xbf16>
    %217 = vector.shape_cast %216 : vector<2x1x896xbf16> to vector<2x896xbf16>
    %218 = vector.extract_strided_slice %217 {offsets = [0, 0], sizes = [2, 448], strides = [1, 1]} : vector<2x896xbf16> to vector<2x448xbf16>
    %c8_183 = arith.constant 8 : index
    %c2560_184 = arith.constant 2560 : index
    %219 = vector.load %arg9[%c8_183, %c2560_184] : memref<32x3584xbf16, #tpu.memory_space<vmem>>, vector<2x448xbf16>
    tpu.vector_store %arg9[%c8_183, %c2560_184], %218 {strides = array<i32>} : memref<32x3584xbf16, #tpu.memory_space<vmem>>, vector<2x448xbf16>,
    %220 = vector.extract_strided_slice %217 {offsets = [0, 128], sizes = [2, 448], strides = [1, 1]} : vector<2x896xbf16> to vector<2x448xbf16>
    %c10_185 = arith.constant 10 : index
    %c2560_186 = arith.constant 2560 : index
    %221 = vector.load %arg9[%c10_185, %c2560_186] : memref<32x3584xbf16, #tpu.memory_space<vmem>>, vector<2x448xbf16>
    tpu.vector_store %arg9[%c10_185, %c2560_186], %220 {strides = array<i32>} : memref<32x3584xbf16, #tpu.memory_space<vmem>>, vector<2x448xbf16>,
    %222 = vector.extract_strided_slice %217 {offsets = [0, 256], sizes = [2, 448], strides = [1, 1]} : vector<2x896xbf16> to vector<2x448xbf16>
    %c12_187 = arith.constant 12 : index
    %c2560_188 = arith.constant 2560 : index
    %223 = vector.load %arg9[%c12_187, %c2560_188] : memref<32x3584xbf16, #tpu.memory_space<vmem>>, vector<2x448xbf16>
    tpu.vector_store %arg9[%c12_187, %c2560_188], %222 {strides = array<i32>} : memref<32x3584xbf16, #tpu.memory_space<vmem>>, vector<2x448xbf16>,
    %224 = vector.extract_strided_slice %217 {offsets = [0, 384], sizes = [2, 448], strides = [1, 1]} : vector<2x896xbf16> to vector<2x448xbf16>
    %c14_189 = arith.constant 14 : index
    %c2560_190 = arith.constant 2560 : index
    %225 = vector.load %arg9[%c14_189, %c2560_190] : memref<32x3584xbf16, #tpu.memory_space<vmem>>, vector<2x448xbf16>
    tpu.vector_store %arg9[%c14_189, %c2560_190], %224 {strides = array<i32>} : memref<32x3584xbf16, #tpu.memory_space<vmem>>, vector<2x448xbf16>,
    %c0_191 = arith.constant 0 : index
    %c8_192 = arith.constant 8 : index
    %c0_193 = arith.constant 0 : index
    %226 = vector.load %arg8[%c0_191, %c8_192, %c0_193] : memref<2x14x896xbf16, #tpu.memory_space<vmem>>, vector<2x1x896xbf16>
    %227 = vector.shape_cast %226 : vector<2x1x896xbf16> to vector<2x896xbf16>
    %228 = vector.extract_strided_slice %227 {offsets = [0, 0], sizes = [2, 448], strides = [1, 1]} : vector<2x896xbf16> to vector<2x448xbf16>
    %c8_194 = arith.constant 8 : index
    %c3072_195 = arith.constant 3072 : index
    %229 = vector.load %arg9[%c8_194, %c3072_195] : memref<32x3584xbf16, #tpu.memory_space<vmem>>, vector<2x448xbf16>
    tpu.vector_store %arg9[%c8_194, %c3072_195], %228 {strides = array<i32>} : memref<32x3584xbf16, #tpu.memory_space<vmem>>, vector<2x448xbf16>,
    %230 = vector.extract_strided_slice %227 {offsets = [0, 128], sizes = [2, 448], strides = [1, 1]} : vector<2x896xbf16> to vector<2x448xbf16>
    %c10_196 = arith.constant 10 : index
    %c3072_197 = arith.constant 3072 : index
    %231 = vector.load %arg9[%c10_196, %c3072_197] : memref<32x3584xbf16, #tpu.memory_space<vmem>>, vector<2x448xbf16>
    tpu.vector_store %arg9[%c10_196, %c3072_197], %230 {strides = array<i32>} : memref<32x3584xbf16, #tpu.memory_space<vmem>>, vector<2x448xbf16>,
    %232 = vector.extract_strided_slice %227 {offsets = [0, 256], sizes = [2, 448], strides = [1, 1]} : vector<2x896xbf16> to vector<2x448xbf16>
    %c12_198 = arith.constant 12 : index
    %c3072_199 = arith.constant 3072 : index
    %233 = vector.load %arg9[%c12_198, %c3072_199] : memref<32x3584xbf16, #tpu.memory_space<vmem>>, vector<2x448xbf16>
    tpu.vector_store %arg9[%c12_198, %c3072_199], %232 {strides = array<i32>} : memref<32x3584xbf16, #tpu.memory_space<vmem>>, vector<2x448xbf16>,
    %234 = vector.extract_strided_slice %227 {offsets = [0, 384], sizes = [2, 448], strides = [1, 1]} : vector<2x896xbf16> to vector<2x448xbf16>
    %c14_200 = arith.constant 14 : index
    %c3072_201 = arith.constant 3072 : index
    %235 = vector.load %arg9[%c14_200, %c3072_201] : memref<32x3584xbf16, #tpu.memory_space<vmem>>, vector<2x448xbf16>
    tpu.vector_store %arg9[%c14_200, %c3072_201], %234 {strides = array<i32>} : memref<32x3584xbf16, #tpu.memory_space<vmem>>, vector<2x448xbf16>,
    %c0_202 = arith.constant 0 : index
    %c4_203 = arith.constant 4 : index
    %c0_204 = arith.constant 0 : index
    %236 = vector.load %arg8[%c0_202, %c4_203, %c0_204] : memref<2x14x896xbf16, #tpu.memory_space<vmem>>, vector<2x1x896xbf16>
    %237 = vector.shape_cast %236 : vector<2x1x896xbf16> to vector<2x896xbf16>
    %238 = vector.extract_strided_slice %237 {offsets = [0, 0], sizes = [2, 448], strides = [1, 1]} : vector<2x896xbf16> to vector<2x448xbf16>
    %c16 = arith.constant 16 : index
    %c0_205 = arith.constant 0 : index
    %239 = vector.load %arg9[%c16, %c0_205] : memref<32x3584xbf16, #tpu.memory_space<vmem>>, vector<2x448xbf16>
    tpu.vector_store %arg9[%c16, %c0_205], %238 {strides = array<i32>} : memref<32x3584xbf16, #tpu.memory_space<vmem>>, vector<2x448xbf16>,
    %240 = vector.extract_strided_slice %237 {offsets = [0, 128], sizes = [2, 448], strides = [1, 1]} : vector<2x896xbf16> to vector<2x448xbf16>
    %c18 = arith.constant 18 : index
    %c0_206 = arith.constant 0 : index
    %241 = vector.load %arg9[%c18, %c0_206] : memref<32x3584xbf16, #tpu.memory_space<vmem>>, vector<2x448xbf16>
    tpu.vector_store %arg9[%c18, %c0_206], %240 {strides = array<i32>} : memref<32x3584xbf16, #tpu.memory_space<vmem>>, vector<2x448xbf16>,
    %242 = vector.extract_strided_slice %237 {offsets = [0, 256], sizes = [2, 448], strides = [1, 1]} : vector<2x896xbf16> to vector<2x448xbf16>
    %c20 = arith.constant 20 : index
    %c0_207 = arith.constant 0 : index
    %243 = vector.load %arg9[%c20, %c0_207] : memref<32x3584xbf16, #tpu.memory_space<vmem>>, vector<2x448xbf16>
    tpu.vector_store %arg9[%c20, %c0_207], %242 {strides = array<i32>} : memref<32x3584xbf16, #tpu.memory_space<vmem>>, vector<2x448xbf16>,
    %244 = vector.extract_strided_slice %237 {offsets = [0, 384], sizes = [2, 448], strides = [1, 1]} : vector<2x896xbf16> to vector<2x448xbf16>
    %c22 = arith.constant 22 : index
    %c0_208 = arith.constant 0 : index
    %245 = vector.load %arg9[%c22, %c0_208] : memref<32x3584xbf16, #tpu.memory_space<vmem>>, vector<2x448xbf16>
    tpu.vector_store %arg9[%c22, %c0_208], %244 {strides = array<i32>} : memref<32x3584xbf16, #tpu.memory_space<vmem>>, vector<2x448xbf16>,
    %c0_209 = arith.constant 0 : index
    %c5_210 = arith.constant 5 : index
    %c0_211 = arith.constant 0 : index
    %246 = vector.load %arg8[%c0_209, %c5_210, %c0_211] : memref<2x14x896xbf16, #tpu.memory_space<vmem>>, vector<2x1x896xbf16>
    %247 = vector.shape_cast %246 : vector<2x1x896xbf16> to vector<2x896xbf16>
    %248 = vector.extract_strided_slice %247 {offsets = [0, 0], sizes = [2, 448], strides = [1, 1]} : vector<2x896xbf16> to vector<2x448xbf16>
    %c16_212 = arith.constant 16 : index
    %c512_213 = arith.constant 512 : index
    %249 = vector.load %arg9[%c16_212, %c512_213] : memref<32x3584xbf16, #tpu.memory_space<vmem>>, vector<2x448xbf16>
    tpu.vector_store %arg9[%c16_212, %c512_213], %248 {strides = array<i32>} : memref<32x3584xbf16, #tpu.memory_space<vmem>>, vector<2x448xbf16>,
    %250 = vector.extract_strided_slice %247 {offsets = [0, 128], sizes = [2, 448], strides = [1, 1]} : vector<2x896xbf16> to vector<2x448xbf16>
    %c18_214 = arith.constant 18 : index
    %c512_215 = arith.constant 512 : index
    %251 = vector.load %arg9[%c18_214, %c512_215] : memref<32x3584xbf16, #tpu.memory_space<vmem>>, vector<2x448xbf16>
    tpu.vector_store %arg9[%c18_214, %c512_215], %250 {strides = array<i32>} : memref<32x3584xbf16, #tpu.memory_space<vmem>>, vector<2x448xbf16>,
    %252 = vector.extract_strided_slice %247 {offsets = [0, 256], sizes = [2, 448], strides = [1, 1]} : vector<2x896xbf16> to vector<2x448xbf16>
    %c20_216 = arith.constant 20 : index
    %c512_217 = arith.constant 512 : index
    %253 = vector.load %arg9[%c20_216, %c512_217] : memref<32x3584xbf16, #tpu.memory_space<vmem>>, vector<2x448xbf16>
    tpu.vector_store %arg9[%c20_216, %c512_217], %252 {strides = array<i32>} : memref<32x3584xbf16, #tpu.memory_space<vmem>>, vector<2x448xbf16>,
    %254 = vector.extract_strided_slice %247 {offsets = [0, 384], sizes = [2, 448], strides = [1, 1]} : vector<2x896xbf16> to vector<2x448xbf16>
    %c22_218 = arith.constant 22 : index
    %c512_219 = arith.constant 512 : index
    %255 = vector.load %arg9[%c22_218, %c512_219] : memref<32x3584xbf16, #tpu.memory_space<vmem>>, vector<2x448xbf16>
    tpu.vector_store %arg9[%c22_218, %c512_219], %254 {strides = array<i32>} : memref<32x3584xbf16, #tpu.memory_space<vmem>>, vector<2x448xbf16>,
    %c0_220 = arith.constant 0 : index
    %c6_221 = arith.constant 6 : index
    %c0_222 = arith.constant 0 : index
    %256 = vector.load %arg8[%c0_220, %c6_221, %c0_222] : memref<2x14x896xbf16, #tpu.memory_space<vmem>>, vector<2x1x896xbf16>
    %257 = vector.shape_cast %256 : vector<2x1x896xbf16> to vector<2x896xbf16>
    %258 = vector.extract_strided_slice %257 {offsets = [0, 0], sizes = [2, 448], strides = [1, 1]} : vector<2x896xbf16> to vector<2x448xbf16>
    %c16_223 = arith.constant 16 : index
    %c1024_224 = arith.constant 1024 : index
    %259 = vector.load %arg9[%c16_223, %c1024_224] : memref<32x3584xbf16, #tpu.memory_space<vmem>>, vector<2x448xbf16>
    tpu.vector_store %arg9[%c16_223, %c1024_224], %258 {strides = array<i32>} : memref<32x3584xbf16, #tpu.memory_space<vmem>>, vector<2x448xbf16>,
    %260 = vector.extract_strided_slice %257 {offsets = [0, 128], sizes = [2, 448], strides = [1, 1]} : vector<2x896xbf16> to vector<2x448xbf16>
    %c18_225 = arith.constant 18 : index
    %c1024_226 = arith.constant 1024 : index
    %261 = vector.load %arg9[%c18_225, %c1024_226] : memref<32x3584xbf16, #tpu.memory_space<vmem>>, vector<2x448xbf16>
    tpu.vector_store %arg9[%c18_225, %c1024_226], %260 {strides = array<i32>} : memref<32x3584xbf16, #tpu.memory_space<vmem>>, vector<2x448xbf16>,
    %262 = vector.extract_strided_slice %257 {offsets = [0, 256], sizes = [2, 448], strides = [1, 1]} : vector<2x896xbf16> to vector<2x448xbf16>
    %c20_227 = arith.constant 20 : index
    %c1024_228 = arith.constant 1024 : index
    %263 = vector.load %arg9[%c20_227, %c1024_228] : memref<32x3584xbf16, #tpu.memory_space<vmem>>, vector<2x448xbf16>
    tpu.vector_store %arg9[%c20_227, %c1024_228], %262 {strides = array<i32>} : memref<32x3584xbf16, #tpu.memory_space<vmem>>, vector<2x448xbf16>,
    %264 = vector.extract_strided_slice %257 {offsets = [0, 384], sizes = [2, 448], strides = [1, 1]} : vector<2x896xbf16> to vector<2x448xbf16>
    %c22_229 = arith.constant 22 : index
    %c1024_230 = arith.constant 1024 : index
    %265 = vector.load %arg9[%c22_229, %c1024_230] : memref<32x3584xbf16, #tpu.memory_space<vmem>>, vector<2x448xbf16>
    tpu.vector_store %arg9[%c22_229, %c1024_230], %264 {strides = array<i32>} : memref<32x3584xbf16, #tpu.memory_space<vmem>>, vector<2x448xbf16>,
    %c0_231 = arith.constant 0 : index
    %c7_232 = arith.constant 7 : index
    %c0_233 = arith.constant 0 : index
    %266 = vector.load %arg8[%c0_231, %c7_232, %c0_233] : memref<2x14x896xbf16, #tpu.memory_space<vmem>>, vector<2x1x896xbf16>
    %267 = vector.shape_cast %266 : vector<2x1x896xbf16> to vector<2x896xbf16>
    %268 = vector.extract_strided_slice %267 {offsets = [0, 0], sizes = [2, 448], strides = [1, 1]} : vector<2x896xbf16> to vector<2x448xbf16>
    %c16_234 = arith.constant 16 : index
    %c1536_235 = arith.constant 1536 : index
    %269 = vector.load %arg9[%c16_234, %c1536_235] : memref<32x3584xbf16, #tpu.memory_space<vmem>>, vector<2x448xbf16>
    tpu.vector_store %arg9[%c16_234, %c1536_235], %268 {strides = array<i32>} : memref<32x3584xbf16, #tpu.memory_space<vmem>>, vector<2x448xbf16>,
    %270 = vector.extract_strided_slice %267 {offsets = [0, 128], sizes = [2, 448], strides = [1, 1]} : vector<2x896xbf16> to vector<2x448xbf16>
    %c18_236 = arith.constant 18 : index
    %c1536_237 = arith.constant 1536 : index
    %271 = vector.load %arg9[%c18_236, %c1536_237] : memref<32x3584xbf16, #tpu.memory_space<vmem>>, vector<2x448xbf16>
    tpu.vector_store %arg9[%c18_236, %c1536_237], %270 {strides = array<i32>} : memref<32x3584xbf16, #tpu.memory_space<vmem>>, vector<2x448xbf16>,
    %272 = vector.extract_strided_slice %267 {offsets = [0, 256], sizes = [2, 448], strides = [1, 1]} : vector<2x896xbf16> to vector<2x448xbf16>
    %c20_238 = arith.constant 20 : index
    %c1536_239 = arith.constant 1536 : index
    %273 = vector.load %arg9[%c20_238, %c1536_239] : memref<32x3584xbf16, #tpu.memory_space<vmem>>, vector<2x448xbf16>
    tpu.vector_store %arg9[%c20_238, %c1536_239], %272 {strides = array<i32>} : memref<32x3584xbf16, #tpu.memory_space<vmem>>, vector<2x448xbf16>,
    %274 = vector.extract_strided_slice %267 {offsets = [0, 384], sizes = [2, 448], strides = [1, 1]} : vector<2x896xbf16> to vector<2x448xbf16>
    %c22_240 = arith.constant 22 : index
    %c1536_241 = arith.constant 1536 : index
    %275 = vector.load %arg9[%c22_240, %c1536_241] : memref<32x3584xbf16, #tpu.memory_space<vmem>>, vector<2x448xbf16>
    tpu.vector_store %arg9[%c22_240, %c1536_241], %274 {strides = array<i32>} : memref<32x3584xbf16, #tpu.memory_space<vmem>>, vector<2x448xbf16>,
    %c0_242 = arith.constant 0 : index
    %c8_243 = arith.constant 8 : index
    %c0_244 = arith.constant 0 : index
    %276 = vector.load %arg8[%c0_242, %c8_243, %c0_244] : memref<2x14x896xbf16, #tpu.memory_space<vmem>>, vector<2x1x896xbf16>
    %277 = vector.shape_cast %276 : vector<2x1x896xbf16> to vector<2x896xbf16>
    %278 = vector.extract_strided_slice %277 {offsets = [0, 0], sizes = [2, 448], strides = [1, 1]} : vector<2x896xbf16> to vector<2x448xbf16>
    %c16_245 = arith.constant 16 : index
    %c2048_246 = arith.constant 2048 : index
    %279 = vector.load %arg9[%c16_245, %c2048_246] : memref<32x3584xbf16, #tpu.memory_space<vmem>>, vector<2x448xbf16>
    tpu.vector_store %arg9[%c16_245, %c2048_246], %278 {strides = array<i32>} : memref<32x3584xbf16, #tpu.memory_space<vmem>>, vector<2x448xbf16>,
    %280 = vector.extract_strided_slice %277 {offsets = [0, 128], sizes = [2, 448], strides = [1, 1]} : vector<2x896xbf16> to vector<2x448xbf16>
    %c18_247 = arith.constant 18 : index
    %c2048_248 = arith.constant 2048 : index
    %281 = vector.load %arg9[%c18_247, %c2048_248] : memref<32x3584xbf16, #tpu.memory_space<vmem>>, vector<2x448xbf16>
    tpu.vector_store %arg9[%c18_247, %c2048_248], %280 {strides = array<i32>} : memref<32x3584xbf16, #tpu.memory_space<vmem>>, vector<2x448xbf16>,
    %282 = vector.extract_strided_slice %277 {offsets = [0, 256], sizes = [2, 448], strides = [1, 1]} : vector<2x896xbf16> to vector<2x448xbf16>
    %c20_249 = arith.constant 20 : index
    %c2048_250 = arith.constant 2048 : index
    %283 = vector.load %arg9[%c20_249, %c2048_250] : memref<32x3584xbf16, #tpu.memory_space<vmem>>, vector<2x448xbf16>
    tpu.vector_store %arg9[%c20_249, %c2048_250], %282 {strides = array<i32>} : memref<32x3584xbf16, #tpu.memory_space<vmem>>, vector<2x448xbf16>,
    %284 = vector.extract_strided_slice %277 {offsets = [0, 384], sizes = [2, 448], strides = [1, 1]} : vector<2x896xbf16> to vector<2x448xbf16>
    %c22_251 = arith.constant 22 : index
    %c2048_252 = arith.constant 2048 : index
    %285 = vector.load %arg9[%c22_251, %c2048_252] : memref<32x3584xbf16, #tpu.memory_space<vmem>>, vector<2x448xbf16>
    tpu.vector_store %arg9[%c22_251, %c2048_252], %284 {strides = array<i32>} : memref<32x3584xbf16, #tpu.memory_space<vmem>>, vector<2x448xbf16>,
    %c0_253 = arith.constant 0 : index
    %c9 = arith.constant 9 : index
    %c0_254 = arith.constant 0 : index
    %286 = vector.load %arg8[%c0_253, %c9, %c0_254] : memref<2x14x896xbf16, #tpu.memory_space<vmem>>, vector<2x1x896xbf16>
    %287 = vector.shape_cast %286 : vector<2x1x896xbf16> to vector<2x896xbf16>
    %288 = vector.extract_strided_slice %287 {offsets = [0, 0], sizes = [2, 448], strides = [1, 1]} : vector<2x896xbf16> to vector<2x448xbf16>
    %c16_255 = arith.constant 16 : index
    %c2560_256 = arith.constant 2560 : index
    %289 = vector.load %arg9[%c16_255, %c2560_256] : memref<32x3584xbf16, #tpu.memory_space<vmem>>, vector<2x448xbf16>
    tpu.vector_store %arg9[%c16_255, %c2560_256], %288 {strides = array<i32>} : memref<32x3584xbf16, #tpu.memory_space<vmem>>, vector<2x448xbf16>,
    %290 = vector.extract_strided_slice %287 {offsets = [0, 128], sizes = [2, 448], strides = [1, 1]} : vector<2x896xbf16> to vector<2x448xbf16>
    %c18_257 = arith.constant 18 : index
    %c2560_258 = arith.constant 2560 : index
    %291 = vector.load %arg9[%c18_257, %c2560_258] : memref<32x3584xbf16, #tpu.memory_space<vmem>>, vector<2x448xbf16>
    tpu.vector_store %arg9[%c18_257, %c2560_258], %290 {strides = array<i32>} : memref<32x3584xbf16, #tpu.memory_space<vmem>>, vector<2x448xbf16>,
    %292 = vector.extract_strided_slice %287 {offsets = [0, 256], sizes = [2, 448], strides = [1, 1]} : vector<2x896xbf16> to vector<2x448xbf16>
    %c20_259 = arith.constant 20 : index
    %c2560_260 = arith.constant 2560 : index
    %293 = vector.load %arg9[%c20_259, %c2560_260] : memref<32x3584xbf16, #tpu.memory_space<vmem>>, vector<2x448xbf16>
    tpu.vector_store %arg9[%c20_259, %c2560_260], %292 {strides = array<i32>} : memref<32x3584xbf16, #tpu.memory_space<vmem>>, vector<2x448xbf16>,
    %294 = vector.extract_strided_slice %287 {offsets = [0, 384], sizes = [2, 448], strides = [1, 1]} : vector<2x896xbf16> to vector<2x448xbf16>
    %c22_261 = arith.constant 22 : index
    %c2560_262 = arith.constant 2560 : index
    %295 = vector.load %arg9[%c22_261, %c2560_262] : memref<32x3584xbf16, #tpu.memory_space<vmem>>, vector<2x448xbf16>
    tpu.vector_store %arg9[%c22_261, %c2560_262], %294 {strides = array<i32>} : memref<32x3584xbf16, #tpu.memory_space<vmem>>, vector<2x448xbf16>,
    %c0_263 = arith.constant 0 : index
    %c10_264 = arith.constant 10 : index
    %c0_265 = arith.constant 0 : index
    %296 = vector.load %arg8[%c0_263, %c10_264, %c0_265] : memref<2x14x896xbf16, #tpu.memory_space<vmem>>, vector<2x1x896xbf16>
    %297 = vector.shape_cast %296 : vector<2x1x896xbf16> to vector<2x896xbf16>
    %298 = vector.extract_strided_slice %297 {offsets = [0, 0], sizes = [2, 448], strides = [1, 1]} : vector<2x896xbf16> to vector<2x448xbf16>
    %c16_266 = arith.constant 16 : index
    %c3072_267 = arith.constant 3072 : index
    %299 = vector.load %arg9[%c16_266, %c3072_267] : memref<32x3584xbf16, #tpu.memory_space<vmem>>, vector<2x448xbf16>
    tpu.vector_store %arg9[%c16_266, %c3072_267], %298 {strides = array<i32>} : memref<32x3584xbf16, #tpu.memory_space<vmem>>, vector<2x448xbf16>,
    %300 = vector.extract_strided_slice %297 {offsets = [0, 128], sizes = [2, 448], strides = [1, 1]} : vector<2x896xbf16> to vector<2x448xbf16>
    %c18_268 = arith.constant 18 : index
    %c3072_269 = arith.constant 3072 : index
    %301 = vector.load %arg9[%c18_268, %c3072_269] : memref<32x3584xbf16, #tpu.memory_space<vmem>>, vector<2x448xbf16>
    tpu.vector_store %arg9[%c18_268, %c3072_269], %300 {strides = array<i32>} : memref<32x3584xbf16, #tpu.memory_space<vmem>>, vector<2x448xbf16>,
    %302 = vector.extract_strided_slice %297 {offsets = [0, 256], sizes = [2, 448], strides = [1, 1]} : vector<2x896xbf16> to vector<2x448xbf16>
    %c20_270 = arith.constant 20 : index
    %c3072_271 = arith.constant 3072 : index
    %303 = vector.load %arg9[%c20_270, %c3072_271] : memref<32x3584xbf16, #tpu.memory_space<vmem>>, vector<2x448xbf16>
    tpu.vector_store %arg9[%c20_270, %c3072_271], %302 {strides = array<i32>} : memref<32x3584xbf16, #tpu.memory_space<vmem>>, vector<2x448xbf16>,
    %304 = vector.extract_strided_slice %297 {offsets = [0, 384], sizes = [2, 448], strides = [1, 1]} : vector<2x896xbf16> to vector<2x448xbf16>
    %c22_272 = arith.constant 22 : index
    %c3072_273 = arith.constant 3072 : index
    %305 = vector.load %arg9[%c22_272, %c3072_273] : memref<32x3584xbf16, #tpu.memory_space<vmem>>, vector<2x448xbf16>
    tpu.vector_store %arg9[%c22_272, %c3072_273], %304 {strides = array<i32>} : memref<32x3584xbf16, #tpu.memory_space<vmem>>, vector<2x448xbf16>,
    %c0_274 = arith.constant 0 : index
    %c6_275 = arith.constant 6 : index
    %c0_276 = arith.constant 0 : index
    %306 = vector.load %arg8[%c0_274, %c6_275, %c0_276] : memref<2x14x896xbf16, #tpu.memory_space<vmem>>, vector<2x1x896xbf16>
    %307 = vector.shape_cast %306 : vector<2x1x896xbf16> to vector<2x896xbf16>
    %308 = vector.extract_strided_slice %307 {offsets = [0, 0], sizes = [2, 448], strides = [1, 1]} : vector<2x896xbf16> to vector<2x448xbf16>
    %c24 = arith.constant 24 : index
    %c0_277 = arith.constant 0 : index
    %309 = vector.load %arg9[%c24, %c0_277] : memref<32x3584xbf16, #tpu.memory_space<vmem>>, vector<2x448xbf16>
    tpu.vector_store %arg9[%c24, %c0_277], %308 {strides = array<i32>} : memref<32x3584xbf16, #tpu.memory_space<vmem>>, vector<2x448xbf16>,
    %310 = vector.extract_strided_slice %307 {offsets = [0, 128], sizes = [2, 448], strides = [1, 1]} : vector<2x896xbf16> to vector<2x448xbf16>
    %c26 = arith.constant 26 : index
    %c0_278 = arith.constant 0 : index
    %311 = vector.load %arg9[%c26, %c0_278] : memref<32x3584xbf16, #tpu.memory_space<vmem>>, vector<2x448xbf16>
    tpu.vector_store %arg9[%c26, %c0_278], %310 {strides = array<i32>} : memref<32x3584xbf16, #tpu.memory_space<vmem>>, vector<2x448xbf16>,
    %312 = vector.extract_strided_slice %307 {offsets = [0, 256], sizes = [2, 448], strides = [1, 1]} : vector<2x896xbf16> to vector<2x448xbf16>
    %c28 = arith.constant 28 : index
    %c0_279 = arith.constant 0 : index
    %313 = vector.load %arg9[%c28, %c0_279] : memref<32x3584xbf16, #tpu.memory_space<vmem>>, vector<2x448xbf16>
    tpu.vector_store %arg9[%c28, %c0_279], %312 {strides = array<i32>} : memref<32x3584xbf16, #tpu.memory_space<vmem>>, vector<2x448xbf16>,
    %314 = vector.extract_strided_slice %307 {offsets = [0, 384], sizes = [2, 448], strides = [1, 1]} : vector<2x896xbf16> to vector<2x448xbf16>
    %c30 = arith.constant 30 : index
    %c0_280 = arith.constant 0 : index
    %315 = vector.load %arg9[%c30, %c0_280] : memref<32x3584xbf16, #tpu.memory_space<vmem>>, vector<2x448xbf16>
    tpu.vector_store %arg9[%c30, %c0_280], %314 {strides = array<i32>} : memref<32x3584xbf16, #tpu.memory_space<vmem>>, vector<2x448xbf16>,
    %c0_281 = arith.constant 0 : index
    %c7_282 = arith.constant 7 : index
    %c0_283 = arith.constant 0 : index
    %316 = vector.load %arg8[%c0_281, %c7_282, %c0_283] : memref<2x14x896xbf16, #tpu.memory_space<vmem>>, vector<2x1x896xbf16>
    %317 = vector.shape_cast %316 : vector<2x1x896xbf16> to vector<2x896xbf16>
    %318 = vector.extract_strided_slice %317 {offsets = [0, 0], sizes = [2, 448], strides = [1, 1]} : vector<2x896xbf16> to vector<2x448xbf16>
    %c24_284 = arith.constant 24 : index
    %c512_285 = arith.constant 512 : index
    %319 = vector.load %arg9[%c24_284, %c512_285] : memref<32x3584xbf16, #tpu.memory_space<vmem>>, vector<2x448xbf16>
    tpu.vector_store %arg9[%c24_284, %c512_285], %318 {strides = array<i32>} : memref<32x3584xbf16, #tpu.memory_space<vmem>>, vector<2x448xbf16>,
    %320 = vector.extract_strided_slice %317 {offsets = [0, 128], sizes = [2, 448], strides = [1, 1]} : vector<2x896xbf16> to vector<2x448xbf16>
    %c26_286 = arith.constant 26 : index
    %c512_287 = arith.constant 512 : index
    %321 = vector.load %arg9[%c26_286, %c512_287] : memref<32x3584xbf16, #tpu.memory_space<vmem>>, vector<2x448xbf16>
    tpu.vector_store %arg9[%c26_286, %c512_287], %320 {strides = array<i32>} : memref<32x3584xbf16, #tpu.memory_space<vmem>>, vector<2x448xbf16>,
    %322 = vector.extract_strided_slice %317 {offsets = [0, 256], sizes = [2, 448], strides = [1, 1]} : vector<2x896xbf16> to vector<2x448xbf16>
    %c28_288 = arith.constant 28 : index
    %c512_289 = arith.constant 512 : index
    %323 = vector.load %arg9[%c28_288, %c512_289] : memref<32x3584xbf16, #tpu.memory_space<vmem>>, vector<2x448xbf16>
    tpu.vector_store %arg9[%c28_288, %c512_289], %322 {strides = array<i32>} : memref<32x3584xbf16, #tpu.memory_space<vmem>>, vector<2x448xbf16>,
    %324 = vector.extract_strided_slice %317 {offsets = [0, 384], sizes = [2, 448], strides = [1, 1]} : vector<2x896xbf16> to vector<2x448xbf16>
    %c30_290 = arith.constant 30 : index
    %c512_291 = arith.constant 512 : index
    %325 = vector.load %arg9[%c30_290, %c512_291] : memref<32x3584xbf16, #tpu.memory_space<vmem>>, vector<2x448xbf16>
    tpu.vector_store %arg9[%c30_290, %c512_291], %324 {strides = array<i32>} : memref<32x3584xbf16, #tpu.memory_space<vmem>>, vector<2x448xbf16>,
    %c0_292 = arith.constant 0 : index
    %c8_293 = arith.constant 8 : index
    %c0_294 = arith.constant 0 : index
    %326 = vector.load %arg8[%c0_292, %c8_293, %c0_294] : memref<2x14x896xbf16, #tpu.memory_space<vmem>>, vector<2x1x896xbf16>
    %327 = vector.shape_cast %326 : vector<2x1x896xbf16> to vector<2x896xbf16>
    %328 = vector.extract_strided_slice %327 {offsets = [0, 0], sizes = [2, 448], strides = [1, 1]} : vector<2x896xbf16> to vector<2x448xbf16>
    %c24_295 = arith.constant 24 : index
    %c1024_296 = arith.constant 1024 : index
    %329 = vector.load %arg9[%c24_295, %c1024_296] : memref<32x3584xbf16, #tpu.memory_space<vmem>>, vector<2x448xbf16>
    tpu.vector_store %arg9[%c24_295, %c1024_296], %328 {strides = array<i32>} : memref<32x3584xbf16, #tpu.memory_space<vmem>>, vector<2x448xbf16>,
    %330 = vector.extract_strided_slice %327 {offsets = [0, 128], sizes = [2, 448], strides = [1, 1]} : vector<2x896xbf16> to vector<2x448xbf16>
    %c26_297 = arith.constant 26 : index
    %c1024_298 = arith.constant 1024 : index
    %331 = vector.load %arg9[%c26_297, %c1024_298] : memref<32x3584xbf16, #tpu.memory_space<vmem>>, vector<2x448xbf16>
    tpu.vector_store %arg9[%c26_297, %c1024_298], %330 {strides = array<i32>} : memref<32x3584xbf16, #tpu.memory_space<vmem>>, vector<2x448xbf16>,
    %332 = vector.extract_strided_slice %327 {offsets = [0, 256], sizes = [2, 448], strides = [1, 1]} : vector<2x896xbf16> to vector<2x448xbf16>
    %c28_299 = arith.constant 28 : index
    %c1024_300 = arith.constant 1024 : index
    %333 = vector.load %arg9[%c28_299, %c1024_300] : memref<32x3584xbf16, #tpu.memory_space<vmem>>, vector<2x448xbf16>
    tpu.vector_store %arg9[%c28_299, %c1024_300], %332 {strides = array<i32>} : memref<32x3584xbf16, #tpu.memory_space<vmem>>, vector<2x448xbf16>,
    %334 = vector.extract_strided_slice %327 {offsets = [0, 384], sizes = [2, 448], strides = [1, 1]} : vector<2x896xbf16> to vector<2x448xbf16>
    %c30_301 = arith.constant 30 : index
    %c1024_302 = arith.constant 1024 : index
    %335 = vector.load %arg9[%c30_301, %c1024_302] : memref<32x3584xbf16, #tpu.memory_space<vmem>>, vector<2x448xbf16>
    tpu.vector_store %arg9[%c30_301, %c1024_302], %334 {strides = array<i32>} : memref<32x3584xbf16, #tpu.memory_space<vmem>>, vector<2x448xbf16>,
    %c0_303 = arith.constant 0 : index
    %c9_304 = arith.constant 9 : index
    %c0_305 = arith.constant 0 : index
    %336 = vector.load %arg8[%c0_303, %c9_304, %c0_305] : memref<2x14x896xbf16, #tpu.memory_space<vmem>>, vector<2x1x896xbf16>
    %337 = vector.shape_cast %336 : vector<2x1x896xbf16> to vector<2x896xbf16>
    %338 = vector.extract_strided_slice %337 {offsets = [0, 0], sizes = [2, 448], strides = [1, 1]} : vector<2x896xbf16> to vector<2x448xbf16>
    %c24_306 = arith.constant 24 : index
    %c1536_307 = arith.constant 1536 : index
    %339 = vector.load %arg9[%c24_306, %c1536_307] : memref<32x3584xbf16, #tpu.memory_space<vmem>>, vector<2x448xbf16>
    tpu.vector_store %arg9[%c24_306, %c1536_307], %338 {strides = array<i32>} : memref<32x3584xbf16, #tpu.memory_space<vmem>>, vector<2x448xbf16>,
    %340 = vector.extract_strided_slice %337 {offsets = [0, 128], sizes = [2, 448], strides = [1, 1]} : vector<2x896xbf16> to vector<2x448xbf16>
    %c26_308 = arith.constant 26 : index
    %c1536_309 = arith.constant 1536 : index
    %341 = vector.load %arg9[%c26_308, %c1536_309] : memref<32x3584xbf16, #tpu.memory_space<vmem>>, vector<2x448xbf16>
    tpu.vector_store %arg9[%c26_308, %c1536_309], %340 {strides = array<i32>} : memref<32x3584xbf16, #tpu.memory_space<vmem>>, vector<2x448xbf16>,
    %342 = vector.extract_strided_slice %337 {offsets = [0, 256], sizes = [2, 448], strides = [1, 1]} : vector<2x896xbf16> to vector<2x448xbf16>
    %c28_310 = arith.constant 28 : index
    %c1536_311 = arith.constant 1536 : index
    %343 = vector.load %arg9[%c28_310, %c1536_311] : memref<32x3584xbf16, #tpu.memory_space<vmem>>, vector<2x448xbf16>
    tpu.vector_store %arg9[%c28_310, %c1536_311], %342 {strides = array<i32>} : memref<32x3584xbf16, #tpu.memory_space<vmem>>, vector<2x448xbf16>,
    %344 = vector.extract_strided_slice %337 {offsets = [0, 384], sizes = [2, 448], strides = [1, 1]} : vector<2x896xbf16> to vector<2x448xbf16>
    %c30_312 = arith.constant 30 : index
    %c1536_313 = arith.constant 1536 : index
    %345 = vector.load %arg9[%c30_312, %c1536_313] : memref<32x3584xbf16, #tpu.memory_space<vmem>>, vector<2x448xbf16>
    tpu.vector_store %arg9[%c30_312, %c1536_313], %344 {strides = array<i32>} : memref<32x3584xbf16, #tpu.memory_space<vmem>>, vector<2x448xbf16>,
    %c0_314 = arith.constant 0 : index
    %c10_315 = arith.constant 10 : index
    %c0_316 = arith.constant 0 : index
    %346 = vector.load %arg8[%c0_314, %c10_315, %c0_316] : memref<2x14x896xbf16, #tpu.memory_space<vmem>>, vector<2x1x896xbf16>
    %347 = vector.shape_cast %346 : vector<2x1x896xbf16> to vector<2x896xbf16>
    %348 = vector.extract_strided_slice %347 {offsets = [0, 0], sizes = [2, 448], strides = [1, 1]} : vector<2x896xbf16> to vector<2x448xbf16>
    %c24_317 = arith.constant 24 : index
    %c2048_318 = arith.constant 2048 : index
    %349 = vector.load %arg9[%c24_317, %c2048_318] : memref<32x3584xbf16, #tpu.memory_space<vmem>>, vector<2x448xbf16>
    tpu.vector_store %arg9[%c24_317, %c2048_318], %348 {strides = array<i32>} : memref<32x3584xbf16, #tpu.memory_space<vmem>>, vector<2x448xbf16>,
    %350 = vector.extract_strided_slice %347 {offsets = [0, 128], sizes = [2, 448], strides = [1, 1]} : vector<2x896xbf16> to vector<2x448xbf16>
    %c26_319 = arith.constant 26 : index
    %c2048_320 = arith.constant 2048 : index
    %351 = vector.load %arg9[%c26_319, %c2048_320] : memref<32x3584xbf16, #tpu.memory_space<vmem>>, vector<2x448xbf16>
    tpu.vector_store %arg9[%c26_319, %c2048_320], %350 {strides = array<i32>} : memref<32x3584xbf16, #tpu.memory_space<vmem>>, vector<2x448xbf16>,
    %352 = vector.extract_strided_slice %347 {offsets = [0, 256], sizes = [2, 448], strides = [1, 1]} : vector<2x896xbf16> to vector<2x448xbf16>
    %c28_321 = arith.constant 28 : index
    %c2048_322 = arith.constant 2048 : index
    %353 = vector.load %arg9[%c28_321, %c2048_322] : memref<32x3584xbf16, #tpu.memory_space<vmem>>, vector<2x448xbf16>
    tpu.vector_store %arg9[%c28_321, %c2048_322], %352 {strides = array<i32>} : memref<32x3584xbf16, #tpu.memory_space<vmem>>, vector<2x448xbf16>,
    %354 = vector.extract_strided_slice %347 {offsets = [0, 384], sizes = [2, 448], strides = [1, 1]} : vector<2x896xbf16> to vector<2x448xbf16>
    %c30_323 = arith.constant 30 : index
    %c2048_324 = arith.constant 2048 : index
    %355 = vector.load %arg9[%c30_323, %c2048_324] : memref<32x3584xbf16, #tpu.memory_space<vmem>>, vector<2x448xbf16>
    tpu.vector_store %arg9[%c30_323, %c2048_324], %354 {strides = array<i32>} : memref<32x3584xbf16, #tpu.memory_space<vmem>>, vector<2x448xbf16>,
    %c0_325 = arith.constant 0 : index
    %c11_326 = arith.constant 11 : index
    %c0_327 = arith.constant 0 : index
    %356 = vector.load %arg8[%c0_325, %c11_326, %c0_327] : memref<2x14x896xbf16, #tpu.memory_space<vmem>>, vector<2x1x896xbf16>
    %357 = vector.shape_cast %356 : vector<2x1x896xbf16> to vector<2x896xbf16>
    %358 = vector.extract_strided_slice %357 {offsets = [0, 0], sizes = [2, 448], strides = [1, 1]} : vector<2x896xbf16> to vector<2x448xbf16>
    %c24_328 = arith.constant 24 : index
    %c2560_329 = arith.constant 2560 : index
    %359 = vector.load %arg9[%c24_328, %c2560_329] : memref<32x3584xbf16, #tpu.memory_space<vmem>>, vector<2x448xbf16>
    tpu.vector_store %arg9[%c24_328, %c2560_329], %358 {strides = array<i32>} : memref<32x3584xbf16, #tpu.memory_space<vmem>>, vector<2x448xbf16>,
    %360 = vector.extract_strided_slice %357 {offsets = [0, 128], sizes = [2, 448], strides = [1, 1]} : vector<2x896xbf16> to vector<2x448xbf16>
    %c26_330 = arith.constant 26 : index
    %c2560_331 = arith.constant 2560 : index
    %361 = vector.load %arg9[%c26_330, %c2560_331] : memref<32x3584xbf16, #tpu.memory_space<vmem>>, vector<2x448xbf16>
    tpu.vector_store %arg9[%c26_330, %c2560_331], %360 {strides = array<i32>} : memref<32x3584xbf16, #tpu.memory_space<vmem>>, vector<2x448xbf16>,
    %362 = vector.extract_strided_slice %357 {offsets = [0, 256], sizes = [2, 448], strides = [1, 1]} : vector<2x896xbf16> to vector<2x448xbf16>
    %c28_332 = arith.constant 28 : index
    %c2560_333 = arith.constant 2560 : index
    %363 = vector.load %arg9[%c28_332, %c2560_333] : memref<32x3584xbf16, #tpu.memory_space<vmem>>, vector<2x448xbf16>
    tpu.vector_store %arg9[%c28_332, %c2560_333], %362 {strides = array<i32>} : memref<32x3584xbf16, #tpu.memory_space<vmem>>, vector<2x448xbf16>,
    %364 = vector.extract_strided_slice %357 {offsets = [0, 384], sizes = [2, 448], strides = [1, 1]} : vector<2x896xbf16> to vector<2x448xbf16>
    %c30_334 = arith.constant 30 : index
    %c2560_335 = arith.constant 2560 : index
    %365 = vector.load %arg9[%c30_334, %c2560_335] : memref<32x3584xbf16, #tpu.memory_space<vmem>>, vector<2x448xbf16>
    tpu.vector_store %arg9[%c30_334, %c2560_335], %364 {strides = array<i32>} : memref<32x3584xbf16, #tpu.memory_space<vmem>>, vector<2x448xbf16>,
    %c0_336 = arith.constant 0 : index
    %c12_337 = arith.constant 12 : index
    %c0_338 = arith.constant 0 : index
    %366 = vector.load %arg8[%c0_336, %c12_337, %c0_338] : memref<2x14x896xbf16, #tpu.memory_space<vmem>>, vector<2x1x896xbf16>
    %367 = vector.shape_cast %366 : vector<2x1x896xbf16> to vector<2x896xbf16>
    %368 = vector.extract_strided_slice %367 {offsets = [0, 0], sizes = [2, 448], strides = [1, 1]} : vector<2x896xbf16> to vector<2x448xbf16>
    %c24_339 = arith.constant 24 : index
    %c3072_340 = arith.constant 3072 : index
    %369 = vector.load %arg9[%c24_339, %c3072_340] : memref<32x3584xbf16, #tpu.memory_space<vmem>>, vector<2x448xbf16>
    tpu.vector_store %arg9[%c24_339, %c3072_340], %368 {strides = array<i32>} : memref<32x3584xbf16, #tpu.memory_space<vmem>>, vector<2x448xbf16>,
    %370 = vector.extract_strided_slice %367 {offsets = [0, 128], sizes = [2, 448], strides = [1, 1]} : vector<2x896xbf16> to vector<2x448xbf16>
    %c26_341 = arith.constant 26 : index
    %c3072_342 = arith.constant 3072 : index
    %371 = vector.load %arg9[%c26_341, %c3072_342] : memref<32x3584xbf16, #tpu.memory_space<vmem>>, vector<2x448xbf16>
    tpu.vector_store %arg9[%c26_341, %c3072_342], %370 {strides = array<i32>} : memref<32x3584xbf16, #tpu.memory_space<vmem>>, vector<2x448xbf16>,
    %372 = vector.extract_strided_slice %367 {offsets = [0, 256], sizes = [2, 448], strides = [1, 1]} : vector<2x896xbf16> to vector<2x448xbf16>
    %c28_343 = arith.constant 28 : index
    %c3072_344 = arith.constant 3072 : index
    %373 = vector.load %arg9[%c28_343, %c3072_344] : memref<32x3584xbf16, #tpu.memory_space<vmem>>, vector<2x448xbf16>
    tpu.vector_store %arg9[%c28_343, %c3072_344], %372 {strides = array<i32>} : memref<32x3584xbf16, #tpu.memory_space<vmem>>, vector<2x448xbf16>,
    %374 = vector.extract_strided_slice %367 {offsets = [0, 384], sizes = [2, 448], strides = [1, 1]} : vector<2x896xbf16> to vector<2x448xbf16>
    %c30_345 = arith.constant 30 : index
    %c3072_346 = arith.constant 3072 : index
    %375 = vector.load %arg9[%c30_345, %c3072_346] : memref<32x3584xbf16, #tpu.memory_space<vmem>>, vector<2x448xbf16>
    tpu.vector_store %arg9[%c30_345, %c3072_346], %374 {strides = array<i32>} : memref<32x3584xbf16, #tpu.memory_space<vmem>>, vector<2x448xbf16>,
    %cst_347 = arith.constant 0.000000e+00 : bf16
    %376 = vector.broadcast %cst_347 : bf16 to vector<32x64xbf16>
    %c0_348 = arith.constant 0 : index
    %c448_349 = arith.constant 448 : index
    %377 = vector.load %arg9[%c0_348, %c448_349] : memref<32x3584xbf16, #tpu.memory_space<vmem>>, vector<32x64xbf16>
    tpu.vector_store %arg9[%c0_348, %c448_349], %376 {strides = array<i32>} : memref<32x3584xbf16, #tpu.memory_space<vmem>>, vector<32x64xbf16>,
    %c0_350 = arith.constant 0 : index
    %c960 = arith.constant 960 : index
    %378 = vector.load %arg9[%c0_350, %c960] : memref<32x3584xbf16, #tpu.memory_space<vmem>>, vector<32x64xbf16>
    tpu.vector_store %arg9[%c0_350, %c960], %376 {strides = array<i32>} : memref<32x3584xbf16, #tpu.memory_space<vmem>>, vector<32x64xbf16>,
    %c0_351 = arith.constant 0 : index
    %c1472 = arith.constant 1472 : index
    %379 = vector.load %arg9[%c0_351, %c1472] : memref<32x3584xbf16, #tpu.memory_space<vmem>>, vector<32x64xbf16>
    tpu.vector_store %arg9[%c0_351, %c1472], %376 {strides = array<i32>} : memref<32x3584xbf16, #tpu.memory_space<vmem>>, vector<32x64xbf16>,
    %c0_352 = arith.constant 0 : index
    %c1984 = arith.constant 1984 : index
    %380 = vector.load %arg9[%c0_352, %c1984] : memref<32x3584xbf16, #tpu.memory_space<vmem>>, vector<32x64xbf16>
    tpu.vector_store %arg9[%c0_352, %c1984], %376 {strides = array<i32>} : memref<32x3584xbf16, #tpu.memory_space<vmem>>, vector<32x64xbf16>,
    %c0_353 = arith.constant 0 : index
    %c2496 = arith.constant 2496 : index
    %381 = vector.load %arg9[%c0_353, %c2496] : memref<32x3584xbf16, #tpu.memory_space<vmem>>, vector<32x64xbf16>
    tpu.vector_store %arg9[%c0_353, %c2496], %376 {strides = array<i32>} : memref<32x3584xbf16, #tpu.memory_space<vmem>>, vector<32x64xbf16>,
    %c0_354 = arith.constant 0 : index
    %c3008 = arith.constant 3008 : index
    %382 = vector.load %arg9[%c0_354, %c3008] : memref<32x3584xbf16, #tpu.memory_space<vmem>>, vector<32x64xbf16>
    tpu.vector_store %arg9[%c0_354, %c3008], %376 {strides = array<i32>} : memref<32x3584xbf16, #tpu.memory_space<vmem>>, vector<32x64xbf16>,
    %c0_355 = arith.constant 0 : index
    %c3520 = arith.constant 3520 : index
    %383 = vector.load %arg9[%c0_355, %c3520] : memref<32x3584xbf16, #tpu.memory_space<vmem>>, vector<32x64xbf16>
    tpu.vector_store %arg9[%c0_355, %c3520], %376 {strides = array<i32>} : memref<32x3584xbf16, #tpu.memory_space<vmem>>, vector<32x64xbf16>,
    %c0_356 = arith.constant 0 : index
    %c0_357 = arith.constant 0 : index
    %384 = vector.load %arg9[%c0_356, %c0_357] : memref<32x3584xbf16, #tpu.memory_space<vmem>>, vector<32x3584xbf16>
    %c0_358 = arith.constant 0 : index
    %c0_359 = arith.constant 0 : index
    %385 = vector.load %arg4[%c0_358, %c0_359] : memref<3584x64xbf16, #tpu.memory_space<vmem>>, vector<3584x64xbf16>
    %cst_360 = arith.constant dense<0.000000e+00> : vector<32x64xf32>
    %386 = tpu.matmul %384, %385, %cst_360 {dimension_numbers = #tpu.dot_dimension_numbers<[1], [0], [0], [1], [0, 0, 1, 1], [], []>} : vector<32x3584xbf16>, vector<3584x64xbf16>, vector<32x64xf32> -> vector<32x64xf32>
    %cst_361 = arith.constant dense<0.000000e+00> : vector<64xf32>
    %387 = vector.multi_reduction <add>, %386, %cst_361 [0] : vector<32x64xf32> to vector<64xf32>
    %388 = vector.shape_cast %387 : vector<64xf32> to vector<1x64xf32>
    %cst_362 = arith.constant 3.125000e-02 : f32
    %389 = vector.broadcast %cst_362 : f32 to vector<1x64xf32>
    %390 = arith.mulf %388, %389 : vector<1x64xf32>
    %391 = vector.broadcast %390 : vector<1x64xf32> to vector<32x64xf32>
    %392 = arith.subf %386, %391 : vector<32x64xf32>
    %393 = arith.mulf %392, %392 : vector<32x64xf32>
    %cst_363 = arith.constant dense<0.000000e+00> : vector<64xf32>
    %394 = vector.multi_reduction <add>, %393, %cst_363 [0] : vector<32x64xf32> to vector<64xf32>
    %395 = vector.shape_cast %394 : vector<64xf32> to vector<1x64xf32>
    %cst_364 = arith.constant 3.125000e-02 : f32
    %396 = vector.broadcast %cst_364 : f32 to vector<1x64xf32>
    %397 = arith.mulf %395, %396 : vector<1x64xf32>
    %cst_365 = arith.constant 9.99999974E-6 : f32
    %398 = vector.broadcast %cst_365 : f32 to vector<1x64xf32>
    %399 = arith.addf %397, %398 : vector<1x64xf32>
    %400 = math.rsqrt %399 : vector<1x64xf32>
    %401 = vector.broadcast %400 : vector<1x64xf32> to vector<32x64xf32>
    %402 = arith.mulf %392, %401 : vector<32x64xf32>
    %c0_366 = arith.constant 0 : index
    %c0_367 = arith.constant 0 : index
    %403 = vector.load %arg5[%c0_366, %c0_367] : memref<1x64xf32, #tpu.memory_space<vmem>>, vector<1x64xf32>
    %404 = vector.broadcast %403 : vector<1x64xf32> to vector<32x64xf32>
    %405 = arith.mulf %402, %404 : vector<32x64xf32>
    %c0_368 = arith.constant 0 : index
    %c0_369 = arith.constant 0 : index
    %406 = vector.load %arg6[%c0_368, %c0_369] : memref<1x64xf32, #tpu.memory_space<vmem>>, vector<1x64xf32>
    %407 = vector.broadcast %406 : vector<1x64xf32> to vector<32x64xf32>
    %408 = arith.addf %405, %407 : vector<32x64xf32>
    %c0_370 = arith.constant 0 : index
    %c0_371 = arith.constant 0 : index
    %409 = vector.load %arg7[%c0_370, %c0_371] : memref<32x64xf32, #tpu.memory_space<vmem>>, vector<32x64xf32>
    tpu.vector_store %arg7[%c0_370, %c0_371], %408 {strides = array<i32>} : memref<32x64xf32, #tpu.memory_space<vmem>>, vector<32x64xf32>,
    return
  }
}

</mosaic_0001>

<bundles_post_ra>
// kernel: basic_model_forward.1
= control target key start
LH: loop header
LB: loop body
LE: loop exit
PB: predicated region body
PF: predicated region fallthrough
CT: control target
= control target key end

     0   :  { %vm348_vm0 = vcmask 523264   ;;  %vm529_vm1 = vcmask 1041408   ;;  %vm530_vm2 = vsmask.f32 1280  ;;  %vm561_vm3 = vsmask.f32 7942  ;;  %s14011_s1 = inlined_call_operand.vmem [shape: bf16[256,64], index: 1, kind: input, shape index: {}]   ;;  %s14012_s0 = inlined_call_operand.vmem [shape: bf16[128,256], index: 0, kind: input, shape index: {}]   ;;  %s14013_s2 = inlined_call_operand.vmem [shape: f32[1,64], index: 2, kind: input, shape index: {}]   ;;  %s14014_s3 = inlined_call_operand.vmem [shape: f32[1,64], index: 3, kind: input, shape index: {}]   ;;  %s14015_s4 = inlined_call_operand.vmem [shape: bf16[3584,64], index: 4, kind: input, shape index: {}]   ;;  %s14016_s5 = inlined_call_operand.vmem [shape: f32[1,64], index: 5, kind: input, shape index: {}]   ;;  %s14017_s6 = inlined_call_operand.vmem [shape: f32[1,64], index: 6, kind: input, shape index: {}]   ;;  %s14018_s7 = inlined_call_operand.vmem [shape: f32[32,64], index: 7, kind: output, shape index: {}]  }
   0x1   :  { %v9011_v0 = vld [vmem:[%s14011_s1 + $0x40] sm:$0xff]   ;;  %v9013_v2 = vld [vmem:[%s14011_s1 + $0x48] sm:$0xff]   ;;  %v9015_v4 = vld [vmem:[%s14011_s1 + $0x50] sm:$0xff]   ;;  %vm560_vm4 = vcmask 1042433   ;;  %vm532_vm5 = vcmask 1045508   ;;  %vm611_vm11 = vcmask 1043969  }
   0x2   :  { %v9012_v1 = vld [vmem:[%s14011_s1] sm:$0xff]   ;;  %8553 = vmatprep.subr.bf16.mxu0 %v9011_v0  ;;  %v9014_v3 = vld [vmem:[%s14011_s1 + $0x8] sm:$0xff]   ;;  %v9016_v5 = vld [vmem:[%s14011_s1 + $0x10] sm:$0xff]   ;;  %vm533_vm6 = vsmask.f32 5376  ;;  %vm613_vm12 = vcmask 1047557  }
   0x3   :  { %8554 = vmatpush3.bf16.msra.mxu0 %v9012_v1  ;;  %v9017_v6 = vld [vmem:[%s14011_s1 + $0x58] sm:$0xff]   ;;  %v9019_v8 = vld [vmem:[%s14011_s1 + $0x60] sm:$0xff]   ;;  %v9021_v10 = vld [vmem:[%s14011_s1 + $0x68] sm:$0xff]   ;;  %vm564_vm14 = vsmask.f32 7958 }
   0x4   :  { %8555 = vmatprep.subr.bf16.mxu0 %v9013_v2  ;;  %v9018_v7 = vld [vmem:[%s14011_s1 + $0x18] sm:$0xff]   ;;  %v9020_v9 = vld [vmem:[%s14011_s1 + $0x20] sm:$0xff]   ;;  %v9022_v12 = vld [vmem:[%s14011_s1 + $0x28] sm:$0xff]  }
   0x5   :  { %v9029_v11 = vld [vmem:[%s14012_s0 + $0x4] ss:$8 sps:$4 sm:$0xff]   ;;  %v9023_v13 = vld [vmem:[%s14011_s1 + $0x70] sm:$0xff]   ;;  %v9025_v15 = vld [vmem:[%s14011_s1 + $0x78] sm:$0xff]  }
   0x6   :  { %283 = vmatprep.mubr.bf16.mxu0 %v9029_v11  ;;  %v9024_v14 = vld [vmem:[%s14011_s1 + $0x30] sm:$0xff]   ;;  %v9026_v16 = vld [vmem:[%s14011_s1 + $0x38] sm:$0xff]   ;;  %v9027_v17 = vld [vmem:[%s14012_s0] ss:$8 sps:$4 sm:$0xff]  }
   0x7   :  { %8556 = vmatpush3.bf16.msra.mxu0 %v9014_v3  ;;  %v9030_v18 = vld [vmem:[%s14012_s0 + $0x14] ss:$8 sps:$4 sm:$0xff]   ;;  %v9032_v19 = vld [vmem:[%s14012_s0 + $0x10] ss:$8 sps:$4 sm:$0xff]   ;;  %v9033_v20 = vld [vmem:[%s14012_s0 + $0x24] ss:$8 sps:$4 sm:$0xff]  }
   0x8   :  { %8557 = vmatprep.subr.bf16.mxu0 %v9015_v4  ;;  %v9035_v21 = vld [vmem:[%s14012_s0 + $0x20] ss:$8 sps:$4 sm:$0xff]   ;;  %v9036_v22 = vld [vmem:[%s14012_s0 + $0x34] ss:$8 sps:$4 sm:$0xff]   ;;  %v9038_v23 = vld [vmem:[%s14012_s0 + $0x30] ss:$8 sps:$4 sm:$0xff]  }
   0x9   :  { %v9039_v24 = vld [vmem:[%s14012_s0 + $0x44] ss:$8 sps:$4 sm:$0xff]   ;;  %v9041_v25 = vld [vmem:[%s14012_s0 + $0x40] ss:$8 sps:$4 sm:$0xff]   ;;  %v9042_v26 = vld [vmem:[%s14012_s0 + $0x54] ss:$8 sps:$4 sm:$0xff]  }
   0xa   :  { %v9044_v27 = vld [vmem:[%s14012_s0 + $0x50] ss:$8 sps:$4 sm:$0xff]   ;;  %v9045_v28 = vld [vmem:[%s14012_s0 + $0x64] ss:$8 sps:$4 sm:$0xff]   ;;  %v9047_v29 = vld [vmem:[%s14012_s0 + $0x60] ss:$8 sps:$4 sm:$0xff]  }
   0xb   :  { %8558 = vmatpush3.bf16.msra.mxu0 %v9016_v5  ;;  %v9048_v30 = vld [vmem:[%s14012_s0 + $0x74] ss:$8 sps:$4 sm:$0xff]   ;;  %v9050_v31 = vld [vmem:[%s14012_s0 + $0x70] ss:$8 sps:$4 sm:$0xff]   ;;  %vm9800_vm7 = vmand %vm560_vm4, %vm561_vm3  ;;  %vm563_vm4 = vcmask 1046533  }
   0xc   :  { %8559 = vmatprep.subr.bf16.mxu0 %v9017_v6  ;;  %vm9805_vm8 = vmand %vm529_vm1, %vm530_vm2 }
   0xd   :  { %vm9816_vm9 = vmand %vm532_vm5, %vm533_vm6 }
   0xe   :  { %vm9828_vm10 = vmor %vm9816_vm9, %vm9805_vm8 }
   0xf   :  { %8560 = vmatpush3.bf16.msra.mxu0 %v9018_v7  ;;  %vm9842_vm13 = vmand %vm611_vm11, %vm561_vm3 }
  0x10   :  { %8561 = vmatprep.subr.bf16.mxu0 %v9019_v8  ;;  %vm9849_vm15 = vmand %vm613_vm12, %vm564_vm14  ;;  %v9984_v8 = vld [vmem:[%s14013_s2] ss:$0 sm:$0xff]  ;;  %vm593_vm12 = vcmask 523269  }
  0x11   :  { %vm615_vm1 = vmor %vm9849_vm15, %vm9842_vm13  ;;  %vm668_vm15 = vcmask 519169  }
  0x12   :  { %vm565_vm5 = vmand %vm563_vm4, %vm564_vm14 }
  0x13   :  { %8562 = vmatpush3.bf16.msra.mxu0 %v9020_v9  ;;  %v576_v9 = vld [vmem:[#allocation2 + $0x34] sm:$0x6]  ;;  %vm9971_vm11 = vmor %vm565_vm5, %vm9800_vm7 }
  0x14   :  { %8563 = vmatprep.subr.bf16.mxu0 %v9021_v10  ;;  %v588_v10 = vld [vmem:[#allocation2 + $0x6c] sm:$0x6]  ;;  %vm10080_vm4 = vmand %vm593_vm12, %vm564_vm14 }
  0x15   :  { %vm10095_vm5 = vmand %vm668_vm15, %vm561_vm3 }
  0x17   :  { %8564 = vmatpush3.bf16.msra.mxu0 %v9022_v12  ;;  %v14458_v12 = vmov 0 }
  0x18   :  { %8565 = vmatprep.subr.bf16.mxu0 %v9023_v13  ;;  %v14459_v12 = vsel %vm9805_vm8, 4294967295, %v14458_v12  ;;  %v577_v13 = vsel %vm9800_vm7, 0, %v576_v9 }
  0x19   :  { %14460 = vst [vmem:[#allocation4_spill] sm:$0xff] %v14459_v12  ;;  %578 = vst [vmem:[#allocation2 + $0x34] sm:$0x6] %v577_v13  ;;  %v551_v13 = vld [vmem:[#allocation2 + $0x40] sm:$0x33] }
  0x1b   :  { %8566 = vmatpush3.bf16.msra.mxu0 %v9024_v14  ;;  %v589_v14 = vsel %vm9800_vm7, 0, %v588_v10  ;;  %vm591_vm7 = vcmask 1043457  }
  0x1c   :  { %8567 = vmatprep.subr.bf16.mxu0 %v9025_v15  ;;  %590 = vst [vmem:[#allocation2 + $0x6c] sm:$0x6] %v589_v14  ;;  %v552_v14 = vsel %vm9828_vm10, 0, %v551_v13 }
  0x1d   :  { %553 = vst [vmem:[#allocation2 + $0x40] sm:$0x33] %v552_v14 }
  0x1f   :  { %8568 = vmatpush3.bf16.msra.mxu0 %v9026_v16 }
  0x22   :  { %284 = vmatmul.mubr.bf16.vlgmr.msra.gmra.mrb[0].mxu0 %v9027_v17 }
  0x23   :  { %291 = vmatprep.mubr.bf16.mxu0 %v9030_v18 }
  0x2a   :  { %292 = vmatmul.mubr.bf16.gmra.mrb[4].mxu0 %v9032_v19 }
  0x2b   :  { %299 = vmatprep.mubr.bf16.mxu0 %v9033_v20 }
  0x32   :  { %300 = vmatmul.mubr.bf16.gmra.mrb[8].mxu0 %v9035_v21 }
  0x33   :  { %307 = vmatprep.mubr.bf16.mxu0 %v9036_v22 }
  0x3a   :  { %308 = vmatmul.mubr.bf16.gmra.mrb[12].mxu0 %v9038_v23 }
  0x3b   :  { %315 = vmatprep.mubr.bf16.mxu0 %v9039_v24 }
  0x42   :  { %316 = vmatmul.mubr.bf16.gmra.mrb[16].mxu0 %v9041_v25  ;;  %v539_v25 = vld [vmem:[#allocation2 + $0x8] sm:$0x33] }
  0x43   :  { %323 = vmatprep.mubr.bf16.mxu0 %v9042_v26  ;;  %v542_v26 = vld [vmem:[#allocation2 + $0x10] sm:$0x33] }
  0x4a   :  { %324 = vmatmul.mubr.bf16.gmra.mrb[20].mxu0 %v9044_v27 }
  0x4b   :  { %331 = vmatprep.mubr.bf16.mxu0 %v9045_v28  ;;  %v540_v28 = vsel %vm9828_vm10, 0, %v539_v25 }
  0x4c   :  { %541 = vst [vmem:[#allocation2 + $0x8] sm:$0x33] %v540_v28 }
  0x52   :  { %332 = vmatmul.mubr.bf16.gmra.mrb[24].mxu0 %v9047_v29  ;;  %v543_v29 = vsel %vm9828_vm10, 0, %v542_v26 }
  0x53   :  { %339 = vmatprep.mubr.bf16.mxu0 %v9048_v30  ;;  %v545_v30 = vld [vmem:[#allocation2 + $0x18] sm:$0x3]  ;;  %544 = vst [vmem:[#allocation2 + $0x10] sm:$0x33] %v543_v29 }
  0x5a   :  { %340 = vmatmul.mubr.bf16.gmra.mrb[28].mxu0 %v9050_v31 }
  0xf5   :  { %v8569_v32 = vpop.f32.mrb[0].mxu0 }
  0xf6   :  { %v8570_v33 = vpop.f32.mrb[1].mxu0 }
  0xf7   :  { %v9767_v34 = vadd.f32 %v8570_v33, %v8569_v32  ;;  %v8572_v35 = vpop.f32.mrb[2].mxu0  ;;  %v546_v32 = vsel %vm9805_vm8, 0, %v545_v30 }
  0xf8   :  { %v8573_v36 = vpop.f32.mrb[3].mxu0  ;;  %547 = vst [vmem:[#allocation2 + $0x18] sm:$0x3] %v546_v32 }
  0xf9   :  { %v9769_v37 = vadd.f32 %v8573_v36, %v8572_v35  ;;  %v349_v38 = vsel %vm348_vm0, %v9767_v34, 0.0 }
  0xfb   :  { %v350_v39 = vsel %vm348_vm0, %v9769_v37, 0.0 }
  0xfc   :  { %v351_v40 = vadd.f32 %v350_v39, %v349_v38 }
  0xfd   :  { %v8575_v41 = vpop.f32.mrb[4].mxu0 }
  0xfe   :  { %v8576_v42 = vpop.f32.mrb[5].mxu0 }
  0xff   :  { %v9775_v43 = vadd.f32 %v8576_v42, %v8575_v41  ;;  %v8578_v44 = vpop.f32.mrb[6].mxu0 }
 0x100   :  { %v8579_v45 = vpop.f32.mrb[7].mxu0 }
 0x101   :  { %v352_v46 = vsel %vm348_vm0, %v9775_v43, 0.0  ;;  %v9779_v47 = vadd.f32 %v8579_v45, %v8578_v44 }
 0x102   :  { %v353_v48 = vadd.f32 %v352_v46, %v351_v40 }
 0x103   :  { %v354_v49 = vsel %vm348_vm0, %v9779_v47, 0.0 }
 0x104   :  { %v355_v50 = vadd.f32 %v354_v49, %v353_v48  ;;  %v616_v49 = vld [vmem:[#allocation2 + $0x14] sm:$0xee] }
 0x105   :  { %v8581_v51 = vpop.f32.mrb[8].mxu0 }
 0x106   :  { %v8582_v52 = vpop.f32.mrb[9].mxu0 }
 0x107   :  { %v9783_v53 = vadd.f32 %v8582_v52, %v8581_v51  ;;  %v8584_v54 = vpop.f32.mrb[10].mxu0  ;;  %v617_v52 = vsel %vm615_vm1, 0, %v616_v49 }
 0x108   :  { %v8585_v55 = vpop.f32.mrb[11].mxu0  ;;  %618 = vst [vmem:[#allocation2 + $0x14] sm:$0xee] %v617_v52 }
 0x109   :  { %v356_v56 = vsel %vm348_vm0, %v9783_v53, 0.0  ;;  %v9787_v57 = vadd.f32 %v8585_v55, %v8584_v54 }
 0x10a   :  { %v357_v58 = vadd.f32 %v356_v56, %v355_v50 }
 0x10b   :  { %v358_v59 = vsel %vm348_vm0, %v9787_v57, 0.0 }
 0x10c   :  { %v359_v60 = vadd.f32 %v358_v59, %v357_v58 }
 0x10d   :  { %v8587_v61 = vpop.f32.mrb[12].mxu0 }
 0x10e   :  { %v8588_v62 = vpop.f32.mrb[13].mxu0 }
 0x10f   :  { %v9791_v63 = vadd.f32 %v8588_v62, %v8587_v61  ;;  %v8590_v0 = vpop.f32.mrb[14].mxu0 }
 0x110   :  { %v8591_v1 = vpop.f32.mrb[15].mxu0 }
 0x111   :  { %v360_v2 = vsel %vm348_vm0, %v9791_v63, 0.0  ;;  %v9795_v3 = vadd.f32 %v8591_v1, %v8590_v0 }
 0x112   :  { %v361_v4 = vadd.f32 %v360_v2, %v359_v60 }
 0x113   :  { %v362_v5 = vsel %vm348_vm0, %v9795_v3, 0.0 }
 0x114   :  { %v363_v6 = vadd.f32 %v362_v5, %v361_v4 }
 0x115   :  { %v8593_v7 = vpop.f32.mrb[16].mxu0 }
 0x116   :  { %v8594_v11 = vpop.f32.mrb[17].mxu0 }
 0x117   :  { %v9813_v15 = vadd.f32 %v8594_v11, %v8593_v7  ;;  %v8596_v16 = vpop.f32.mrb[18].mxu0 }
 0x118   :  { %v8597_v18 = vpop.f32.mrb[19].mxu0 }
 0x119   :  { %v364_v19 = vsel %vm348_vm0, %v9813_v15, 0.0  ;;  %v9822_v20 = vadd.f32 %v8597_v18, %v8596_v16 }
 0x11a   :  { %v365_v21 = vadd.f32 %v364_v19, %v363_v6 }
 0x11b   :  { %v366_v23 = vsel %vm348_vm0, %v9822_v20, 0.0 }
 0x11c   :  { %v367_v24 = vadd.f32 %v366_v23, %v365_v21  ;;  %v554_v21 = vld [vmem:[#allocation2 + $0x48] sm:$0x33]  ;;  %v557_v23 = vld [vmem:[#allocation2 + $0x50] sm:$0x3] }
 0x11d   :  { %v8599_v27 = vpop.f32.mrb[20].mxu0  ;;  %v555_v25 = vsel %vm9828_vm10, 0, %v554_v21  ;;  %v558_v26 = vsel %vm9805_vm8, 0, %v557_v23 }
 0x11e   :  { %v8600_v31 = vpop.f32.mrb[21].mxu0  ;;  %556 = vst [vmem:[#allocation2 + $0x48] sm:$0x33] %v555_v25  ;;  %559 = vst [vmem:[#allocation2 + $0x50] sm:$0x3] %v558_v26 }
 0x11f   :  { %v8601_v33 = vadd.f32 %v8600_v31, %v8599_v27  ;;  %v8602_v35 = vpop.f32.mrb[22].mxu0 }
 0x120   :  { %v8603_v36 = vpop.f32.mrb[23].mxu0 }
 0x121   :  { %v368_v39 = vsel %vm348_vm0, %v8601_v33, 0.0  ;;  %v8604_v40 = vadd.f32 %v8603_v36, %v8602_v35 }
 0x122   :  { %v369_v42 = vadd.f32 %v368_v39, %v367_v24 }
 0x123   :  { %v370_v44 = vsel %vm348_vm0, %v8604_v40, 0.0 }
 0x124   :  { %v371_v45 = vadd.f32 %v370_v44, %v369_v42 }
 0x125   :  { %v8605_v46 = vpop.f32.mrb[24].mxu0 }
 0x126   :  { %v8606_v48 = vpop.f32.mrb[25].mxu0 }
 0x127   :  { %v8607_v50 = vadd.f32 %v8606_v48, %v8605_v46  ;;  %v8608_v51 = vpop.f32.mrb[26].mxu0  ;;  %v625_v46 = vld [vmem:[#allocation2 + $0x4c] sm:$0xee] }
 0x128   :  { %v8609_v54 = vpop.f32.mrb[27].mxu0 }
 0x129   :  { %v372_v55 = vsel %vm348_vm0, %v8607_v50, 0.0  ;;  %v8610_v56 = vadd.f32 %v8609_v54, %v8608_v51  ;;  %v626_v54 = vsel %vm615_vm1, 0, %v625_v46  ;;  %vm10072_vm1 = vmand %vm591_vm7, %vm561_vm3  ;;  %vm619_vm3 = vcmask 1041920  }
 0x12a   :  { %v373_v58 = vadd.f32 %v372_v55, %v371_v45  ;;  %627 = vst [vmem:[#allocation2 + $0x4c] sm:$0xee] %v626_v54  ;;  %vm595_vm14 = vmor %vm10080_vm4, %vm10072_vm1  ;;  %vm1070_vm1 = vcmask 517121   ;;  %vm1080_vm4 = vcmask 1045509  }
 0x12b   :  { %v374_v59 = vsel %vm348_vm0, %v8610_v56, 0.0  ;;  %vm10150_vm7 = vmand %vm619_vm3, %vm530_vm2  ;;  %vm2165_vm3 = vcmask 522246  }
 0x12c   :  { %v375_v60 = vadd.f32 %v374_v59, %v373_v58  ;;  %vm621_vm12 = vmor %vm9816_vm9, %vm10150_vm7 }
 0x12d   :  { %v8611_v61 = vpop.f32.mrb[28].mxu0 }
 0x12e   :  { %v8612_v62 = vpop.f32.mrb[29].mxu0 }
 0x12f   :  { %v8613_v0 = vadd.f32 %v8612_v62, %v8611_v61  ;;  %v8614_v1 = vpop.f32.mrb[30].mxu0 }
 0x130   :  { %v8615_v2 = vpop.f32.mrb[31].mxu0 }
 0x131   :  { %v376_v4 = vsel %vm348_vm0, %v8613_v0, 0.0  ;;  %v8616_v5 = vadd.f32 %v8615_v2, %v8614_v1 }
 0x132   :  { %v377_v6 = vadd.f32 %v376_v4, %v375_v60 }
 0x133   :  { %v378_v7 = vsel %vm348_vm0, %v8616_v5, 0.0 }
 0x134   :  { %v379_v9 = vadd.f32 %v378_v7, %v377_v6 }
 0x136   :  { %v380_v10 = vrot.slane %v379_v9, 4 }
 0x138   :  { %v381_v11 = vadd.f32 %v380_v10, %v379_v9 }
 0x13a   :  { %v382_v16 = vrot.slane %v381_v11, 2 }
 0x13c   :  { %v383_v18 = vadd.f32 %v382_v16, %v381_v11 }
 0x13e   :  { %v384_v19 = vrot.slane %v383_v18, 1 }
 0x140   :  { %v385_v24 = vadd.f32 %v384_v19, %v383_v18 }
 0x142   :  { %v386_v27 = vmul.f32 0.0078125, %v385_v24 }
 0x144   :  { %v9874_v28 = vsub.f32 %v9767_v34, %v386_v27  ;;  %v9877_v29 = vsub.f32 %v9769_v37, %v386_v27  ;;  %v9880_v30 = vsub.f32 %v9775_v43, %v386_v27  ;;  %v9883_v31 = vsub.f32 %v9779_v47, %v386_v27 }
 0x145   :  { %v9886_v32 = vsub.f32 %v9783_v53, %v386_v27  ;;  %v9889_v35 = vsub.f32 %v9787_v57, %v386_v27  ;;  %v9892_v36 = vsub.f32 %v9791_v63, %v386_v27  ;;  %v9895_v34 = vsub.f32 %v9795_v3, %v386_v27 }
 0x146   :  { %v9898_v37 = vsub.f32 %v9813_v15, %v386_v27  ;;  %v9901_v43 = vsub.f32 %v9822_v20, %v386_v27  ;;  %v9903_v47 = vsub.f32 %v8601_v33, %v386_v27  ;;  %v9905_v39 = vsub.f32 %v8604_v40, %v386_v27 }
 0x147   :  { %v9907_v53 = vsub.f32 %v8607_v50, %v386_v27  ;;  %v9909_v57 = vsub.f32 %v8610_v56, %v386_v27  ;;  %v9911_v42 = vsub.f32 %v8613_v0, %v386_v27  ;;  %v9913_v63 = vsub.f32 %v8616_v5, %v386_v27 }
 0x148   :  { %v403_v3 = vmul.f32 %v9874_v28, %v9874_v28  ;;  %v404_v15 = vmul.f32 %v9877_v29, %v9877_v29  ;;  %v405_v20 = vmul.f32 %v9880_v30, %v9880_v30  ;;  %v406_v33 = vmul.f32 %v9883_v31, %v9883_v31 }
 0x149   :  { %v407_v48 = vmul.f32 %v9886_v32, %v9886_v32  ;;  %v408_v51 = vmul.f32 %v9889_v35, %v9889_v35  ;;  %v409_v56 = vmul.f32 %v9892_v36, %v9892_v36  ;;  %v410_v59 = vmul.f32 %v9895_v34, %v9895_v34 }
 0x14a   :  { %v419_v40 = vsel %vm348_vm0, %v403_v3, 0.0  ;;  %v420_v44 = vsel %vm348_vm0, %v404_v15, 0.0  ;;  %v422_v49 = vsel %vm348_vm0, %v405_v20, 0.0  ;;  %v424_v52 = vsel %vm348_vm0, %v406_v33, 0.0 }
 0x14b   :  { %v421_v45 = vadd.f32 %v420_v44, %v419_v40  ;;  %v426_v58 = vsel %vm348_vm0, %v407_v48, 0.0  ;;  %v411_v61 = vmul.f32 %v9898_v37, %v9898_v37  ;;  %v412_v41 = vmul.f32 %v9901_v43, %v9901_v43 }
 0x14c   :  { %v428_v62 = vsel %vm348_vm0, %v408_v51, 0.0  ;;  %v430_v1 = vsel %vm348_vm0, %v409_v56, 0.0  ;;  %v432_v4 = vsel %vm348_vm0, %v410_v59, 0.0  ;;  %v413_v9 = vmul.f32 %v9903_v47, %v9903_v47  ;;  %v573_v56 = vld [vmem:[#allocation2 + $0x2c] sm:$0x66] }
 0x14d   :  { %v423_v50 = vadd.f32 %v422_v49, %v421_v45  ;;  %v434_v5 = vsel %vm348_vm0, %v411_v61, 0.0  ;;  %v436_v6 = vsel %vm348_vm0, %v412_v41, 0.0  ;;  %v414_v11 = vmul.f32 %v9905_v39, %v9905_v39  ;;  %v570_v59 = vld [vmem:[#allocation2 + $0x24] sm:$0x66] }
 0x14e   :  { %v415_v14 = vmul.f32 %v9907_v53, %v9907_v53  ;;  %v438_v16 = vsel %vm348_vm0, %v413_v9, 0.0  ;;  %v416_v19 = vmul.f32 %v9909_v57, %v9909_v57  ;;  %v417_v24 = vmul.f32 %v9911_v42, %v9911_v42 }
 0x14f   :  { %v425_v55 = vadd.f32 %v424_v52, %v423_v50  ;;  %v440_v21 = vsel %vm348_vm0, %v414_v11, 0.0  ;;  %v418_v27 = vmul.f32 %v9913_v63, %v9913_v63 }
 0x150   :  { %v442_v25 = vsel %vm348_vm0, %v415_v14, 0.0  ;;  %v444_v3 = vsel %vm348_vm0, %v416_v19, 0.0  ;;  %v446_v20 = vsel %vm348_vm0, %v417_v24, 0.0 }
 0x151   :  { %v427_v60 = vadd.f32 %v426_v58, %v425_v55  ;;  %v448_v40 = vsel %vm348_vm0, %v418_v27, 0.0  ;;  %v14469_v55 = vmov 0  ;;  %v574_v58 = vsel %vm9971_vm11, 0, %v573_v56 }
 0x152   :  { %v14470_v55 = vsel %vm9971_vm11, 4294967295, %v14469_v55  ;;  %575 = vst [vmem:[#allocation2 + $0x2c] sm:$0x66] %v574_v58 }
 0x153   :  { %v429_v0 = vadd.f32 %v428_v62, %v427_v60  ;;  %14471 = vst [vmem:[#allocation5_spill] sm:$0xff] %v14470_v55  ;;  %v571_v60 = vsel %vm9971_vm11, 0, %v570_v59 }
 0x154   :  { %572 = vst [vmem:[#allocation2 + $0x24] sm:$0x66] %v571_v60 }
 0x155   :  { %v431_v2 = vadd.f32 %v430_v1, %v429_v0 }
 0x157   :  { %v433_v7 = vadd.f32 %v432_v4, %v431_v2  ;;  %v10005_v4 = vld [vmem:[%s14014_s3] ss:$0 sm:$0xff]  ;;  %s9629_s3 = smov 64  }
 0x159   :  { %v435_v10 = vadd.f32 %v434_v5, %v433_v7 }
 0x15b   :  { %v437_v13 = vadd.f32 %v436_v6, %v435_v10 }
 0x15d   :  { %v439_v18 = vadd.f32 %v438_v16, %v437_v13 }
 0x15f   :  { %v441_v23 = vadd.f32 %v440_v21, %v439_v18 }
 0x161   :  { %v443_v26 = vadd.f32 %v442_v25, %v441_v23 }
 0x163   :  { %v445_v15 = vadd.f32 %v444_v3, %v443_v26 }
 0x165   :  { %v447_v33 = vadd.f32 %v446_v20, %v445_v15 }
 0x167   :  { %v449_v44 = vadd.f32 %v448_v40, %v447_v33 }
 0x169   :  { %v450_v45 = vrot.slane %v449_v44, 4 }
 0x16b   :  { %v451_v46 = vadd.f32 %v450_v45, %v449_v44 }
 0x16d   :  { %v452_v48 = vrot.slane %v451_v46, 2 }
 0x16f   :  { %v453_v49 = vadd.f32 %v452_v48, %v451_v46 }
 0x171   :  { %v454_v50 = vrot.slane %v453_v49, 1 }
 0x173   :  { %v455_v51 = vadd.f32 %v454_v50, %v453_v49 }
 0x175   :  { %v456_v52 = vmul.f32 0.0078125, %v455_v51 }
 0x177   :  { %v457_v54 = vadd.f32 1e-05, %v456_v52 }
 0x179   :  { %9585 = vrsqrt.f32 %v457_v54 }
 0x183   :  { %v9979_v61 = vpop.eup %9585 }
 0x184   :  { %v466_v41 = vmul.f32 %v9979_v61, %v9895_v34  ;;  %v9990_v62 = vmul.f32 %v9979_v61, %v9901_v43  ;;  %v9994_v0 = vmul.f32 %v9979_v61, %v9905_v39  ;;  %v9998_v1 = vmul.f32 %v9979_v61, %v9909_v57 }
 0x185   :  { %v474_v2 = vmul.f32 %v9979_v61, %v9913_v63  ;;  %v463_v34 = vmul.f32 %v9979_v61, %v9886_v32  ;;  %v459_v43 = vmul.f32 %v9979_v61, %v9874_v28  ;;  %v465_v39 = vmul.f32 %v9979_v61, %v9892_v36 }
 0x186   :  { %v489_v57 = vmul.f32 %v9984_v8, %v466_v41  ;;  %v461_v5 = vmul.f32 %v9979_v61, %v9880_v30  ;;  %v469_v28 = vmul.f32 %v9979_v61, %v9903_v47 }
 0x187   :  { %v486_v63 = vmul.f32 %v9984_v8, %v463_v34  ;;  %v482_v6 = vmul.f32 %v9984_v8, %v459_v43  ;;  %v488_v7 = vmul.f32 %v9984_v8, %v465_v39  ;;  %v497_v14 = vmul.f32 %v9984_v8, %v474_v2 }
 0x188   :  { %v512_v9 = vadd.f32 %v10005_v4, %v489_v57  ;;  %v484_v32 = vmul.f32 %v9984_v8, %v461_v5  ;;  %v492_v13 = vmul.f32 %v9984_v8, %v469_v28  ;;  %v467_v57 = vmul.f32 %v9979_v61, %v9898_v37 }
 0x189   :  { %v509_v36 = vadd.f32 %v10005_v4, %v486_v63  ;;  %v505_v10 = vadd.f32 %v10005_v4, %v482_v6  ;;  %v511_v11 = vadd.f32 %v10005_v4, %v488_v7  ;;  %v520_v3 = vadd.f32 %v10005_v4, %v497_v14  ;;  %v536_v6 = vld [vmem:[#allocation2] sm:$0x33] }
 0x18a   :  { %v507_v30 = vadd.f32 %v10005_v4, %v484_v32  ;;  %v8544_v16 = vpack.c.bf16 %v512_v9, %v512_v9  ;;  %v515_v27 = vadd.f32 %v10005_v4, %v492_v13  ;;  %v473_v5 = vmul.f32 %v9979_v61, %v9911_v42 }
 0x18b   :  { %v8541_v18 = vpack.c.bf16 %v509_v36, %v509_v36  ;;  %v8537_v19 = vpack.c.bf16 %v505_v10, %v505_v10  ;;  %v8543_v21 = vpack.c.bf16 %v511_v11, %v511_v11  ;;  %v10037_v2 = vpack.c.bf16 %v520_v3, %v520_v3 }
 0x18c   :  { %v8539_v25 = vpack.c.bf16 %v507_v30, %v507_v30  ;;  %v791_v15 = vshrl.u32 %v8544_v16, 16  ;;  %v8547_v56 = vpack.c.bf16 %v515_v27, %v515_v27  ;;  %v794_v58 = vshll.u32 %v8544_v16, 16 }
 0x18d   :  { %v725_v23 = vshrl.u32 %v8541_v18, 16  ;;  %v728_v24 = vshll.u32 %v8541_v18, 16  ;;  %v635_v47 = vshrl.u32 %v8537_v19, 16  ;;  %v638_v26 = vshll.u32 %v8537_v19, 16 }
 0x18e   :  { %v768_v45 = vshrl.u32 %v8543_v21, 16  ;;  %v771_v46 = vshll.u32 %v8543_v21, 16  ;;  %v682_v49 = vshrl.u32 %v8539_v25, 16  ;;  %v685_v50 = vshll.u32 %v8539_v25, 16 }
 0x18f   :  { %v727_v20 = vrot.slane %v725_v23, 6  ;;  %v730_v33 = vrot.slane %v728_v24, 7  ;;  %v637_v40 = vrot.slane %v635_v47, 6  ;;  %v640_v44 = vrot.slane %v638_v26, 7 }
 0x190   :  { %v770_v52 = vrot.slane %v768_v45, 6  ;;  %v773_v54 = vrot.slane %v771_v46, 7  ;;  %v684_v59 = vrot.slane %v682_v49, 6  ;;  %v687_v60 = vrot.slane %v685_v50, 7 }
 0x191   :  { %v10031_v48 = vor.u32 %v730_v33, %v727_v20  ;;  %v10033_v51 = vor.u32 %v640_v44, %v637_v40  ;;  %v793_v41 = vrot.slane %v791_v15, 6  ;;  %v855_v34 = vshrl.u32 %v8547_v56, 16 }
 0x192   :  { %v858_v43 = vshll.u32 %v8547_v56, 16  ;;  %v10041_v39 = vor.u32 %v773_v54, %v770_v52  ;;  %v471_v63 = vmul.f32 %v9979_v61, %v9907_v53  ;;  %v10049_v7 = vor.u32 %v687_v60, %v684_v59 }
 0x193   :  { %733 = vrot.lane.b32.xlu1 %v10031_v48, %s9629_s3  ;;  %643 = vrot.lane.b32.xlu0 %v10033_v51, %s9629_s3  ;;  %v857_v9 = vrot.slane %v855_v34, 6  ;;  %v462_v28 = vmul.f32 %v9979_v61, %v9883_v31  ;;  %v796_v36 = vrot.slane %v794_v58, 7  ;;  %v490_v37 = vmul.f32 %v9984_v8, %v467_v57  ;;  %v801_v58 = vld [vmem:[#allocation2 + $0x14] sm:$0xe] }
 0x194   :  { %v860_v32 = vrot.slane %v858_v43, 7  ;;  %v496_v10 = vmul.f32 %v9984_v8, %v473_v5  ;;  %v494_v42 = vmul.f32 %v9984_v8, %v471_v63  ;;  %v537_v31 = vsel %vm9828_vm10, 0, %v536_v6  ;;  %v715_v5 = vld [vmem:[#allocation2 + $0xc] sm:$0xe] }
 0x195   :  { %v485_v11 = vmul.f32 %v9984_v8, %v462_v28  ;;  %v513_v30 = vadd.f32 %v10005_v4, %v490_v37  ;;  %538 = vst [vmem:[#allocation2] sm:$0x33] %v537_v31  ;;  %v495_v16 = vmul.f32 %v9984_v8, %v9998_v1  ;;  %v964_v21 = vshrl.u32 %v10037_v2, 16 }
 0x196   :  { %v10060_v53 = vor.u32 %v860_v32, %v857_v9  ;;  %v519_v13 = vadd.f32 %v10005_v4, %v496_v10  ;;  %v517_v14 = vadd.f32 %v10005_v4, %v494_v42  ;;  %v967_v1 = vshll.u32 %v10037_v2, 16 }
 0x197   :  { %776 = vrot.lane.b32.xlu1 %v10041_v39, %s9629_s3  ;;  %690 = vrot.lane.b32.xlu0 %v10049_v7, %s9629_s3  ;;  %v508_v18 = vadd.f32 %v10005_v4, %v485_v11  ;;  %v8545_v23 = vpack.c.bf16 %v513_v30, %v513_v30  ;;  %v464_v27 = vmul.f32 %v9979_v61, %v9889_v35  ;;  %v966_v9 = vrot.slane %v964_v21, 6  ;;  %v974_v21 = vld [vmem:[#allocation2 + $0x4c] sm:$0xe]  ;;  %v9158_v35 = vld [vmem:[%s14015_s4 + $0x100] sm:$0xff]  }
 0x198   :  { %v8551_v24 = vpack.c.bf16 %v519_v13, %v519_v13  ;;  %v8549_v25 = vpack.c.bf16 %v517_v14, %v517_v14  ;;  %v10087_v3 = vor.u32 %v796_v36, %v793_v41  ;;  %v969_v32 = vrot.slane %v967_v1, 7 }
 0x199   :  { %v8540_v26 = vpack.c.bf16 %v508_v18, %v508_v18  ;;  %v811_v15 = vshrl.u32 %v8545_v23, 16  ;;  %v814_v20 = vshll.u32 %v8545_v23, 16  ;;  %v487_v6 = vmul.f32 %v9984_v8, %v464_v27  ;;  %v758_v27 = vld [vmem:[#allocation2 + $0x10] sm:$0xe] }
 0x19a   :  { %v941_v33 = vshrl.u32 %v8551_v24, 16  ;;  %v944_v40 = vshll.u32 %v8551_v24, 16  ;;  %v898_v44 = vshrl.u32 %v8549_v25, 16  ;;  %v901_v45 = vshll.u32 %v8549_v25, 16 }
 0x19b   :  { %863 = vrot.lane.b32.xlu1 %v10060_v53, %s9629_s3  ;;  %v705_v46 = vshrl.u32 %v8540_v26, 16  ;;  %v708_v49 = vshll.u32 %v8540_v26, 16  ;;  %v813_v50 = vrot.slane %v811_v15, 6  ;;  %v816_v52 = vrot.slane %v814_v20, 7 }
 0x19c   :  { %v943_v54 = vrot.slane %v941_v33, 6  ;;  %v946_v56 = vrot.slane %v944_v40, 7  ;;  %v900_v59 = vrot.slane %v898_v44, 6  ;;  %v903_v60 = vrot.slane %v901_v45, 7  ;;  %v596_v34 = vld [vmem:[#allocation2] sm:$0xee] }
 0x19d   :  { %v707_v41 = vrot.slane %v705_v46, 6  ;;  %v710_v2 = vrot.slane %v708_v49, 7  ;;  %v817_v43 = vor.u32 %v816_v52, %v813_v50  ;;  %v597_v63 = vsel %vm595_vm14, 0, %v596_v34 }
 0x19e   :  { %v10099_v57 = vor.u32 %v946_v56, %v943_v54  ;;  %598 = vst [vmem:[#allocation2] sm:$0xee] %v597_v63  ;;  %v802_v36 = vsel %vm10095_vm5, %v10087_v3, %v801_v58  ;;  %v510_v37 = vadd.f32 %v10005_v4, %v487_v6  ;;  %v732_v42 = vrot.slane %v10031_v48, 4  ;;  %v718_v6 = vld [vmem:[#allocation2 + $0x28] sm:$0x3] }
 0x19f   :  { %v10107_v28 = vor.u32 %v710_v2, %v707_v41  ;;  %819 = vrot.lane.b32.xlu0 %v817_v43, %s9629_s3  ;;  %803 = vst [vmem:[#allocation2 + $0x14] sm:$0xe] %v802_v36  ;;  %v904_v11 = vor.u32 %v903_v60, %v900_v59  ;;  %v518_v30 = vadd.f32 %v10005_v4, %v495_v16  ;;  %v689_v24 = vrot.slane %v10049_v7, 4  ;;  %v548_v7 = vld [vmem:[#allocation2 + $0x38] sm:$0x33] }
 0x1a0   :  { %949 = vrot.lane.b32.xlu1 %v10099_v57, %s9629_s3  ;;  %v8542_v31 = vpack.c.bf16 %v510_v37, %v510_v37  ;;  %v10121_v13 = vor.u32 %v969_v32, %v966_v9  ;;  %v493_v23 = vmul.f32 %v9984_v8, %v9994_v0  ;;  %v818_v48 = vrot.slane %v817_v43, 4  ;;  %v845_v36 = vld [vmem:[#allocation2 + $0x40] sm:$0xe] }
 0x1a1   :  { %v716_v10 = vsel %vm10095_vm5, %v10107_v28, %v715_v5  ;;  %v8550_v26 = vpack.c.bf16 %v518_v30, %v518_v30  ;;  %v460_v16 = vmul.f32 %v9979_v61, %v9877_v29  ;;  %v491_v15 = vmul.f32 %v9984_v8, %v9990_v62 }
 0x1a2   :  { %717 = vst [vmem:[#allocation2 + $0xc] sm:$0xe] %v716_v10  ;;  %v748_v14 = vshrl.u32 %v8542_v31, 16  ;;  %v751_v18 = vshll.u32 %v8542_v31, 16  ;;  %v975_v20 = vsel %vm10095_vm5, %v10121_v13, %v974_v21  ;;  %v775_v33 = vrot.slane %v10041_v39, 4 }
 0x1a3   :  { %906 = vrot.lane.b32.xlu0 %v904_v11, %s9629_s3  ;;  %976 = vst [vmem:[#allocation2 + $0x4c] sm:$0xe] %v975_v20  ;;  %v483_v29 = vmul.f32 %v9984_v8, %v460_v16  ;;  %v516_v61 = vadd.f32 %v10005_v4, %v493_v23  ;;  %v905_v62 = vrot.slane %v904_v11, 4  ;;  %v514_v44 = vadd.f32 %v10005_v4, %v491_v15  ;;  %v582_v15 = vld [vmem:[#allocation2 + $0x5c] sm:$0x66] }
 0x1a4   :  { %735 = vrot.lane.b32.xlu1 %v732_v42, %s9629_s3  ;;  %v750_v25 = vrot.slane %v748_v14, 6  ;;  %v753_v1 = vrot.slane %v751_v18, 7  ;;  %v549_v45 = vsel %vm9828_vm10, 0, %v548_v7  ;;  %v921_v49 = vshrl.u32 %v8550_v26, 16  ;;  %v888_v14 = vld [vmem:[#allocation2 + $0x44] sm:$0xe] }
 0x1a5   :  { %v506_v46 = vadd.f32 %v10005_v4, %v483_v29  ;;  %550 = vst [vmem:[#allocation2 + $0x38] sm:$0x33] %v549_v45  ;;  %v642_v39 = vrot.slane %v10033_v51, 4  ;;  %v862_v50 = vrot.slane %v10060_v53, 4  ;;  %v8546_v22 = vpack.c.bf16 %v514_v44, %v514_v44  ;;  %v931_v4 = vld [vmem:[#allocation2 + $0x48] sm:$0xe] }
 0x1a6   :  { %v10137_v0 = vor.u32 %v753_v1, %v750_v25  ;;  %v924_v52 = vshll.u32 %v8550_v26, 16  ;;  %v923_v56 = vrot.slane %v921_v49, 6  ;;  %v8548_v58 = vpack.c.bf16 %v516_v61, %v516_v61  ;;  %v622_v51 = vld [vmem:[#allocation2 + $0x30] sm:$0x33]  ;;  %v9155_v20 = vld [vmem:[%s14015_s4 + $0x40] sm:$0xff]  }
 0x1a7   :  { %692 = vrot.lane.b32.xlu0 %v689_v24, %s9629_s3  ;;  %v8538_v54 = vpack.c.bf16 %v506_v46, %v506_v46  ;;  %vm673_vm10 = vcmask 517120   ;;  %v948_v59 = vrot.slane %v10099_v57, 4  ;;  %v835_v60 = vshrl.u32 %v8546_v22, 16  ;;  %v670_v57 = vld [vmem:[#allocation2 + $0x8] sm:$0xe]  ;;  %v9156_v7 = vld [vmem:[%s14015_s4 + $0x140] sm:$0xff]   ;;  %8617 = vmatprep.subr.bf16.mxu1 %v9155_v20 }
 0x1a8   :  { %821 = vrot.lane.b32.xlu1 %v818_v48, %s9629_s3  ;;  %v759_v40 = vsel %vm10095_vm5, %v10137_v0, %v758_v27  ;;  %v838_v41 = vshll.u32 %v8546_v22, 16  ;;  %v926_v2 = vrot.slane %v924_v52, 7  ;;  %v878_v43 = vshrl.u32 %v8548_v58, 16  ;;  %vm10164_vm15 = vmand %vm673_vm10, %vm530_vm2  ;;  %v761_v48 = vld [vmem:[#allocation2 + $0x2c] sm:$0x3]  ;;  %v9157_v61 = vld [vmem:[%s14015_s4] sm:$0xff]   ;;  %8673 = vmatprep.subr.bf16.mxu0 %v9156_v7 }
 0x1a9   :  { %760 = vst [vmem:[#allocation2 + $0x10] sm:$0xe] %v759_v40  ;;  %v658_v34 = vshrl.u32 %v8538_v54, 16  ;;  %v661_v53 = vshll.u32 %v8538_v54, 16  ;;  %v881_v5 = vshll.u32 %v8548_v58, 16  ;;  %v837_v9 = vrot.slane %v835_v60, 6  ;;  %8618 = vmatpush3.bf16.msra.mxu1 %v9157_v61  ;;  %8674 = vmatpush3.bf16.msra.mxu0 %v9158_v35 }
 0x1aa   :  { %v840_v32 = vrot.slane %v838_v41, 7  ;;  %v10170_v37 = vor.u32 %v926_v2, %v923_v56  ;;  %v712_v10 = vrot.slane %v10107_v28, 4  ;;  %v880_v31 = vrot.slane %v878_v43, 6  ;;  %v675_v27 = vld [vmem:[#allocation2 + $0x24] sm:$0x3]  ;;  %v9186_v22 = vld [vmem:[%s14015_s4 + $0x148] sm:$0xff]  }
 0x1ab   :  { %778 = vrot.lane.b32.xlu0 %v775_v33, %s9629_s3  ;;  %v660_v42 = vrot.slane %v658_v34, 6  ;;  %v663_v11 = vrot.slane %v661_v53, 7  ;;  %v883_v30 = vrot.slane %v881_v5, 7  ;;  %v623_v28 = vsel %vm621_vm12, 0, %v622_v51  ;;  %v9187_v54 = vld [vmem:[%s14015_s4 + $0x8] sm:$0xff]   ;;  %8675 = vmatprep.subr.bf16.mxu0 %v9186_v22 }
 0x1ac   :  { %908 = vrot.lane.b32.xlu1 %v905_v62, %s9629_s3  ;;  %v10173_v18 = vor.u32 %v840_v32, %v837_v9  ;;  %v605_v21 = vld [vmem:[#allocation2 + $0x38] sm:$0xee]  ;;  %v932_v23 = vsel %vm10095_vm5, %v10170_v37, %v931_v4  ;;  %v719_v24 = vsel %vm10164_vm15, %v712_v10, %v718_v6  ;;  %624 = vst [vmem:[#allocation2 + $0x30] sm:$0x33] %v623_v28  ;;  %v755_v16 = vrot.slane %v10137_v0, 4  ;;  %v9188_v56 = vld [vmem:[%s14015_s4 + $0x108] sm:$0xff]  }
 0x1ad   :  { %v664_v25 = vor.u32 %v663_v11, %v660_v42  ;;  %v606_v1 = vsel %vm595_vm14, 0, %v605_v21  ;;  %933 = vst [vmem:[#allocation2 + $0x48] sm:$0xe] %v932_v23  ;;  %v884_v26 = vor.u32 %v883_v30, %v880_v31  ;;  %720 = vst [vmem:[#allocation2 + $0x28] sm:$0x3] %v719_v24  ;;  %v583_v62 = vsel %vm9971_vm11, 0, %v582_v15  ;;  %8676 = vmatpush3.bf16.msra.mxu0 %v9188_v56 }
 0x1ae   :  { %v846_v19 = vsel %vm10095_vm5, %v10173_v18, %v845_v36  ;;  %607 = vst [vmem:[#allocation2 + $0x38] sm:$0xee] %v606_v1  ;;  %v762_v29 = vsel %vm10164_vm15, %v755_v16, %v761_v48  ;;  %584 = vst [vmem:[#allocation2 + $0x5c] sm:$0x66] %v583_v62  ;;  %v798_v44 = vrot.slane %v10087_v3, 4  ;;  %v842_v52 = vrot.slane %v10173_v18, 4 }
 0x1af   :  { %865 = vrot.lane.b32.xlu0 %v862_v50, %s9629_s3  ;;  %v671_v47 = vsel %vm10095_vm5, %v664_v25, %v670_v57  ;;  %847 = vst [vmem:[#allocation2 + $0x40] sm:$0xe] %v846_v19  ;;  %v889_v0 = vsel %vm10095_vm5, %v884_v26, %v888_v14  ;;  %v665_v33 = vrot.slane %v664_v25, 4  ;;  %763 = vst [vmem:[#allocation2 + $0x2c] sm:$0x3] %v762_v29  ;;  %v885_v46 = vrot.slane %v884_v26, 4 }
 0x1b0   :  { %645 = vrot.lane.b32.xlu1 %v642_v39, %s9629_s3  ;;  %672 = vst [vmem:[#allocation2 + $0x8] sm:$0xe] %v671_v47  ;;  %890 = vst [vmem:[#allocation2 + $0x44] sm:$0xe] %v889_v0  ;;  %v585_v39 = vld [vmem:[#allocation2 + $0x64] sm:$0x66] }
 0x1b1   :  { %v676_v40 = vsel %vm10164_vm15, %v665_v33, %v675_v27  ;;  %v9185_v50 = vld [vmem:[%s14015_s4 + $0x48] sm:$0xff]   ;;  %v586_v3 = vsel %vm9971_vm11, 0, %v585_v39  ;;  %v928_v58 = vrot.slane %v10170_v37, 4  ;;  %v9051_v43 = vld [vmem:[#allocation2 + $0x34] ss:$0 sps:$4 sm:$0x44]  }
 0x1b2   :  { %677 = vst [vmem:[#allocation2 + $0x24] sm:$0x3] %v676_v40  ;;  %587 = vst [vmem:[#allocation2 + $0x64] sm:$0x66] %v586_v3  ;;  %8619 = vmatprep.subr.bf16.mxu1 %v9185_v50  ;;  %v971_v5 = vrot.slane %v10121_v13, 4  ;;  %v5221_v17 = vunpack.c.l.b16 %v9051_v43  ;;  %vm599_vm2 = vcmask 521220  }
 0x1b3   :  { %951 = vrot.lane.b32.xlu0 %v948_v59, %s9629_s3  ;;  %v804_v45 = vld [vmem:[#allocation2 + $0x30] sm:$0x3]  ;;  %8620 = vmatpush3.bf16.msra.mxu1 %v9187_v54  ;;  %v9052_v6 = vld [vmem:[#allocation2 + $0x6c] ss:$0 sps:$4 sm:$0x44]   ;;  %vm10327_vm9 = vmand %vm599_vm2, %vm533_vm6  ;;  %vm1102_vm14 = vcmask 518146  }
 0x1b4   :  { %v805_v49 = vsel %vm10164_vm15, %v798_v44, %v804_v45  ;;  %v9079_v57 = vld [vmem:[#allocation2 + $0x18] ss:$0 sps:$4 sm:$0x22]   ;;  %v5223_v31 = vunpack.c.l.b16 %v9052_v6  ;;  %v10248_v1 = vrot.slane %v5221_v17, 6  ;;  %v579_v17 = vld [vmem:[#allocation2 + $0x54] sm:$0x66]  ;;  %vm601_vm6 = vmor %vm10327_vm9, %vm9805_vm8 }
 0x1b5   :  { %806 = vst [vmem:[#allocation2 + $0x30] sm:$0x3] %v805_v49  ;;  %v891_v4 = vld [vmem:[#allocation2 + $0x60] sm:$0x3]  ;;  %v848_v60 = vld [vmem:[#allocation2 + $0x5c] sm:$0x3]  ;;  %v1412_v18 = vunpack.c.l.b16 %v9079_v57 }
 0x1b6   :  { %v892_v59 = vsel %vm10164_vm15, %v885_v46, %v891_v4  ;;  %v849_v41 = vsel %vm10164_vm15, %v842_v52, %v848_v60  ;;  %v9080_v9 = vld [vmem:[#allocation2 + $0x18] ss:$0 sps:$4 sm:$0x22]   ;;  %14482 = vst [vmem:[#allocation6_spill] sm:$0xff] %v10248_v1  ;;  %v10250_v15 = vrot.slane %v5223_v31, 5  ;;  %vm2132_vm5 = vcmask 521221  }
 0x1b7   :  { %893 = vst [vmem:[#allocation2 + $0x60] sm:$0x3] %v892_v59  ;;  %850 = vst [vmem:[#allocation2 + $0x5c] sm:$0x3] %v849_v41  ;;  %v1562_v21 = vunpack.c.l.b16 %v9080_v9  ;;  %v10254_v7 = vrot.slane %v1412_v18, 4  ;;  %vm1017_vm10 = vcmask 1041409  }
 0x1b8   :  { %v9081_v32 = vld [vmem:[#allocation2 + $0x18] ss:$0 sps:$4 sm:$0x44]   ;;  %14483 = vst [vmem:[#allocation7_spill] sm:$0xff] %v10250_v15  ;;  %vm1114_vm8 = vcmask 1047559   ;;  %vm5248_vm2 = vcmask 1048064  }
 0x1b9   :  { %v628_v2 = vld [vmem:[#allocation2 + $0x68] sm:$0x33]  ;;  %v934_v51 = vld [vmem:[#allocation2 + $0x64] sm:$0x3]  ;;  %v1712_v28 = vunpack.c.l.b16 %v9081_v32  ;;  %14484 = vst [vmem:[#allocation8_spill] sm:$0xff] %v10254_v7  ;;  %v10256_v0 = vrot.slane %v1562_v21, 5 }
 0x1ba   :  { %v629_v34 = vsel %vm621_vm12, 0, %v628_v2  ;;  %v935_v53 = vsel %vm10164_vm15, %v928_v58, %v934_v51  ;;  %v9082_v36 = vld [vmem:[#allocation2 + $0x18] ss:$0 sps:$4 sm:$0x44]   ;;  %vm1036_vm12 = vcmask 516096  }
 0x1bb   :  { %630 = vst [vmem:[#allocation2 + $0x68] sm:$0x33] %v629_v34  ;;  %936 = vst [vmem:[#allocation2 + $0x64] sm:$0x3] %v935_v53  ;;  %v1862_v48 = vunpack.c.l.b16 %v9082_v36  ;;  %v10258_v61 = vrot.slane %v1712_v28, 6 }
 0x1bc   :  { %v9084_v37 = vld [vmem:[#allocation2 + $0x18] ss:$0 sps:$4 sm:$0x22]   ;;  %14485 = vst [vmem:[#allocation9_spill] sm:$0xff] %v10256_v0 }
 0x1bd   :  { %v9085_v10 = vld [vmem:[#allocation2 + $0x18] ss:$0 sps:$4 sm:$0x22]   ;;  %v2173_v13 = vunpack.c.l.b16 %v9084_v37  ;;  %14486 = vst [vmem:[#allocation10_spill] sm:$0xff] %v10258_v61  ;;  %v10260_v62 = vrot.slane %v1862_v48, 7 }
 0x1be   :  { %v9086_v42 = vld [vmem:[#allocation2 + $0x18] ss:$0 sps:$4 sm:$0x44]   ;;  %v2324_v25 = vunpack.c.l.b16 %v9085_v10  ;;  %v9189_v22 = vld [vmem:[#allocation2 + $0x50] ss:$0 sps:$4 sm:$0x22]  }
 0x1bf   :  { %v9087_v11 = vld [vmem:[#allocation2 + $0x18] ss:$0 sps:$4 sm:$0x44]   ;;  %v2481_v26 = vunpack.c.l.b16 %v9086_v42  ;;  %14487 = vst [vmem:[#allocation11_spill] sm:$0xff] %v10260_v62  ;;  %v10262_v35 = vrot.slane %v2173_v13, 4  ;;  %v1413_v3 = vunpack.c.l.b16 %v9189_v22 }
 0x1c0   :  { %v9089_v30 = vld [vmem:[#allocation2 + $0x18] ss:$0 sps:$4 sm:$0x88]   ;;  %v2632_v27 = vunpack.c.l.b16 %v9087_v11  ;;  %v10264_v40 = vrot.slane %v2324_v25, 5 }
 0x1c1   :  { %v9090_v14 = vld [vmem:[#allocation2 + $0x18] ss:$0 sps:$4 sm:$0x44]   ;;  %v2942_v20 = vunpack.c.l.b16 %v9089_v30  ;;  %14488 = vst [vmem:[#allocation12_spill] sm:$0xff] %v10262_v35  ;;  %v10266_v44 = vrot.slane %v2481_v26, 6  ;;  %v10280_v58 = vrot.slane %v1413_v3, 3 }
 0x1c2   :  { %v9091_v23 = vld [vmem:[#allocation2 + $0x18] ss:$0 sps:$4 sm:$0x44]   ;;  %v977_v16 = vld [vmem:[#allocation2 + $0x68] sm:$0x3]  ;;  %v3244_v19 = vunpack.c.l.b16 %v9090_v14  ;;  %14489 = vst [vmem:[#allocation13_spill] sm:$0xff] %v10264_v40 }
 0x1c3   :  { %v9093_v24 = vld [vmem:[#allocation2 + $0x18] ss:$0 sps:$4 sm:$0x88]   ;;  %v978_v47 = vsel %vm10164_vm15, %v971_v5, %v977_v16  ;;  %v3394_v33 = vunpack.c.l.b16 %v9091_v23  ;;  %14490 = vst [vmem:[#allocation14_spill] sm:$0xff] %v10266_v44  ;;  %v10268_v45 = vrot.slane %v2632_v27, 7  ;;  %v10270_v63 = vrot.slane %v2942_v20, 1 }
 0x1c4   :  { %v3698_v29 = vunpack.c.l.b16 %v9093_v24  ;;  %979 = vst [vmem:[#allocation2 + $0x68] sm:$0x3] %v978_v47  ;;  %v10272_v46 = vrot.slane %v3244_v19, 6  ;;  %v9095_v50 = vld [vmem:[#allocation2 + $0x18] ss:$0 sps:$4 sm:$0x88]  }
 0x1c5   :  { %14491 = vst [vmem:[#allocation15_spill] sm:$0xff] %v10268_v45  ;;  %14492 = vst [vmem:[#allocation16_spill] sm:$0xff] %v10270_v63  ;;  %v10274_v49 = vrot.slane %v3394_v33, 7  ;;  %v4454_v52 = vunpack.c.l.b16 %v9095_v50  ;;  %v9190_v54 = vld [vmem:[#allocation2 + $0x50] ss:$0 sps:$4 sm:$0x22]  }
 0x1c6   :  { %14493 = vst [vmem:[#allocation17_spill] sm:$0xff] %v10272_v46  ;;  %v10276_v39 = vrot.slane %v3698_v29, 1  ;;  %v9191_v56 = vld [vmem:[#allocation2 + $0x50] ss:$0 sps:$4 sm:$0x44]   ;;  %14497 = vst [vmem:[#allocation21_spill] sm:$0xff] %v10280_v58  ;;  %v1563_v59 = vunpack.c.l.b16 %v9190_v54 }
 0x1c7   :  { %14494 = vst [vmem:[#allocation18_spill] sm:$0xff] %v10274_v49  ;;  %v10278_v4 = vrot.slane %v4454_v52, 1  ;;  %v1713_v60 = vunpack.c.l.b16 %v9191_v56  ;;  %v9192_v41 = vld [vmem:[#allocation2 + $0x50] ss:$0 sps:$4 sm:$0x44]   ;;  %v580_v30 = vsel %vm9971_vm11, 0, %v579_v17 }
 0x1c8   :  { %14495 = vst [vmem:[#allocation19_spill] sm:$0xff] %v10276_v39  ;;  %v10282_v2 = vrot.slane %v1563_v59, 4  ;;  %v9193_v34 = vld [vmem:[#allocation2 + $0x50] ss:$0 sps:$4 sm:$0x88]   ;;  %v1863_v6 = vunpack.c.l.b16 %v9192_v41  ;;  %v9280_v62 = vld [vmem:[%s14015_s4 + $0x118] sm:$0xff]  }
 0x1c9   :  { %14496 = vst [vmem:[#allocation20_spill] sm:$0xff] %v10278_v4  ;;  %v10284_v51 = vrot.slane %v1713_v60, 5  ;;  %v9194_v53 = vld [vmem:[#allocation2 + $0x50] ss:$0 sps:$4 sm:$0x22]   ;;  %v2017_v11 = vunpack.c.l.b16 %v9193_v34  ;;  %v9333_v40 = vld [vmem:[%s14015_s4 + $0x28] sm:$0xff]  }
 0x1ca   :  { %14498 = vst [vmem:[#allocation22_spill] sm:$0xff] %v10282_v2  ;;  %v9195_v43 = vld [vmem:[#allocation2 + $0x50] ss:$0 sps:$4 sm:$0x22]   ;;  %v10286_v42 = vrot.slane %v1863_v6, 6  ;;  %v2174_v31 = vunpack.c.l.b16 %v9194_v53  ;;  %v14511_v6 = vmov 0 }
 0x1cb   :  { %14499 = vst [vmem:[#allocation23_spill] sm:$0xff] %v10284_v51  ;;  %v9196_v5 = vld [vmem:[#allocation2 + $0x50] ss:$0 sps:$4 sm:$0x44]   ;;  %v649_v14 = vld [vmem:[#allocation2 + $0x4] sm:$0xe]  ;;  %v2325_v18 = vunpack.c.l.b16 %v9195_v43 }
 0x1cc   :  { %v9197_v57 = vld [vmem:[#allocation2 + $0x50] ss:$0 sps:$4 sm:$0x44]   ;;  %14500 = vst [vmem:[#allocation24_spill] sm:$0xff] %v10286_v42  ;;  %v2483_v21 = vunpack.c.l.b16 %v9196_v5  ;;  %581 = vst [vmem:[#allocation2 + $0x54] sm:$0x66] %v580_v30 }
 0x1cd   :  { %v9198_v9 = vld [vmem:[#allocation2 + $0x50] ss:$0 sps:$4 sm:$0x88]   ;;  %v739_v23 = vld [vmem:[#allocation2 + $0xc] sm:$0xe]  ;;  %v2633_v24 = vunpack.c.l.b16 %v9197_v57  ;;  %v10290_v25 = vrot.slane %v2017_v11, 7 }
 0x1ce   :  { %v9200_v32 = vld [vmem:[#allocation2 + $0x50] ss:$0 sps:$4 sm:$0x44]   ;;  %v2793_v28 = vunpack.c.h.b16 %v9198_v9  ;;  %v10292_v26 = vrot.slane %v2174_v31, 3  ;;  %v10302_v29 = vrot.slane %v2325_v18, 4  ;;  %v10304_v50 = vrot.slane %v2483_v21, 5 }
 0x1cf   :  { %v9201_v36 = vld [vmem:[#allocation2 + $0x50] ss:$0 sps:$4 sm:$0x44]   ;;  %v3245_v48 = vunpack.c.l.b16 %v9200_v32  ;;  %14501 = vst [vmem:[#allocation25_spill] sm:$0xff] %v10290_v25  ;;  %v782_v56 = vld [vmem:[#allocation2 + $0x10] sm:$0xe] }
 0x1d0   :  { %v9202_v37 = vld [vmem:[#allocation2 + $0x50] ss:$0 sps:$4 sm:$0x88]   ;;  %14502 = vst [vmem:[#allocation26_spill] sm:$0xff] %v10292_v26  ;;  %v3395_v27 = vunpack.c.l.b16 %v9201_v36  ;;  %14503 = vst [vmem:[#allocation27_spill] sm:$0xff] %v10302_v29  ;;  %v10314_v59 = vrot.slane %v2633_v24, 6 }
 0x1d1   :  { %v9204_v10 = vld [vmem:[#allocation2 + $0x50] ss:$0 sps:$4 sm:$0x88]   ;;  %v3549_v16 = vunpack.c.l.b16 %v9202_v37  ;;  %14504 = vst [vmem:[#allocation28_spill] sm:$0xff] %v10304_v50  ;;  %v696_v53 = vld [vmem:[#allocation2 + $0x8] sm:$0xe] }
 0x1d2   :  { %v9259_v20 = vld [vmem:[%s14015_s4 + $0x50] sm:$0xff]   ;;  %v4305_v22 = vunpack.c.h.b16 %v9204_v10  ;;  %14505 = vst [vmem:[#allocation29_spill] sm:$0xff] %v10314_v59  ;;  %v10316_v60 = vld [vmem:[#allocation2 + $0x18] ss:$0 sps:$4 sm:$0x88]   ;;  %v10322_v43 = vrot.slane %v2793_v28, 7 }
 0x1d3   :  { %v9260_v19 = vld [vmem:[%s14015_s4 + $0x150] sm:$0xff]   ;;  %8621 = vmatprep.subr.bf16.mxu1 %v9259_v20  ;;  %14506 = vst [vmem:[#allocation30_spill] sm:$0xff] %v10316_v60  ;;  %v10318_v41 = vld [vmem:[#allocation2 + $0x18] ss:$0 sps:$4 sm:$0x88]   ;;  %v10324_v5 = vrot.slane %v3245_v48, 5 }
 0x1d4   :  { %v9261_v52 = vld [vmem:[%s14015_s4 + $0x10] sm:$0xff]   ;;  %8677 = vmatprep.subr.bf16.mxu0 %v9260_v19  ;;  %14507 = vst [vmem:[#allocation31_spill] sm:$0xff] %v10318_v41  ;;  %v10320_v34 = vld [vmem:[#allocation2 + $0x18] ss:$0 sps:$4 sm:$0x88]   ;;  %14509 = vst [vmem:[#allocation33_spill] sm:$0xff] %v10322_v43 }
 0x1d5   :  { %v9262_v3 = vld [vmem:[%s14015_s4 + $0x110] sm:$0xff]   ;;  %14508 = vst [vmem:[#allocation32_spill] sm:$0xff] %v10320_v34  ;;  %14510 = vst [vmem:[#allocation34_spill] sm:$0xff] %v10324_v5  ;;  %8622 = vmatpush3.bf16.msra.mxu1 %v9261_v52  ;;  %v14512_v6 = vsel %vm10327_vm9, 4294967295, %v14511_v6  ;;  %v10335_v36 = vrot.slane %v3395_v27, 6  ;;  %v10337_v37 = vrot.slane %v3549_v16, 7 }
 0x1d6   :  { %8678 = vmatpush3.bf16.msra.mxu0 %v9262_v3  ;;  %14513 = vst [vmem:[#allocation35_spill] sm:$0xff] %v14512_v6  ;;  %v10331_v57 = vld [vmem:[#allocation2 + $0x18] ss:$0 sps:$4 sm:$0x88]   ;;  %vm2097_vm15 = vcmask 520196  }
 0x1d7   :  { %14514 = vst [vmem:[#allocation36_spill] sm:$0xff] %v10331_v57  ;;  %v10333_v32 = vld [vmem:[#allocation2 + $0x50] ss:$0 sps:$4 sm:$0x88]   ;;  %14516 = vst [vmem:[#allocation38_spill] sm:$0xff] %v10335_v36  ;;  %v9278_v42 = vld [vmem:[%s14015_s4 + $0x158] sm:$0xff]  }
 0x1d8   :  { %14515 = vst [vmem:[#allocation37_spill] sm:$0xff] %v10333_v32  ;;  %14517 = vst [vmem:[#allocation39_spill] sm:$0xff] %v10337_v37  ;;  %v10339_v10 = vld [vmem:[#allocation2 + $0x50] ss:$0 sps:$4 sm:$0x88]   ;;  %v9279_v41 = vld [vmem:[%s14015_s4 + $0x18] sm:$0xff]   ;;  %8679 = vmatprep.subr.bf16.mxu0 %v9278_v42 }
 0x1d9   :  { %14518 = vst [vmem:[#allocation40_spill] sm:$0xff] %v10339_v10  ;;  %v10341_v17 = vld [vmem:[#allocation2 + $0x50] ss:$0 sps:$4 sm:$0x88]   ;;  %v608_v11 = vld [vmem:[#allocation2 + $0x54] sm:$0x33] }
 0x1da   :  { %14519 = vst [vmem:[#allocation41_spill] sm:$0xff] %v10341_v17  ;;  %v609_v18 = vsel %vm601_vm6, 0, %v608_v11  ;;  %8680 = vmatpush3.bf16.msra.mxu0 %v9280_v62  ;;  %v9289_v6 = vld [vmem:[#allocation2 + $0x34] ss:$0 sps:$4 sm:$0x11]  }
 0x1db   :  { %610 = vst [vmem:[#allocation2 + $0x54] sm:$0x33] %v609_v18  ;;  %v9291_v55 = vld [vmem:[#allocation2 + $0x34] ss:$0 sps:$4 sm:$0x22]  }
 0x1dc   :  { %v10713_v38 = vld [vmem:[#allocation2 + $0x6c] ss:$0 sps:$4 sm:$0x11]  }
 0x1e2   :  { %v829_v12 = vld [vmem:[#allocation2 + $0x58] sm:$0x3] }
 0x205   :  { %v734_v13 = vpop.permute.xlu1 %733  ;;  %v644_v33 = vpop.permute.xlu0 %643 }
 0x206   :  { %v740_v47 = vsel %vm9842_vm13, %v734_v13, %v739_v23  ;;  %v650_v54 = vsel %vm9842_vm13, %v644_v33, %v649_v14  ;;  %v10349_v14 = vrot.slane %v4305_v22, 7  ;;  %v869_v23 = vld [vmem:[#allocation2 + $0x40] sm:$0xe] }
 0x207   :  { %741 = vst [vmem:[#allocation2 + $0xc] sm:$0xe] %v740_v47  ;;  %651 = vst [vmem:[#allocation2 + $0x4] sm:$0xe] %v650_v54 }
 0x208   :  { %14520 = vst [vmem:[#allocation42_spill] sm:$0xff] %v10349_v14 }
 0x209   :  { %v777_v9 = vpop.permute.xlu1 %776  ;;  %v691_v30 = vpop.permute.xlu0 %690 }
 0x20a   :  { %v783_v31 = vsel %vm9842_vm13, %v777_v9, %v782_v56  ;;  %v697_v21 = vsel %vm9842_vm13, %v691_v30, %v696_v53 }
 0x20b   :  { %784 = vst [vmem:[#allocation2 + $0x10] sm:$0xe] %v783_v31  ;;  %698 = vst [vmem:[#allocation2 + $0x8] sm:$0xe] %v697_v21 }
 0x20d   :  { %v864_v24 = vpop.permute.xlu1 %863 }
 0x20e   :  { %v870_v27 = vsel %vm9842_vm13, %v864_v24, %v869_v23  ;;  %v10363_v16 = vld [vmem:[#allocation2] sm:$0x22]  ;;  %v10367_v19 = vld [vmem:[#allocation2] sm:$0x44]  ;;  %v10383_v11 = vld [vmem:[#allocation2] sm:$0x88] }
 0x20f   :  { %14521 = vst [vmem:[#allocation43_spill] sm:$0xff] %v10363_v16  ;;  %v10365_v20 = vld [vmem:[#allocation2] sm:$0x22]  ;;  %14523 = vst [vmem:[#allocation45_spill] sm:$0xff] %v10367_v19  ;;  %v7947_v3 = vcombine.low %v10363_v16, %v10363_v16  ;;  %v10381_v9 = vld [vmem:[#allocation2] sm:$0x44]  ;;  %v7975_v31 = vcombine.low %v10367_v19, %v10367_v19  ;;  %v8003_v33 = vcombine.low %v10383_v11, %v10383_v11 }
 0x210   :  { %14522 = vst [vmem:[#allocation44_spill] sm:$0xff] %v10365_v20  ;;  %871 = vst [vmem:[#allocation2 + $0x40] sm:$0xe] %v870_v27  ;;  %v7961_v56 = vcombine.low %v10365_v20, %v10365_v20  ;;  %v7989_v18 = vcombine.low %v10381_v9, %v10381_v9  ;;  %v10393_v23 = vld [vmem:[#allocation2] sm:$0x22] }
 0x211   :  { %14524 = vst [vmem:[#allocation46_spill] sm:$0xff] %v10381_v9  ;;  %14525 = vst [vmem:[#allocation47_spill] sm:$0xff] %v10383_v11  ;;  %v10395_v24 = vld [vmem:[#allocation2] sm:$0x44]  ;;  %v10397_v27 = vunpack.c.l.b16 %v7947_v3  ;;  %v10405_v22 = vunpack.c.l.b16 %v7975_v31  ;;  %v8031_v21 = vcombine.low %v10393_v23, %v10393_v23  ;;  %v10417_v53 = vunpack.c.l.b16 %v8003_v33  ;;  %v10421_v48 = vld [vmem:[#allocation2] sm:$0x88]  ;;  %v10594_v14 = vpop.permute.xlu0 %819 }
 0x212   :  { %14526 = vst [vmem:[#allocation48_spill] sm:$0xff] %v10393_v23  ;;  %14527 = vst [vmem:[#allocation49_spill] sm:$0xff] %v10395_v24  ;;  %v10399_v28 = vunpack.c.l.b16 %v7961_v56  ;;  %v10407_v13 = vunpack.c.l.b16 %v7989_v18  ;;  %v10413_v3 = vld [vmem:[#allocation2] sm:$0x44]  ;;  %v8045_v31 = vcombine.low %v10395_v24, %v10395_v24  ;;  %v10423_v18 = vld [vmem:[#allocation2] sm:$0x88] }
 0x213   :  { %14528 = vst [vmem:[#allocation50_spill] sm:$0xff] %v10397_v27  ;;  %14530 = vst [vmem:[#allocation52_spill] sm:$0xff] %v10405_v22  ;;  %v10427_v30 = vunpack.c.l.b16 %v8031_v21  ;;  %v10431_v15 = vld [vmem:[#allocation2] sm:$0x44]  ;;  %v8059_v25 = vcombine.low %v10413_v3, %v10413_v3  ;;  %v10442_v54 = vld [vmem:[#allocation2] sm:$0x88]  ;;  %v8087_v32 = vcombine.low %v10423_v18, %v10423_v18 }
 0x214   :  { %14529 = vst [vmem:[#allocation51_spill] sm:$0xff] %v10399_v28  ;;  %14531 = vst [vmem:[#allocation53_spill] sm:$0xff] %v10407_v13  ;;  %v10433_v33 = vld [vmem:[#allocation2] sm:$0x44]  ;;  %v10436_v1 = vunpack.c.l.b16 %v8045_v31  ;;  %v10444_v21 = vld [vmem:[#allocation2] sm:$0x88]  ;;  %v8073_v31 = vcombine.low %v10421_v48, %v10421_v48 }
 0x215   :  { %14532 = vst [vmem:[#allocation54_spill] sm:$0xff] %v10413_v3  ;;  %14533 = vst [vmem:[#allocation55_spill] sm:$0xff] %v10417_v53  ;;  %v9277_v56 = vld [vmem:[%s14015_s4 + $0x58] sm:$0xff]   ;;  %v10456_v47 = vld [vmem:[#allocation2] sm:$0x88]  ;;  %v10464_v60 = vunpack.c.l.b16 %v8059_v25  ;;  %v10475_v61 = vunpack.c.l.b16 %v8087_v32 }
 0x216   :  { %14534 = vst [vmem:[#allocation56_spill] sm:$0xff] %v10421_v48  ;;  %14535 = vst [vmem:[#allocation57_spill] sm:$0xff] %v10423_v18  ;;  %v10458_v63 = vld [vmem:[#allocation2] sm:$0x88]  ;;  %v1290_v43 = vld [vmem:[#allocation2 + $0x10] sm:$0x22]  ;;  %8623 = vmatprep.subr.bf16.mxu1 %v9277_v56  ;;  %v10473_v51 = vunpack.c.l.b16 %v8073_v31 }
 0x217   :  { %14536 = vst [vmem:[#allocation58_spill] sm:$0xff] %v10427_v30  ;;  %14537 = vst [vmem:[#allocation59_spill] sm:$0xff] %v10431_v15  ;;  %v1440_v53 = vld [vmem:[#allocation2 + $0x10] sm:$0x22]  ;;  %v1590_v11 = vld [vmem:[#allocation2 + $0x10] sm:$0x44]  ;;  %8624 = vmatpush3.bf16.msra.mxu1 %v9279_v41  ;;  %v7955_v52 = vcombine.low %v1290_v43, %v1290_v43  ;;  %v7957_v39 = vcombine.high %v1290_v43, %v1290_v43 }
 0x218   :  { %14538 = vst [vmem:[#allocation60_spill] sm:$0xff] %v10433_v33  ;;  %14539 = vst [vmem:[#allocation61_spill] sm:$0xff] %v10436_v1  ;;  %v1740_v10 = vld [vmem:[#allocation2 + $0x10] sm:$0x44]  ;;  %v7969_v13 = vcombine.low %v1440_v53, %v1440_v53  ;;  %v7971_v56 = vcombine.high %v1440_v53, %v1440_v53  ;;  %v7983_v59 = vcombine.low %v1590_v11, %v1590_v11  ;;  %v1890_v31 = vld [vmem:[#allocation2 + $0x10] sm:$0x88] }
 0x219   :  { %14540 = vst [vmem:[#allocation62_spill] sm:$0xff] %v10442_v54  ;;  %14541 = vst [vmem:[#allocation63_spill] sm:$0xff] %v10444_v21  ;;  %v7985_v45 = vcombine.high %v1590_v11, %v1590_v11  ;;  %v10493_v2 = vunpack.c.l.b16 %v7955_v52  ;;  %v10495_v32 = vunpack.c.l.b16 %v7957_v39  ;;  %v7997_v41 = vcombine.low %v1740_v10, %v1740_v10  ;;  %v2040_v18 = vld [vmem:[#allocation2 + $0x10] sm:$0x22]  ;;  %v2352_v52 = vld [vmem:[#allocation2 + $0x10] sm:$0x44] }
 0x21a   :  { %14542 = vst [vmem:[#allocation64_spill] sm:$0xff] %v10456_v47  ;;  %14543 = vst [vmem:[#allocation65_spill] sm:$0xff] %v10458_v63  ;;  %v7999_v0 = vcombine.high %v1740_v10, %v1740_v10  ;;  %v10497_v9 = vunpack.c.l.b16 %v7969_v13  ;;  %v10499_v25 = vunpack.c.l.b16 %v7971_v56  ;;  %v10501_v42 = vunpack.c.l.b16 %v7983_v59  ;;  %v2202_v53 = vld [vmem:[#allocation2 + $0x10] sm:$0x22]  ;;  %v9312_v10 = vld [vmem:[%s14015_s4 + $0x60] sm:$0xff]  }
 0x21b   :  { %14544 = vst [vmem:[#allocation66_spill] sm:$0xff] %v10464_v60  ;;  %14545 = vst [vmem:[#allocation67_spill] sm:$0xff] %v10473_v51  ;;  %v10503_v43 = vunpack.c.l.b16 %v7985_v45  ;;  %v8013_v39 = vcombine.high %v1890_v31, %v1890_v31  ;;  %v8027_v56 = vcombine.high %v2040_v18, %v2040_v18  ;;  %v2510_v37 = vld [vmem:[#allocation2 + $0x10] sm:$0x44]  ;;  %v8039_v34 = vcombine.low %v2202_v53, %v2202_v53  ;;  %v2660_v18 = vld [vmem:[#allocation2 + $0x10] sm:$0x88] }
 0x21c   :  { %14546 = vst [vmem:[#allocation68_spill] sm:$0xff] %v10475_v61  ;;  %14547 = vst [vmem:[#allocation69_spill] sm:$0xff] %v10493_v2  ;;  %v10506_v61 = vunpack.c.l.b16 %v7997_v41  ;;  %v10508_v62 = vunpack.c.l.b16 %v7999_v0  ;;  %v9313_v41 = vld [vmem:[%s14015_s4 + $0x160] sm:$0xff]   ;;  %8625 = vmatprep.subr.bf16.mxu1 %v9312_v10  ;;  %v8041_v13 = vcombine.high %v2202_v53, %v2202_v53  ;;  %v10525_v59 = vcombine.low %v2352_v52, %v2352_v52  ;;  %v2816_v31 = vld [vmem:[#allocation2 + $0x10] sm:$0x88] }
 0x21d   :  { %14548 = vst [vmem:[#allocation70_spill] sm:$0xff] %v10495_v32  ;;  %14549 = vst [vmem:[#allocation71_spill] sm:$0xff] %v10497_v9  ;;  %v10521_v11 = vunpack.c.l.b16 %v8013_v39  ;;  %v10523_v51 = vunpack.c.l.b16 %v8027_v56  ;;  %v10527_v45 = vcombine.high %v2352_v52, %v2352_v52  ;;  %8681 = vmatprep.subr.bf16.mxu0 %v9313_v41  ;;  %v10530_v50 = vunpack.c.l.b16 %v8039_v34  ;;  %v3122_v39 = vld [vmem:[#allocation2 + $0x10] sm:$0x44]  ;;  %v9314_v10 = vld [vmem:[%s14015_s4 + $0x20] sm:$0xff]  }
 0x21e   :  { %14550 = vst [vmem:[#allocation72_spill] sm:$0xff] %v10499_v25  ;;  %14551 = vst [vmem:[#allocation73_spill] sm:$0xff] %v10501_v42  ;;  %v8067_v0 = vcombine.low %v2510_v37, %v2510_v37  ;;  %v8069_v44 = vcombine.high %v2510_v37, %v2510_v37  ;;  %v10536_v56 = vunpack.c.l.b16 %v8041_v13  ;;  %v9315_v34 = vld [vmem:[%s14015_s4 + $0x120] sm:$0xff]   ;;  %v10548_v7 = vcombine.high %v2660_v18, %v2660_v18  ;;  %v3272_v48 = vld [vmem:[#allocation2 + $0x10] sm:$0x44] }
 0x21f   :  { %14552 = vst [vmem:[#allocation74_spill] sm:$0xff] %v10503_v43  ;;  %14553 = vst [vmem:[#allocation75_spill] sm:$0xff] %v10506_v61  ;;  %8626 = vmatpush3.bf16.msra.mxu1 %v9314_v10  ;;  %v8095_v53 = vcombine.low %v2816_v31, %v2816_v31  ;;  %v8097_v52 = vcombine.high %v2816_v31, %v2816_v31  ;;  %v8123_v19 = vcombine.low %v3122_v39, %v3122_v39  ;;  %v3422_v41 = vld [vmem:[#allocation2 + $0x10] sm:$0x88]  ;;  %v1289_v4 = vld [vmem:[#allocation2 + $0x8] sm:$0x22] }
 0x220   :  { %14554 = vst [vmem:[#allocation76_spill] sm:$0xff] %v10508_v62  ;;  %14555 = vst [vmem:[#allocation77_spill] sm:$0xff] %v10521_v11  ;;  %v10544_v22 = vunpack.c.l.b16 %v8067_v0  ;;  %v10546_v58 = vunpack.c.l.b16 %v8069_v44  ;;  %8682 = vmatpush3.bf16.msra.mxu0 %v9315_v34  ;;  %v2754_v0 = vunpack.c.l.b16 %v10548_v7  ;;  %v8125_v37 = vcombine.high %v3122_v39, %v3122_v39  ;;  %v3572_v13 = vld [vmem:[#allocation2 + $0x10] sm:$0x88]  ;;  %v9331_v39 = vld [vmem:[%s14015_s4 + $0x68] sm:$0xff]  }
 0x221   :  { %14556 = vst [vmem:[#allocation78_spill] sm:$0xff] %v10523_v51  ;;  %14557 = vst [vmem:[#allocation79_spill] sm:$0xff] %v10525_v59  ;;  %v10554_v44 = vunpack.c.l.b16 %v8095_v53  ;;  %v10556_v18 = vunpack.c.l.b16 %v8097_v52  ;;  %v10558_v36 = vunpack.c.l.b16 %v8123_v19  ;;  %v8137_v10 = vcombine.low %v3272_v48, %v3272_v48  ;;  %v4172_v49 = vld [vmem:[#allocation2 + $0x10] sm:$0x88]  ;;  %v9332_v19 = vld [vmem:[%s14015_s4 + $0x168] sm:$0xff]   ;;  %8627 = vmatprep.subr.bf16.mxu1 %v9331_v39 }
 0x222   :  { %14558 = vst [vmem:[#allocation80_spill] sm:$0xff] %v10527_v45  ;;  %14559 = vst [vmem:[#allocation81_spill] sm:$0xff] %v10530_v50  ;;  %v4328_v31 = vld [vmem:[#allocation2 + $0x10] sm:$0x88]  ;;  %v10560_v21 = vrot.slane %v2754_v0, 2  ;;  %v10562_v34 = vunpack.c.l.b16 %v8125_v37  ;;  %v8139_v17 = vcombine.high %v3272_v48, %v3272_v48  ;;  %v8153_v60 = vcombine.high %v3422_v41, %v3422_v41  ;;  %8683 = vmatprep.subr.bf16.mxu0 %v9332_v19  ;;  %v9334_v53 = vld [vmem:[%s14015_s4 + $0x128] sm:$0xff]  }
 0x223   :  { %14560 = vst [vmem:[#allocation82_spill] sm:$0xff] %v10536_v56  ;;  %14561 = vst [vmem:[#allocation83_spill] sm:$0xff] %v10544_v22  ;;  %v1439_v37 = vld [vmem:[#allocation2 + $0x8] sm:$0x22]  ;;  %v8165_v28 = vcombine.low %v3572_v13, %v3572_v13  ;;  %v8167_v29 = vcombine.high %v3572_v13, %v3572_v13  ;;  %v10586_v0 = vcombine.high %v4172_v49, %v4172_v49  ;;  %v1739_v3 = vld [vmem:[#allocation2 + $0x8] sm:$0x44]  ;;  %8628 = vmatpush3.bf16.msra.mxu1 %v9333_v40 }
 0x224   :  { %14562 = vst [vmem:[#allocation84_spill] sm:$0xff] %v10546_v58  ;;  %14563 = vst [vmem:[#allocation85_spill] sm:$0xff] %v10548_v7  ;;  %v10573_v7 = vunpack.c.l.b16 %v8137_v10  ;;  %v10575_v48 = vunpack.c.l.b16 %v8139_v17  ;;  %v10577_v41 = vunpack.c.l.b16 %v8153_v60  ;;  %v8235_v17 = vcombine.low %v4328_v31, %v4328_v31  ;;  %v1589_v60 = vld [vmem:[#allocation2 + $0x8] sm:$0x44]  ;;  %v1889_v20 = vld [vmem:[#allocation2 + $0x8] sm:$0x88]  ;;  %8684 = vmatpush3.bf16.msra.mxu0 %v9334_v53 }
 0x225   :  { %14564 = vst [vmem:[#allocation86_spill] sm:$0xff] %v10554_v44  ;;  %14565 = vst [vmem:[#allocation87_spill] sm:$0xff] %v10556_v18  ;;  %v8237_v52 = vcombine.high %v4328_v31, %v4328_v31  ;;  %v10590_v39 = vunpack.c.l.b16 %v8165_v28  ;;  %v10592_v19 = vunpack.c.l.b16 %v8167_v29  ;;  %v4266_v49 = vunpack.c.l.b16 %v10586_v0  ;;  %v2201_v5 = vld [vmem:[#allocation2 + $0x8] sm:$0x22]  ;;  %v2659_v27 = vld [vmem:[#allocation2 + $0x8] sm:$0x88] }
 0x226   :  { %14566 = vst [vmem:[#allocation88_spill] sm:$0xff] %v10558_v36  ;;  %14567 = vst [vmem:[#allocation89_spill] sm:$0xff] %v10562_v34  ;;  %v10597_v10 = vunpack.c.l.b16 %v8235_v17  ;;  %v7950_v57 = vcombine.high %v1289_v4, %v1289_v4  ;;  %v7963_v13 = vcombine.low %v1439_v37, %v1439_v37  ;;  %v7964_v29 = vcombine.high %v1439_v37, %v1439_v37  ;;  %v2351_v17 = vld [vmem:[#allocation2 + $0x8] sm:$0x44]  ;;  %v3421_v54 = vld [vmem:[#allocation2 + $0x8] sm:$0x88] }
 0x227   :  { %14568 = vst [vmem:[#allocation90_spill] sm:$0xff] %v10573_v7  ;;  %14569 = vst [vmem:[#allocation91_spill] sm:$0xff] %v10575_v48  ;;  %v10599_v31 = vunpack.c.l.b16 %v8237_v52  ;;  %v10603_v46 = vrot.slane %v4266_v49, 2  ;;  %v7977_v4 = vcombine.low %v1589_v60, %v1589_v60  ;;  %v7978_v44 = vcombine.high %v1589_v60, %v1589_v60  ;;  %v3121_v59 = vld [vmem:[#allocation2 + $0x8] sm:$0x44] }
 0x228   :  { %14570 = vst [vmem:[#allocation92_spill] sm:$0xff] %v10577_v41  ;;  %14571 = vst [vmem:[#allocation93_spill] sm:$0xff] %v10586_v0  ;;  %v10607_v53 = vunpack.c.l.b16 %v7950_v57  ;;  %v10609_v0 = vunpack.c.l.b16 %v7963_v13  ;;  %v10611_v52 = vunpack.c.l.b16 %v7964_v29  ;;  %v7991_v37 = vcombine.low %v1739_v3, %v1739_v3  ;;  %v2815_v13 = vld [vmem:[#allocation2 + $0x8] sm:$0x88]  ;;  %v10621_v29 = vpop.permute.xlu0 %906  ;;  %v826_v23 = vld [vmem:[#allocation2 + $0x3c] sm:$0xe] }
 0x229   :  { %14572 = vst [vmem:[#allocation94_spill] sm:$0xff] %v10590_v39  ;;  %14573 = vst [vmem:[#allocation95_spill] sm:$0xff] %v10592_v19  ;;  %v2509_v39 = vld [vmem:[#allocation2 + $0x8] sm:$0x44]  ;;  %v7992_v1 = vcombine.high %v1739_v3, %v1739_v3  ;;  %v8005_v49 = vcombine.low %v1889_v20, %v1889_v20  ;;  %v10615_v26 = vunpack.c.l.b16 %v7977_v4  ;;  %v10617_v57 = vunpack.c.l.b16 %v7978_v44 }
 0x22a   :  { %14574 = vst [vmem:[#allocation96_spill] sm:$0xff] %v10597_v10  ;;  %14575 = vst [vmem:[#allocation97_spill] sm:$0xff] %v10599_v31  ;;  %v8006_v40 = vcombine.high %v1889_v20, %v1889_v20  ;;  %v10623_v60 = vunpack.c.l.b16 %v7991_v37  ;;  %v8033_v3 = vcombine.low %v2201_v5, %v2201_v5  ;;  %v8034_v44 = vcombine.high %v2201_v5, %v2201_v5  ;;  %v3571_v20 = vld [vmem:[#allocation2 + $0x8] sm:$0x88] }
 0x22b   :  { %14576 = vst [vmem:[#allocation98_spill] sm:$0xff] %v10607_v53  ;;  %14577 = vst [vmem:[#allocation99_spill] sm:$0xff] %v10609_v0  ;;  %v10619_v0 = vpop.permute.xlu1 %949  ;;  %v10625_v35 = vunpack.c.l.b16 %v7992_v1  ;;  %v10627_v28 = vunpack.c.l.b16 %v8005_v49  ;;  %v8061_v16 = vcombine.low %v2509_v39, %v2509_v39  ;;  %v8062_v37 = vcombine.high %v2509_v39, %v2509_v39 }
 0x22c   :  { %14578 = vst [vmem:[#allocation100_spill] sm:$0xff] %v10611_v52  ;;  %14579 = vst [vmem:[#allocation101_spill] sm:$0xff] %v10615_v26  ;;  %v10630_v4 = vunpack.c.l.b16 %v8006_v40  ;;  %v10632_v26 = vcombine.low %v2351_v17, %v2351_v17  ;;  %v10635_v24 = vunpack.c.l.b16 %v8033_v3  ;;  %v10638_v49 = vunpack.c.l.b16 %v8034_v44  ;;  %v10652_v33 = vpop.permute.xlu0 %692 }
 0x22d   :  { %14580 = vst [vmem:[#allocation102_spill] sm:$0xff] %v10617_v57  ;;  %14581 = vst [vmem:[#allocation103_spill] sm:$0xff] %v10623_v60  ;;  %v3271_v60 = vld [vmem:[#allocation2 + $0x8] sm:$0x44]  ;;  %v10640_v10 = vcombine.high %v2659_v27, %v2659_v27  ;;  %v10642_v40 = vunpack.c.l.b16 %v8061_v16  ;;  %v10644_v5 = vunpack.c.l.b16 %v8062_v37  ;;  %v8089_v17 = vcombine.low %v2815_v13, %v2815_v13 }
 0x22e   :  { %14582 = vst [vmem:[#allocation104_spill] sm:$0xff] %v10625_v35  ;;  %14583 = vst [vmem:[#allocation105_spill] sm:$0xff] %v10627_v28  ;;  %v8075_v28 = vcombine.low %v2659_v27, %v2659_v27  ;;  %v8117_v44 = vcombine.low %v3121_v59, %v3121_v59  ;;  %v8132_v3 = vcombine.high %v3271_v60, %v3271_v60  ;;  %v699_v35 = vld [vmem:[#allocation2 + $0x24] sm:$0x3] }
 0x22f   :  { %14584 = vst [vmem:[#allocation106_spill] sm:$0xff] %v10630_v4  ;;  %14585 = vst [vmem:[#allocation107_spill] sm:$0xff] %v10632_v26  ;;  %v8090_v26 = vcombine.high %v2815_v13, %v2815_v13  ;;  %v10650_v39 = vunpack.c.l.b16 %v10640_v10  ;;  %v736_v1 = vpop.permute.xlu1 %735  ;;  %v10655_v16 = vunpack.c.l.b16 %v8089_v17  ;;  %v8145_v30 = vcombine.low %v3421_v54, %v3421_v54  ;;  %v9288_v13 = vld [vmem:[#allocation2 + $0x34] ss:$0 sps:$4 sm:$0x11]  }
 0x230   :  { %14586 = vst [vmem:[#allocation108_spill] sm:$0xff] %v10635_v24  ;;  %14587 = vst [vmem:[#allocation109_spill] sm:$0xff] %v10638_v49  ;;  %v10647_v63 = vunpack.c.l.b16 %v8075_v28  ;;  %v10660_v47 = vunpack.c.l.b16 %v8117_v44  ;;  %v8131_v28 = vcombine.low %v3271_v60, %v3271_v60  ;;  %v8146_v24 = vcombine.high %v3421_v54, %v3421_v54  ;;  %v9290_v54 = vld [vmem:[#allocation2 + $0x34] ss:$0 sps:$4 sm:$0x11]  }
 0x231   :  { %14588 = vst [vmem:[#allocation110_spill] sm:$0xff] %v10640_v10  ;;  %14589 = vst [vmem:[#allocation111_spill] sm:$0xff] %v10642_v40  ;;  %v10657_v37 = vunpack.c.l.b16 %v8090_v26  ;;  %v8118_v40 = vcombine.high %v3121_v59, %v3121_v59  ;;  %v10667_v17 = vunpack.c.l.b16 %v8132_v3  ;;  %v8159_v26 = vcombine.low %v3571_v20, %v3571_v20  ;;  %v742_v44 = vld [vmem:[#allocation2 + $0x28] sm:$0x3] }
 0x232   :  { %14590 = vst [vmem:[#allocation112_spill] sm:$0xff] %v10644_v5  ;;  %14591 = vst [vmem:[#allocation113_spill] sm:$0xff] %v10647_v63  ;;  %v4171_v63 = vld [vmem:[#allocation2 + $0x8] sm:$0x88]  ;;  %v10665_v27 = vunpack.c.l.b16 %v8131_v28  ;;  %v8160_v59 = vcombine.high %v3571_v20, %v3571_v20  ;;  %v10672_v60 = vunpack.c.l.b16 %v8146_v24 }
 0x233   :  { %14592 = vst [vmem:[#allocation114_spill] sm:$0xff] %v10650_v39  ;;  %14593 = vst [vmem:[#allocation115_spill] sm:$0xff] %v10655_v16  ;;  %v10663_v15 = vunpack.c.l.b16 %v8118_v40  ;;  %v4327_v16 = vld [vmem:[#allocation2 + $0x8] sm:$0x88]  ;;  %v8215_v10 = vcombine.low %v4171_v63, %v4171_v63  ;;  %v10675_v3 = vunpack.c.l.b16 %v8159_v26  ;;  %v10679_v20 = vcombine.high %v4171_v63, %v4171_v63 }
 0x234   :  { %14594 = vst [vmem:[#allocation116_spill] sm:$0xff] %v10657_v37  ;;  %14595 = vst [vmem:[#allocation117_spill] sm:$0xff] %v10660_v47  ;;  %v10670_v47 = vunpack.c.l.b16 %v8145_v30  ;;  %v955_v40 = vld [vmem:[#allocation2 + $0x48] sm:$0xe]  ;;  %v912_v37 = vld [vmem:[#allocation2 + $0x44] sm:$0xe]  ;;  %v822_v30 = vpop.permute.xlu1 %821  ;;  %v8229_v49 = vcombine.low %v4327_v16, %v4327_v16  ;;  %v8230_v4 = vcombine.high %v4327_v16, %v4327_v16  ;;  %v827_v63 = vsel %vm9842_vm13, %v10594_v14, %v826_v23 }
 0x235   :  { %14596 = vst [vmem:[#allocation118_spill] sm:$0xff] %v10663_v15  ;;  %14597 = vst [vmem:[#allocation119_spill] sm:$0xff] %v10665_v27  ;;  %v10677_v27 = vunpack.c.l.b16 %v8160_v59  ;;  %v9293_v24 = vld [vmem:[#allocation2 + $0x34] ss:$0 sps:$4 sm:$0x11]   ;;  %v779_v15 = vpop.permute.xlu0 %778  ;;  %v10682_v5 = vunpack.c.l.b16 %v8215_v10  ;;  %v10686_v59 = vunpack.c.l.b16 %v10679_v20  ;;  %v913_v16 = vsel %vm9842_vm13, %v10621_v29, %v912_v37 }
 0x236   :  { %14598 = vst [vmem:[#allocation120_spill] sm:$0xff] %v10667_v17  ;;  %14599 = vst [vmem:[#allocation121_spill] sm:$0xff] %v10670_v47  ;;  %v9292_v47 = vld [vmem:[#allocation2 + $0x34] ss:$0 sps:$4 sm:$0x11]   ;;  %v10694_v10 = vunpack.c.l.b16 %v8229_v49  ;;  %v743_v26 = vsel %vm10150_vm7, %v736_v1, %v742_v44  ;;  %v700_v23 = vsel %vm10150_vm7, %v10652_v33, %v699_v35  ;;  %v4144_v35 = vunpack.c.l.b16 %v9291_v55 }
 0x237   :  { %14600 = vst [vmem:[#allocation122_spill] sm:$0xff] %v10672_v60  ;;  %14601 = vst [vmem:[#allocation123_spill] sm:$0xff] %v10675_v3  ;;  %v9294_v28 = vld [vmem:[#allocation2 + $0x34] ss:$0 sps:$4 sm:$0x22]   ;;  %v956_v3 = vsel %vm9842_vm13, %v10619_v0, %v955_v40  ;;  %v830_v0 = vsel %vm10150_vm7, %v822_v30, %v829_v12  ;;  %v3844_v40 = vunpack.c.l.b16 %v9289_v6  ;;  %v4606_v12 = vunpack.c.l.b16 %v9292_v47 }
 0x238   :  { %14602 = vst [vmem:[#allocation124_spill] sm:$0xff] %v10677_v27  ;;  %14603 = vst [vmem:[#allocation125_spill] sm:$0xff] %v10679_v20  ;;  %v9295_v39 = vld [vmem:[#allocation2 + $0x34] ss:$0 sps:$4 sm:$0x22]   ;;  %v4914_v30 = vunpack.c.l.b16 %v9294_v28  ;;  %v10726_v37 = vrot.slane %v4144_v35, 4 }
 0x239   :  { %14604 = vst [vmem:[#allocation126_spill] sm:$0xff] %v10682_v5  ;;  %14605 = vst [vmem:[#allocation127_spill] sm:$0xff] %v10686_v59  ;;  %v10696_v5 = vunpack.c.l.b16 %v8230_v4  ;;  %v10703_v20 = vld [vmem:[#allocation2 + $0x6c] ss:$0 sps:$4 sm:$0x11]   ;;  %v3094_v4 = vunpack.c.l.b16 %v9288_v13  ;;  %v4756_v13 = vunpack.c.l.b16 %v9293_v24  ;;  %v866_v14 = vpop.permute.xlu0 %865  ;;  %vm1048_vm13 = vcmask 1043459  }
 0x23a   :  { %14606 = vst [vmem:[#allocation128_spill] sm:$0xff] %v10694_v10  ;;  %828 = vst [vmem:[#allocation2 + $0x3c] sm:$0xe] %v827_v63  ;;  %v10711_v49 = vld [vmem:[#allocation2 + $0x6c] ss:$0 sps:$4 sm:$0x11]   ;;  %v909_v63 = vpop.permute.xlu1 %908 }
 0x23b   :  { %14607 = vst [vmem:[#allocation129_spill] sm:$0xff] %v10696_v5  ;;  %957 = vst [vmem:[#allocation2 + $0x48] sm:$0xe] %v956_v3  ;;  %v10715_v29 = vld [vmem:[#allocation2 + $0x6c] ss:$0 sps:$4 sm:$0x22]   ;;  %v3994_v3 = vunpack.c.l.b16 %v9290_v54 }
 0x23c   :  { %914 = vst [vmem:[#allocation2 + $0x44] sm:$0xe] %v913_v16  ;;  %744 = vst [vmem:[#allocation2 + $0x28] sm:$0x3] %v743_v26  ;;  %v785_v44 = vld [vmem:[#allocation2 + $0x2c] sm:$0x3] }
 0x23d   :  { %v10717_v1 = vld [vmem:[#allocation2 + $0x6c] ss:$0 sps:$4 sm:$0x11]   ;;  %701 = vst [vmem:[#allocation2 + $0x24] sm:$0x3] %v700_v23  ;;  %v10720_v33 = vrot.slane %v3094_v4, 2  ;;  %v5064_v23 = vunpack.c.l.b16 %v9295_v39  ;;  %v786_v47 = vsel %vm10150_vm7, %v779_v15, %v785_v44 }
 0x23e   :  { %831 = vst [vmem:[#allocation2 + $0x58] sm:$0x3] %v830_v0  ;;  %v915_v26 = vld [vmem:[#allocation2 + $0x60] sm:$0x3]  ;;  %v872_v16 = vld [vmem:[#allocation2 + $0x5c] sm:$0x3] }
 0x23f   :  { %14608 = vst [vmem:[#allocation130_spill] sm:$0xff] %v10720_v33  ;;  %v10722_v10 = vrot.slane %v3844_v40, 2  ;;  %v10724_v59 = vrot.slane %v3994_v3, 3  ;;  %14611 = vst [vmem:[#allocation133_spill] sm:$0xff] %v10726_v37  ;;  %v10728_v0 = vrot.slane %v4606_v12, 2  ;;  %v10730_v6 = vrot.slane %v4756_v13, 3 }
 0x240   :  { %v10732_v55 = vrot.slane %v4914_v30, 4  ;;  %v10736_v54 = vrot.slane %v5064_v23, 5  ;;  %787 = vst [vmem:[#allocation2 + $0x2c] sm:$0x3] %v786_v47  ;;  %v916_v28 = vsel %vm10150_vm7, %v909_v63, %v915_v26  ;;  %v873_v24 = vsel %vm10150_vm7, %v866_v14, %v872_v16 }
 0x241   :  { %14609 = vst [vmem:[#allocation131_spill] sm:$0xff] %v10722_v10  ;;  %14610 = vst [vmem:[#allocation132_spill] sm:$0xff] %v10724_v59  ;;  %v10743_v4 = vld [vmem:[#allocation2 + $0x38] sm:$0x22]  ;;  %v10747_v3 = vld [vmem:[#allocation2 + $0x38] sm:$0x44] }
 0x242   :  { %14612 = vst [vmem:[#allocation134_spill] sm:$0xff] %v10728_v0  ;;  %14613 = vst [vmem:[#allocation135_spill] sm:$0xff] %v10730_v6  ;;  %v10745_v40 = vld [vmem:[#allocation2 + $0x38] sm:$0x22]  ;;  %v7951_v14 = vcombine.low %v10743_v4, %v10743_v4  ;;  %v10761_v63 = vld [vmem:[#allocation2 + $0x38] sm:$0x44]  ;;  %v7979_v23 = vcombine.low %v10747_v3, %v10747_v3 }
 0x243   :  { %14614 = vst [vmem:[#allocation136_spill] sm:$0xff] %v10732_v55  ;;  %14615 = vst [vmem:[#allocation137_spill] sm:$0xff] %v10736_v54  ;;  %v7965_v30 = vcombine.low %v10745_v40, %v10745_v40  ;;  %v10763_v16 = vld [vmem:[#allocation2 + $0x38] sm:$0x88]  ;;  %v10773_v13 = vld [vmem:[#allocation2 + $0x38] sm:$0x22] }
 0x244   :  { %14616 = vst [vmem:[#allocation138_spill] sm:$0xff] %v10743_v4  ;;  %14617 = vst [vmem:[#allocation139_spill] sm:$0xff] %v10745_v40  ;;  %v10775_v12 = vld [vmem:[#allocation2 + $0x38] sm:$0x44]  ;;  %v10777_v26 = vunpack.c.l.b16 %v7951_v14  ;;  %v8007_v44 = vcombine.low %v10763_v16, %v10763_v16  ;;  %v10785_v15 = vunpack.c.l.b16 %v7979_v23  ;;  %v10801_v47 = vld [vmem:[#allocation2 + $0x38] sm:$0x88] }
 0x245   :  { %14618 = vst [vmem:[#allocation140_spill] sm:$0xff] %v10747_v3  ;;  %917 = vst [vmem:[#allocation2 + $0x60] sm:$0x3] %v916_v28  ;;  %v7993_v28 = vcombine.low %v10761_v63, %v10761_v63  ;;  %v10779_v35 = vunpack.c.l.b16 %v7965_v30  ;;  %v10793_v14 = vld [vmem:[#allocation2 + $0x38] sm:$0x44]  ;;  %v8049_v23 = vcombine.low %v10775_v12, %v10775_v12 }
 0x246   :  { %874 = vst [vmem:[#allocation2 + $0x5c] sm:$0x3] %v873_v24  ;;  %14619 = vst [vmem:[#allocation141_spill] sm:$0xff] %v10761_v63  ;;  %v8035_v24 = vcombine.low %v10773_v13, %v10773_v13  ;;  %v10797_v54 = vunpack.c.l.b16 %v8007_v44  ;;  %v10811_v10 = vld [vmem:[#allocation2 + $0x38] sm:$0x44]  ;;  %v8063_v6 = vcombine.low %v10793_v14, %v10793_v14 }
 0x247   :  { %14620 = vst [vmem:[#allocation142_spill] sm:$0xff] %v10763_v16  ;;  %14621 = vst [vmem:[#allocation143_spill] sm:$0xff] %v10775_v12  ;;  %v10787_v39 = vunpack.c.l.b16 %v7993_v28  ;;  %v10803_v28 = vld [vmem:[#allocation2 + $0x38] sm:$0x88]  ;;  %v10813_v44 = vld [vmem:[#allocation2 + $0x38] sm:$0x44]  ;;  %v10816_v16 = vunpack.c.l.b16 %v8049_v23 }
 0x248   :  { %14622 = vst [vmem:[#allocation144_spill] sm:$0xff] %v10777_v26  ;;  %14623 = vst [vmem:[#allocation145_spill] sm:$0xff] %v10779_v35  ;;  %v10807_v37 = vunpack.c.l.b16 %v8035_v24  ;;  %v10822_v55 = vld [vmem:[#allocation2 + $0x38] sm:$0x88]  ;;  %v8091_v23 = vcombine.low %v10803_v28, %v10803_v28  ;;  %v10838_v0 = vunpack.c.l.b16 %v8063_v6  ;;  %v1294_v33 = vld [vmem:[#allocation2 + $0x48] sm:$0x22] }
 0x249   :  { %14624 = vst [vmem:[#allocation146_spill] sm:$0xff] %v10785_v15  ;;  %14625 = vst [vmem:[#allocation147_spill] sm:$0xff] %v10787_v39  ;;  %v10824_v24 = vld [vmem:[#allocation2 + $0x38] sm:$0x88]  ;;  %v8077_v39 = vcombine.low %v10801_v47, %v10801_v47  ;;  %v1444_v59 = vld [vmem:[#allocation2 + $0x48] sm:$0x22]  ;;  %v7956_v6 = vcombine.low %v1294_v33, %v1294_v33 }
 0x24a   :  { %14626 = vst [vmem:[#allocation148_spill] sm:$0xff] %v10793_v14  ;;  %14627 = vst [vmem:[#allocation149_spill] sm:$0xff] %v10797_v54  ;;  %v10833_v54 = vld [vmem:[#allocation2 + $0x38] sm:$0x88]  ;;  %v10846_v3 = vunpack.c.l.b16 %v8091_v23  ;;  %v1594_v14 = vld [vmem:[#allocation2 + $0x48] sm:$0x44]  ;;  %v7972_v26 = vcombine.high %v1444_v59, %v1444_v59 }
 0x24b   :  { %14628 = vst [vmem:[#allocation150_spill] sm:$0xff] %v10801_v47  ;;  %14629 = vst [vmem:[#allocation151_spill] sm:$0xff] %v10803_v28  ;;  %v10835_v63 = vld [vmem:[#allocation2 + $0x38] sm:$0x88]  ;;  %v10844_v47 = vunpack.c.l.b16 %v8077_v39  ;;  %v1744_v23 = vld [vmem:[#allocation2 + $0x48] sm:$0x44]  ;;  %v7984_v30 = vcombine.low %v1594_v14, %v1594_v14  ;;  %v10861_v12 = vunpack.c.l.b16 %v7956_v6 }
 0x24c   :  { %14630 = vst [vmem:[#allocation152_spill] sm:$0xff] %v10813_v44  ;;  %14631 = vst [vmem:[#allocation153_spill] sm:$0xff] %v10816_v16  ;;  %v7970_v16 = vcombine.low %v1444_v59, %v1444_v59  ;;  %v7998_v28 = vcombine.low %v1744_v23, %v1744_v23  ;;  %v10867_v39 = vunpack.c.l.b16 %v7972_v26 }
 0x24d   :  { %14632 = vst [vmem:[#allocation154_spill] sm:$0xff] %v10822_v55  ;;  %14633 = vst [vmem:[#allocation155_spill] sm:$0xff] %v10824_v24  ;;  %v7958_v55 = vcombine.high %v1294_v33, %v1294_v33  ;;  %v8000_v24 = vcombine.high %v1744_v23, %v1744_v23  ;;  %v10869_v40 = vunpack.c.l.b16 %v7984_v30  ;;  %v1362_v33 = vrot.slane %v10861_v12, 7 }
 0x24e   :  { %14634 = vst [vmem:[#allocation156_spill] sm:$0xff] %v10833_v54  ;;  %14635 = vst [vmem:[#allocation157_spill] sm:$0xff] %v10835_v63  ;;  %v10865_v4 = vunpack.c.l.b16 %v7970_v16  ;;  %v1542_v26 = vrot.slane %v10867_v39, 6  ;;  %v2969_v63 = vld [vmem:[#allocation2 + $0x5c] sm:$0x11] }
 0x24f   :  { %14636 = vst [vmem:[#allocation158_spill] sm:$0xff] %v10838_v0  ;;  %14637 = vst [vmem:[#allocation159_spill] sm:$0xff] %v10844_v47  ;;  %v7986_v0 = vcombine.high %v1594_v14, %v1594_v14  ;;  %v10863_v15 = vunpack.c.l.b16 %v7958_v55  ;;  %v10877_v14 = vunpack.c.l.b16 %v8000_v24  ;;  %v14647_v55 = vrot.slane %v10497_v9, 1  ;;  %v4787_v54 = vld [vmem:[#allocation2 + $0x5c] sm:$0x22] }
 0x250   :  { %14638 = vst [vmem:[#allocation160_spill] sm:$0xff] %v10846_v3  ;;  %14639 = vst [vmem:[#allocation161_spill] sm:$0xff] %v10861_v12  ;;  %v10875_v3 = vunpack.c.l.b16 %v7998_v28  ;;  %v1666_v30 = vrot.slane %v10869_v40, 1  ;;  %v1363_v6 = vsel %vm1048_vm13, %v1362_v33, %v10493_v2  ;;  %v14648_v28 = vrot.slane %v10495_v32, 6  ;;  %v2044_v12 = vld [vmem:[#allocation2 + $0x48] sm:$0x22] }
 0x251   :  { %14640 = vst [vmem:[#allocation162_spill] sm:$0xff] %v10863_v15  ;;  %14641 = vst [vmem:[#allocation163_spill] sm:$0xff] %v10865_v4  ;;  %v10871_v35 = vunpack.c.l.b16 %v7986_v0  ;;  %v1392_v59 = vrot.slane %v10863_v15, 5  ;;  %v1513_v16 = vsel %vm1048_vm13, %v10865_v4, %v14647_v55  ;;  %v1894_v15 = vld [vmem:[#allocation2 + $0x48] sm:$0x88]  ;;  %v1367_v9 = vpack.c.b16 %v1363_v6, %v1363_v6 }
 0x252   :  { %14642 = vst [vmem:[#allocation164_spill] sm:$0xff] %v10867_v39  ;;  %14643 = vst [vmem:[#allocation165_spill] sm:$0xff] %v10869_v40  ;;  %v1517_v23 = vpack.c.b16 %v1513_v16, %v1513_v16  ;;  %v1816_v47 = vrot.slane %v10875_v3, 2  ;;  %v14649_v39 = vrot.slane %v10499_v25, 7  ;;  %v2206_v33 = vld [vmem:[#allocation2 + $0x48] sm:$0x22] }
 0x253   :  { %14644 = vst [vmem:[#allocation166_spill] sm:$0xff] %v10871_v35  ;;  %14645 = vst [vmem:[#allocation167_spill] sm:$0xff] %v10875_v3  ;;  %v1692_v0 = vrot.slane %v10871_v35, 7  ;;  %v1393_v24 = vsel %vm1080_vm4, %v1392_v59, %v14648_v28  ;;  %v14650_v35 = vrot.slane %v10501_v42, 2  ;;  %v14651_v6 = vrot.slane %v10506_v61, 3 }
 0x254   :  { %14646 = vst [vmem:[#allocation168_spill] sm:$0xff] %v10877_v14  ;;  %v1397_v55 = vpack.c.b16 %v1393_v24, %v1393_v24  ;;  %v1543_v40 = vsel %vm1080_vm4, %v1542_v26, %v14649_v39  ;;  %1525 = vst.msk [vmem:[#allocation3 + $0x78] sm:$0x2] %vm1070_vm1, %v1517_v23  ;;  %v2356_v24 = vld [vmem:[#allocation2 + $0x48] sm:$0x44]  ;;  %v14652_v26 = vrot.slane %v10508_v62, 1  ;;  %v8028_v23 = vcombine.high %v2044_v12, %v2044_v12 }
 0x255   :  { %v1667_v4 = vsel %vm1048_vm13, %v1666_v30, %v14650_v35  ;;  %v1547_v32 = vpack.c.b16 %v1543_v40, %v1543_v40  ;;  %v1693_v16 = vsel %vm1080_vm4, %v1692_v0, %v10503_v43  ;;  %v1817_v28 = vsel %vm1048_vm13, %v1816_v47, %v14651_v6  ;;  %1375 = vst.msk [vmem:[#allocation3 + $0x58] sm:$0x2] %vm1070_vm1, %v1367_v9  ;;  %v2514_v30 = vld [vmem:[#allocation2 + $0x48] sm:$0x44] }
 0x256   :  { %v1671_v59 = vpack.c.b16 %v1667_v4, %v1667_v4  ;;  %1405 = vst.msk [vmem:[#allocation3 + $0x58] sm:$0x4] %vm1102_vm14, %v1397_v55  ;;  %v1697_v39 = vpack.c.b16 %v1693_v16, %v1693_v16  ;;  %v1821_v35 = vpack.c.b16 %v1817_v28, %v1817_v28  ;;  %v1843_v40 = vsel %vm1080_vm4, %v10877_v14, %v14652_v26 }
 0x257   :  { %v8012_v4 = vcombine.low %v1894_v15, %v1894_v15  ;;  %1555 = vst.msk [vmem:[#allocation3 + $0x78] sm:$0x4] %vm1102_vm14, %v1547_v32  ;;  %v1847_v47 = vpack.c.b16 %v1843_v40, %v1843_v40  ;;  %v8014_v0 = vcombine.high %v1894_v15, %v1894_v15  ;;  %v8040_v9 = vcombine.low %v2206_v33, %v2206_v33  ;;  %v2664_v40 = vld [vmem:[#allocation2 + $0x48] sm:$0x88] }
 0x258   :  { %1679 = vst.msk [vmem:[#allocation3 + $0x98] sm:$0x2] %vm1070_vm1, %v1671_v59  ;;  %1829 = vst.msk [vmem:[#allocation3 + $0xb8] sm:$0x2] %vm1070_vm1, %v1821_v35  ;;  %v8042_v16 = vcombine.high %v2206_v33, %v2206_v33  ;;  %v10916_v6 = vcombine.low %v2356_v24, %v2356_v24  ;;  %v10918_v28 = vcombine.high %v2356_v24, %v2356_v24  ;;  %v10923_v59 = vunpack.c.l.b16 %v8028_v23  ;;  %v9357_v24 = vld [vmem:[%s14015_s4 + $0x70] sm:$0xff]  }
 0x259   :  { %1705 = vst.msk [vmem:[#allocation3 + $0x98] sm:$0x4] %vm1102_vm14, %v1697_v39  ;;  %v10914_v55 = vunpack.c.l.b16 %v8012_v4  ;;  %1855 = vst.msk [vmem:[#allocation3 + $0xb8] sm:$0x4] %vm1102_vm14, %v1847_v47  ;;  %v10921_v32 = vunpack.c.l.b16 %v8014_v0  ;;  %v10925_v15 = vunpack.c.l.b16 %v8040_v9  ;;  %v8068_v12 = vcombine.low %v2514_v30, %v2514_v30  ;;  %8629 = vmatprep.subr.bf16.mxu1 %v9357_v24  ;;  %v3126_v9 = vld [vmem:[#allocation2 + $0x48] sm:$0x44] }
 0x25a   :  { %14654 = vst [vmem:[#allocation170_spill] sm:$0xff] %v10916_v6  ;;  %14655 = vst [vmem:[#allocation171_spill] sm:$0xff] %v10918_v28  ;;  %v10928_v26 = vunpack.c.l.b16 %v8042_v16  ;;  %v2453_v33 = vunpack.c.h.b16 %v10918_v28  ;;  %v2152_v47 = vrot.slane %v10923_v59, 5  ;;  %v14660_v0 = vrot.slane %v10530_v50, 1 }
 0x25b   :  { %14653 = vst [vmem:[#allocation169_spill] sm:$0xff] %v10914_v55  ;;  %14656 = vst [vmem:[#allocation172_spill] sm:$0xff] %v10921_v32  ;;  %v1996_v4 = vrot.slane %v10921_v32, 1  ;;  %v10943_v14 = vunpack.c.l.b16 %v8068_v12  ;;  %v14662_v62 = vrot.slane %v10521_v11, 2  ;;  %v14663_v43 = vrot.slane %v10523_v51, 6 }
 0x25c   :  { %14657 = vst [vmem:[#allocation173_spill] sm:$0xff] %v10923_v59  ;;  %14658 = vst [vmem:[#allocation174_spill] sm:$0xff] %v10925_v15  ;;  %v2275_v23 = vsel %vm1048_vm13, %v10925_v15, %v14660_v0  ;;  %v2304_v39 = vrot.slane %v10928_v26, 6  ;;  %v2460_v35 = vrot.slane %v2453_v33, 7  ;;  %v8070_v25 = vcombine.high %v2514_v30, %v2514_v30  ;;  %v2820_v0 = vld [vmem:[#allocation2 + $0x48] sm:$0x88] }
 0x25d   :  { %14659 = vst [vmem:[#allocation175_spill] sm:$0xff] %v10928_v26  ;;  %v2279_v16 = vpack.c.b16 %v2275_v23, %v2275_v23  ;;  %14661 = vst [vmem:[#allocation176_spill] sm:$0xff] %v10943_v14  ;;  %v1997_v32 = vsel %vm1080_vm4, %v1996_v4, %v14662_v62  ;;  %v2153_v55 = vsel %vm1080_vm4, %v2152_v47, %v14663_v43  ;;  %v14665_v12 = vrot.slane %v10536_v56, 7  ;;  %v3276_v4 = vld [vmem:[#allocation2 + $0x48] sm:$0x44] }
 0x25e   :  { %v10951_v3 = vcombine.low %v2664_v40, %v2664_v40  ;;  %v2001_v23 = vpack.c.b16 %v1997_v32, %v1997_v32  ;;  %v2157_v61 = vpack.c.b16 %v2153_v55, %v2153_v55  ;;  %v14666_v24 = vunpack.c.h.b16 %v10527_v45  ;;  %v9358_v55 = vld [vmem:[%s14015_s4 + $0x170] sm:$0xff]  }
 0x25f   :  { %2287 = vst.msk [vmem:[#allocation3 + $0x38] sm:$0x20] %vm2132_vm5, %v2279_v16  ;;  %v2305_v33 = vsel %vm1080_vm4, %v2304_v39, %v14665_v12  ;;  %v2586_v30 = vrot.slane %v10943_v14, 2  ;;  %v10961_v47 = vunpack.c.l.b16 %v8070_v25  ;;  %v10969_v39 = vcombine.high %v2664_v40, %v2664_v40  ;;  %8685 = vmatprep.subr.bf16.mxu0 %v9358_v55  ;;  %v9359_v40 = vld [vmem:[%s14015_s4 + $0x30] sm:$0xff]   ;;  %v9362_v55 = vld [vmem:[%s14015_s4 + $0x178] sm:$0xff]  }
 0x260   :  { %14664 = vst [vmem:[#allocation177_spill] sm:$0xff] %v10951_v3  ;;  %v2461_v62 = vsel %vm1080_vm4, %v2460_v35, %v14666_v24  ;;  %v2309_v11 = vpack.c.b16 %v2305_v33, %v2305_v33  ;;  %2009 = vst.msk [vmem:[#allocation3 + $0xd8] sm:$0x4] %vm1102_vm14, %v2001_v23  ;;  %v14168_v32 = vunpack.c.l.b16 %v10951_v3  ;;  %v8098_v35 = vcombine.high %v2820_v0, %v2820_v0 }
 0x261   :  { %v2465_v43 = vpack.c.b16 %v2461_v62, %v2461_v62  ;;  %14667 = vst [vmem:[#allocation178_spill] sm:$0xff] %v10961_v47  ;;  %2166 = vst.msk [vmem:[#allocation3 + $0x18] sm:$0x40] %vm2165_vm3, %v2157_v61  ;;  %v8124_v16 = vcombine.low %v3126_v9, %v3126_v9  ;;  %v14669_v25 = vrot.slane %v10544_v22, 3  ;;  %v14670_v33 = vrot.slane %v10546_v58, 1  ;;  %8630 = vmatpush3.bf16.msra.mxu1 %v9359_v40 }
 0x262   :  { %14668 = vst [vmem:[#allocation179_spill] sm:$0xff] %v10969_v39  ;;  %2317 = vst.msk [vmem:[#allocation3 + $0x38] sm:$0x40] %vm2165_vm3, %v2309_v11  ;;  %v8126_v61 = vcombine.high %v3126_v9, %v3126_v9  ;;  %v8138_v24 = vcombine.low %v3276_v4, %v3276_v4  ;;  %v3426_v62 = vld [vmem:[#allocation2 + $0x48] sm:$0x88]  ;;  %v9361_v9 = vld [vmem:[%s14015_s4 + $0x78] sm:$0xff]   ;;  %v8140_v45 = vcombine.high %v3276_v4, %v3276_v4 }
 0x263   :  { %2473 = vst.msk [vmem:[#allocation3 + $0x58] sm:$0x40] %vm2165_vm3, %v2465_v43  ;;  %v2587_v12 = vsel %vm1048_vm13, %v2586_v30, %v14669_v25  ;;  %v2613_v23 = vsel %vm1080_vm4, %v10961_v47, %v14670_v33  ;;  %v10985_v43 = vrot.slane %v14168_v32, 3  ;;  %v2755_v30 = vunpack.c.l.b16 %v10969_v39  ;;  %v9360_v25 = vld [vmem:[%s14015_s4 + $0x130] sm:$0xff]   ;;  %v9363_v47 = vld [vmem:[%s14015_s4 + $0x38] sm:$0xff]   ;;  %8631 = vmatprep.subr.bf16.mxu1 %v9361_v9 }
 0x264   :  { %v2591_v11 = vpack.c.b16 %v2587_v12, %v2587_v12  ;;  %v2617_v0 = vpack.c.b16 %v2613_v23, %v2613_v23  ;;  %v10998_v33 = vunpack.c.l.b16 %v8098_v35  ;;  %v11000_v23 = vunpack.c.l.b16 %v8124_v16  ;;  %8686 = vmatpush3.bf16.msra.mxu0 %v9360_v25  ;;  %v9364_v35 = vld [vmem:[%s14015_s4 + $0x138] sm:$0xff]   ;;  %v9373_v25 = vld [vmem:[%s14015_s4 + $0xc0] sm:$0xff]  }
 0x265   :  { %14671 = vst [vmem:[#allocation180_spill] sm:$0xff] %v10985_v43  ;;  %v11002_v32 = vunpack.c.l.b16 %v8126_v61  ;;  %v2766_v58 = vrot.slane %v2755_v30, 1  ;;  %v11009_v28 = vunpack.c.l.b16 %v8138_v24  ;;  %v8152_v12 = vcombine.low %v3426_v62, %v3426_v62  ;;  %8687 = vmatprep.subr.bf16.mxu0 %v9362_v55  ;;  %8632 = vmatpush3.bf16.msra.mxu1 %v9363_v47 }
 0x266   :  { %14672 = vst [vmem:[#allocation181_spill] sm:$0xff] %v10998_v33  ;;  %14673 = vst [vmem:[#allocation182_spill] sm:$0xff] %v11000_v23  ;;  %v2922_v16 = vrot.slane %v10998_v33, 2  ;;  %v3198_v61 = vrot.slane %v11000_v23, 1  ;;  %v14678_v33 = vrot.slane %v10556_v18, 3  ;;  %v14680_v42 = vrot.slane %v10573_v7, 3  ;;  %8645 = vmatprep.subr.bf16.mxu1 %v9373_v25 }
 0x267   :  { %14674 = vst [vmem:[#allocation183_spill] sm:$0xff] %v11002_v32  ;;  %2599 = vst.msk [vmem:[#allocation3 + $0x78] sm:$0x20] %vm2132_vm5, %v2591_v11  ;;  %v3224_v40 = vrot.slane %v11002_v32, 7  ;;  %v8154_v11 = vcombine.high %v3426_v62, %v3426_v62  ;;  %v2767_v24 = vsel %vm1080_vm4, %v2766_v58, %v10560_v21  ;;  %v3348_v4 = vrot.slane %v11009_v28, 2 }
 0x268   :  { %2625 = vst.msk [vmem:[#allocation3 + $0x78] sm:$0x40] %vm2165_vm3, %v2617_v0  ;;  %14675 = vst [vmem:[#allocation184_spill] sm:$0xff] %v11009_v28  ;;  %v11020_v0 = vunpack.c.l.b16 %v8140_v45  ;;  %v11022_v30 = vunpack.c.l.b16 %v8152_v12  ;;  %v2771_v9 = vpack.c.b16 %v2767_v24, %v2767_v24  ;;  %v2923_v39 = vsel %vm1080_vm4, %v2922_v16, %v14678_v33  ;;  %v3576_v21 = vld [vmem:[#allocation2 + $0x48] sm:$0x88]  ;;  %8688 = vmatpush3.bf16.msra.mxu0 %v9364_v35 }
 0x269   :  { %v14679_v62 = vrot.slane %v10558_v36, 2  ;;  %v3225_v58 = vsel %vm1080_vm4, %v3224_v40, %v10562_v34  ;;  %v4176_v45 = vld [vmem:[#allocation2 + $0x48] sm:$0x88]  ;;  %v2927_v12 = vpack.c.b16 %v2923_v39, %v2923_v39  ;;  %v3349_v24 = vsel %vm1048_vm13, %v3348_v4, %v14680_v42  ;;  %v1293_v33 = vld [vmem:[#allocation2 + $0x40] sm:$0x22] }
 0x26a   :  { %14676 = vst [vmem:[#allocation185_spill] sm:$0xff] %v11020_v0  ;;  %14677 = vst [vmem:[#allocation186_spill] sm:$0xff] %v11022_v30  ;;  %v3229_v3 = vpack.c.b16 %v3225_v58, %v3225_v58  ;;  %v4332_v18 = vld [vmem:[#allocation2 + $0x48] sm:$0x88]  ;;  %v3353_v16 = vpack.c.b16 %v3349_v24, %v3349_v24  ;;  %v11044_v39 = vunpack.c.l.b16 %v8154_v11  ;;  %v8168_v35 = vcombine.high %v3576_v21, %v3576_v21  ;;  %v3875_v7 = vld [vmem:[#allocation2 + $0x5c] sm:$0x11] }
 0x26b   :  { %v3199_v55 = vsel %vm1048_vm13, %v3198_v61, %v14679_v62  ;;  %2779 = vst.msk [vmem:[#allocation3 + $0x98] sm:$0x40] %vm2165_vm3, %v2771_v9  ;;  %v14681_v61 = vrot.slane %v10575_v48, 1  ;;  %v1443_v62 = vld [vmem:[#allocation2 + $0x40] sm:$0x22]  ;;  %v11049_v4 = vcombine.low %v4176_v45, %v4176_v45  ;;  %v11051_v9 = vcombine.high %v4176_v45, %v4176_v45 }
 0x26c   :  { %v3203_v43 = vpack.c.b16 %v3199_v55, %v3199_v55  ;;  %14682 = vst [vmem:[#allocation187_spill] sm:$0xff] %v11044_v39  ;;  %2935 = vst.msk [vmem:[#allocation3 + $0xb8] sm:$0x40] %vm2165_vm3, %v2927_v12  ;;  %v1593_v55 = vld [vmem:[#allocation2 + $0x40] sm:$0x44]  ;;  %v3528_v11 = vrot.slane %v11044_v39, 1  ;;  %v8238_v58 = vcombine.high %v4332_v18, %v4332_v18  ;;  %v7953_v24 = vcombine.low %v1293_v33, %v1293_v33 }
 0x26d   :  { %v3375_v40 = vsel %vm1080_vm4, %v11020_v0, %v14681_v61  ;;  %3237 = vst.msk [vmem:[#allocation3 + $0xf8] sm:$0x4] %vm1102_vm14, %v3229_v3  ;;  %14683 = vst [vmem:[#allocation188_spill] sm:$0xff] %v11049_v4  ;;  %v7954_v25 = vcombine.high %v1293_v33, %v1293_v33  ;;  %v1743_v61 = vld [vmem:[#allocation2 + $0x40] sm:$0x44]  ;;  %v14183_v3 = vunpack.c.l.b16 %v11049_v4  ;;  %v4267_v21 = vunpack.c.l.b16 %v11051_v9 }
 0x26e   :  { %3211 = vst.msk [vmem:[#allocation3 + $0xf8] sm:$0x2] %vm1070_vm1, %v3203_v43  ;;  %v3379_v42 = vpack.c.b16 %v3375_v40, %v3375_v40  ;;  %14684 = vst [vmem:[#allocation189_spill] sm:$0xff] %v11051_v9  ;;  %v11056_v43 = vunpack.c.l.b16 %v8168_v35  ;;  %v7968_v12 = vcombine.high %v1443_v62, %v1443_v62  ;;  %v14686_v45 = vrot.slane %v10577_v41, 2  ;;  %v1893_v0 = vld [vmem:[#allocation2 + $0x40] sm:$0x88] }
 0x26f   :  { %3361 = vst.msk [vmem:[#allocation3 + $0x118] sm:$0x2] %vm1070_vm1, %v3353_v16  ;;  %v11063_v16 = vunpack.c.l.b16 %v8238_v58  ;;  %v11065_v47 = vunpack.c.l.b16 %v7953_v24  ;;  %v11067_v18 = vunpack.c.l.b16 %v7954_v25  ;;  %v11072_v35 = vrot.slane %v14183_v3, 3  ;;  %v2043_v24 = vld [vmem:[#allocation2 + $0x40] sm:$0x22] }
 0x270   :  { %3387 = vst.msk [vmem:[#allocation3 + $0x118] sm:$0x4] %vm1102_vm14, %v3379_v42  ;;  %14685 = vst [vmem:[#allocation190_spill] sm:$0xff] %v11056_v43  ;;  %v3529_v40 = vsel %vm1080_vm4, %v3528_v11, %v14686_v45  ;;  %v3678_v42 = vrot.slane %v11056_v43, 2  ;;  %v4278_v39 = vrot.slane %v4267_v21, 1  ;;  %v11076_v11 = vunpack.c.l.b16 %v7968_v12 }
 0x271   :  { %14687 = vst [vmem:[#allocation191_spill] sm:$0xff] %v11063_v16  ;;  %14688 = vst [vmem:[#allocation192_spill] sm:$0xff] %v11065_v47  ;;  %v3533_v33 = vpack.c.b16 %v3529_v40, %v3529_v40  ;;  %v4434_v62 = vrot.slane %v11063_v16, 2  ;;  %v1334_v41 = vrot.slane %v11067_v18, 1  ;;  %v7981_v58 = vcombine.low %v1593_v55, %v1593_v55  ;;  %v2205_v45 = vld [vmem:[#allocation2 + $0x40] sm:$0x22] }
 0x272   :  { %14689 = vst [vmem:[#allocation193_spill] sm:$0xff] %v11067_v18  ;;  %14690 = vst [vmem:[#allocation194_spill] sm:$0xff] %v11072_v35  ;;  %v14692_v25 = vrot.slane %v10592_v19, 3  ;;  %v4279_v3 = vsel %vm1080_vm4, %v4278_v39, %v10603_v46  ;;  %v7982_v21 = vcombine.high %v1593_v55, %v1593_v55  ;;  %v7995_v43 = vcombine.low %v1743_v61, %v1743_v61  ;;  %v2513_v46 = vld [vmem:[#allocation2 + $0x40] sm:$0x44] }
 0x273   :  { %14691 = vst [vmem:[#allocation195_spill] sm:$0xff] %v11076_v11  ;;  %3541 = vst.msk [vmem:[#allocation3 + $0x138] sm:$0x4] %vm1102_vm14, %v3533_v33  ;;  %v4283_v16 = vpack.c.b16 %v4279_v3, %v4279_v3  ;;  %v14693_v26 = vrot.slane %v10599_v31, 3  ;;  %v14694_v56 = vrot.slane %v10607_v53, 2  ;;  %v8009_v3 = vcombine.low %v1893_v0, %v1893_v0 }
 0x274   :  { %v3679_v40 = vsel %vm1080_vm4, %v3678_v42, %v14692_v25  ;;  %v2355_v33 = vld [vmem:[#allocation2 + $0x40] sm:$0x44]  ;;  %v1484_v42 = vrot.slane %v11076_v11, 2  ;;  %v11091_v25 = vunpack.c.l.b16 %v7981_v58  ;;  %v11095_v39 = vunpack.c.l.b16 %v7982_v21  ;;  %v4022_v47 = vld [vmem:[#allocation2 + $0x2c] sm:$0x22] }
 0x275   :  { %v3683_v48 = vpack.c.b16 %v3679_v40, %v3679_v40  ;;  %v4435_v12 = vsel %vm1080_vm4, %v4434_v62, %v14693_v26  ;;  %v1335_v14 = vsel %vm1017_vm10, %v1334_v41, %v14694_v56  ;;  %4291 = vst.msk [vmem:[#allocation3 + $0xf8] sm:$0x40] %vm2165_vm3, %v4283_v16  ;;  %v7996_v26 = vcombine.high %v1743_v61, %v1743_v61  ;;  %v4637_v4 = vld [vmem:[#allocation2 + $0x5c] sm:$0x11] }
 0x276   :  { %v4439_v22 = vpack.c.b16 %v4435_v12, %v4435_v12  ;;  %v1339_v19 = vpack.c.b16 %v1335_v14, %v1335_v14  ;;  %14695 = vst [vmem:[#allocation196_spill] sm:$0xff] %v11091_v25  ;;  %14696 = vst [vmem:[#allocation197_spill] sm:$0xff] %v11095_v39  ;;  %v11097_v55 = vunpack.c.l.b16 %v7995_v43  ;;  %v14698_v56 = vrot.slane %v10611_v52, 3  ;;  %v2663_v43 = vld [vmem:[#allocation2 + $0x40] sm:$0x88] }
 0x277   :  { %3691 = vst.msk [vmem:[#allocation3 + $0x158] sm:$0x4] %vm1102_vm14, %v3683_v48  ;;  %v8010_v14 = vcombine.high %v1893_v0, %v1893_v0  ;;  %v11104_v62 = vcombine.high %v2043_v24, %v2043_v24  ;;  %v8038_v48 = vcombine.high %v2205_v45, %v2205_v45  ;;  %v1634_v16 = vrot.slane %v11095_v39, 3 }
 0x278   :  { %14697 = vst [vmem:[#allocation198_spill] sm:$0xff] %v11097_v55  ;;  %4447 = vst.msk [vmem:[#allocation3 + $0x118] sm:$0x40] %vm2165_vm3, %v4439_v22  ;;  %v1485_v41 = vsel %vm1017_vm10, %v1484_v42, %v14698_v56  ;;  %v11107_v40 = vunpack.c.l.b16 %v7996_v26  ;;  %v11109_v61 = vunpack.c.l.b16 %v8009_v3  ;;  %v11116_v12 = vcombine.low %v2355_v33, %v2355_v33  ;;  %v2819_v3 = vld [vmem:[#allocation2 + $0x40] sm:$0x88] }
 0x279   :  { %1347 = vst.msk [vmem:[#allocation3 + $0x58] sm:$0x1] %vm1036_vm12, %v1339_v19  ;;  %v1489_v58 = vpack.c.b16 %v1485_v41, %v1485_v41  ;;  %v11111_v21 = vunpack.c.l.b16 %v8010_v14  ;;  %v11114_v19 = vunpack.c.l.b16 %v8038_v48  ;;  %v14704_v0 = vrot.slane %v10617_v57, 4  ;;  %v3125_v22 = vld [vmem:[#allocation2 + $0x40] sm:$0x44] }
 0x27a   :  { %14699 = vst [vmem:[#allocation199_spill] sm:$0xff] %v11107_v40  ;;  %14700 = vst [vmem:[#allocation200_spill] sm:$0xff] %v11109_v61  ;;  %v1784_v45 = vrot.slane %v11107_v40, 4  ;;  %v11123_v42 = vcombine.high %v2355_v33, %v2355_v33  ;;  %v8065_v26 = vcombine.low %v2513_v46, %v2513_v46  ;;  %v3275_v61 = vld [vmem:[#allocation2 + $0x40] sm:$0x44]  ;;  %v8066_v33 = vcombine.high %v2513_v46, %v2513_v46 }
 0x27b   :  { %14701 = vst [vmem:[#allocation201_spill] sm:$0xff] %v11111_v21  ;;  %14702 = vst [vmem:[#allocation202_spill] sm:$0xff] %v11114_v19  ;;  %v1635_v24 = vsel %vm1017_vm10, %v1634_v16, %v14704_v0  ;;  %v1934_v41 = vrot.slane %v11111_v21, 5  ;;  %v2246_v14 = vrot.slane %v11114_v19, 2  ;;  %v14710_v48 = vld [vmem:[#allocation106_spill] sm:$0xff] }
 0x27c   :  { %14703 = vst [vmem:[#allocation203_spill] sm:$0xff] %v11116_v12  ;;  %1497 = vst.msk [vmem:[#allocation3 + $0x78] sm:$0x1] %vm1036_vm12, %v1489_v58  ;;  %v1639_v56 = vpack.c.b16 %v1635_v24, %v1635_v24  ;;  %v14706_v58 = vld [vmem:[#allocation104_spill] sm:$0xff]  ;;  %v11132_v16 = vunpack.c.l.b16 %v11123_v42  ;;  %v11134_v0 = vunpack.c.l.b16 %v8065_v26  ;;  %v9382_v24 = vld [vmem:[%s14015_s4 + $0x240] sm:$0xff]   ;;  %v14711_v40 = vrot.slane %v14710_v48, 6 }
 0x27d   :  { %14705 = vst [vmem:[#allocation204_spill] sm:$0xff] %v11123_v42  ;;  %v14707_v55 = vrot.slane %v14706_v58, 5  ;;  %v14712_v58 = vld [vmem:[#allocation109_spill] sm:$0xff]  ;;  %8729 = vmatprep.subr.bf16.mxu0 %v9382_v24  ;;  %v8093_v48 = vcombine.low %v2819_v3, %v2819_v3 }
 0x27e   :  { %14708 = vst [vmem:[#allocation205_spill] sm:$0xff] %v11132_v16  ;;  %14709 = vst [vmem:[#allocation206_spill] sm:$0xff] %v11134_v0  ;;  %v1935_v39 = vsel %vm1017_vm10, %v1934_v41, %v14711_v40  ;;  %v14713_v25 = vrot.slane %v14712_v58, 3  ;;  %v11147_v0 = vunpack.c.l.b16 %v8066_v33  ;;  %v8094_v40 = vcombine.high %v2819_v3, %v2819_v3  ;;  %v3425_v41 = vld [vmem:[#allocation2 + $0x40] sm:$0x88]  ;;  %v14720_v3 = vld [vmem:[#allocation112_spill] sm:$0xff] }
 0x27f   :  { %v1785_v57 = vsel %vm1017_vm10, %v1784_v45, %v14707_v55  ;;  %1647 = vst.msk [vmem:[#allocation3 + $0x98] sm:$0x1] %vm1036_vm12, %v1639_v56  ;;  %v8079_v45 = vcombine.low %v2663_v43, %v2663_v43  ;;  %v1939_v31 = vpack.c.b16 %v1935_v39, %v1935_v39  ;;  %v11150_v56 = vcombine.high %v2663_v43, %v2663_v43 }
 0x280   :  { %v1789_v21 = vpack.c.b16 %v1785_v57, %v1785_v57  ;;  %v2247_v55 = vsel %vm1017_vm10, %v2246_v14, %v14713_v25  ;;  %14714 = vst [vmem:[#allocation207_spill] sm:$0xff] %v11147_v0  ;;  %v2554_v25 = vrot.slane %v11147_v0, 4  ;;  %v8121_v39 = vcombine.low %v3125_v22, %v3125_v22 }
 0x281   :  { %v2251_v46 = vpack.c.b16 %v2247_v55, %v2247_v55  ;;  %14715 = vst [vmem:[#allocation208_spill] sm:$0xff] %v11150_v56  ;;  %v11152_v57 = vunpack.c.l.b16 %v8079_v45  ;;  %1947 = vst.msk [vmem:[#allocation3 + $0xd8] sm:$0x1] %vm1036_vm12, %v1939_v31  ;;  %v8122_v14 = vcombine.high %v3125_v22, %v3125_v22  ;;  %v8135_v33 = vcombine.low %v3275_v61, %v3275_v61  ;;  %v3575_v55 = vld [vmem:[#allocation2 + $0x40] sm:$0x88] }
 0x282   :  { %1797 = vst.msk [vmem:[#allocation3 + $0xb8] sm:$0x1] %vm1036_vm12, %v1789_v21  ;;  %v11158_v24 = vunpack.c.l.b16 %v11150_v56  ;;  %v11161_v21 = vunpack.c.l.b16 %v8093_v48  ;;  %v11163_v45 = vunpack.c.l.b16 %v8094_v40  ;;  %v14721_v26 = vrot.slane %v14720_v3, 5  ;;  %v4175_v48 = vld [vmem:[#allocation2 + $0x40] sm:$0x88] }
 0x283   :  { %14716 = vst [vmem:[#allocation209_spill] sm:$0xff] %v11152_v57  ;;  %2259 = vst.msk [vmem:[#allocation3 + $0x38] sm:$0x10] %vm2097_vm15, %v2251_v46  ;;  %v11168_v46 = vunpack.c.l.b16 %v8121_v39  ;;  %v11170_v57 = vunpack.c.l.b16 %v8122_v14  ;;  %v8136_v22 = vcombine.high %v3275_v61, %v3275_v61  ;;  %v11174_v9 = vunpack.c.l.b16 %v8135_v33  ;;  %v14726_v14 = vld [vmem:[#allocation116_spill] sm:$0xff]  ;;  %v2965_v3 = vld [vmem:[#allocation2 + $0x24] sm:$0x11] }
 0x284   :  { %14717 = vst [vmem:[#allocation210_spill] sm:$0xff] %v11158_v24  ;;  %14718 = vst [vmem:[#allocation211_spill] sm:$0xff] %v11161_v21  ;;  %v2555_v31 = vsel %vm1017_vm10, %v2554_v25, %v14721_v26  ;;  %v2704_v11 = vrot.slane %v11158_v24, 5  ;;  %v2860_v52 = vrot.slane %v11163_v45, 6  ;;  %v8149_v21 = vcombine.low %v3425_v41, %v3425_v41  ;;  %v4331_v26 = vld [vmem:[#allocation2 + $0x40] sm:$0x88] }
 0x285   :  { %14719 = vst [vmem:[#allocation212_spill] sm:$0xff] %v11163_v45  ;;  %v2559_v0 = vpack.c.b16 %v2555_v31, %v2555_v31  ;;  %14722 = vst [vmem:[#allocation213_spill] sm:$0xff] %v11174_v9  ;;  %v3166_v40 = vrot.slane %v11170_v57, 3  ;;  %v11177_v43 = vunpack.c.l.b16 %v8136_v22  ;;  %v8150_v56 = vcombine.high %v3425_v41, %v3425_v41  ;;  %v14724_v25 = vld [vmem:[#allocation114_spill] sm:$0xff] }
 0x286   :  { %v14725_v39 = vrot.slane %v14724_v25, 6  ;;  %v14727_v31 = vrot.slane %v14726_v14, 7  ;;  %v8163_v33 = vcombine.low %v3575_v55, %v3575_v55  ;;  %v8164_v24 = vcombine.high %v3575_v55, %v3575_v55  ;;  %v14728_v22 = vld [vmem:[#allocation118_spill] sm:$0xff] }
 0x287   :  { %14723 = vst [vmem:[#allocation214_spill] sm:$0xff] %v11177_v43  ;;  %2567 = vst.msk [vmem:[#allocation3 + $0x78] sm:$0x10] %vm2097_vm15, %v2559_v0  ;;  %v14729_v30 = vrot.slane %v14728_v22, 4  ;;  %v3316_v59 = vrot.slane %v11177_v43, 4  ;;  %v11190_v51 = vunpack.c.l.b16 %v8149_v21  ;;  %v11192_v25 = vunpack.c.l.b16 %v8150_v56 }
 0x288   :  { %v2705_v61 = vsel %vm1017_vm10, %v2704_v11, %v14725_v39  ;;  %v2861_v45 = vsel %vm1017_vm10, %v2860_v52, %v14727_v31  ;;  %v11194_v11 = vunpack.c.l.b16 %v8163_v33  ;;  %v3721_v39 = vld [vmem:[#allocation2 + $0x24] sm:$0x11]  ;;  %v14733_v52 = vrot.slane %v10667_v17, 5  ;;  %v4025_v17 = vld [vmem:[#allocation2 + $0x5c] sm:$0x22] }
 0x289   :  { %v2709_v32 = vpack.c.b16 %v2705_v61, %v2705_v61  ;;  %v2865_v34 = vpack.c.b16 %v2861_v45, %v2861_v45  ;;  %v3167_v41 = vsel %vm1017_vm10, %v3166_v40, %v14729_v30  ;;  %14730 = vst [vmem:[#allocation215_spill] sm:$0xff] %v11190_v51  ;;  %14731 = vst [vmem:[#allocation216_spill] sm:$0xff] %v11192_v25  ;;  %v11201_v45 = vunpack.c.l.b16 %v8164_v24  ;;  %v3871_v33 = vld [vmem:[#allocation2 + $0x24] sm:$0x11]  ;;  %v4021_v24 = vld [vmem:[#allocation2 + $0x24] sm:$0x22] }
 0x28a   :  { %v3171_v0 = vpack.c.b16 %v3167_v41, %v3167_v41  ;;  %14732 = vst [vmem:[#allocation217_spill] sm:$0xff] %v11194_v11  ;;  %v3317_v55 = vsel %vm1017_vm10, %v3316_v59, %v14733_v52  ;;  %v8219_v30 = vcombine.low %v4175_v48, %v4175_v48  ;;  %v11203_v40 = vcombine.high %v4175_v48, %v4175_v48 }
 0x28b   :  { %2717 = vst.msk [vmem:[#allocation3 + $0x98] sm:$0x10] %vm2097_vm15, %v2709_v32  ;;  %2873 = vst.msk [vmem:[#allocation3 + $0xb8] sm:$0x10] %vm2097_vm15, %v2865_v34  ;;  %v3321_v56 = vpack.c.b16 %v3317_v55, %v3317_v55  ;;  %v3466_v21 = vrot.slane %v11192_v25, 5  ;;  %v8233_v61 = vcombine.low %v4331_v26, %v4331_v26  ;;  %v8234_v31 = vcombine.high %v4331_v26, %v4331_v26 }
 0x28c   :  { %14734 = vst [vmem:[#allocation218_spill] sm:$0xff] %v11201_v45  ;;  %14735 = vst [vmem:[#allocation219_spill] sm:$0xff] %v11203_v40  ;;  %v3616_v32 = vrot.slane %v11201_v45, 6  ;;  %v11208_v34 = vunpack.c.l.b16 %v8219_v30  ;;  %v11211_v41 = vunpack.c.l.b16 %v11203_v40  ;;  %v11213_v59 = vcombine.low %v2965_v3, %v2965_v3  ;;  %v4477_v30 = vld [vmem:[#allocation2 + $0x24] sm:$0x11] }
 0x28d   :  { %3179 = vst.msk [vmem:[#allocation3 + $0xf8] sm:$0x1] %vm1036_vm12, %v3171_v0  ;;  %3329 = vst.msk [vmem:[#allocation3 + $0x118] sm:$0x1] %vm1036_vm12, %v3321_v56  ;;  %v14739_v48 = vrot.slane %v10672_v60, 6  ;;  %v11219_v52 = vunpack.c.l.b16 %v8233_v61  ;;  %v11221_v26 = vunpack.c.l.b16 %v8234_v31  ;;  %v11223_v55 = vcombine.high %v2965_v3, %v2965_v3 }
 0x28e   :  { %14736 = vst [vmem:[#allocation220_spill] sm:$0xff] %v11208_v34  ;;  %14737 = vst [vmem:[#allocation221_spill] sm:$0xff] %v11211_v41  ;;  %v14742_v45 = vrot.slane %v10677_v27, 7  ;;  %v8173_v25 = vcombine.low %v3721_v39, %v3721_v39  ;;  %v4633_v56 = vld [vmem:[#allocation2 + $0x24] sm:$0x11]  ;;  %v8187_v16 = vcombine.low %v3871_v33, %v3871_v33  ;;  %v8202_v6 = vcombine.high %v4021_v24, %v4021_v24 }
 0x28f   :  { %14738 = vst [vmem:[#allocation222_spill] sm:$0xff] %v11213_v59  ;;  %v3467_v0 = vsel %vm1017_vm10, %v3466_v21, %v14739_v48  ;;  %14740 = vst [vmem:[#allocation223_spill] sm:$0xff] %v11219_v52  ;;  %v4216_v59 = vrot.slane %v11211_v41, 5  ;;  %v4372_v60 = vrot.slane %v11221_v26, 6  ;;  %v11232_v61 = vunpack.c.l.b16 %v11223_v55  ;;  %v4783_v3 = vld [vmem:[#allocation2 + $0x24] sm:$0x22] }
 0x290   :  { %14741 = vst [vmem:[#allocation224_spill] sm:$0xff] %v11221_v26  ;;  %v3471_v14 = vpack.c.b16 %v3467_v0, %v3467_v0  ;;  %v3617_v11 = vsel %vm1017_vm10, %v3616_v32, %v14742_v45  ;;  %v4941_v31 = vld [vmem:[#allocation2 + $0x24] sm:$0x22]  ;;  %v8174_v32 = vcombine.high %v3721_v39, %v3721_v39  ;;  %v11238_v27 = vunpack.c.l.b16 %v8173_v25  ;;  %v2968_v39 = vld [vmem:[#allocation2 + $0x54] sm:$0x11] }
 0x291   :  { %v3621_v51 = vpack.c.b16 %v3617_v11, %v3617_v11  ;;  %14743 = vst [vmem:[#allocation225_spill] sm:$0xff] %v11232_v61  ;;  %v14744_v48 = vld [vmem:[#allocation127_spill] sm:$0xff]  ;;  %v14747_v21 = vrot.slane %v10696_v5, 7  ;;  %v8188_v61 = vcombine.high %v3871_v33, %v3871_v33  ;;  %v11248_v18 = vcombine.low %v4477_v30, %v4477_v30  ;;  %v11250_v25 = vld [vmem:[#allocation2 + $0x54] sm:$0x11] }
 0x292   :  { %3479 = vst.msk [vmem:[#allocation3 + $0x138] sm:$0x1] %vm1036_vm12, %v3471_v14  ;;  %v14745_v0 = vrot.slane %v14744_v48, 6  ;;  %14746 = vst [vmem:[#allocation226_spill] sm:$0xff] %v11238_v27  ;;  %v11244_v2 = vunpack.c.l.b16 %v8174_v32  ;;  %v11246_v14 = vunpack.c.l.b16 %v8187_v16  ;;  %v11259_v33 = vld [vmem:[#allocation2 + $0x54] sm:$0x22]  ;;  %v8258_v16 = vcombine.high %v4633_v56, %v4633_v56 }
 0x293   :  { %3629 = vst.msk [vmem:[#allocation3 + $0x158] sm:$0x1] %vm1036_vm12, %v3621_v51  ;;  %v4373_v42 = vsel %vm1017_vm10, %v4372_v60, %v14747_v21  ;;  %14750 = vst [vmem:[#allocation229_spill] sm:$0xff] %v11248_v18  ;;  %v11253_v51 = vunpack.c.l.b16 %v8188_v61  ;;  %v8257_v60 = vcombine.low %v4633_v56, %v4633_v56  ;;  %v11262_v24 = vcombine.high %v4783_v3, %v4783_v3  ;;  %v4786_v32 = vld [vmem:[#allocation2 + $0x54] sm:$0x22] }
 0x294   :  { %v4217_v45 = vsel %vm1017_vm10, %v4216_v59, %v14745_v0  ;;  %v4377_v12 = vpack.c.b16 %v4373_v42, %v4373_v42  ;;  %14748 = vst [vmem:[#allocation227_spill] sm:$0xff] %v11244_v2  ;;  %14749 = vst [vmem:[#allocation228_spill] sm:$0xff] %v11246_v14  ;;  %v11255_v59 = vunpack.c.l.b16 %v8202_v6  ;;  %v11257_v0 = vcombine.high %v4477_v30, %v4477_v30  ;;  %v4480_v42 = vld [vmem:[#allocation2 + $0x54] sm:$0x11]  ;;  %v11270_v14 = vld [vmem:[#allocation2 + $0x54] sm:$0x22] }
 0x295   :  { %v4221_v11 = vpack.c.b16 %v4217_v45, %v4217_v45  ;;  %14751 = vst [vmem:[#allocation230_spill] sm:$0xff] %v11250_v25  ;;  %14752 = vst [vmem:[#allocation231_spill] sm:$0xff] %v11253_v51  ;;  %v8285_v21 = vcombine.low %v4941_v31, %v4941_v31  ;;  %v8286_v45 = vcombine.high %v4941_v31, %v4941_v31  ;;  %v2966_v27 = vld [vmem:[#allocation2 + $0x2c] sm:$0x11]  ;;  %v11274_v56 = vunpack.c.l.b16 %v8258_v16 }
 0x296   :  { %14753 = vst [vmem:[#allocation232_spill] sm:$0xff] %v11255_v59  ;;  %14754 = vst [vmem:[#allocation233_spill] sm:$0xff] %v11259_v33  ;;  %v11268_v30 = vunpack.c.l.b16 %v11257_v0  ;;  %v3722_v18 = vld [vmem:[#allocation2 + $0x2c] sm:$0x11]  ;;  %v11277_v3 = vunpack.c.l.b16 %v11262_v24  ;;  %v8105_v6 = vcombine.low %v2968_v39, %v2968_v39  ;;  %v11283_v53 = vcombine.high %v2968_v39, %v2968_v39 }
 0x297   :  { %4229 = vst.msk [vmem:[#allocation3 + $0xf8] sm:$0x10] %vm2097_vm15, %v4221_v11  ;;  %4385 = vst.msk [vmem:[#allocation3 + $0x118] sm:$0x10] %vm2097_vm15, %v4377_v12  ;;  %v11272_v12 = vunpack.c.l.b16 %v8257_v60  ;;  %v11279_v31 = vunpack.c.l.b16 %v8285_v21  ;;  %v3872_v11 = vld [vmem:[#allocation2 + $0x2c] sm:$0x11]  ;;  %v11281_v61 = vunpack.c.l.b16 %v8286_v45  ;;  %v8109_v25 = vcombine.low %v2966_v27, %v2966_v27 }
 0x298   :  { %14755 = vst [vmem:[#allocation234_spill] sm:$0xff] %v11262_v24  ;;  %14756 = vst [vmem:[#allocation235_spill] sm:$0xff] %v11268_v30  ;;  %v11294_v45 = vunpack.c.h.b16 %v8105_v6  ;;  %v8111_v60 = vcombine.high %v2966_v27, %v2966_v27  ;;  %v8179_v40 = vcombine.low %v3722_v18, %v3722_v18  ;;  %v8181_v26 = vcombine.high %v3722_v18, %v3722_v18  ;;  %v4478_v33 = vld [vmem:[#allocation2 + $0x2c] sm:$0x11] }
 0x299   :  { %14757 = vst [vmem:[#allocation236_spill] sm:$0xff] %v11270_v14  ;;  %14758 = vst [vmem:[#allocation237_spill] sm:$0xff] %v11272_v12  ;;  %v11291_v12 = vcombine.high %v4480_v42, %v4480_v42  ;;  %v8193_v24 = vcombine.low %v3872_v11, %v3872_v11  ;;  %v8195_v42 = vcombine.high %v3872_v11, %v3872_v11  ;;  %v11302_v21 = vunpack.c.l.b16 %v8109_v25  ;;  %v3725_v11 = vld [vmem:[#allocation2 + $0x5c] sm:$0x11] }
 0x29a   :  { %14759 = vst [vmem:[#allocation238_spill] sm:$0xff] %v11274_v56  ;;  %14760 = vst [vmem:[#allocation239_spill] sm:$0xff] %v11277_v3  ;;  %v11304_v6 = vunpack.c.l.b16 %v8111_v60  ;;  %v11306_v39 = vunpack.c.l.b16 %v8179_v40  ;;  %v11308_v30 = vunpack.c.l.b16 %v8181_v26  ;;  %v8209_v18 = vcombine.high %v4022_v47, %v4022_v47 }
 0x29b   :  { %14761 = vst [vmem:[#allocation240_spill] sm:$0xff] %v11279_v31  ;;  %14762 = vst [vmem:[#allocation241_spill] sm:$0xff] %v11281_v61  ;;  %v11297_v31 = vcombine.high %v4786_v32, %v4786_v32  ;;  %v8207_v32 = vcombine.low %v4022_v47, %v4022_v47  ;;  %v11310_v27 = vunpack.c.l.b16 %v8193_v24  ;;  %v11312_v14 = vunpack.c.l.b16 %v8195_v42 }
 0x29c   :  { %14763 = vst [vmem:[#allocation242_spill] sm:$0xff] %v11283_v53  ;;  %14764 = vst [vmem:[#allocation243_spill] sm:$0xff] %v11291_v12  ;;  %v4634_v12 = vld [vmem:[#allocation2 + $0x2c] sm:$0x11]  ;;  %v4784_v53 = vld [vmem:[#allocation2 + $0x2c] sm:$0x22]  ;;  %v11322_v5 = vunpack.c.l.b16 %v8209_v18  ;;  %v8249_v24 = vcombine.low %v4478_v33, %v4478_v33  ;;  %v8251_v42 = vcombine.high %v4478_v33, %v4478_v33  ;;  %v8108_v9 = vcombine.high %v2969_v63, %v2969_v63 }
 0x29d   :  { %14765 = vst [vmem:[#allocation244_spill] sm:$0xff] %v11294_v45  ;;  %14766 = vst [vmem:[#allocation245_spill] sm:$0xff] %v11297_v31  ;;  %v4942_v31 = vld [vmem:[#allocation2 + $0x2c] sm:$0x22]  ;;  %v11317_v60 = vunpack.c.l.b16 %v8207_v32  ;;  %v8263_v52 = vcombine.low %v4634_v12, %v4634_v12  ;;  %v8265_v47 = vcombine.high %v4634_v12, %v4634_v12  ;;  %v11325_v16 = vcombine.low %v4784_v53, %v4784_v53 }
 0x29e   :  { %14767 = vst [vmem:[#allocation246_spill] sm:$0xff] %v11302_v21  ;;  %14768 = vst [vmem:[#allocation247_spill] sm:$0xff] %v11304_v6  ;;  %v8279_v25 = vcombine.high %v4784_v53, %v4784_v53  ;;  %v8291_v32 = vcombine.low %v4942_v31, %v4942_v31  ;;  %v11327_v43 = vunpack.c.l.b16 %v8249_v24  ;;  %v11329_v40 = vunpack.c.l.b16 %v8251_v42 }
 0x29f   :  { %14769 = vst [vmem:[#allocation248_spill] sm:$0xff] %v11306_v39  ;;  %14770 = vst [vmem:[#allocation249_spill] sm:$0xff] %v11308_v30  ;;  %v11331_v45 = vunpack.c.l.b16 %v8263_v52  ;;  %v11333_v26 = vunpack.c.l.b16 %v8265_v47  ;;  %v8293_v28 = vcombine.high %v4942_v31, %v4942_v31  ;;  %v4481_v31 = vld [vmem:[#allocation2 + $0x5c] sm:$0x11]  ;;  %v8177_v35 = vcombine.low %v3725_v11, %v3725_v11 }
 0x2a0   :  { %14771 = vst [vmem:[#allocation250_spill] sm:$0xff] %v11310_v27  ;;  %14772 = vst [vmem:[#allocation251_spill] sm:$0xff] %v11312_v14  ;;  %v11336_v33 = vunpack.c.l.b16 %v8279_v25  ;;  %v11338_v12 = vunpack.c.l.b16 %v8291_v32  ;;  %v11348_v32 = vcombine.low %v2969_v63, %v2969_v63  ;;  %v8178_v44 = vcombine.high %v3725_v11, %v3725_v11 }
 0x2a1   :  { %14773 = vst [vmem:[#allocation252_spill] sm:$0xff] %v11317_v60  ;;  %14774 = vst [vmem:[#allocation253_spill] sm:$0xff] %v11322_v5  ;;  %v11346_v25 = vunpack.c.l.b16 %v8293_v28  ;;  %v8191_v53 = vcombine.low %v3875_v7, %v3875_v7  ;;  %v8192_v52 = vcombine.high %v3875_v7, %v3875_v7  ;;  %v8205_v41 = vcombine.low %v4025_v17, %v4025_v17 }
 0x2a2   :  { %14775 = vst [vmem:[#allocation254_spill] sm:$0xff] %v11325_v16  ;;  %14776 = vst [vmem:[#allocation255_spill] sm:$0xff] %v11329_v40  ;;  %v2999_v48 = vunpack.c.h.b16 %v8108_v9  ;;  %v11352_v47 = vunpack.c.l.b16 %v8108_v9  ;;  %v11354_v18 = vunpack.c.l.b16 %v8177_v35  ;;  %v11356_v28 = vunpack.c.l.b16 %v8178_v44  ;;  %v4945_v9 = vld [vmem:[#allocation2 + $0x5c] sm:$0x22] }
 0x2a3   :  { %14777 = vst [vmem:[#allocation256_spill] sm:$0xff] %v11331_v45  ;;  %14778 = vst [vmem:[#allocation257_spill] sm:$0xff] %v11333_v26  ;;  %v11358_v34 = vunpack.c.l.b16 %v8191_v53  ;;  %v11360_v63 = vunpack.c.l.b16 %v8192_v52  ;;  %v8206_v11 = vcombine.high %v4025_v17, %v4025_v17  ;;  %v11362_v22 = vunpack.c.l.b16 %v8205_v41 }
 0x2a4   :  { %14779 = vst [vmem:[#allocation258_spill] sm:$0xff] %v11336_v33  ;;  %14780 = vst [vmem:[#allocation259_spill] sm:$0xff] %v11338_v12  ;;  %v3006_v24 = vrot.slane %v2999_v48, 7  ;;  %v3762_v42 = vrot.slane %v11356_v28, 7  ;;  %v11365_v7 = vcombine.low %v4481_v31, %v4481_v31  ;;  %v14790_v35 = vrot.slane %v11253_v51, 1 }
 0x2a5   :  { %14781 = vst [vmem:[#allocation260_spill] sm:$0xff] %v11346_v25  ;;  %14782 = vst [vmem:[#allocation261_spill] sm:$0xff] %v11348_v32  ;;  %v8248_v32 = vcombine.high %v4481_v31, %v4481_v31  ;;  %v11371_v53 = vunpack.c.l.b16 %v8206_v11  ;;  %v8261_v52 = vcombine.low %v4637_v4, %v4637_v4  ;;  %v14792_v17 = vunpack.c.h.b16 %v11223_v55  ;;  %v9340_v31 = vld [vmem:[#allocation2 + $0x6c] ss:$0 sps:$4 sm:$0x11]  }
 0x2a6   :  { %14783 = vst [vmem:[#allocation262_spill] sm:$0xff] %v11352_v47  ;;  %14784 = vst [vmem:[#allocation263_spill] sm:$0xff] %v11354_v18  ;;  %v3913_v44 = vsel %vm1017_vm10, %v11360_v63, %v14790_v35  ;;  %v8262_v47 = vcombine.high %v4637_v4, %v4637_v4  ;;  %v3763_v48 = vsel %vm1017_vm10, %v3762_v42, %v11244_v2  ;;  %v9341_v11 = vld [vmem:[#allocation2 + $0x6c] ss:$0 sps:$4 sm:$0x22]   ;;  %v14797_v42 = vrot.slane %v11255_v59, 2 }
 0x2a7   :  { %14785 = vst [vmem:[#allocation264_spill] sm:$0xff] %v11356_v28  ;;  %14786 = vst [vmem:[#allocation265_spill] sm:$0xff] %v11358_v34  ;;  %v3007_v41 = vsel %vm1017_vm10, %v3006_v24, %v14792_v17  ;;  %v4511_v34 = vunpack.c.h.b16 %v8248_v32  ;;  %v3767_v18 = vpack.c.b16 %v3763_v48, %v3763_v48  ;;  %v4066_v51 = vrot.slane %v11371_v53, 1  ;;  %v9342_v35 = vld [vmem:[#allocation2 + $0x6c] ss:$0 sps:$4 sm:$0x22]  }
 0x2a8   :  { %14787 = vst [vmem:[#allocation266_spill] sm:$0xff] %v11360_v63  ;;  %14788 = vst [vmem:[#allocation267_spill] sm:$0xff] %v11362_v22  ;;  %v3917_v22 = vpack.c.b16 %v3913_v44, %v3913_v44  ;;  %v3011_v28 = vpack.c.b16 %v3007_v41, %v3007_v41  ;;  %v11382_v55 = vunpack.c.l.b16 %v8261_v52  ;;  %v11384_v24 = vunpack.c.l.b16 %v8262_v47  ;;  %v567_v52 = vld [vmem:[#allocation2 + $0x1c] sm:$0x66]  ;;  %v11399_v47 = vld [vmem:[#allocation2] sm:$0x11] }
 0x2a9   :  { %14789 = vst [vmem:[#allocation268_spill] sm:$0xff] %v11365_v7  ;;  %14791 = vst [vmem:[#allocation269_spill] sm:$0xff] %v11371_v53  ;;  %v11379_v7 = vunpack.c.l.b16 %v8248_v32  ;;  %v4518_v4 = vrot.slane %v4511_v34, 7  ;;  %v11386_v17 = vcombine.low %v4787_v54, %v4787_v54  ;;  %v4067_v32 = vsel %vm1017_vm10, %v4066_v51, %v14797_v42  ;;  %v981_v59 = vld [vmem:[#allocation2 + $0x8] sm:$0x11] }
 0x2aa   :  { %3925 = vst.msk [vmem:[#allocation3 + $0x198] sm:$0x1] %vm1036_vm12, %v3917_v22  ;;  %14794 = vst [vmem:[#allocation271_spill] sm:$0xff] %v11382_v55  ;;  %v11393_v44 = vcombine.high %v4787_v54, %v4787_v54  ;;  %v8290_v41 = vcombine.high %v4945_v9, %v4945_v9  ;;  %v14799_v22 = vunpack.c.l.b16 %v10703_v20  ;;  %v4071_v48 = vpack.c.b16 %v4067_v32, %v4067_v32  ;;  %v958_v32 = vld [vmem:[#allocation2 + $0x64] sm:$0x3] }
 0x2ab   :  { %14793 = vst [vmem:[#allocation270_spill] sm:$0xff] %v11379_v7  ;;  %14795 = vst [vmem:[#allocation272_spill] sm:$0xff] %v11384_v24  ;;  %v14801_v53 = vunpack.c.h.b16 %v11257_v0  ;;  %v14803_v54 = vunpack.c.l.b16 %v10711_v49  ;;  %v952_v0 = vpop.permute.xlu0 %951  ;;  %v14809_v49 = vunpack.c.l.b16 %v10715_v29  ;;  %v5065_v29 = vunpack.c.l.b16 %v9342_v35 }
 0x2ac   :  { %14796 = vst [vmem:[#allocation273_spill] sm:$0xff] %v11386_v17  ;;  %3019 = vst.msk [vmem:[#allocation3 + $0xd8] sm:$0x10] %vm2097_vm15, %v3011_v28  ;;  %v11397_v34 = vrot.slane %v14799_v22, 1  ;;  %v11413_v22 = vunpack.c.l.b16 %v11393_v44 }
 0x2ad   :  { %3775 = vst.msk [vmem:[#allocation3 + $0x178] sm:$0x1] %vm1036_vm12, %v3767_v18  ;;  %14798 = vst [vmem:[#allocation274_spill] sm:$0xff] %v11393_v44  ;;  %v4519_v28 = vsel %vm1017_vm10, %v4518_v4, %v14801_v53  ;;  %v14802_v18 = vrot.slane %v11274_v56, 1  ;;  %v11410_v9 = vrot.slane %v14803_v54, 1  ;;  %v14807_v53 = vunpack.c.l.b16 %v10713_v38 }
 0x2ae   :  { %14800 = vst [vmem:[#allocation275_spill] sm:$0xff] %v11397_v34  ;;  %v4523_v20 = vpack.c.b16 %v4519_v28, %v4519_v28  ;;  %14805 = vst [vmem:[#allocation277_spill] sm:$0xff] %v11413_v22  ;;  %v11415_v34 = vunpack.c.l.b16 %v8290_v41  ;;  %v14811_v28 = vunpack.c.l.b16 %v10717_v1  ;;  %v4757_v54 = vunpack.c.l.b16 %v9340_v31  ;;  %v11430_v41 = vld [vmem:[#allocation2 + $0x38] sm:$0x11]  ;;  %v985_v44 = vld [vmem:[#allocation2 + $0x40] sm:$0x11] }
 0x2af   :  { %v4675_v51 = vsel %vm1017_vm10, %v11384_v24, %v14802_v18  ;;  %14804 = vst [vmem:[#allocation276_spill] sm:$0xff] %v11410_v9  ;;  %4079 = vst.msk [vmem:[#allocation3 + $0x1b8] sm:$0x1] %vm1036_vm12, %v4071_v48  ;;  %v11420_v4 = vrot.slane %v14807_v53, 2  ;;  %v11424_v18 = vrot.slane %v14809_v49, 3  ;;  %v4828_v38 = vrot.slane %v11413_v22, 1 }
 0x2b0   :  { %v4679_v42 = vpack.c.b16 %v4675_v51, %v4675_v51  ;;  %14806 = vst [vmem:[#allocation278_spill] sm:$0xff] %v11415_v34  ;;  %v11428_v51 = vrot.slane %v14811_v28, 1  ;;  %4531 = vst.msk [vmem:[#allocation3 + $0x138] sm:$0x10] %vm2097_vm15, %v4523_v20  ;;  %v4986_v48 = vrot.slane %v11415_v34, 2  ;;  %v4915_v53 = vunpack.c.l.b16 %v9341_v11 }
 0x2b1   :  { %14808 = vst [vmem:[#allocation279_spill] sm:$0xff] %v11420_v4  ;;  %14810 = vst [vmem:[#allocation280_spill] sm:$0xff] %v11424_v18  ;;  %v982_v49 = vld [vmem:[#allocation2 + $0x10] sm:$0x11]  ;;  %v986_v18 = vld [vmem:[#allocation2 + $0x48] sm:$0x11]  ;;  %v959_v1 = vsel %vm10150_vm7, %v952_v0, %v958_v32  ;;  %v7920_v20 = vcombine.high %v11399_v47, %v11399_v47  ;;  %v7922_v31 = vcombine.high %v981_v59, %v981_v59 }
 0x2b2   :  { %14812 = vst [vmem:[#allocation281_spill] sm:$0xff] %v11428_v51  ;;  %4687 = vst.msk [vmem:[#allocation3 + $0x158] sm:$0x10] %vm2097_vm15, %v4679_v42  ;;  %v11436_v4 = vrot.slane %v4757_v54, 2  ;;  %v568_v28 = vsel %vm9971_vm11, 0, %v567_v52  ;;  %v14815_v42 = vrot.slane %v11277_v3, 2  ;;  %v7921_v52 = vcombine.low %v981_v59, %v981_v59 }
 0x2b3   :  { %v14816_v11 = vrot.slane %v11281_v61, 3  ;;  %v11450_v34 = vrot.slane %v4915_v53, 3  ;;  %v11452_v54 = vrot.slane %v5065_v29, 4  ;;  %960 = vst [vmem:[#allocation2 + $0x64] sm:$0x3] %v959_v1  ;;  %v7924_v63 = vcombine.high %v11430_v41, %v11430_v41 }
 0x2b4   :  { %14813 = vst [vmem:[#allocation282_spill] sm:$0xff] %v11436_v4  ;;  %v4829_v9 = vsel %vm1017_vm10, %v4828_v38, %v14815_v42  ;;  %569 = vst [vmem:[#allocation2 + $0x1c] sm:$0x66] %v568_v28  ;;  %v11454_v4 = vld [vmem:[#allocation2] sm:$0x22]  ;;  %v7925_v38 = vcombine.low %v985_v44, %v985_v44  ;;  %v7926_v42 = vcombine.high %v985_v44, %v985_v44  ;;  %v11458_v61 = vunpack.c.l.b16 %v7920_v20 }
 0x2b5   :  { %v4987_v35 = vsel %vm1017_vm10, %v4986_v48, %v14816_v11  ;;  %14817 = vst [vmem:[#allocation5_spill] sm:$0xff] %v11450_v34  ;;  %14818 = vst [vmem:[#allocation283_spill] sm:$0xff] %v11452_v54  ;;  %v4833_v32 = vpack.c.b16 %v4829_v9, %v4829_v9  ;;  %v11462_v48 = vunpack.c.l.b16 %v7921_v52  ;;  %v11464_v53 = vunpack.c.l.b16 %v7922_v31  ;;  %v2039_v59 = vld [vmem:[#allocation2 + $0x8] sm:$0x22] }
 0x2b6   :  { %v4991_v0 = vpack.c.b16 %v4987_v35, %v4987_v35  ;;  %v7927_v9 = vcombine.low %v982_v49, %v982_v49  ;;  %v7928_v29 = vcombine.low %v986_v18, %v986_v18  ;;  %v11466_v1 = vunpack.c.l.b16 %v7924_v63 }
 0x2b7   :  { %4841 = vst.msk [vmem:[#allocation3 + $0x178] sm:$0x10] %vm2097_vm15, %v4833_v32  ;;  %v11468_v28 = vunpack.c.l.b16 %v7925_v38  ;;  %v11470_v11 = vunpack.c.l.b16 %v7926_v42  ;;  %v7929_v44 = vcombine.high %v982_v49, %v982_v49  ;;  %v11486_v49 = vcombine.high %v11454_v4, %v11454_v4 }
 0x2b8   :  { %4999 = vst.msk [vmem:[#allocation3 + $0x198] sm:$0x10] %vm2097_vm15, %v4991_v0  ;;  %v11472_v20 = vunpack.c.l.b16 %v7927_v9  ;;  %v11474_v35 = vunpack.c.l.b16 %v7928_v29  ;;  %v7930_v0 = vcombine.high %v986_v18, %v986_v18  ;;  %v11488_v9 = vcombine.low %v2039_v59, %v2039_v59 }
 0x2b9   :  { %v11480_v63 = vunpack.c.l.b16 %v7929_v44  ;;  %v11490_v18 = vcombine.high %v2039_v59, %v2039_v59  ;;  %vm1136_vm11 = vcmask 519171  }
 0x2ba   :  { %v2970_v38 = vld [vmem:[#allocation2 + $0x64] sm:$0x11]  ;;  %v11482_v51 = vunpack.c.l.b16 %v7930_v0  ;;  %v4026_v54 = vld [vmem:[#allocation2 + $0x64] sm:$0x22] }
 0x2bb   :  { %v3726_v34 = vld [vmem:[#allocation2 + $0x64] sm:$0x11]  ;;  %v8110_v29 = vcombine.low %v2970_v38, %v2970_v38  ;;  %v8112_v32 = vcombine.high %v2970_v38, %v2970_v38  ;;  %v8208_v3 = vcombine.low %v4026_v54, %v4026_v54  ;;  %v8210_v17 = vcombine.high %v4026_v54, %v4026_v54 }
 0x2bc   :  { %v3876_v42 = vld [vmem:[#allocation2 + $0x64] sm:$0x11]  ;;  %v8180_v31 = vcombine.low %v3726_v34, %v3726_v34  ;;  %v8182_v52 = vcombine.high %v3726_v34, %v3726_v34 }
 0x2bd   :  { %v8194_v44 = vcombine.low %v3876_v42, %v3876_v42  ;;  %v8196_v22 = vcombine.high %v3876_v42, %v3876_v42  ;;  %v11492_v2 = vunpack.c.l.b16 %v8110_v29  ;;  %v11494_v0 = vunpack.c.l.b16 %v8112_v32  ;;  %v4482_v36 = vld [vmem:[#allocation2 + $0x64] sm:$0x11] }
 0x2be   :  { %v11496_v24 = vunpack.c.l.b16 %v8180_v31  ;;  %v11498_v56 = vunpack.c.l.b16 %v8182_v52  ;;  %v11504_v38 = vunpack.c.l.b16 %v8208_v3  ;;  %v11506_v34 = vunpack.c.l.b16 %v8210_v17 }
 0x2bf   :  { %14819 = vst [vmem:[#allocation284_spill] sm:$0xff] %v11492_v2  ;;  %14820 = vst [vmem:[#allocation285_spill] sm:$0xff] %v11494_v0  ;;  %v11500_v55 = vunpack.c.l.b16 %v8194_v44  ;;  %v11502_v59 = vunpack.c.l.b16 %v8196_v22  ;;  %v3044_v42 = vrot.slane %v11492_v2, 5  ;;  %v3074_v54 = vrot.slane %v11494_v0, 3 }
 0x2c0   :  { %14821 = vst [vmem:[#allocation286_spill] sm:$0xff] %v11496_v24  ;;  %14822 = vst [vmem:[#allocation287_spill] sm:$0xff] %v11498_v56  ;;  %v3794_v29 = vrot.slane %v11496_v24, 5  ;;  %v3824_v32 = vrot.slane %v11498_v56, 3  ;;  %v4094_v44 = vrot.slane %v11504_v38, 7  ;;  %v4124_v22 = vrot.slane %v11506_v34, 5 }
 0x2c1   :  { %14823 = vst [vmem:[#allocation288_spill] sm:$0xff] %v11500_v55  ;;  %14824 = vst [vmem:[#allocation289_spill] sm:$0xff] %v11502_v59  ;;  %v3944_v31 = vrot.slane %v11500_v55, 6  ;;  %v3974_v52 = vrot.slane %v11502_v59, 4  ;;  %v14827_v3 = vrot.slane %v11302_v21, 6  ;;  %v14828_v2 = vrot.slane %v11304_v6, 4 }
 0x2c2   :  { %14825 = vst [vmem:[#allocation290_spill] sm:$0xff] %v11504_v38  ;;  %14826 = vst [vmem:[#allocation291_spill] sm:$0xff] %v11506_v34  ;;  %v14829_v24 = vrot.slane %v11306_v39, 6  ;;  %v14830_v55 = vrot.slane %v11308_v30, 4  ;;  %v4638_v21 = vld [vmem:[#allocation2 + $0x64] sm:$0x11] }
 0x2c3   :  { %v3045_v17 = vsel %vm1048_vm13, %v3044_v42, %v14827_v3  ;;  %v3075_v0 = vsel %vm1080_vm4, %v3074_v54, %v14828_v2  ;;  %v14831_v42 = vrot.slane %v11310_v27, 7  ;;  %v14832_v2 = vrot.slane %v11312_v14, 5  ;;  %v1139_v27 = vld [vmem:[#allocation2 + $0x8] sm:$0x11] }
 0x2c4   :  { %v3795_v56 = vsel %vm1048_vm13, %v3794_v29, %v14829_v24  ;;  %v3825_v59 = vsel %vm1080_vm4, %v3824_v32, %v14830_v55  ;;  %v3049_v7 = vpack.c.b16 %v3045_v17, %v3045_v17  ;;  %v3079_v38 = vpack.c.b16 %v3075_v0, %v3075_v0  ;;  %v4788_v0 = vld [vmem:[#allocation2 + $0x64] sm:$0x22] }
 0x2c5   :  { %v3799_v23 = vpack.c.b16 %v3795_v56, %v3795_v56  ;;  %v3829_v34 = vpack.c.b16 %v3825_v59, %v3825_v59  ;;  %v3945_v3 = vsel %vm1048_vm13, %v3944_v31, %v14831_v42  ;;  %v3975_v54 = vsel %vm1080_vm4, %v3974_v52, %v14832_v2  ;;  %v4946_v56 = vld [vmem:[#allocation2 + $0x64] sm:$0x22] }
 0x2c6   :  { %v4095_v24 = vsel %vm1048_vm13, %v4094_v44, %v11317_v60  ;;  %v14833_v29 = vrot.slane %v11322_v5, 6  ;;  %3057 = vst.msk [vmem:[#allocation3 + $0xd8] sm:$0x20] %vm2132_vm5, %v3049_v7  ;;  %v3949_v59 = vpack.c.b16 %v3945_v3, %v3945_v3  ;;  %v3979_v32 = vpack.c.b16 %v3975_v54, %v3975_v54 }
 0x2c7   :  { %3087 = vst.msk [vmem:[#allocation3 + $0xd8] sm:$0x40] %vm2165_vm3, %v3079_v38  ;;  %v4099_v31 = vpack.c.b16 %v4095_v24, %v4095_v24  ;;  %v8250_v17 = vcombine.low %v4482_v36, %v4482_v36  ;;  %v8252_v44 = vcombine.high %v4482_v36, %v4482_v36  ;;  %v8264_v42 = vcombine.low %v4638_v21, %v4638_v21 }
 0x2c8   :  { %v4125_v55 = vsel %vm1080_vm4, %v4124_v22, %v14833_v29  ;;  %3807 = vst.msk [vmem:[#allocation3 + $0x178] sm:$0x2] %vm1070_vm1, %v3799_v23  ;;  %v8266_v2 = vcombine.high %v4638_v21, %v4638_v21  ;;  %3957 = vst.msk [vmem:[#allocation3 + $0x198] sm:$0x2] %vm1070_vm1, %v3949_v59  ;;  %v11547_v7 = vcombine.low %v4788_v0, %v4788_v0  ;;  %v14845_v14 = vrot.slane %v11333_v26, 5 }
 0x2c9   :  { %3837 = vst.msk [vmem:[#allocation3 + $0x178] sm:$0x4] %vm1102_vm14, %v3829_v34  ;;  %v4129_v52 = vpack.c.b16 %v4125_v55, %v4125_v55  ;;  %3987 = vst.msk [vmem:[#allocation3 + $0x198] sm:$0x4] %vm1102_vm14, %v3979_v32  ;;  %v8280_v23 = vcombine.high %v4788_v0, %v4788_v0  ;;  %v8292_v38 = vcombine.low %v4946_v56, %v4946_v56  ;;  %v11549_v22 = vunpack.c.l.b16 %v8250_v17 }
 0x2ca   :  { %4107 = vst.msk [vmem:[#allocation3 + $0x1b8] sm:$0x2] %vm1070_vm1, %v4099_v31  ;;  %14834 = vst [vmem:[#allocation292_spill] sm:$0xff] %v11547_v7  ;;  %v8294_v34 = vcombine.high %v4946_v56, %v4946_v56  ;;  %v11551_v3 = vunpack.c.l.b16 %v8252_v44  ;;  %v11553_v36 = vunpack.c.l.b16 %v8264_v42  ;;  %v11555_v21 = vunpack.c.l.b16 %v8266_v2  ;;  %v602_v2 = vld [vmem:[#allocation2 + $0x1c] sm:$0x33] }
 0x2cb   :  { %4137 = vst.msk [vmem:[#allocation3 + $0x1b8] sm:$0x4] %vm1102_vm14, %v4129_v52  ;;  %v4855_v54 = vunpack.c.h.b16 %v11547_v7  ;;  %v11558_v24 = vunpack.c.l.b16 %v8280_v23  ;;  %v11560_v29 = vunpack.c.l.b16 %v8292_v38  ;;  %v4556_v0 = vrot.slane %v11549_v22, 5 }
 0x2cc   :  { %14835 = vst [vmem:[#allocation293_spill] sm:$0xff] %v11551_v3  ;;  %14836 = vst [vmem:[#allocation294_spill] sm:$0xff] %v11553_v36  ;;  %v11562_v55 = vunpack.c.l.b16 %v8294_v34  ;;  %v4586_v56 = vrot.slane %v11551_v3, 3  ;;  %v4706_v59 = vrot.slane %v11553_v36, 6  ;;  %v4736_v32 = vrot.slane %v11555_v21, 4 }
 0x2cd   :  { %14837 = vst [vmem:[#allocation295_spill] sm:$0xff] %v11555_v21  ;;  %14838 = vst [vmem:[#allocation296_spill] sm:$0xff] %v11558_v24  ;;  %v4862_v31 = vrot.slane %v4855_v54, 7  ;;  %v4894_v52 = vrot.slane %v11558_v24, 5  ;;  %v14841_v17 = vrot.slane %v11338_v12, 1  ;;  %v14842_v23 = vrot.slane %v11327_v43, 6 }
 0x2ce   :  { %14839 = vst [vmem:[#allocation297_spill] sm:$0xff] %v11560_v29  ;;  %14840 = vst [vmem:[#allocation298_spill] sm:$0xff] %v11562_v55  ;;  %v5044_v42 = vrot.slane %v11562_v55, 6  ;;  %v14843_v34 = vrot.slane %v11329_v40, 4  ;;  %v14844_v54 = vrot.slane %v11331_v45, 7  ;;  %v4737_v24 = vsel %vm1080_vm4, %v4736_v32, %v14845_v14 }
 0x2cf   :  { %v5015_v44 = vsel %vm1048_vm13, %v11560_v29, %v14841_v17  ;;  %v4557_v38 = vsel %vm1048_vm13, %v4556_v0, %v14842_v23  ;;  %v4741_v60 = vpack.c.b16 %v4737_v24, %v4737_v24  ;;  %v14846_v21 = vunpack.c.h.b16 %v11325_v16 }
 0x2d0   :  { %v4587_v5 = vsel %vm1080_vm4, %v4586_v56, %v14843_v34  ;;  %v4707_v6 = vsel %vm1048_vm13, %v4706_v59, %v14844_v54  ;;  %v4561_v17 = vpack.c.b16 %v4557_v38, %v4557_v38  ;;  %v14847_v23 = vrot.slane %v11336_v33, 6  ;;  %v11595_v54 = vld [vmem:[#allocation2 + $0x38] sm:$0x22] }
 0x2d1   :  { %v4591_v30 = vpack.c.b16 %v4587_v5, %v4587_v5  ;;  %v4711_v55 = vpack.c.b16 %v4707_v6, %v4707_v6  ;;  %v4863_v0 = vsel %vm1048_vm13, %v4862_v31, %v14846_v21  ;;  %v5019_v34 = vpack.c.b16 %v5015_v44, %v5015_v44  ;;  %4749 = vst.msk [vmem:[#allocation3 + $0x158] sm:$0x40] %vm2165_vm3, %v4741_v60 }
 0x2d2   :  { %v4895_v56 = vsel %vm1080_vm4, %v4894_v52, %v14847_v23  ;;  %v14848_v29 = vrot.slane %v11346_v25, 7  ;;  %4569 = vst.msk [vmem:[#allocation3 + $0x138] sm:$0x20] %vm2132_vm5, %v4561_v17  ;;  %v4867_v5 = vpack.c.b16 %v4863_v0, %v4863_v0  ;;  %v603_v32 = vsel %vm601_vm6, 0, %v602_v2 }
 0x2d3   :  { %4599 = vst.msk [vmem:[#allocation3 + $0x138] sm:$0x40] %vm2165_vm3, %v4591_v30  ;;  %v4899_v14 = vpack.c.b16 %v4895_v56, %v4895_v56  ;;  %604 = vst [vmem:[#allocation2 + $0x1c] sm:$0x33] %v603_v32  ;;  %v14852_v60 = vrot.slane %v11470_v11, 7  ;;  %v14853_v31 = vrot.slane %v11462_v48, 6 }
 0x2d4   :  { %v5045_v59 = vsel %vm1080_vm4, %v5044_v42, %v14848_v29  ;;  %4719 = vst.msk [vmem:[#allocation3 + $0x158] sm:$0x20] %vm2132_vm5, %v4711_v55  ;;  %5027 = vst.msk [vmem:[#allocation3 + $0x198] sm:$0x20] %vm2132_vm5, %v5019_v34  ;;  %v14851_v29 = vrot.slane %v11466_v1, 7  ;;  %v14854_v52 = vrot.slane %v11468_v28, 5 }
 0x2d5   :  { %v5049_v6 = vpack.c.b16 %v5045_v59, %v5045_v59  ;;  %v1024_v55 = vsel %vm1017_vm10, %v14852_v60, %v11464_v53  ;;  %v1056_v42 = vrot.slane %v11472_v20, 6  ;;  %4875 = vst.msk [vmem:[#allocation3 + $0x178] sm:$0x20] %vm2132_vm5, %v4867_v5  ;;  %v1057_v17 = vrot.slane %v11474_v35, 5 }
 0x2d6   :  { %v1020_v30 = vsel %vm1017_vm10, %v14851_v29, %v11458_v61  ;;  %v1052_v44 = vsel %vm1048_vm13, %v14854_v52, %v14853_v31  ;;  %4907 = vst.msk [vmem:[#allocation3 + $0x178] sm:$0x40] %vm2165_vm3, %v4899_v14  ;;  %v1028_v38 = vpack.c.b16 %v1024_v55, %v1024_v55  ;;  %v1082_v23 = vrot.slane %v11464_v53, 4  ;;  %v9589_v52 = vld [vmem:[#allocation2 + $0x40] sm:$0x22] }
 0x2d7   :  { %5057 = vst.msk [vmem:[#allocation3 + $0x198] sm:$0x40] %vm2165_vm3, %v5049_v6  ;;  %v1026_v2 = vpack.c.b16 %v1020_v30, %v1020_v30  ;;  %v1060_v0 = vpack.c.b16 %v1052_v44, %v1052_v44  ;;  %v1083_v56 = vrot.slane %v11470_v11, 3  ;;  %v1088_v34 = vrot.slane %v11480_v63, 4  ;;  %v646_v30 = vpop.permute.xlu1 %645 }
 0x2d8   :  { %v1089_v59 = vrot.slane %v11482_v51, 3  ;;  %1037 = vst.msk [vmem:[#allocation3 + $0x18] sm:$0x1] %vm1036_vm12, %v1028_v38  ;;  %v1058_v5 = vsel %vm1048_vm13, %v1057_v17, %v1056_v42  ;;  %v1116_v14 = vrot.slane %v11472_v20, 2  ;;  %v1117_v6 = vrot.slane %v11474_v35, 1 }
 0x2d9   :  { %1034 = vst [vmem:[#allocation3 + $0x8] sm:$0x1] %v1026_v2  ;;  %1068 = vst [vmem:[#allocation3 + $0x8] sm:$0x2] %v1060_v0  ;;  %v1062_v21 = vpack.c.b16 %v1058_v5, %v1058_v5  ;;  %v1084_v24 = vsel %vm1080_vm4, %v1083_v56, %v1082_v23  ;;  %v11637_v29 = vcombine.high %v11595_v54, %v11595_v54  ;;  %v2067_v2 = vunpack.c.l.b16 %v11486_v49  ;;  %v9590_v56 = vld [vmem:[#allocation2 + $0x10] sm:$0x22] }
 0x2da   :  { %v1090_v32 = vsel %vm1080_vm4, %v1089_v59, %v1088_v34  ;;  %v1092_v60 = vpack.c.b16 %v1084_v24, %v1084_v24  ;;  %v1118_v31 = vsel %vm1114_vm8, %v1117_v6, %v1116_v14  ;;  %v11640_v44 = vcombine.low %v9589_v52, %v9589_v52  ;;  %v652_v0 = vld [vmem:[#allocation2 + $0x20] sm:$0x3]  ;;  %v9591_v59 = vld [vmem:[#allocation2 + $0x48] sm:$0x22] }
 0x2db   :  { %v1094_v55 = vpack.c.b16 %v1090_v32, %v1090_v32  ;;  %1071 = vst.msk [vmem:[#allocation3 + $0x18] sm:$0x2] %vm1070_vm1, %v1062_v21  ;;  %v1126_v42 = vpack.c.b16 %v1118_v31, %v1118_v31  ;;  %v11645_v38 = vunpack.c.l.b16 %v11490_v18  ;;  %v2071_v17 = vunpack.c.l.b16 %v11637_v29 }
 0x2dc   :  { %1100 = vst [vmem:[#allocation3 + $0x8] sm:$0x4] %v1092_v60  ;;  %v11650_v23 = vunpack.c.l.b16 %v11104_v62  ;;  %v8025_v34 = vcombine.low %v9590_v56, %v9590_v56  ;;  %v8026_v5 = vcombine.low %v9591_v59, %v9591_v59  ;;  %v2106_v14 = vunpack.c.h.b16 %v11488_v9 }
 0x2dd   :  { %1103 = vst.msk [vmem:[#allocation3 + $0x18] sm:$0x4] %vm1102_vm14, %v1094_v55  ;;  %v653_v6 = vsel %vm10150_vm7, %v646_v30, %v652_v0  ;;  %1134 = vst [vmem:[#allocation3 + $0x8] sm:$0x8] %v1126_v42  ;;  %v2077_v21 = vrot.slane %v2067_v2, 2  ;;  %v2078_v24 = vrot.slane %v2071_v17, 1  ;;  %v2110_v31 = vunpack.c.h.b16 %v11640_v44 }
 0x2de   :  { %v2083_v32 = vrot.slane %v11645_v38, 2  ;;  %654 = vst [vmem:[#allocation2 + $0x20] sm:$0x3] %v653_v6  ;;  %v2084_v60 = vrot.slane %v11650_v23, 1  ;;  %v2108_v55 = vunpack.c.h.b16 %v8025_v34  ;;  %v2112_v52 = vunpack.c.h.b16 %v8026_v5  ;;  %v11661_v17 = vld [vmem:[#allocation2] sm:$0x11] }
 0x2df   :  { %v2079_v56 = vsel %vm1017_vm10, %v2078_v24, %v2077_v21  ;;  %v2138_v59 = vunpack.c.l.b16 %v8025_v34  ;;  %v2140_v25 = vunpack.c.l.b16 %v8026_v5  ;;  %v2145_v33 = vrot.slane %v11645_v38, 6 }
 0x2e0   :  { %v2085_v8 = vsel %vm1017_vm10, %v2084_v60, %v2083_v32  ;;  %v2087_v30 = vpack.c.b16 %v2079_v56, %v2079_v56  ;;  %v2115_v42 = vrot.slane %v2110_v31, 7  ;;  %v2119_v2 = vrot.slane %v2112_v52, 7  ;;  %v1142_v32 = vld [vmem:[#allocation2 + $0x38] sm:$0x11]  ;;  %v1143_v56 = vld [vmem:[#allocation2 + $0x40] sm:$0x11] }
 0x2e1   :  { %v2089_v0 = vpack.c.b16 %v2085_v8, %v2085_v8  ;;  %v2146_v6 = vrot.slane %v11650_v23, 5  ;;  %v11664_v26 = vrot.slane %v2138_v59, 6  ;;  %v11666_v12 = vrot.slane %v2140_v25, 5 }
 0x2e2   :  { %2095 = vst [vmem:[#allocation3 + $0x8] sm:$0x10] %v2087_v30  ;;  %v2116_v34 = vsel %vm1048_vm13, %v2115_v42, %v2106_v14  ;;  %v2120_v5 = vsel %vm1048_vm13, %v2119_v2, %v2108_v55  ;;  %v2178_v21 = vrot.slane %v2138_v59, 4  ;;  %v2179_v24 = vrot.slane %v2140_v25, 3 }
 0x2e3   :  { %2098 = vst.msk [vmem:[#allocation3 + $0x18] sm:$0x10] %vm2097_vm15, %v2089_v0  ;;  %v2122_v60 = vpack.c.b16 %v2116_v34, %v2116_v34  ;;  %v2124_v31 = vpack.c.b16 %v2120_v5, %v2120_v5  ;;  %v2147_v52 = vsel %vm1080_vm4, %v2146_v6, %v2145_v33  ;;  %v7934_v14 = vcombine.high %v11661_v17, %v11661_v17 }
 0x2e4   :  { %v2155_v3 = vpack.c.b16 %v2147_v52, %v2147_v52  ;;  %v2180_v30 = vsel %vm1114_vm8, %v2179_v24, %v2178_v21  ;;  %v7935_v55 = vcombine.low %v1139_v27, %v1139_v27  ;;  %v7936_v2 = vcombine.high %v1139_v27, %v1139_v27  ;;  %v1140_v24 = vld [vmem:[#allocation2 + $0x10] sm:$0x11] }
 0x2e5   :  { %v2964_v59 = vld [vmem:[#allocation2 + $0x1c] sm:$0x11]  ;;  %2130 = vst [vmem:[#allocation3 + $0x8] sm:$0x20] %v2122_v60  ;;  %2133 = vst.msk [vmem:[#allocation3 + $0x18] sm:$0x20] %vm2132_vm5, %v2124_v31  ;;  %v2188_v42 = vpack.c.b16 %v2180_v30, %v2180_v30  ;;  %v7937_v33 = vcombine.low %v1142_v32, %v1142_v32  ;;  %v7938_v0 = vcombine.high %v1142_v32, %v1142_v32 }
 0x2e6   :  { %v11677_v25 = vld [vmem:[#allocation2 + $0x1c] sm:$0x11]  ;;  %v8101_v6 = vcombine.low %v2964_v59, %v2964_v59  ;;  %v11682_v5 = vld [vmem:[#allocation2 + $0x1c] sm:$0x22]  ;;  %2163 = vst [vmem:[#allocation3 + $0x8] sm:$0x40] %v2155_v3  ;;  %v7939_v52 = vcombine.low %v1143_v56, %v1143_v56  ;;  %v7940_v8 = vcombine.high %v1143_v56, %v1143_v56  ;;  %v11692_v59 = vunpack.c.l.b16 %v7934_v14 }
 0x2e7   :  { %14855 = vst [vmem:[#allocation35_spill] sm:$0xff] %v11677_v25  ;;  %14856 = vst [vmem:[#allocation4_spill] sm:$0xff] %v11682_v5  ;;  %v11684_v21 = vld [vmem:[#allocation2 + $0x1c] sm:$0x11]  ;;  %v4782_v31 = vld [vmem:[#allocation2 + $0x1c] sm:$0x22]  ;;  %v11694_v34 = vunpack.c.l.b16 %v7935_v55  ;;  %v11702_v60 = vunpack.c.l.b16 %v7936_v2  ;;  %v11704_v5 = vunpack.c.l.b16 %v7937_v33  ;;  %v11706_v27 = vunpack.c.l.b16 %v7938_v0 }
 0x2e8   :  { %14857 = vst [vmem:[#allocation299_spill] sm:$0xff] %v11684_v21  ;;  %v11690_v32 = vld [vmem:[#allocation2 + $0x1c] sm:$0x22]  ;;  %2196 = vst [vmem:[#allocation3 + $0x8] sm:$0x80] %v2188_v42  ;;  %v11696_v25 = vunpack.c.h.b16 %v8101_v6  ;;  %v11698_v3 = vcombine.high %v4782_v31, %v4782_v31  ;;  %v11708_v40 = vunpack.c.l.b16 %v7939_v52  ;;  %v11710_v42 = vunpack.c.l.b16 %v7940_v8 }
 0x2e9   :  { %14858 = vst [vmem:[#allocation300_spill] sm:$0xff] %v11690_v32  ;;  %v1144_v30 = vld [vmem:[#allocation2 + $0x48] sm:$0x11]  ;;  %14859 = vst [vmem:[#allocation301_spill] sm:$0xff] %v11694_v34  ;;  %v1176_v14 = vrot.slane %v11692_v59, 1  ;;  %v1180_v55 = vrot.slane %v11702_v60, 1  ;;  %v7941_v6 = vcombine.low %v1140_v24, %v1140_v24  ;;  %v7943_v33 = vcombine.high %v1140_v24, %v1140_v24 }
 0x2ea   :  { %14860 = vst [vmem:[#allocation302_spill] sm:$0xff] %v11696_v25  ;;  %14861 = vst [vmem:[#allocation303_spill] sm:$0xff] %v11698_v3  ;;  %v7942_v31 = vcombine.low %v1144_v30, %v1144_v30  ;;  %v1205_v56 = vrot.slane %v11694_v34, 7  ;;  %v1206_v2 = vrot.slane %v11708_v40, 6  ;;  %v7944_v25 = vcombine.high %v1144_v30, %v1144_v30 }
 0x2eb   :  { %14862 = vst [vmem:[#allocation304_spill] sm:$0xff] %v11702_v60  ;;  %14863 = vst [vmem:[#allocation305_spill] sm:$0xff] %v11708_v40  ;;  %v1177_v0 = vsel %vm1017_vm10, %v11706_v27, %v1176_v14  ;;  %v1181_v8 = vsel %vm1017_vm10, %v11710_v42, %v1180_v55  ;;  %v11721_v52 = vunpack.c.l.b16 %v7941_v6  ;;  %v11728_v21 = vunpack.c.l.b16 %v7943_v33  ;;  %v14869_v33 = vld [vmem:[#allocation48_spill] sm:$0xff] }
 0x2ec   :  { %14864 = vst [vmem:[#allocation306_spill] sm:$0xff] %v11710_v42  ;;  %v11723_v32 = vunpack.c.l.b16 %v7942_v31  ;;  %v1183_v7 = vpack.c.b16 %v1177_v0, %v1177_v0  ;;  %v1185_v16 = vpack.c.b16 %v1181_v8, %v1181_v8  ;;  %v1207_v3 = vsel %vm1048_vm13, %v1206_v2, %v1205_v56  ;;  %v9592_v2 = vld [vmem:[#allocation2 + $0x40] sm:$0x22] }
 0x2ed   :  { %14865 = vst [vmem:[#allocation307_spill] sm:$0xff] %v11721_v52  ;;  %v1211_v36 = vrot.slane %v11721_v52, 7  ;;  %v1215_v45 = vpack.c.b16 %v1207_v3, %v1207_v3  ;;  %14867 = vst [vmem:[#allocation309_spill] sm:$0xff] %v11728_v21  ;;  %v11731_v14 = vunpack.c.l.b16 %v7944_v25  ;;  %v1235_v55 = vrot.slane %v11702_v60, 5 }
 0x2ee   :  { %14866 = vst [vmem:[#allocation308_spill] sm:$0xff] %v11723_v32  ;;  %v1212_v24 = vrot.slane %v11723_v32, 6  ;;  %1191 = vst [vmem:[#allocation3 + $0x28] sm:$0x1] %v1183_v7  ;;  %v1236_v6 = vrot.slane %v11710_v42, 4  ;;  %v1267_v30 = vrot.slane %v11721_v52, 3  ;;  %v14870_v0 = vcombine.high %v14869_v33, %v14869_v33 }
 0x2ef   :  { %v5264_v39 = vld [vmem:[#allocation3 + $0x8] sm:$0xff]  ;;  %1193 = vst.msk [vmem:[#allocation3 + $0x38] sm:$0x1] %vm1036_vm12, %v1185_v16  ;;  %14868 = vst [vmem:[#allocation310_spill] sm:$0xff] %v11731_v14  ;;  %v1241_v31 = vrot.slane %v11728_v21, 5  ;;  %v1268_v3 = vrot.slane %v11723_v32, 2 }
 0x2f0   :  { %7143 = vmatprep.mubr.bf16.mxu1 %v5264_v39  ;;  %v1213_v56 = vsel %vm1048_vm13, %v1212_v24, %v1211_v36  ;;  %1223 = vst [vmem:[#allocation3 + $0x28] sm:$0x2] %v1215_v45  ;;  %v8037_v39 = vcombine.low %v9592_v2, %v9592_v2  ;;  %v1237_v16 = vsel %vm1080_vm4, %v1236_v6, %v1235_v55  ;;  %v1242_v25 = vrot.slane %v11731_v14, 4  ;;  %v14873_v2 = vld [vmem:[#allocation108_spill] sm:$0xff] }
 0x2f1   :  { %v1217_v7 = vpack.c.b16 %v1213_v56, %v1213_v56  ;;  %v11744_v8 = vunpack.c.l.b16 %v14870_v0  ;;  %v1245_v52 = vpack.c.b16 %v1237_v16, %v1237_v16  ;;  %v1269_v36 = vsel %vm1114_vm8, %v1268_v3, %v1267_v30 }
 0x2f2   :  { %v14871_v45 = vcombine.high %v10773_v13, %v10773_v13  ;;  %v11752_v21 = vunpack.c.l.b16 %v8037_v39  ;;  %v1243_v55 = vsel %vm1080_vm4, %v1242_v25, %v1241_v31  ;;  %v1277_v6 = vpack.c.b16 %v1269_v36, %v1269_v36 }
 0x2f3   :  { %1225 = vst.msk [vmem:[#allocation3 + $0x38] sm:$0x2] %vm1070_vm1, %v1217_v7  ;;  %v2239_v56 = vrot.slane %v11744_v8, 3  ;;  %v2270_v33 = vrot.slane %v14873_v2, 1  ;;  %v1247_v0 = vpack.c.b16 %v1243_v55, %v1243_v55  ;;  %1253 = vst [vmem:[#allocation3 + $0x28] sm:$0x4] %v1245_v52  ;;  %v7919_v16 = vcombine.low %v11399_v47, %v11399_v47 }
 0x2f4   :  { %v11750_v24 = vunpack.c.l.b16 %v14871_v45  ;;  %14872 = vst [vmem:[#allocation48_spill] sm:$0xff] %v11752_v21  ;;  %v2297_v3 = vrot.slane %v14712_v58, 7  ;;  %v2298_v13 = vrot.slane %v11114_v19, 6  ;;  %1285 = vst [vmem:[#allocation3 + $0x28] sm:$0x8] %v1277_v6  ;;  %v2329_v7 = vrot.slane %v10530_v50, 5 }
 0x2f5   :  { %v2271_v39 = vsel %vm1048_vm13, %v11752_v21, %v2270_v33  ;;  %v2330_v31 = vrot.slane %v10925_v15, 4  ;;  %1255 = vst.msk [vmem:[#allocation3 + $0x38] sm:$0x4] %vm1102_vm14, %v1247_v0  ;;  %v7923_v45 = vcombine.low %v11430_v41, %v11430_v41  ;;  %v1008_v50 = vunpack.c.l.b16 %v7919_v16 }
 0x2f6   :  { %v2240_v30 = vrot.slane %v11750_v24, 2  ;;  %v2277_v25 = vpack.c.b16 %v2271_v39, %v2271_v39  ;;  %v2299_v36 = vsel %vm1080_vm4, %v2298_v13, %v2297_v3  ;;  %v1046_v47 = vrot.slane %v11458_v61, 6 }
 0x2f7   :  { %v2307_v6 = vpack.c.b16 %v2299_v36, %v2299_v36  ;;  %v2331_v33 = vsel %vm1114_vm8, %v2330_v31, %v2329_v7  ;;  %v1012_v14 = vunpack.c.l.b16 %v7923_v45  ;;  %v1047_v0 = vrot.slane %v11466_v1, 5 }
 0x2f8   :  { %v2241_v52 = vsel %vm1017_vm10, %v2240_v30, %v2239_v56  ;;  %2285 = vst [vmem:[#allocation3 + $0x28] sm:$0x20] %v2277_v25  ;;  %v2339_v15 = vpack.c.b16 %v2331_v33, %v2331_v33  ;;  %v1078_v56 = vrot.slane %v11462_v48, 4  ;;  %v1079_v30 = vrot.slane %v11468_v28, 3 }
 0x2f9   :  { %v2249_v55 = vpack.c.b16 %v2241_v52, %v2241_v52  ;;  %2315 = vst [vmem:[#allocation3 + $0x28] sm:$0x40] %v2307_v6  ;;  %v1112_v41 = vrot.slane %v11464_v53, 2  ;;  %v1113_v3 = vrot.slane %v11470_v11, 1  ;;  %v1016_v13 = vrot.slane %v1012_v14, 7 }
 0x2fa   :  { %2347 = vst [vmem:[#allocation3 + $0x28] sm:$0x80] %v2339_v15  ;;  %v1049_v39 = vsel %vm1048_vm13, %v1047_v0, %v1046_v47  ;;  %v8017_v7 = vcombine.low %v11454_v4, %v11454_v4  ;;  %v8021_v61 = vcombine.low %v11595_v54, %v11595_v54  ;;  %v1081_v31 = vsel %vm1080_vm4, %v1079_v30, %v1078_v56 }
 0x2fb   :  { %2257 = vst [vmem:[#allocation3 + $0x28] sm:$0x10] %v2249_v55  ;;  %v1059_v1 = vpack.c.b16 %v1049_v39, %v1049_v39  ;;  %v1115_v16 = vsel %vm1114_vm8, %v1113_v3, %v1112_v41  ;;  %v14395_v52 = vunpack.c.l.b16 %v11488_v9  ;;  %v1018_v25 = vsel %vm1017_vm10, %v1016_v13, %v1008_v50 }
 0x2fc   :  { %v1091_v36 = vpack.c.b16 %v1081_v31, %v1081_v31  ;;  %v1125_v15 = vpack.c.b16 %v1115_v16, %v1115_v16  ;;  %v2066_v14 = vunpack.c.l.b16 %v8017_v7  ;;  %v1025_v45 = vpack.c.b16 %v1018_v25, %v1018_v25 }
 0x2fd   :  { %1067 = vst [vmem:[#allocation3] sm:$0x2] %v1059_v1  ;;  %v2070_v55 = vunpack.c.l.b16 %v8021_v61  ;;  %v14394_v4 = vunpack.c.l.b16 %v11640_v44  ;;  %v2105_v6 = vunpack.c.h.b16 %v11486_v49  ;;  %v2109_v33 = vunpack.c.h.b16 %v11637_v29 }
 0x2fe   :  { %1099 = vst [vmem:[#allocation3] sm:$0x4] %v1091_v36  ;;  %1133 = vst [vmem:[#allocation3] sm:$0x8] %v1125_v15  ;;  %v2074_v54 = vrot.slane %v2066_v14, 2  ;;  %v2142_v47 = vrot.slane %v14395_v52, 6  ;;  %v14874_v49 = vcombine.low %v11661_v17, %v11661_v17 }
 0x2ff   :  { %v2175_v50 = vrot.slane %v11645_v38, 4  ;;  %1033 = vst [vmem:[#allocation3] sm:$0x1] %v1025_v45  ;;  %v2075_v0 = vrot.slane %v2070_v55, 1  ;;  %v2143_v56 = vrot.slane %v14394_v4, 5  ;;  %v2176_v30 = vrot.slane %v11650_v23, 3 }
 0x300   :  { %v1166_v41 = vunpack.c.l.b16 %v14874_v49  ;;  %v2113_v3 = vrot.slane %v2109_v33, 7  ;;  %v1202_v13 = vrot.slane %v11692_v59, 7  ;;  %v1232_v29 = vrot.slane %v11694_v34, 5  ;;  %v14898_v4 = vld [vmem:[#allocation152_spill] sm:$0xff]  ;;  %v9596_v34 = vld [vmem:[#allocation2 + $0x38] sm:$0x44] }
 0x301   :  { %v1233_v39 = vrot.slane %v11708_v40, 4  ;;  %v2076_v38 = vsel %vm1017_vm10, %v2075_v0, %v2074_v54  ;;  %v2144_v61 = vsel %vm1080_vm4, %v2143_v56, %v2142_v47  ;;  %v2177_v1 = vsel %vm1114_vm8, %v2176_v30, %v2175_v50  ;;  %v14876_v50 = vld [vmem:[#allocation58_spill] sm:$0xff] }
 0x302   :  { %v5268_v7 = vld [vmem:[#allocation3 + $0x28] sm:$0xff]  ;;  %v1174_v31 = vrot.slane %v1166_v41, 1  ;;  %v2086_v23 = vpack.c.b16 %v2076_v38, %v2076_v38  ;;  %v2114_v17 = vsel %vm1048_vm13, %v2113_v3, %v2105_v6  ;;  %v2154_v16 = vpack.c.b16 %v2144_v61, %v2144_v61  ;;  %v14908_v40 = vld [vmem:[#allocation214_spill] sm:$0xff] }
 0x303   :  { %7241 = vmatprep.mubr.bf16.mxu0 %v5268_v7  ;;  %v2187_v25 = vpack.c.b16 %v2177_v1, %v2177_v1  ;;  %v2121_v36 = vpack.c.b16 %v2114_v17, %v2114_v17  ;;  %v14875_v15 = vrot.slane %v11706_v27, 6  ;;  %v1234_v45 = vsel %vm1080_vm4, %v1233_v39, %v1232_v29  ;;  %v14879_v39 = vld [vmem:[#allocation59_spill] sm:$0xff] }
 0x304   :  { %v1175_v59 = vsel %vm1017_vm10, %v11704_v5, %v1174_v31  ;;  %2094 = vst [vmem:[#allocation3] sm:$0x10] %v2086_v23  ;;  %2162 = vst [vmem:[#allocation3] sm:$0x40] %v2154_v16  ;;  %v1244_v33 = vpack.c.b16 %v1234_v45, %v1234_v45  ;;  %v1264_v6 = vrot.slane %v11702_v60, 3  ;;  %v1265_v47 = vrot.slane %v11710_v42, 2 }
 0x305   :  { %v1204_v14 = vsel %vm1048_vm13, %v14875_v15, %v1202_v13  ;;  %2195 = vst [vmem:[#allocation3] sm:$0x80] %v2187_v25  ;;  %v1182_v55 = vpack.c.b16 %v1175_v59, %v1175_v59  ;;  %2129 = vst [vmem:[#allocation3] sm:$0x20] %v2121_v36  ;;  %v14877_v0 = vrot.slane %v14876_v50, 3  ;;  %v14878_v5 = vrot.slane %v10807_v37, 2 }
 0x306   :  { %v1214_v54 = vpack.c.b16 %v1204_v14, %v1204_v14  ;;  %v2268_v56 = vrot.slane %v11744_v8, 1  ;;  %v2294_v30 = vrot.slane %v14873_v2, 7  ;;  %1252 = vst [vmem:[#allocation3 + $0x20] sm:$0x4] %v1244_v33  ;;  %v2295_v41 = vrot.slane %v11752_v21, 6  ;;  %v9383_v59 = vld [vmem:[%s14015_s4 + $0x80] sm:$0xff]  }
 0x307   :  { %v2238_v27 = vsel %vm1017_vm10, %v14878_v5, %v14877_v0  ;;  %1190 = vst [vmem:[#allocation3 + $0x20] sm:$0x1] %v1182_v55  ;;  %v2326_v3 = vrot.slane %v14712_v58, 5  ;;  %v2327_v13 = vrot.slane %v11114_v19, 4  ;;  %v1266_v29 = vsel %vm1114_vm8, %v1265_v47, %v1264_v6  ;;  %v14883_v55 = vld [vmem:[#allocation88_spill] sm:$0xff]  ;;  %v14884_v6 = vld [vmem:[#allocation182_spill] sm:$0xff] }
 0x308   :  { %1222 = vst [vmem:[#allocation3 + $0x20] sm:$0x2] %v1214_v54  ;;  %v2248_v49 = vpack.c.b16 %v2238_v27, %v2238_v27  ;;  %v2269_v37 = vsel %vm1048_vm13, %v11750_v24, %v2268_v56  ;;  %v14880_v8 = vcombine.high %v14879_v39, %v14879_v39  ;;  %v14881_v38 = vcombine.high %v10811_v10, %v10811_v10  ;;  %v14882_v10 = vld [vmem:[#allocation117_spill] sm:$0xff]  ;;  %v14885_v50 = vld [vmem:[#allocation64_spill] sm:$0xff] }
 0x309   :  { %v1276_v1 = vpack.c.b16 %v1266_v29, %v1266_v29  ;;  %v2276_v31 = vpack.c.b16 %v2269_v37, %v2269_v37  ;;  %v2296_v23 = vsel %vm1080_vm4, %v2295_v41, %v2294_v30  ;;  %v2328_v17 = vsel %vm1114_vm8, %v2327_v13, %v2326_v3  ;;  %v14887_v27 = vld [vmem:[#allocation156_spill] sm:$0xff]  ;;  %v14889_v29 = vld [vmem:[#allocation118_spill] sm:$0xff] }
 0x30a   :  { %v11831_v7 = vunpack.c.l.b16 %v14880_v8  ;;  %v11836_v61 = vunpack.c.l.b16 %v14881_v38  ;;  %2256 = vst [vmem:[#allocation3 + $0x20] sm:$0x10] %v2248_v49  ;;  %v2306_v16 = vpack.c.b16 %v2296_v23, %v2296_v23  ;;  %v2338_v25 = vpack.c.b16 %v2328_v17, %v2328_v17  ;;  %v9385_v49 = vld [vmem:[%s14015_s4 + $0xc8] sm:$0xff]   ;;  %v9593_v39 = vld [vmem:[#allocation2 + $0x10] sm:$0x88] }
 0x30b   :  { %1284 = vst [vmem:[#allocation3 + $0x20] sm:$0x8] %v1276_v1  ;;  %2284 = vst [vmem:[#allocation3 + $0x20] sm:$0x20] %v2276_v31  ;;  %v3191_v15 = vrot.slane %v14882_v10, 2  ;;  %v3192_v14 = vrot.slane %v11168_v46, 1  ;;  %v14886_v0 = vcombine.high %v14885_v50, %v14885_v50  ;;  %v14888_v56 = vcombine.high %v14887_v27, %v14887_v27 }
 0x30c   :  { %v3159_v24 = vrot.slane %v11831_v7, 4  ;;  %v3160_v36 = vrot.slane %v11836_v61, 3  ;;  %v3220_v45 = vrot.slane %v11170_v57, 7  ;;  %v3249_v54 = vrot.slane %v14883_v55, 6  ;;  %2314 = vst [vmem:[#allocation3 + $0x20] sm:$0x40] %v2306_v16 }
 0x30d   :  { %2346 = vst [vmem:[#allocation3 + $0x20] sm:$0x80] %v2338_v25  ;;  %v3250_v47 = vrot.slane %v14884_v6, 5  ;;  %v11854_v5 = vunpack.c.l.b16 %v14886_v0  ;;  %v11859_v30 = vunpack.c.l.b16 %v14888_v56  ;;  %v5263_v41 = vld [vmem:[#allocation3] sm:$0xff]  ;;  %v3193_v13 = vsel %vm1048_vm13, %v3192_v14, %v3191_v15  ;;  %v9387_v15 = vld [vmem:[%s14015_s4 + $0x88] sm:$0xff]   ;;  %v9384_v27 = vld [vmem:[%s14015_s4 + $0x200] sm:$0xff]  }
 0x30e   :  { %v3161_v33 = vsel %vm1017_vm10, %v3160_v36, %v3159_v24  ;;  %v3221_v37 = vsel %vm1080_vm4, %v3220_v45, %v14889_v29  ;;  %v11867_v8 = vcombine.low %v9593_v39, %v9593_v39  ;;  %7144 = vmatmul.mubr.bf16.vlgmr.msra.gmra.mrb[0].mxu1 %v5263_v41  ;;  %v3201_v38 = vpack.c.b16 %v3193_v13, %v3193_v13  ;;  %v14891_v24 = vld [vmem:[#allocation126_spill] sm:$0xff]  ;;  %v14892_v14 = vld [vmem:[#allocation220_spill] sm:$0xff] }
 0x30f   :  { %v3169_v3 = vpack.c.b16 %v3161_v33, %v3161_v33  ;;  %v3227_v1 = vpack.c.b16 %v3221_v37, %v3221_v37  ;;  %v3251_v31 = vsel %vm1114_vm8, %v3250_v47, %v3249_v54  ;;  %v4209_v23 = vrot.slane %v11854_v5, 6  ;;  %8646 = vmatpush3.bf16.msra.mxu1 %v9383_v59  ;;  %v14893_v54 = vld [vmem:[#allocation127_spill] sm:$0xff]  ;;  %v14894_v47 = vld [vmem:[#allocation221_spill] sm:$0xff]  ;;  %v9389_v0 = vld [vmem:[%s14015_s4 + $0xd0] sm:$0xff]  }
 0x310   :  { %14890 = vst [vmem:[#allocation58_spill] sm:$0xff] %v11867_v8  ;;  %v3259_v17 = vpack.c.b16 %v3251_v31, %v3251_v31  ;;  %v4210_v16 = vrot.slane %v11859_v30, 5  ;;  %v14396_v25 = vunpack.c.l.b16 %v11867_v8  ;;  %v4241_v36 = vrot.slane %v14891_v24, 4  ;;  %3209 = vst [vmem:[#allocation3 + $0xe8] sm:$0x2] %v3201_v38  ;;  %8647 = vmatprep.subr.bf16.mxu1 %v9385_v49  ;;  %v14896_v37 = vld [vmem:[#allocation60_spill] sm:$0xff] }
 0x311   :  { %3177 = vst [vmem:[#allocation3 + $0xe8] sm:$0x1] %v3169_v3  ;;  %3235 = vst [vmem:[#allocation3 + $0xe8] sm:$0x4] %v3227_v1  ;;  %v4242_v45 = vrot.slane %v14892_v14, 3  ;;  %v4271_v33 = vrot.slane %v14893_v54, 2  ;;  %v4299_v50 = vunpack.c.h.b16 %v11867_v8  ;;  %v14897_v39 = vcombine.high %v14896_v37, %v14896_v37 }
 0x312   :  { %v4272_v59 = vrot.slane %v14894_v47, 1  ;;  %3267 = vst [vmem:[#allocation3 + $0xe8] sm:$0x8] %v3259_v17  ;;  %v4211_v56 = vsel %vm1017_vm10, %v4210_v16, %v4209_v23  ;;  %v4247_v41 = vrot.slane %v14396_v25, 4  ;;  %v14895_v3 = vld [vmem:[#allocation188_spill] sm:$0xff]  ;;  %v14899_v17 = vcombine.high %v14898_v4, %v14898_v4  ;;  %v9386_v23 = vld [vmem:[%s14015_s4 + $0x248] sm:$0xff]  }
 0x313   :  { %v4303_v13 = vunpack.c.h.b16 %v14895_v3  ;;  %v11894_v49 = vunpack.c.l.b16 %v14897_v39  ;;  %v4219_v38 = vpack.c.b16 %v4211_v56, %v4211_v56  ;;  %v4243_v1 = vsel %vm1048_vm13, %v4242_v45, %v4241_v36  ;;  %v14900_v25 = vld [vmem:[#allocation194_spill] sm:$0xff]  ;;  %8648 = vmatpush3.bf16.msra.mxu1 %v9387_v15  ;;  %v9391_v36 = vld [vmem:[%s14015_s4 + $0x90] sm:$0xff]  }
 0x314   :  { %v4273_v31 = vsel %vm1080_vm4, %v4272_v59, %v4271_v33  ;;  %v11901_v52 = vunpack.c.l.b16 %v14899_v17  ;;  %v5267_v16 = vld [vmem:[#allocation3 + $0x20] sm:$0xff]  ;;  %v4249_v37 = vsel %vm1048_vm13, %v14900_v25, %v4247_v41  ;;  %v4251_v39 = vpack.c.b16 %v4243_v1, %v4243_v1  ;;  %v14901_v59 = vld [vmem:[#allocation119_spill] sm:$0xff]  ;;  %8649 = vmatprep.subr.bf16.mxu1 %v9389_v0  ;;  %v9393_v25 = vld [vmem:[%s14015_s4 + $0xd8] sm:$0xff]  }
 0x315   :  { %v4281_v19 = vpack.c.b16 %v4273_v31, %v4273_v31  ;;  %v4308_v56 = vrot.slane %v4303_v13, 7  ;;  %7242 = vmatmul.mubr.bf16.vlgmr.msra.gmra.mrb[32].mxu0 %v5267_v16  ;;  %4227 = vst [vmem:[#allocation3 + $0xe8] sm:$0x10] %v4219_v38  ;;  %v4253_v4 = vpack.c.b16 %v4249_v37, %v4249_v37  ;;  %v3309_v45 = vrot.slane %v11894_v49, 5  ;;  %v14902_v41 = vld [vmem:[#allocation213_spill] sm:$0xff]  ;;  %v14903_v38 = vld [vmem:[#allocation120_spill] sm:$0xff] }
 0x316   :  { %v3310_v33 = vrot.slane %v11901_v52, 4  ;;  %v3341_v17 = vrot.slane %v14901_v59, 3  ;;  %8730 = vmatpush3.bf16.msra.mxu0 %v9384_v27  ;;  %4259 = vst [vmem:[#allocation3 + $0xe8] sm:$0x20] %v4251_v39  ;;  %v3342_v13 = vrot.slane %v14902_v41, 2  ;;  %v3370_v1 = vrot.slane %v14903_v38, 1 }
 0x317   :  { %4289 = vst [vmem:[#allocation3 + $0xe8] sm:$0x40] %v4281_v19  ;;  %v4309_v15 = vsel %vm1114_vm8, %v4308_v56, %v4299_v50  ;;  %v14904_v31 = vld [vmem:[#allocation90_spill] sm:$0xff]  ;;  %v9388_v37 = vld [vmem:[%s14015_s4 + $0x208] sm:$0xff]   ;;  %4261 = vst.msk [vmem:[#allocation3 + $0xf8] sm:$0x20] %vm2132_vm5, %v4253_v4  ;;  %8731 = vmatprep.subr.bf16.mxu0 %v9386_v23  ;;  %8650 = vmatpush3.bf16.msra.mxu1 %v9391_v36  ;;  %v8119_v3 = vcombine.low %v9596_v34, %v9596_v34 }
 0x318   :  { %v3399_v16 = vrot.slane %v14904_v31, 7  ;;  %v4315_v0 = vpack.c.b16 %v4309_v15, %v4309_v15  ;;  %v3311_v58 = vsel %vm1017_vm10, %v3310_v33, %v3309_v45  ;;  %v14905_v27 = vld [vmem:[#allocation184_spill] sm:$0xff]  ;;  %v14906_v19 = vld [vmem:[#allocation65_spill] sm:$0xff]  ;;  %v3343_v2 = vsel %vm1048_vm13, %v3342_v13, %v3341_v17  ;;  %8651 = vmatprep.subr.bf16.mxu1 %v9393_v25  ;;  %v9397_v13 = vld [vmem:[%s14015_s4 + $0xe0] sm:$0xff]  }
 0x319   :  { %v3400_v39 = vrot.slane %v14905_v27, 6  ;;  %v14907_v50 = vcombine.high %v14906_v19, %v14906_v19  ;;  %v9390_v31 = vld [vmem:[%s14015_s4 + $0x250] sm:$0xff]   ;;  %v3319_v21 = vpack.c.b16 %v3311_v58, %v3311_v58  ;;  %v3371_v4 = vsel %vm1080_vm4, %v14908_v40, %v3370_v1  ;;  %v14909_v15 = vld [vmem:[#allocation157_spill] sm:$0xff]  ;;  %v14912_v25 = vld [vmem:[#allocation223_spill] sm:$0xff] }
 0x31a   :  { %v14910_v45 = vcombine.high %v14909_v15, %v14909_v15  ;;  %v9395_v23 = vld [vmem:[%s14015_s4 + $0x98] sm:$0xff]   ;;  %4323 = vst [vmem:[#allocation3 + $0xe8] sm:$0x80] %v4315_v0  ;;  %v3351_v19 = vpack.c.b16 %v3343_v2, %v3343_v2  ;;  %v9594_v15 = vld [vmem:[#allocation2 + $0x48] sm:$0x88]  ;;  %v14911_v27 = vld [vmem:[#allocation128_spill] sm:$0xff]  ;;  %8732 = vmatpush3.bf16.msra.mxu0 %v9388_v37 }
 0x31b   :  { %v11930_v56 = vunpack.c.l.b16 %v14907_v50  ;;  %v3377_v50 = vpack.c.b16 %v3371_v4, %v3371_v4  ;;  %v3401_v58 = vsel %vm1114_vm8, %v3400_v39, %v3399_v16  ;;  %3327 = vst [vmem:[#allocation3 + $0x108] sm:$0x1] %v3319_v21  ;;  %v4397_v32 = vrot.slane %v14911_v27, 5  ;;  %v9392_v2 = vld [vmem:[%s14015_s4 + $0x210] sm:$0xff]   ;;  %v14913_v0 = vld [vmem:[#allocation129_spill] sm:$0xff]  ;;  %8733 = vmatprep.subr.bf16.mxu0 %v9390_v31  ;;  %8652 = vmatpush3.bf16.msra.mxu1 %v9395_v23  ;;  %v9399_v8 = vld [vmem:[%s14015_s4 + $0xa0] sm:$0xff]  }
 0x31c   :  { %v11941_v33 = vunpack.c.l.b16 %v14910_v45  ;;  %v3409_v1 = vpack.c.b16 %v3401_v58, %v3401_v58  ;;  %v8236_v45 = vcombine.low %v9594_v15, %v9594_v15  ;;  %3359 = vst [vmem:[#allocation3 + $0x108] sm:$0x2] %v3351_v19  ;;  %v4398_v16 = vrot.slane %v14912_v25, 4  ;;  %v14914_v4 = vld [vmem:[#allocation224_spill] sm:$0xff]  ;;  %v9394_v15 = vld [vmem:[%s14015_s4 + $0x258] sm:$0xff]   ;;  %8653 = vmatprep.subr.bf16.mxu1 %v9397_v13 }
 0x31d   :  { %v4365_v17 = vrot.slane %v11930_v56, 7  ;;  %3385 = vst [vmem:[#allocation3 + $0x108] sm:$0x4] %v3377_v50  ;;  %v4427_v39 = vrot.slane %v14913_v0, 3  ;;  %v4428_v21 = vrot.slane %v14914_v4, 2  ;;  %v14915_v58 = vld [vmem:[#allocation96_spill] sm:$0xff]  ;;  %v3152_v13 = vunpack.c.l.b16 %v8119_v3 }
 0x31e   :  { %v4366_v36 = vrot.slane %v11941_v33, 6  ;;  %v4458_v42 = vrot.slane %v14915_v58, 1  ;;  %3417 = vst [vmem:[#allocation3 + $0x108] sm:$0x8] %v3409_v1  ;;  %v11964_v60 = vunpack.c.l.b16 %v8236_v45  ;;  %v9595_v19 = vld [vmem:[#allocation2] sm:$0x44]  ;;  %v4399_v31 = vsel %vm1048_vm13, %v4398_v16, %v4397_v32  ;;  %8734 = vmatpush3.bf16.msra.mxu0 %v9392_v2 }
 0x31f   :  { %v8115_v50 = vcombine.low %v9595_v19, %v9595_v19  ;;  %v4429_v54 = vsel %vm1080_vm4, %v4428_v21, %v4427_v39  ;;  %v3188_v1 = vrot.slane %v11831_v7, 2  ;;  %v4407_v34 = vpack.c.b16 %v4399_v31, %v4399_v31  ;;  %v9396_v32 = vld [vmem:[%s14015_s4 + $0x218] sm:$0xff]   ;;  %8735 = vmatprep.subr.bf16.mxu0 %v9394_v15  ;;  %v9398_v21 = vld [vmem:[%s14015_s4 + $0x260] sm:$0xff]   ;;  %8654 = vmatpush3.bf16.msra.mxu1 %v9399_v8 }
 0x320   :  { %v4367_v37 = vsel %vm1017_vm10, %v4366_v36, %v4365_v17  ;;  %14916 = vst [vmem:[#allocation59_spill] sm:$0xff] %v11964_v60  ;;  %v9401_v17 = vld [vmem:[%s14015_s4 + $0xe8] sm:$0xff]   ;;  %v4404_v36 = vrot.slane %v11964_v60, 4  ;;  %v4437_v23 = vpack.c.b16 %v4429_v54, %v4429_v54  ;;  %v4459_v45 = vsel %vm1114_vm8, %v11964_v60, %v4458_v42 }
 0x321   :  { %v4375_v47 = vpack.c.b16 %v4367_v37, %v4367_v37  ;;  %v4465_v16 = vpack.c.b16 %v4459_v45, %v4459_v45  ;;  %v3148_v7 = vunpack.c.l.b16 %v8115_v50  ;;  %v3189_v39 = vrot.slane %v11836_v61, 1  ;;  %v5292_v54 = vld [vmem:[#allocation3 + $0xe8] sm:$0xff]  ;;  %4415 = vst [vmem:[#allocation3 + $0x108] sm:$0x20] %v4407_v34  ;;  %v9403_v61 = vld [vmem:[%s14015_s4 + $0xa8] sm:$0xff]   ;;  %8655 = vmatprep.subr.bf16.mxu1 %v9401_v17 }
 0x322   :  { %v14917_v37 = vrot.slane %v14915_v58, 5  ;;  %4445 = vst [vmem:[#allocation3 + $0x108] sm:$0x40] %v4437_v23  ;;  %v3218_v2 = vrot.slane %v11168_v46, 7  ;;  %v3247_v3 = vrot.slane %v11170_v57, 5  ;;  %7151 = vmatprep.mubr.bf16.mxu1 %v5292_v54  ;;  %v3157_v50 = vrot.slane %v3152_v13, 3  ;;  %8736 = vmatpush3.bf16.msra.mxu0 %v9396_v32 }
 0x323   :  { %4383 = vst [vmem:[#allocation3 + $0x108] sm:$0x10] %v4375_v47  ;;  %v3246_v47 = vrot.slane %v14889_v29, 6  ;;  %4473 = vst [vmem:[#allocation3 + $0x108] sm:$0x80] %v4465_v16  ;;  %v3156_v19 = vrot.slane %v3148_v7, 4  ;;  %v3190_v31 = vsel %vm1048_vm13, %v3189_v39, %v3188_v1  ;;  %8737 = vmatprep.subr.bf16.mxu0 %v9398_v21  ;;  %8656 = vmatpush3.bf16.msra.mxu1 %v9403_v61 }
 0x324   :  { %v4405_v42 = vsel %vm1048_vm13, %v4404_v36, %v14917_v37  ;;  %v9405_v36 = vld [vmem:[%s14015_s4 + $0xf0] sm:$0xff]   ;;  %v3200_v34 = vpack.c.b16 %v3190_v31, %v3190_v31  ;;  %v3219_v8 = vsel %vm1080_vm4, %v3218_v2, %v14882_v10  ;;  %v9597_v45 = vld [vmem:[#allocation2] sm:$0x88]  ;;  %v9598_v13 = vld [vmem:[#allocation2 + $0x38] sm:$0x88]  ;;  %v4238_v2 = vrot.slane %v11854_v5, 4 }
 0x325   :  { %v4409_v15 = vpack.c.b16 %v4405_v42, %v4405_v42  ;;  %v3248_v23 = vsel %vm1114_vm8, %v3247_v3, %v3246_v47  ;;  %v8213_v37 = vcombine.low %v9597_v45, %v9597_v45  ;;  %v9400_v16 = vld [vmem:[%s14015_s4 + $0x220] sm:$0xff]   ;;  %v3158_v1 = vsel %vm1017_vm10, %v3157_v50, %v3156_v19  ;;  %v9402_v54 = vld [vmem:[%s14015_s4 + $0x268] sm:$0xff]   ;;  %v9407_v3 = vld [vmem:[%s14015_s4 + $0xb0] sm:$0xff]   ;;  %8657 = vmatprep.subr.bf16.mxu1 %v9405_v36 }
 0x326   :  { %v3226_v17 = vpack.c.b16 %v3219_v8, %v3219_v8  ;;  %v3258_v7 = vpack.c.b16 %v3248_v23, %v3248_v23  ;;  %v8217_v39 = vcombine.low %v9598_v13, %v9598_v13  ;;  %v3168_v42 = vpack.c.b16 %v3158_v1, %v3158_v1  ;;  %3208 = vst [vmem:[#allocation3 + $0xe0] sm:$0x2] %v3200_v34  ;;  %v14918_v50 = vld [vmem:[#allocation125_spill] sm:$0xff]  ;;  %v14919_v34 = vld [vmem:[#allocation219_spill] sm:$0xff]  ;;  %v9599_v23 = vld [vmem:[#allocation2] sm:$0x44] }
 0x327   :  { %4417 = vst.msk [vmem:[#allocation3 + $0x118] sm:$0x20] %vm2132_vm5, %v4409_v15  ;;  %v4198_v32 = vunpack.c.l.b16 %v8213_v37  ;;  %v4239_v47 = vrot.slane %v11859_v30, 3  ;;  %v4268_v21 = vrot.slane %v14891_v24, 2  ;;  %v4269_v19 = vrot.slane %v14892_v14, 1  ;;  %v9409_v5 = vld [vmem:[%s14015_s4 + $0xf8] sm:$0xff]   ;;  %8738 = vmatpush3.bf16.msra.mxu0 %v9400_v16  ;;  %8658 = vmatpush3.bf16.msra.mxu1 %v9407_v3 }
 0x328   :  { %3234 = vst [vmem:[#allocation3 + $0xe0] sm:$0x4] %v3226_v17  ;;  %3266 = vst [vmem:[#allocation3 + $0xe0] sm:$0x8] %v3258_v7  ;;  %v4202_v15 = vunpack.c.l.b16 %v8217_v39  ;;  %v4298_v31 = vunpack.c.h.b16 %v14918_v50  ;;  %v4302_v8 = vunpack.c.h.b16 %v14919_v34  ;;  %v8129_v45 = vcombine.low %v9599_v23, %v9599_v23  ;;  %v9404_v37 = vld [vmem:[%s14015_s4 + $0x228] sm:$0xff]   ;;  %8739 = vmatprep.subr.bf16.mxu0 %v9402_v54  ;;  %v9406_v39 = vld [vmem:[%s14015_s4 + $0x270] sm:$0xff]   ;;  %8659 = vmatprep.subr.bf16.mxu1 %v9409_v5 }
 0x329   :  { %3176 = vst [vmem:[#allocation3 + $0xe0] sm:$0x1] %v3168_v42  ;;  %v4206_v30 = vrot.slane %v4198_v32, 6  ;;  %v4240_v61 = vsel %vm1048_vm13, %v4239_v47, %v4238_v2  ;;  %v4270_v36 = vsel %vm1080_vm4, %v4269_v19, %v4268_v21  ;;  %v9600_v7 = vld [vmem:[#allocation2 + $0x38] sm:$0x44]  ;;  %v3338_v16 = vrot.slane %v11894_v49, 3 }
 0x32a   :  { %v4207_v1 = vrot.slane %v4202_v15, 5  ;;  %v4250_v17 = vpack.c.b16 %v4240_v61, %v4240_v61  ;;  %v8133_v13 = vcombine.low %v9600_v7, %v9600_v7  ;;  %v5296_v42 = vld [vmem:[#allocation3 + $0x108] sm:$0xff]  ;;  %v4280_v32 = vpack.c.b16 %v4270_v36, %v4270_v36  ;;  %v9415_v61 = vld [vmem:[%s14015_s4 + $0x1c0] sm:$0xff]  }
 0x32b   :  { %v4306_v2 = vrot.slane %v4302_v8, 7  ;;  %v3298_v47 = vunpack.c.l.b16 %v8129_v45  ;;  %v9411_v15 = vld [vmem:[%s14015_s4 + $0xb8] sm:$0xff]   ;;  %7249 = vmatprep.mubr.bf16.mxu0 %v5296_v42  ;;  %v3339_v19 = vrot.slane %v11901_v52, 2  ;;  %v3368_v50 = vrot.slane %v14901_v59, 1  ;;  %8740 = vmatpush3.bf16.msra.mxu0 %v9404_v37  ;;  %v9601_v36 = vld [vmem:[#allocation2] sm:$0x88] }
 0x32c   :  { %v4208_v21 = vsel %vm1017_vm10, %v4207_v1, %v4206_v30  ;;  %4258 = vst [vmem:[#allocation3 + $0xe0] sm:$0x20] %v4250_v17  ;;  %v3302_v54 = vunpack.c.l.b16 %v8133_v13  ;;  %4288 = vst [vmem:[#allocation3 + $0xe0] sm:$0x40] %v4280_v32  ;;  %v3396_v8 = vrot.slane %v14903_v38, 7  ;;  %v9408_v30 = vld [vmem:[%s14015_s4 + $0x230] sm:$0xff]   ;;  %8741 = vmatprep.subr.bf16.mxu0 %v9406_v39  ;;  %v8227_v7 = vcombine.low %v9601_v36, %v9601_v36 }
 0x32d   :  { %v4218_v49 = vpack.c.b16 %v4208_v21, %v4208_v21  ;;  %v4307_v3 = vsel %vm1114_vm8, %v4306_v2, %v4298_v31  ;;  %v3306_v34 = vrot.slane %v3298_v47, 5  ;;  %v3340_v5 = vsel %vm1048_vm13, %v3339_v19, %v3338_v16  ;;  %v9410_v31 = vld [vmem:[%s14015_s4 + $0x278] sm:$0xff]   ;;  %8660 = vmatpush3.bf16.msra.mxu1 %v9411_v15 }
 0x32e   :  { %v4314_v52 = vpack.c.b16 %v4307_v3, %v4307_v3  ;;  %v3307_v23 = vrot.slane %v3302_v54, 4  ;;  %v3369_v45 = vsel %vm1080_vm4, %v14902_v41, %v3368_v50  ;;  %v3350_v1 = vpack.c.b16 %v3340_v5, %v3340_v5  ;;  %v9602_v42 = vld [vmem:[#allocation2 + $0x38] sm:$0x88]  ;;  %8701 = vmatprep.subr.bf16.mxu1 %v9415_v61  ;;  %v9416_v61 = vld [vmem:[%s14015_s4 + $0x340] sm:$0xff]   ;;  %v14920_v5 = vld [vmem:[#allocation43_spill] sm:$0xff] }
 0x32f   :  { %4226 = vst [vmem:[#allocation3 + $0xe0] sm:$0x10] %v4218_v49  ;;  %v3376_v17 = vpack.c.b16 %v3369_v45, %v3369_v45  ;;  %v3397_v37 = vrot.slane %v14908_v40, 6  ;;  %v8231_v32 = vcombine.low %v9602_v42, %v9602_v42  ;;  %v4394_v2 = vrot.slane %v11930_v56, 5  ;;  %8742 = vmatpush3.bf16.msra.mxu0 %v9408_v30  ;;  %v9412_v15 = vld [vmem:[%s14015_s4 + $0x238] sm:$0xff]   ;;  %v14924_v42 = vld [vmem:[#allocation192_spill] sm:$0xff] }
 0x330   :  { %4322 = vst [vmem:[#allocation3 + $0xe0] sm:$0x80] %v4314_v52  ;;  %v3308_v13 = vsel %vm1017_vm10, %v3307_v23, %v3306_v34  ;;  %v4395_v39 = vrot.slane %v11941_v33, 4  ;;  %3358 = vst [vmem:[#allocation3 + $0x100] sm:$0x2] %v3350_v1  ;;  %v4354_v21 = vunpack.c.l.b16 %v8227_v7  ;;  %v4424_v54 = vrot.slane %v14911_v27, 3  ;;  %8743 = vmatprep.subr.bf16.mxu0 %v9410_v31 }
 0x331   :  { %v3318_v47 = vpack.c.b16 %v3308_v13, %v3308_v13  ;;  %3384 = vst [vmem:[#allocation3 + $0x100] sm:$0x4] %v3376_v17  ;;  %v3398_v16 = vsel %vm1114_vm8, %v3397_v37, %v3396_v8  ;;  %v4358_v50 = vunpack.c.l.b16 %v8231_v32  ;;  %v4425_v33 = vrot.slane %v14912_v25, 2  ;;  %v9603_v8 = vld [vmem:[#allocation2 + $0x8] sm:$0x22]  ;;  %v14922_v31 = vld [vmem:[#allocation138_spill] sm:$0xff] }
 0x332   :  { %v3408_v19 = vpack.c.b16 %v3398_v16, %v3398_v16  ;;  %v4396_v56 = vsel %vm1048_vm13, %v4395_v39, %v4394_v2  ;;  %v4362_v49 = vrot.slane %v4354_v21, 7  ;;  %v4456_v34 = vrot.slane %v14913_v0, 1 }
 0x333   :  { %3326 = vst [vmem:[#allocation3 + $0x100] sm:$0x1] %v3318_v47  ;;  %v4406_v3 = vpack.c.b16 %v4396_v56, %v4396_v56  ;;  %v7949_v30 = vcombine.low %v9603_v8, %v9603_v8  ;;  %v4363_v52 = vrot.slane %v4358_v50, 6  ;;  %v4426_v23 = vsel %vm1080_vm4, %v4425_v33, %v4424_v54  ;;  %8744 = vmatpush3.bf16.msra.mxu0 %v9412_v15  ;;  %v14925_v50 = vld [vmem:[#allocation98_spill] sm:$0xff]  ;;  %v14926_v33 = vld [vmem:[#allocation193_spill] sm:$0xff] }
 0x334   :  { %3416 = vst [vmem:[#allocation3 + $0x100] sm:$0x8] %v3408_v19  ;;  %v14921_v45 = vcombine.high %v14920_v5, %v14920_v5  ;;  %v14923_v17 = vcombine.high %v14922_v31, %v14922_v31  ;;  %v4436_v36 = vpack.c.b16 %v4426_v23, %v4426_v23  ;;  %v4457_v7 = vsel %vm1114_vm8, %v14914_v4, %v4456_v34  ;;  %v14927_v34 = vld [vmem:[#allocation69_spill] sm:$0xff]  ;;  %v9604_v5 = vld [vmem:[#allocation2 + $0x8] sm:$0x44] }
 0x335   :  { %4414 = vst [vmem:[#allocation3 + $0x100] sm:$0x20] %v4406_v3  ;;  %v12078_v13 = vunpack.c.l.b16 %v7949_v30  ;;  %v1358_v32 = vrot.slane %v14924_v42, 7  ;;  %v4364_v2 = vsel %vm1017_vm10, %v4363_v52, %v4362_v49  ;;  %v4464_v39 = vpack.c.b16 %v4457_v7, %v4457_v7  ;;  %8785 = vmatprep.subr.bf16.mxu0 %v9416_v61  ;;  %v14928_v30 = vld [vmem:[#allocation161_spill] sm:$0xff] }
 0x336   :  { %v12069_v1 = vunpack.c.l.b16 %v14921_v45  ;;  %v12074_v37 = vunpack.c.l.b16 %v14923_v17  ;;  %v4374_v54 = vpack.c.b16 %v4364_v2, %v4364_v2  ;;  %4444 = vst [vmem:[#allocation3 + $0x100] sm:$0x40] %v4436_v36  ;;  %v1385_v56 = vrot.slane %v14925_v50, 6  ;;  %v14929_v31 = vld [vmem:[#allocation49_spill] sm:$0xff]  ;;  %v14931_v2 = vld [vmem:[#allocation107_spill] sm:$0xff] }
 0x337   :  { %v5291_v21 = vld [vmem:[#allocation3 + $0xe0] sm:$0xff]  ;;  %v1359_v19 = vsel %vm1048_vm13, %v1358_v32, %v12078_v13  ;;  %v1386_v3 = vrot.slane %v14926_v33, 5  ;;  %4472 = vst [vmem:[#allocation3 + $0x100] sm:$0x80] %v4464_v39  ;;  %v1417_v8 = vrot.slane %v14927_v34, 4  ;;  %v1418_v52 = vrot.slane %v14928_v30, 3 }
 0x338   :  { %v1327_v47 = vrot.slane %v12069_v1, 2  ;;  %v1328_v16 = vrot.slane %v12074_v37, 1  ;;  %7152 = vmatmul.mubr.bf16.gmra.mrb[4].mxu1 %v5291_v21  ;;  %v1365_v49 = vpack.c.b16 %v1359_v19, %v1359_v19  ;;  %4382 = vst [vmem:[#allocation3 + $0x100] sm:$0x10] %v4374_v54  ;;  %v8048_v45 = vcombine.high %v9604_v5, %v9604_v5 }
 0x339   :  { %v1387_v23 = vsel %vm1080_vm4, %v1386_v3, %v1385_v56  ;;  %v14930_v17 = vcombine.high %v14929_v31, %v14929_v31  ;;  %v1419_v32 = vsel %vm1114_vm8, %v1418_v52, %v1417_v8  ;;  %v14410_v39 = vunpack.c.l.b16 %v14931_v2  ;;  %v14934_v56 = vld [vmem:[#allocation203_spill] sm:$0xff]  ;;  %v14936_v52 = vld [vmem:[#allocation170_spill] sm:$0xff] }
 0x33a   :  { %v1329_v15 = vsel %vm1017_vm10, %v1328_v16, %v1327_v47  ;;  %1373 = vst [vmem:[#allocation3 + $0x48] sm:$0x2] %v1365_v49  ;;  %v1395_v7 = vpack.c.b16 %v1387_v23, %v1387_v23  ;;  %v14932_v47 = vld [vmem:[#allocation143_spill] sm:$0xff]  ;;  %v1427_v54 = vpack.c.b16 %v1419_v32, %v1419_v32  ;;  %v12104_v19 = vunpack.c.l.b16 %v8048_v45 }
 0x33b   :  { %v1337_v61 = vpack.c.b16 %v1329_v15, %v1329_v15  ;;  %v12095_v36 = vunpack.c.l.b16 %v14930_v17  ;;  %v14933_v16 = vcombine.high %v14932_v47, %v14932_v47  ;;  %v14415_v3 = vunpack.c.l.b16 %v14934_v56  ;;  %v14935_v23 = vld [vmem:[#allocation79_spill] sm:$0xff]  ;;  %v9413_v17 = vld [vmem:[#allocation2 + $0x18] ss:$0 sps:$4 sm:$0x11]  }
 0x33c   :  { %1403 = vst [vmem:[#allocation3 + $0x48] sm:$0x4] %v1395_v7  ;;  %v2416_v8 = vunpack.c.l.b16 %v14935_v23  ;;  %v2417_v5 = vunpack.c.l.b16 %v14936_v52  ;;  %v2421_v31 = vrot.slane %v14410_v39, 2  ;;  %1435 = vst [vmem:[#allocation3 + $0x48] sm:$0x8] %v1427_v54  ;;  %v2447_v47 = vunpack.c.h.b16 %v8048_v45  ;;  %v14938_v52 = vld [vmem:[#allocation205_spill] sm:$0xff] }
 0x33d   :  { %v12102_v21 = vunpack.c.l.b16 %v14933_v16  ;;  %1345 = vst [vmem:[#allocation3 + $0x48] sm:$0x1] %v1337_v61  ;;  %v2389_v15 = vrot.slane %v12095_v36, 4  ;;  %v2395_v61 = vrot.slane %v12104_v19, 4  ;;  %v2422_v32 = vrot.slane %v14415_v3, 1  ;;  %v14937_v16 = vld [vmem:[#allocation204_spill] sm:$0xff] }
 0x33e   :  { %v2451_v30 = vunpack.c.h.b16 %v14937_v16  ;;  %v9414_v7 = vld [vmem:[#allocation2 + $0x50] ss:$0 sps:$4 sm:$0x11]   ;;  %v2427_v60 = vrot.slane %v2416_v8, 2  ;;  %v2428_v23 = vrot.slane %v2417_v5, 1  ;;  %v2487_v58 = vrot.slane %v2416_v8, 6 }
 0x33f   :  { %v2390_v49 = vrot.slane %v12102_v21, 3  ;;  %v14939_v4 = vrot.slane %v14938_v52, 3  ;;  %v2423_v54 = vsel %vm1048_vm13, %v2422_v32, %v2421_v31  ;;  %v5295_v27 = vld [vmem:[#allocation3 + $0x100] sm:$0xff]  ;;  %v2488_v16 = vrot.slane %v2417_v5, 5 }
 0x340   :  { %v2456_v25 = vrot.slane %v2451_v30, 7  ;;  %v2429_v45 = vsel %vm1048_vm13, %v2428_v23, %v2427_v60  ;;  %v2431_v3 = vpack.c.b16 %v2423_v54, %v2423_v54  ;;  %7250 = vmatmul.mubr.bf16.gmra.mrb[36].mxu0 %v5295_v27  ;;  %v1110_v8 = vunpack.c.l.b16 %v9413_v17  ;;  %v14940_v30 = vld [vmem:[#allocation12_spill] sm:$0xff] }
 0x341   :  { %v2391_v34 = vsel %vm1017_vm10, %v2390_v49, %v2389_v15  ;;  %v2397_v39 = vsel %vm1017_vm10, %v14939_v4, %v2395_v61  ;;  %v2433_v15 = vpack.c.b16 %v2429_v45, %v2429_v45  ;;  %v1111_v38 = vunpack.c.l.b16 %v9414_v7 }
 0x342   :  { %v2399_v0 = vpack.c.b16 %v2391_v34, %v2391_v34  ;;  %v2401_v40 = vpack.c.b16 %v2397_v39, %v2397_v39  ;;  %v2457_v49 = vsel %vm1080_vm4, %v2456_v25, %v2447_v47  ;;  %2439 = vst [vmem:[#allocation3 + $0x48] sm:$0x20] %v2431_v3  ;;  %v2489_v34 = vsel %vm1114_vm8, %v2488_v16, %v2487_v58  ;;  %v14941_v39 = vld [vmem:[#allocation26_spill] sm:$0xff] }
 0x343   :  { %v2463_v4 = vpack.c.b16 %v2457_v49, %v2457_v49  ;;  %v2186_v60 = vsel %vm1114_vm8, %v14941_v39, %v14940_v30  ;;  %2441 = vst.msk [vmem:[#allocation3 + $0x58] sm:$0x20] %vm2132_vm5, %v2433_v15  ;;  %v2497_v27 = vpack.c.b16 %v2489_v34, %v2489_v34  ;;  %v1123_v23 = vrot.slane %v1111_v38, 1 }
 0x344   :  { %2407 = vst [vmem:[#allocation3 + $0x48] sm:$0x10] %v2399_v0  ;;  %2409 = vst.msk [vmem:[#allocation3 + $0x58] sm:$0x10] %vm2097_vm15, %v2401_v40  ;;  %v1122_v0 = vrot.slane %v1110_v8, 2  ;;  %v2190_v5 = vpack.c.b16 %v2186_v60, %v2186_v60  ;;  %vm2198_vm7 = vcmask 523271   ;;  %v14942_v54 = vunpack.c.l.b16 %v11488_v9 }
 0x345   :  { %2471 = vst [vmem:[#allocation3 + $0x48] sm:$0x40] %v2463_v4  ;;  %v1021_v40 = vrot.slane %v11468_v28, 7  ;;  %2505 = vst [vmem:[#allocation3 + $0x48] sm:$0x80] %v2497_v27  ;;  %v1053_v58 = vrot.slane %v11464_v53, 6  ;;  %v14943_v45 = vunpack.c.l.b16 %v11640_v44  ;;  %v14944_v9 = vunpack.c.h.b16 %v11104_v62 }
 0x346   :  { %v1124_v25 = vsel %vm1114_vm8, %v1123_v23, %v1122_v0  ;;  %2199 = vst.msk [vmem:[#allocation3 + $0x18] sm:$0x80] %vm2198_vm7, %v2190_v5  ;;  %v1054_v3 = vrot.slane %v11470_v11, 5  ;;  %v1085_v31 = vrot.slane %v11472_v20, 4  ;;  %v1086_v61 = vrot.slane %v11474_v35, 3  ;;  %v14945_v4 = vld [vmem:[#allocation78_spill] sm:$0xff] }
 0x347   :  { %v1128_v17 = vpack.c.b16 %v1124_v25, %v1124_v25  ;;  %v1022_v38 = vsel %vm1017_vm10, %v1021_v40, %v11462_v48  ;;  %v1119_v32 = vrot.slane %v11480_v63, 2  ;;  %v1120_v7 = vrot.slane %v11482_v51, 1  ;;  %v14946_v60 = vld [vmem:[#allocation173_spill] sm:$0xff]  ;;  %v14947_v0 = vld [vmem:[#allocation50_spill] sm:$0xff]  ;;  %v14949_v23 = vld [vmem:[#allocation144_spill] sm:$0xff] }
 0x348   :  { %v1027_v28 = vpack.c.b16 %v1022_v38, %v1022_v38  ;;  %v1055_v47 = vsel %vm1048_vm13, %v1054_v3, %v1053_v58  ;;  %v2080_v53 = vrot.slane %v14942_v54, 2  ;;  %v1087_v20 = vsel %vm1080_vm4, %v1086_v61, %v1085_v31 }
 0x349   :  { %1137 = vst.msk [vmem:[#allocation3 + $0x18] sm:$0x8] %vm1136_vm11, %v1128_v17  ;;  %v1061_v11 = vpack.c.b16 %v1055_v47, %v1055_v47  ;;  %v2081_v48 = vrot.slane %v14943_v45, 1  ;;  %v2107_v35 = vunpack.c.h.b16 %v11490_v18  ;;  %v14417_v16 = vmov 0   ;;  %v14951_v47 = vld [vmem:[#allocation61_spill] sm:$0xff] }
 0x34a   :  { %5249 = vst.msk [vmem:[#allocation3 + $0x18] sm:$0xff] %vm5248_vm2, %v14417_v16  ;;  %1035 = vst [vmem:[#allocation3 + $0x10] sm:$0x1] %v1027_v28  ;;  %v1093_v63 = vpack.c.b16 %v1087_v20, %v1087_v20  ;;  %v1121_v51 = vsel %vm1114_vm8, %v1120_v7, %v1119_v32  ;;  %v2117_v15 = vrot.slane %v14944_v9, 7  ;;  %v2150_v49 = vsel %vm1080_vm4, %v11666_v12, %v11664_v26  ;;  %v14953_v7 = vld [vmem:[#allocation153_spill] sm:$0xff] }
 0x34b   :  { %1069 = vst [vmem:[#allocation3 + $0x10] sm:$0x2] %v1061_v11  ;;  %v1127_v44 = vpack.c.b16 %v1121_v51, %v1121_v51  ;;  %v2082_v8 = vsel %vm1017_vm10, %v2081_v48, %v2080_v53  ;;  %v2156_v18 = vpack.c.b16 %v2150_v49, %v2150_v49  ;;  %v2181_v34 = vrot.slane %v14945_v4, 4 }
 0x34c   :  { %1101 = vst [vmem:[#allocation3 + $0x10] sm:$0x4] %v1093_v63  ;;  %v2088_v30 = vpack.c.b16 %v2082_v8, %v2082_v8  ;;  %v2118_v39 = vsel %vm1048_vm13, %v2117_v15, %v2107_v35  ;;  %v2182_v27 = vrot.slane %v14946_v60, 3  ;;  %v14948_v62 = vrot.slane %v14947_v0, 2  ;;  %v5272_v26 = vld [vmem:[#allocation3 + $0x48] sm:$0xff] }
 0x34d   :  { %v14950_v5 = vrot.slane %v14949_v23, 1  ;;  %1135 = vst [vmem:[#allocation3 + $0x10] sm:$0x8] %v1127_v44  ;;  %v2123_v12 = vpack.c.b16 %v2118_v39, %v2118_v39  ;;  %2164 = vst [vmem:[#allocation3 + $0x10] sm:$0x40] %v2156_v18  ;;  %v1356_v58 = vrot.slane %v12074_v37, 7  ;;  %7339 = vmatprep.mubr.bf16.mxu0 %v5272_v26  ;;  %v2446_v15 = vunpack.c.h.b16 %v14931_v2 }
 0x34e   :  { %v1382_v3 = vrot.slane %v12078_v13, 6  ;;  %2096 = vst [vmem:[#allocation3 + $0x10] sm:$0x10] %v2088_v30  ;;  %v2183_v31 = vsel %vm1114_vm8, %v2182_v27, %v2181_v34  ;;  %v1383_v17 = vrot.slane %v14924_v42, 5  ;;  %v1414_v38 = vrot.slane %v14925_v50, 4  ;;  %v14956_v18 = vld [vmem:[#allocation62_spill] sm:$0xff] }
 0x34f   :  { %v1326_v40 = vsel %vm1017_vm10, %v14950_v5, %v14948_v62  ;;  %v1415_v61 = vrot.slane %v14926_v33, 3  ;;  %2131 = vst [vmem:[#allocation3 + $0x10] sm:$0x20] %v2123_v12  ;;  %v2189_v32 = vpack.c.b16 %v2183_v31, %v2183_v31  ;;  %v1357_v28 = vsel %vm1048_vm13, %v1356_v58, %v12069_v1  ;;  %v14958_v30 = vld [vmem:[#allocation154_spill] sm:$0xff]  ;;  %v9605_v27 = vld [vmem:[#allocation2 + $0x10] sm:$0x88] }
 0x350   :  { %v1336_v25 = vpack.c.b16 %v1326_v40, %v1326_v40  ;;  %v14952_v37 = vrot.slane %v14951_v47, 4  ;;  %v14954_v54 = vrot.slane %v14953_v7, 3  ;;  %v2418_v11 = vrot.slane %v12095_v36, 2  ;;  %v14960_v62 = vld [vmem:[#allocation121_spill] sm:$0xff] }
 0x351   :  { %v1364_v20 = vpack.c.b16 %v1357_v28, %v1357_v28  ;;  %v1384_v45 = vsel %vm1080_vm4, %v1383_v17, %v1382_v3  ;;  %v1416_v48 = vsel %vm1114_vm8, %v1415_v61, %v1414_v38  ;;  %v5266_v63 = vld [vmem:[#allocation3 + $0x18] sm:$0xff]  ;;  %2197 = vst [vmem:[#allocation3 + $0x10] sm:$0x80] %v2189_v32  ;;  %v2419_v1 = vrot.slane %v12102_v21, 1  ;;  %v12200_v5 = vld [vmem:[#allocation2 + $0x1c] sm:$0x11] }
 0x352   :  { %1344 = vst [vmem:[#allocation3 + $0x40] sm:$0x1] %v1336_v25  ;;  %v2388_v53 = vsel %vm1017_vm10, %v14954_v54, %v14952_v37  ;;  %v1394_v51 = vpack.c.b16 %v1384_v45, %v1384_v45  ;;  %v1426_v9 = vpack.c.b16 %v1416_v48, %v1416_v48  ;;  %7192 = vmatprep.mubr.bf16.mxu1 %v5266_v63  ;;  %v14955_v49 = vunpack.c.h.b16 %v14934_v56  ;;  %v9417_v38 = vld [vmem:[%s14015_s4 + $0x180] sm:$0xff]   ;;  %v14961_v61 = vld [vmem:[#allocation215_spill] sm:$0xff]  ;;  %v14963_v37 = vld [vmem:[#allocation216_spill] sm:$0xff] }
 0x353   :  { %v2398_v35 = vpack.c.b16 %v2388_v53, %v2388_v53  ;;  %1372 = vst [vmem:[#allocation3 + $0x40] sm:$0x2] %v1364_v20  ;;  %v2484_v44 = vrot.slane %v12104_v19, 6  ;;  %v2485_v8 = vrot.slane %v14938_v52, 5  ;;  %v14957_v4 = vcombine.high %v14956_v18, %v14956_v18  ;;  %v14962_v28 = vld [vmem:[#allocation122_spill] sm:$0xff]  ;;  %v14965_v48 = vld [vmem:[#allocation243_spill] sm:$0xff] }
 0x354   :  { %v2454_v36 = vrot.slane %v14955_v49, 7  ;;  %1402 = vst [vmem:[#allocation3 + $0x40] sm:$0x4] %v1394_v51  ;;  %1434 = vst [vmem:[#allocation3 + $0x40] sm:$0x8] %v1426_v9  ;;  %v2420_v21 = vsel %vm1048_vm13, %v2419_v1, %v2418_v11  ;;  %v14959_v39 = vcombine.high %v14958_v30, %v14958_v30  ;;  %v8151_v0 = vcombine.low %v9605_v27, %v9605_v27  ;;  %v14964_v54 = vld [vmem:[#allocation186_spill] sm:$0xff] }
 0x355   :  { %2406 = vst [vmem:[#allocation3 + $0x40] sm:$0x10] %v2398_v35  ;;  %v12191_v34 = vunpack.c.l.b16 %v14957_v4  ;;  %v3491_v23 = vrot.slane %v14960_v62, 4  ;;  %v2430_v40 = vpack.c.b16 %v2420_v21, %v2420_v21  ;;  %v2486_v12 = vsel %vm1114_vm8, %v2485_v8, %v2484_v44  ;;  %v9419_v63 = vld [vmem:[%s14015_s4 + $0x1c8] sm:$0xff]   ;;  %v14967_v27 = vld [vmem:[#allocation229_spill] sm:$0xff] }
 0x356   :  { %v12197_v60 = vunpack.c.l.b16 %v14959_v39  ;;  %v2455_v26 = vsel %vm1080_vm4, %v2454_v36, %v2446_v15  ;;  %v2496_v3 = vpack.c.b16 %v2486_v12, %v2486_v12  ;;  %v12206_v17 = vunpack.c.l.b16 %v8151_v0  ;;  %v14969_v12 = vld [vmem:[#allocation235_spill] sm:$0xff] }
 0x357   :  { %v3459_v25 = vrot.slane %v12191_v34, 6  ;;  %v2462_v58 = vpack.c.b16 %v2455_v26, %v2455_v26  ;;  %2438 = vst [vmem:[#allocation3 + $0x40] sm:$0x20] %v2430_v40  ;;  %v3492_v32 = vrot.slane %v14961_v61, 3  ;;  %v3521_v47 = vrot.slane %v14962_v28, 2  ;;  %v14968_v40 = vld [vmem:[#allocation268_spill] sm:$0xff] }
 0x358   :  { %v3460_v31 = vrot.slane %v12197_v60, 5  ;;  %v3522_v7 = vrot.slane %v14963_v37, 1  ;;  %v3552_v53 = vrot.slane %v14964_v54, 7  ;;  %2504 = vst [vmem:[#allocation3 + $0x40] sm:$0x80] %v2496_v3  ;;  %v3497_v20 = vrot.slane %v12206_v17, 4 }
 0x359   :  { %2470 = vst [vmem:[#allocation3 + $0x40] sm:$0x40] %v2462_v58  ;;  %v12219_v45 = vcombine.high %v12200_v5, %v12200_v5  ;;  %v4509_v35 = vunpack.c.h.b16 %v14965_v48  ;;  %v5265_v51 = vld [vmem:[#allocation3 + $0x10] sm:$0xff]  ;;  %v3493_v1 = vsel %vm1048_vm13, %v3492_v32, %v3491_v23  ;;  %v14966_v36 = vrot.slane %v14964_v54, 3  ;;  %v9421_v23 = vld [vmem:[%s14015_s4 + $0x188] sm:$0xff]  }
 0x35a   :  { %v3461_v11 = vsel %vm1017_vm10, %v3460_v31, %v3459_v25  ;;  %v3523_v15 = vsel %vm1080_vm4, %v3522_v7, %v3521_v47  ;;  %v3553_v49 = vsel %vm1114_vm8, %v3552_v53, %v12206_v17  ;;  %7193 = vmatmul.mubr.bf16.vlgmr.msra.gmra.mrb[8].mxu1 %v5265_v51  ;;  %v3501_v8 = vpack.c.b16 %v3493_v1, %v3493_v1  ;;  %v14970_v58 = vld [vmem:[#allocation270_spill] sm:$0xff]  ;;  %v9420_v1 = vld [vmem:[%s14015_s4 + $0x348] sm:$0xff]  }
 0x35b   :  { %v3469_v9 = vpack.c.b16 %v3461_v11, %v3461_v11  ;;  %v3499_v44 = vsel %vm1048_vm13, %v14966_v36, %v3497_v20  ;;  %v3531_v18 = vpack.c.b16 %v3523_v15, %v3523_v15  ;;  %v3559_v4 = vpack.c.b16 %v3553_v49, %v3553_v49  ;;  %8702 = vmatpush3.bf16.msra.mxu1 %v9417_v38  ;;  %v9423_v38 = vld [vmem:[%s14015_s4 + $0x1d0] sm:$0xff]   ;;  %v9418_v53 = vld [vmem:[%s14015_s4 + $0x300] sm:$0xff]   ;;  %v14971_v11 = vld [vmem:[#allocation17_spill] sm:$0xff] }
 0x35c   :  { %v3503_v21 = vpack.c.b16 %v3499_v44, %v3499_v44  ;;  %v4505_v30 = vunpack.c.h.b16 %v12219_v45  ;;  %v4514_v39 = vrot.slane %v4509_v35, 7  ;;  %v4539_v0 = vunpack.c.l.b16 %v14967_v27  ;;  %3509 = vst [vmem:[#allocation3 + $0x128] sm:$0x2] %v3501_v8  ;;  %8703 = vmatprep.subr.bf16.mxu1 %v9419_v63  ;;  %v14972_v20 = vld [vmem:[#allocation34_spill] sm:$0xff]  ;;  %v14973_v8 = vld [vmem:[#allocation36_spill] sm:$0xff] }
 0x35d   :  { %3477 = vst [vmem:[#allocation3 + $0x128] sm:$0x1] %v3469_v9  ;;  %3539 = vst [vmem:[#allocation3 + $0x128] sm:$0x4] %v3531_v18  ;;  %v4543_v26 = vunpack.c.l.b16 %v14968_v40  ;;  %v4579_v25 = vrot.slane %v14969_v12, 4  ;;  %v4580_v3 = vrot.slane %v14970_v58, 3  ;;  %v3257_v35 = vsel %vm1114_vm8, %v14972_v20, %v14971_v11 }
 0x35e   :  { %3567 = vst [vmem:[#allocation3 + $0x128] sm:$0x8] %v3559_v4  ;;  %v4611_v31 = vrot.slane %v11327_v43, 2  ;;  %3511 = vst.msk [vmem:[#allocation3 + $0x138] sm:$0x2] %vm1070_vm1, %v3503_v21  ;;  %v4515_v32 = vsel %vm1017_vm10, %v4514_v39, %v4505_v30  ;;  %v4549_v47 = vrot.slane %v4539_v0, 6  ;;  %v3261_v15 = vpack.c.b16 %v3257_v35, %v3257_v35 }
 0x35f   :  { %v4612_v7 = vrot.slane %v11549_v22, 1  ;;  %v4521_v63 = vpack.c.b16 %v4515_v32, %v4515_v32  ;;  %v4550_v51 = vrot.slane %v4543_v26, 5  ;;  %v4581_v9 = vsel %vm1080_vm4, %v4580_v3, %v4579_v25  ;;  %8704 = vmatpush3.bf16.msra.mxu1 %v9421_v23  ;;  %v14975_v4 = vld [vmem:[#allocation42_spill] sm:$0xff]  ;;  %v9425_v39 = vld [vmem:[%s14015_s4 + $0x190] sm:$0xff]   ;;  %v9427_v32 = vld [vmem:[%s14015_s4 + $0x1d8] sm:$0xff]  }
 0x360   :  { %v5271_v49 = vld [vmem:[#allocation3 + $0x40] sm:$0xff]  ;;  %v4589_v36 = vpack.c.b16 %v4581_v9, %v4581_v9  ;;  %v14974_v18 = vunpack.c.h.b16 %v14973_v8  ;;  %v3162_v30 = vrot.slane %v14882_v10, 4  ;;  %3269 = vst.msk [vmem:[#allocation3 + $0xf8] sm:$0x8] %vm1136_vm11, %v3261_v15  ;;  %v3163_v23 = vrot.slane %v11168_v46, 3  ;;  %8705 = vmatprep.subr.bf16.mxu1 %v9423_v38  ;;  %v14976_v38 = vld [vmem:[#allocation89_spill] sm:$0xff] }
 0x361   :  { %v4613_v44 = vsel %vm1114_vm8, %v4612_v7, %v4611_v31  ;;  %7340 = vmatmul.mubr.bf16.vlgmr.msra.gmra.mrb[40].mxu0 %v5271_v49  ;;  %4529 = vst [vmem:[#allocation3 + $0x128] sm:$0x10] %v4521_v63  ;;  %v4551_v25 = vsel %vm1048_vm13, %v4550_v51, %v4549_v47  ;;  %v9422_v7 = vld [vmem:[%s14015_s4 + $0x308] sm:$0xff]   ;;  %v3194_v47 = vrot.slane %v14889_v29, 2  ;;  %v3195_v11 = vrot.slane %v11170_v57, 1  ;;  %v9424_v29 = vld [vmem:[%s14015_s4 + $0x350] sm:$0xff]  }
 0x362   :  { %v4313_v21 = vsel %vm1114_vm8, %v14975_v4, %v14974_v18  ;;  %v4621_v3 = vpack.c.b16 %v4613_v44, %v4613_v44  ;;  %v4559_v10 = vpack.c.b16 %v4551_v25, %v4551_v25  ;;  %4597 = vst [vmem:[#allocation3 + $0x128] sm:$0x40] %v4589_v36  ;;  %8786 = vmatpush3.bf16.msra.mxu0 %v9418_v53  ;;  %v3222_v20 = vrot.slane %v14884_v6, 7  ;;  %v14977_v63 = vld [vmem:[#allocation183_spill] sm:$0xff]  ;;  %v9431_v18 = vld [vmem:[%s14015_s4 + $0x1e0] sm:$0xff]   ;;  %v14979_v4 = vld [vmem:[#allocation221_spill] sm:$0xff] }
 0x363   :  { %v4317_v31 = vpack.c.b16 %v4313_v21, %v4313_v21  ;;  %8787 = vmatprep.subr.bf16.mxu0 %v9420_v1  ;;  %v3164_v46 = vsel %vm1017_vm10, %v3163_v23, %v3162_v30  ;;  %v3252_v35 = vrot.slane %v14976_v38, 6  ;;  %v3253_v53 = vrot.slane %v14977_v63, 5  ;;  %8706 = vmatpush3.bf16.msra.mxu1 %v9425_v39  ;;  %v14978_v44 = vld [vmem:[#allocation127_spill] sm:$0xff]  ;;  %v14980_v30 = vld [vmem:[#allocation58_spill] sm:$0xff]  ;;  %v14982_v23 = vld [vmem:[#allocation188_spill] sm:$0xff] }
 0x364   :  { %4629 = vst [vmem:[#allocation3 + $0x128] sm:$0x80] %v4621_v3  ;;  %v4212_v51 = vrot.slane %v14891_v24, 6  ;;  %4567 = vst [vmem:[#allocation3 + $0x128] sm:$0x20] %v4559_v10  ;;  %v3170_v57 = vpack.c.b16 %v3164_v46, %v3164_v46  ;;  %v3196_v6 = vsel %vm1048_vm13, %v3195_v11, %v3194_v47  ;;  %v3223_v9 = vsel %vm1080_vm4, %v3222_v20, %v14883_v55  ;;  %v9429_v24 = vld [vmem:[%s14015_s4 + $0x198] sm:$0xff]  }
 0x365   :  { %4325 = vst.msk [vmem:[#allocation3 + $0xf8] sm:$0x80] %vm2198_vm7, %v4317_v31  ;;  %v4213_v1 = vrot.slane %v14892_v14, 5  ;;  %v3202_v15 = vpack.c.b16 %v3196_v6, %v3196_v6  ;;  %v3228_v49 = vpack.c.b16 %v3223_v9, %v3223_v9  ;;  %v3254_v36 = vsel %vm1114_vm8, %v3253_v53, %v3252_v35  ;;  %8707 = vmatprep.subr.bf16.mxu1 %v9427_v32  ;;  %v9426_v3 = vld [vmem:[%s14015_s4 + $0x310] sm:$0xff]   ;;  %v14985_v11 = vld [vmem:[#allocation189_spill] sm:$0xff] }
 0x366   :  { %5250 = vst.msk [vmem:[#allocation3 + $0xf8] sm:$0xff] %vm5248_vm2, %v14417_v16  ;;  %v4244_v8 = vrot.slane %v14978_v44, 4  ;;  %8788 = vmatpush3.bf16.msra.mxu0 %v9422_v7  ;;  %3178 = vst [vmem:[#allocation3 + $0xf0] sm:$0x1] %v3170_v57  ;;  %v3260_v55 = vpack.c.b16 %v3254_v36, %v3254_v36  ;;  %v4245_v21 = vrot.slane %v14979_v4, 3  ;;  %v14981_v39 = vunpack.c.l.b16 %v14980_v30  ;;  %v14984_v7 = vld [vmem:[#allocation93_spill] sm:$0xff] }
 0x367   :  { %v4214_v14 = vsel %vm1017_vm10, %v4213_v1, %v4212_v51  ;;  %3210 = vst [vmem:[#allocation3 + $0xf0] sm:$0x2] %v3202_v15  ;;  %3236 = vst [vmem:[#allocation3 + $0xf0] sm:$0x4] %v3228_v49  ;;  %v14983_v32 = vunpack.c.l.b16 %v14982_v23  ;;  %v4300_v47 = vunpack.c.h.b16 %v14984_v7  ;;  %v4304_v20 = vunpack.c.h.b16 %v14985_v11  ;;  %8789 = vmatprep.subr.bf16.mxu0 %v9424_v29  ;;  %v9428_v46 = vld [vmem:[%s14015_s4 + $0x358] sm:$0xff]   ;;  %8708 = vmatpush3.bf16.msra.mxu1 %v9429_v24  ;;  %v9433_v15 = vld [vmem:[%s14015_s4 + $0x1a0] sm:$0xff]  }
 0x368   :  { %v4274_v25 = vrot.slane %v14981_v39, 2  ;;  %v4220_v31 = vpack.c.b16 %v4214_v14, %v4214_v14  ;;  %3268 = vst [vmem:[#allocation3 + $0xf0] sm:$0x8] %v3260_v55  ;;  %v4246_v38 = vsel %vm1048_vm13, %v4245_v21, %v4244_v8  ;;  %v9606_v35 = vld [vmem:[#allocation2] sm:$0x88]  ;;  %v3488_v57 = vrot.slane %v12191_v34, 4  ;;  %8709 = vmatprep.subr.bf16.mxu1 %v9431_v18 }
 0x369   :  { %v4275_v10 = vrot.slane %v14983_v32, 1  ;;  %v8143_v63 = vcombine.low %v9606_v35, %v9606_v35  ;;  %v9607_v53 = vld [vmem:[#allocation2 + $0x38] sm:$0x88]  ;;  %v4252_v6 = vpack.c.b16 %v4246_v38, %v4246_v38  ;;  %v4310_v1 = vrot.slane %v4304_v20, 7  ;;  %v9435_v24 = vld [vmem:[%s14015_s4 + $0x1e8] sm:$0xff]   ;;  %v9432_v30 = vld [vmem:[%s14015_s4 + $0x360] sm:$0xff]  }
 0x36a   :  { %v8147_v51 = vcombine.low %v9607_v53, %v9607_v53  ;;  %4228 = vst [vmem:[#allocation3 + $0xf0] sm:$0x10] %v4220_v31  ;;  %v3489_v29 = vrot.slane %v12197_v60, 3  ;;  %v3518_v8 = vrot.slane %v14960_v62, 2  ;;  %8790 = vmatpush3.bf16.msra.mxu0 %v9426_v3  ;;  %v9430_v34 = vld [vmem:[%s14015_s4 + $0x318] sm:$0xff]   ;;  %v3519_v4 = vrot.slane %v14961_v61, 1 }
 0x36b   :  { %v4276_v9 = vsel %vm1080_vm4, %v4275_v10, %v4274_v25  ;;  %v3448_v36 = vunpack.c.l.b16 %v8143_v63  ;;  %v5300_v60 = vld [vmem:[#allocation3 + $0x128] sm:$0xff]  ;;  %4260 = vst [vmem:[#allocation3 + $0xf0] sm:$0x20] %v4252_v6  ;;  %v4311_v55 = vsel %vm1114_vm8, %v4310_v1, %v4300_v47  ;;  %v3550_v21 = vrot.slane %v14963_v37, 7  ;;  %8791 = vmatprep.subr.bf16.mxu0 %v9428_v46  ;;  %8710 = vmatpush3.bf16.msra.mxu1 %v9433_v15  ;;  %v9437_v11 = vld [vmem:[%s14015_s4 + $0x1a8] sm:$0xff]   ;;  %v9439_v63 = vld [vmem:[%s14015_s4 + $0x1f0] sm:$0xff]  }
 0x36c   :  { %v4282_v49 = vpack.c.b16 %v4276_v9, %v4276_v9  ;;  %v3452_v44 = vunpack.c.l.b16 %v8147_v51  ;;  %v3490_v14 = vsel %vm1048_vm13, %v3489_v29, %v3488_v57  ;;  %7347 = vmatprep.mubr.bf16.mxu0 %v5300_v60  ;;  %v4316_v39 = vpack.c.b16 %v4311_v55, %v4311_v55  ;;  %v9608_v7 = vld [vmem:[#allocation2 + $0x54] sm:$0x11]  ;;  %8711 = vmatprep.subr.bf16.mxu1 %v9435_v24 }
 0x36d   :  { %v5294_v18 = vld [vmem:[#allocation3 + $0xf8] sm:$0xff]  ;;  %v3456_v25 = vrot.slane %v3448_v36, 6  ;;  %v3500_v31 = vpack.c.b16 %v3490_v14, %v3490_v14  ;;  %v3520_v23 = vsel %vm1080_vm4, %v3519_v4, %v3518_v8  ;;  %v3551_v32 = vsel %vm1114_vm8, %v3550_v21, %v14962_v28 }
 0x36e   :  { %7200 = vmatprep.mubr.bf16.mxu1 %v5294_v18  ;;  %4290 = vst [vmem:[#allocation3 + $0xf0] sm:$0x40] %v4282_v49  ;;  %v3457_v3 = vrot.slane %v3452_v44, 5  ;;  %v8241_v10 = vcombine.low %v12200_v5, %v12200_v5  ;;  %v8245_v47 = vcombine.low %v9608_v7, %v9608_v7  ;;  %4324 = vst [vmem:[#allocation3 + $0xf0] sm:$0x80] %v4316_v39  ;;  %v4538_v35 = vunpack.c.l.b16 %v12219_v45  ;;  %v9434_v5 = vld [vmem:[%s14015_s4 + $0x320] sm:$0xff]  }
 0x36f   :  { %3508 = vst [vmem:[#allocation3 + $0x120] sm:$0x2] %v3500_v31  ;;  %v3530_v46 = vpack.c.b16 %v3520_v23, %v3520_v23  ;;  %v3558_v38 = vpack.c.b16 %v3551_v32, %v3551_v32  ;;  %8792 = vmatpush3.bf16.msra.mxu0 %v9430_v34  ;;  %v4542_v6 = vunpack.c.l.b16 %v14965_v48  ;;  %v9436_v45 = vld [vmem:[%s14015_s4 + $0x368] sm:$0xff]   ;;  %v4576_v1 = vrot.slane %v4539_v0, 4  ;;  %v9609_v44 = vld [vmem:[#allocation2 + $0x40] sm:$0x22]  ;;  %8712 = vmatpush3.bf16.msra.mxu1 %v9437_v11 }
 0x370   :  { %v3458_v20 = vsel %vm1017_vm10, %v3457_v3, %v3456_v25  ;;  %v4504_v51 = vunpack.c.h.b16 %v8241_v10  ;;  %v4508_v57 = vunpack.c.h.b16 %v8245_v47  ;;  %8793 = vmatprep.subr.bf16.mxu0 %v9432_v30  ;;  %v4546_v9 = vrot.slane %v4538_v35, 6  ;;  %v9441_v34 = vld [vmem:[%s14015_s4 + $0x1b0] sm:$0xff]   ;;  %v14988_v18 = vld [vmem:[#allocation139_spill] sm:$0xff]  ;;  %8713 = vmatprep.subr.bf16.mxu1 %v9439_v63  ;;  %v9443_v32 = vld [vmem:[%s14015_s4 + $0x1f8] sm:$0xff]  }
 0x371   :  { %v3468_v53 = vpack.c.b16 %v3458_v20, %v3458_v20  ;;  %3538 = vst [vmem:[#allocation3 + $0x120] sm:$0x4] %v3530_v46  ;;  %3566 = vst [vmem:[#allocation3 + $0x120] sm:$0x8] %v3558_v38  ;;  %v4577_v29 = vrot.slane %v4543_v26, 3  ;;  %v4608_v15 = vrot.slane %v14969_v12, 2  ;;  %v7967_v8 = vcombine.low %v9609_v44, %v9609_v44 }
 0x372   :  { %v4512_v49 = vrot.slane %v4508_v57, 7  ;;  %v4547_v36 = vrot.slane %v4542_v6, 5  ;;  %v4609_v48 = vrot.slane %v14970_v58, 1  ;;  %v14986_v0 = vld [vmem:[#allocation44_spill] sm:$0xff]  ;;  %v14989_v55 = vcombine.high %v14988_v18, %v14988_v18  ;;  %v14990_v4 = vld [vmem:[#allocation99_spill] sm:$0xff]  ;;  %v9445_v57 = vld [vmem:[%s14015_s4 + $0x1b8] sm:$0xff]  }
 0x373   :  { %3476 = vst [vmem:[#allocation3 + $0x120] sm:$0x1] %v3468_v53  ;;  %v4578_v24 = vsel %vm1080_vm4, %v4577_v29, %v4576_v1  ;;  %v14987_v60 = vcombine.high %v14986_v0, %v14986_v0  ;;  %v1508_v21 = vrot.slane %v14990_v4, 1  ;;  %8794 = vmatpush3.bf16.msra.mxu0 %v9434_v5  ;;  %v9438_v30 = vld [vmem:[%s14015_s4 + $0x328] sm:$0xff]   ;;  %v9440_v23 = vld [vmem:[%s14015_s4 + $0x370] sm:$0xff]   ;;  %v12392_v11 = vunpack.c.l.b16 %v7967_v8  ;;  %8714 = vmatpush3.bf16.msra.mxu1 %v9441_v34  ;;  %v9449_v44 = vld [vmem:[%s14015_s4 + $0x2c0] sm:$0xff]  }
 0x374   :  { %v12377_v14 = vunpack.c.l.b16 %v14989_v55  ;;  %v4513_v39 = vsel %vm1017_vm10, %v4512_v49, %v4504_v51  ;;  %v4548_v25 = vsel %vm1048_vm13, %v4547_v36, %v4546_v9  ;;  %v4588_v3 = vpack.c.b16 %v4578_v24, %v4578_v24  ;;  %8795 = vmatprep.subr.bf16.mxu0 %v9436_v45  ;;  %v9442_v20 = vld [vmem:[%s14015_s4 + $0x330] sm:$0xff]   ;;  %v14992_v53 = vld [vmem:[#allocation195_spill] sm:$0xff]  ;;  %8715 = vmatprep.subr.bf16.mxu1 %v9443_v32  ;;  %v9444_v55 = vld [vmem:[%s14015_s4 + $0x378] sm:$0xff]  }
 0x375   :  { %v12372_v26 = vunpack.c.l.b16 %v14987_v60  ;;  %v4610_v31 = vsel %vm1114_vm8, %v4609_v48, %v4608_v15  ;;  %v4520_v10 = vpack.c.b16 %v4513_v39, %v4513_v39  ;;  %v4558_v7 = vpack.c.b16 %v4548_v25, %v4548_v25  ;;  %v5293_v46 = vld [vmem:[#allocation3 + $0xf0] sm:$0xff]  ;;  %v14991_v5 = vld [vmem:[#allocation100_spill] sm:$0xff]  ;;  %v14993_v45 = vld [vmem:[#allocation71_spill] sm:$0xff] }
 0x376   :  { %v4620_v47 = vpack.c.b16 %v4610_v31, %v4610_v31  ;;  %4596 = vst [vmem:[#allocation3 + $0x120] sm:$0x40] %v4588_v3  ;;  %v1478_v35 = vrot.slane %v12377_v14, 2  ;;  %v1535_v63 = vrot.slane %v14991_v5, 7  ;;  %v1536_v51 = vrot.slane %v14992_v53, 6  ;;  %7201 = vmatmul.mubr.bf16.gmra.mrb[12].mxu1 %v5293_v46  ;;  %v14994_v1 = vld [vmem:[#allocation163_spill] sm:$0xff] }
 0x377   :  { %v1477_v38 = vrot.slane %v12372_v26, 3  ;;  %4528 = vst [vmem:[#allocation3 + $0x120] sm:$0x10] %v4520_v10  ;;  %4566 = vst [vmem:[#allocation3 + $0x120] sm:$0x20] %v4558_v7  ;;  %v1509_v6 = vsel %vm1048_vm13, %v12392_v11, %v1508_v21  ;;  %v1567_v9 = vrot.slane %v14993_v45, 5  ;;  %8796 = vmatpush3.bf16.msra.mxu0 %v9438_v30  ;;  %8716 = vmatpush3.bf16.msra.mxu1 %v9445_v57 }
 0x378   :  { %4628 = vst [vmem:[#allocation3 + $0x120] sm:$0x80] %v4620_v47  ;;  %v1568_v29 = vrot.slane %v14994_v1, 4  ;;  %v14995_v15 = vld [vmem:[#allocation54_spill] sm:$0xff]  ;;  %v1515_v34 = vpack.c.b16 %v1509_v6, %v1509_v6  ;;  %v1537_v24 = vsel %vm1080_vm4, %v1536_v51, %v1535_v63  ;;  %v14997_v0 = vld [vmem:[#allocation148_spill] sm:$0xff]  ;;  %8797 = vmatprep.subr.bf16.mxu0 %v9440_v23  ;;  %v14999_v7 = vld [vmem:[#allocation111_spill] sm:$0xff]  ;;  %8757 = vmatprep.subr.bf16.mxu1 %v9449_v44 }
 0x379   :  { %v14996_v49 = vcombine.high %v14995_v15, %v14995_v15  ;;  %v9447_v48 = vld [vmem:[#allocation2 + $0x18] ss:$0 sps:$4 sm:$0x11]   ;;  %v1479_v8 = vsel %vm1017_vm10, %v1478_v35, %v1477_v38  ;;  %v14998_v60 = vcombine.high %v14997_v0, %v14997_v0  ;;  %v9448_v21 = vld [vmem:[#allocation2 + $0x50] ss:$0 sps:$4 sm:$0x11]   ;;  %v1545_v39 = vpack.c.b16 %v1537_v24, %v1537_v24 }
 0x37a   :  { %v1487_v30 = vpack.c.b16 %v1479_v8, %v1479_v8  ;;  %v1569_v25 = vsel %vm1114_vm8, %v1568_v29, %v1567_v9  ;;  %1523 = vst [vmem:[#allocation3 + $0x68] sm:$0x2] %v1515_v34  ;;  %v2579_v47 = vrot.slane %v14999_v7, 3  ;;  %v15000_v46 = vld [vmem:[#allocation206_spill] sm:$0xff]  ;;  %v15001_v32 = vld [vmem:[#allocation112_spill] sm:$0xff]  ;;  %v15002_v35 = vld [vmem:[#allocation83_spill] sm:$0xff]  ;;  %v1262_v9 = vunpack.c.l.b16 %v9447_v48 }
 0x37b   :  { %v12411_v36 = vunpack.c.l.b16 %v14996_v49  ;;  %v12421_v18 = vunpack.c.l.b16 %v14998_v60  ;;  %v1577_v31 = vpack.c.b16 %v1569_v25, %v1569_v25  ;;  %v2580_v23 = vrot.slane %v15000_v46, 2  ;;  %1553 = vst [vmem:[#allocation3 + $0x68] sm:$0x4] %v1545_v39  ;;  %v15003_v51 = vld [vmem:[#allocation176_spill] sm:$0xff]  ;;  %8798 = vmatpush3.bf16.msra.mxu0 %v9442_v20  ;;  %v9446_v57 = vld [vmem:[%s14015_s4 + $0x338] sm:$0xff]   ;;  %v15005_v34 = vld [vmem:[#allocation27_spill] sm:$0xff] }
 0x37c   :  { %1495 = vst [vmem:[#allocation3 + $0x68] sm:$0x1] %v1487_v30  ;;  %v2608_v38 = vrot.slane %v15001_v32, 1  ;;  %v2637_v63 = vrot.slane %v15002_v35, 7  ;;  %v2638_v6 = vrot.slane %v15003_v51, 6  ;;  %8799 = vmatprep.subr.bf16.mxu0 %v9444_v55  ;;  %v1263_v49 = vunpack.c.l.b16 %v9448_v21  ;;  %v15004_v8 = vld [vmem:[#allocation13_spill] sm:$0xff] }
 0x37d   :  { %v2547_v3 = vrot.slane %v12411_v36, 5  ;;  %v2548_v10 = vrot.slane %v12421_v18, 4  ;;  %1585 = vst [vmem:[#allocation3 + $0x68] sm:$0x8] %v1577_v31  ;;  %v2581_v15 = vsel %vm1048_vm13, %v2580_v23, %v2579_v47  ;;  %v2337_v24 = vsel %vm1114_vm8, %v15005_v34, %v15004_v8  ;;  %v15006_v20 = vld [vmem:[#allocation207_spill] sm:$0xff]  ;;  %v9450_v55 = vld [vmem:[%s14015_s4 + $0x440] sm:$0xff]  }
 0x37e   :  { %v2589_v60 = vpack.c.b16 %v2581_v15, %v2581_v15  ;;  %v2609_v48 = vsel %vm1080_vm4, %v15006_v20, %v2608_v38  ;;  %v2639_v44 = vsel %vm1114_vm8, %v2638_v6, %v2637_v63  ;;  %v1274_v21 = vrot.slane %v1263_v49, 2  ;;  %v15008_v23 = vld [vmem:[#allocation304_spill] sm:$0xff]  ;;  %v15009_v38 = vld [vmem:[#allocation306_spill] sm:$0xff]  ;;  %v15010_v6 = vld [vmem:[#allocation307_spill] sm:$0xff] }
 0x37f   :  { %v2549_v29 = vsel %vm1017_vm10, %v2548_v10, %v2547_v3  ;;  %v5299_v30 = vld [vmem:[#allocation3 + $0x120] sm:$0xff]  ;;  %v2615_v39 = vpack.c.b16 %v2609_v48, %v2609_v48  ;;  %v2647_v25 = vpack.c.b16 %v2639_v44, %v2639_v44  ;;  %v1273_v3 = vrot.slane %v1262_v9, 3  ;;  %v15007_v10 = vld [vmem:[#allocation301_spill] sm:$0xff]  ;;  %8800 = vmatpush3.bf16.msra.mxu0 %v9446_v57  ;;  %v9452_v51 = vld [vmem:[%s14015_s4 + $0x400] sm:$0xff]  }
 0x380   :  { %v2557_v0 = vpack.c.b16 %v2549_v29, %v2549_v29  ;;  %7348 = vmatmul.mubr.bf16.gmra.mrb[44].mxu0 %v5299_v30  ;;  %2597 = vst [vmem:[#allocation3 + $0x68] sm:$0x20] %v2589_v60  ;;  %v2341_v31 = vpack.c.b16 %v2337_v24, %v2337_v24  ;;  %v1178_v47 = vrot.slane %v15007_v10, 1  ;;  %v1208_v29 = vrot.slane %v15008_v23, 7  ;;  %v15011_v34 = vld [vmem:[#allocation308_spill] sm:$0xff]  ;;  %v15012_v49 = vld [vmem:[#allocation309_spill] sm:$0xff]  ;;  %8841 = vmatprep.subr.bf16.mxu0 %v9450_v55 }
 0x381   :  { %v1209_v15 = vrot.slane %v15009_v38, 6  ;;  %2623 = vst [vmem:[#allocation3 + $0x68] sm:$0x40] %v2615_v39  ;;  %2655 = vst [vmem:[#allocation3 + $0x68] sm:$0x80] %v2647_v25  ;;  %v1275_v63 = vsel %vm1114_vm8, %v1274_v21, %v1273_v3  ;;  %v1238_v8 = vrot.slane %v15010_v6, 5 }
 0x382   :  { %2565 = vst [vmem:[#allocation3 + $0x68] sm:$0x10] %v2557_v0  ;;  %v1239_v9 = vrot.slane %v15011_v34, 4  ;;  %v1270_v48 = vrot.slane %v15012_v49, 3  ;;  %v1279_v0 = vpack.c.b16 %v1275_v63, %v1275_v63  ;;  %2349 = vst.msk [vmem:[#allocation3 + $0x38] sm:$0x80] %vm2198_vm7, %v2341_v31 }
 0x383   :  { %v15013_v24 = vld [vmem:[#allocation305_spill] sm:$0xff]  ;;  %v1210_v44 = vsel %vm1048_vm13, %v1209_v15, %v1208_v29  ;;  %v15014_v30 = vld [vmem:[#allocation310_spill] sm:$0xff]  ;;  %v15015_v21 = vld [vmem:[#allocation108_spill] sm:$0xff] }
 0x384   :  { %v1179_v60 = vsel %vm1017_vm10, %v15013_v24, %v1178_v47  ;;  %v1271_v39 = vrot.slane %v15014_v30, 2  ;;  %v1216_v25 = vpack.c.b16 %v1210_v44, %v1210_v44  ;;  %v1240_v3 = vsel %vm1080_vm4, %v1239_v9, %v1238_v8  ;;  %1287 = vst.msk [vmem:[#allocation3 + $0x38] sm:$0x8] %vm1136_vm11, %v1279_v0  ;;  %v15016_v31 = vld [vmem:[#allocation48_spill] sm:$0xff]  ;;  %v15017_v6 = vld [vmem:[#allocation109_spill] sm:$0xff]  ;;  %v15019_v8 = vld [vmem:[#allocation174_spill] sm:$0xff] }
 0x385   :  { %v1184_v57 = vpack.c.b16 %v1179_v60, %v1179_v60  ;;  %v2242_v10 = vrot.slane %v15015_v21, 3  ;;  %v1246_v23 = vpack.c.b16 %v1240_v3, %v1240_v3  ;;  %v2243_v63 = vrot.slane %v15016_v31, 2  ;;  %5251 = vst.msk [vmem:[#allocation3 + $0x38] sm:$0xff] %vm5248_vm2, %v14417_v16  ;;  %v15018_v29 = vld [vmem:[#allocation81_spill] sm:$0xff]  ;;  %v15020_v9 = vld [vmem:[#allocation82_spill] sm:$0xff]  ;;  %v15022_v60 = vld [vmem:[#allocation175_spill] sm:$0xff] }
 0x386   :  { %v1272_v38 = vsel %vm1114_vm8, %v1271_v39, %v1270_v48  ;;  %v2272_v47 = vrot.slane %v15017_v6, 1  ;;  %1224 = vst [vmem:[#allocation3 + $0x30] sm:$0x2] %v1216_v25  ;;  %v2300_v15 = vrot.slane %v15018_v29, 7  ;;  %v2301_v34 = vrot.slane %v15019_v8, 6  ;;  %v15021_v48 = vld [vmem:[#allocation202_spill] sm:$0xff] }
 0x387   :  { %1192 = vst [vmem:[#allocation3 + $0x30] sm:$0x1] %v1184_v57  ;;  %v1278_v55 = vpack.c.b16 %v1272_v38, %v1272_v38  ;;  %v2332_v49 = vrot.slane %v15020_v9, 5  ;;  %1254 = vst [vmem:[#allocation3 + $0x30] sm:$0x4] %v1246_v23  ;;  %v2244_v0 = vsel %vm1017_vm10, %v2243_v63, %v2242_v10  ;;  %v2333_v44 = vrot.slane %v15022_v60, 4 }
 0x388   :  { %v2273_v24 = vsel %vm1048_vm13, %v15021_v48, %v2272_v47  ;;  %v15023_v30 = vld [vmem:[#allocation51_spill] sm:$0xff]  ;;  %v15025_v3 = vld [vmem:[#allocation145_spill] sm:$0xff]  ;;  %v2250_v21 = vpack.c.b16 %v2244_v0, %v2244_v0  ;;  %v2302_v31 = vsel %vm1080_vm4, %v2301_v34, %v2300_v15  ;;  %v1506_v63 = vrot.slane %v12372_v26, 1  ;;  %v15029_v26 = vld [vmem:[#allocation158_spill] sm:$0xff] }
 0x389   :  { %v15024_v39 = vrot.slane %v15023_v30, 3  ;;  %v15026_v57 = vrot.slane %v15025_v3, 2  ;;  %1286 = vst [vmem:[#allocation3 + $0x30] sm:$0x8] %v1278_v55  ;;  %v2278_v38 = vpack.c.b16 %v2273_v24, %v2273_v24  ;;  %v5276_v23 = vld [vmem:[#allocation3 + $0x68] sm:$0xff]  ;;  %v2308_v29 = vpack.c.b16 %v2302_v31, %v2302_v31 }
 0x38a   :  { %v2334_v10 = vsel %vm1114_vm8, %v2333_v44, %v2332_v49  ;;  %v1532_v47 = vrot.slane %v14990_v4, 7  ;;  %7437 = vmatprep.mubr.bf16.mxu0 %v5276_v23  ;;  %2258 = vst [vmem:[#allocation3 + $0x30] sm:$0x10] %v2250_v21  ;;  %v1533_v55 = vrot.slane %v12392_v11, 6  ;;  %v1564_v9 = vrot.slane %v14991_v5, 5  ;;  %v15027_v49 = vld [vmem:[#allocation66_spill] sm:$0xff] }
 0x38b   :  { %v1476_v25 = vsel %vm1017_vm10, %v15026_v57, %v15024_v39  ;;  %2286 = vst [vmem:[#allocation3 + $0x30] sm:$0x20] %v2278_v38  ;;  %v2340_v8 = vpack.c.b16 %v2334_v10, %v2334_v10  ;;  %v1565_v15 = vrot.slane %v14992_v53, 4  ;;  %2316 = vst [vmem:[#allocation3 + $0x30] sm:$0x40] %v2308_v29  ;;  %v1507_v34 = vsel %vm1048_vm13, %v12377_v14, %v1506_v63  ;;  %v15031_v23 = vld [vmem:[#allocation63_spill] sm:$0xff] }
 0x38c   :  { %v1486_v6 = vpack.c.b16 %v1476_v25, %v1476_v25  ;;  %v15028_v0 = vrot.slane %v15027_v49, 5  ;;  %v15030_v48 = vrot.slane %v15029_v26, 4  ;;  %v2576_v60 = vrot.slane %v12411_v36, 3  ;;  %v5270_v25 = vld [vmem:[#allocation3 + $0x38] sm:$0xff]  ;;  %v12507_v63 = vld [vmem:[#allocation2 + $0x54] sm:$0x11] }
 0x38d   :  { %v2577_v44 = vrot.slane %v12421_v18, 2  ;;  %2348 = vst [vmem:[#allocation3 + $0x30] sm:$0x80] %v2340_v8  ;;  %v1514_v30 = vpack.c.b16 %v1507_v34, %v1507_v34  ;;  %v1534_v39 = vsel %vm1080_vm4, %v1533_v55, %v1532_v47  ;;  %v1566_v3 = vsel %vm1114_vm8, %v1565_v15, %v1564_v9  ;;  %7290 = vmatprep.mubr.bf16.mxu1 %v5270_v25  ;;  %v15033_v8 = vld [vmem:[#allocation155_spill] sm:$0xff]  ;;  %v15038_v25 = vld [vmem:[#allocation124_spill] sm:$0xff] }
 0x38e   :  { %1494 = vst [vmem:[#allocation3 + $0x60] sm:$0x1] %v1486_v6  ;;  %v2546_v24 = vsel %vm1017_vm10, %v15030_v48, %v15028_v0  ;;  %v1544_v21 = vpack.c.b16 %v1534_v39, %v1534_v39  ;;  %v1576_v14 = vpack.c.b16 %v1566_v3, %v1566_v3  ;;  %v2606_v31 = vrot.slane %v14999_v7, 1  ;;  %v9610_v15 = vld [vmem:[#allocation2 + $0x48] sm:$0x88]  ;;  %v9451_v39 = vld [vmem:[%s14015_s4 + $0x280] sm:$0xff]  }
 0x38f   :  { %v2556_v57 = vpack.c.b16 %v2546_v24, %v2546_v24  ;;  %v2578_v38 = vsel %vm1048_vm13, %v2577_v44, %v2576_v60  ;;  %1522 = vst [vmem:[#allocation3 + $0x60] sm:$0x2] %v1514_v30  ;;  %v2634_v18 = vrot.slane %v15001_v32, 7  ;;  %v2635_v6 = vrot.slane %v15006_v20, 6  ;;  %v15035_v49 = vld [vmem:[#allocation123_spill] sm:$0xff]  ;;  %v15036_v60 = vld [vmem:[#allocation217_spill] sm:$0xff] }
 0x390   :  { %v2588_v36 = vpack.c.b16 %v2578_v38, %v2578_v38  ;;  %v15032_v29 = vcombine.high %v15031_v23, %v15031_v23  ;;  %1552 = vst [vmem:[#allocation3 + $0x60] sm:$0x4] %v1544_v21  ;;  %1584 = vst [vmem:[#allocation3 + $0x60] sm:$0x8] %v1576_v14  ;;  %v2607_v47 = vsel %vm1080_vm4, %v15000_v46, %v2606_v31  ;;  %v3641_v0 = vrot.slane %v15035_v49, 5  ;;  %v15039_v38 = vld [vmem:[#allocation218_spill] sm:$0xff] }
 0x391   :  { %2564 = vst [vmem:[#allocation3 + $0x60] sm:$0x10] %v2556_v57  ;;  %v15034_v55 = vcombine.high %v15033_v8, %v15033_v8  ;;  %v8166_v34 = vcombine.low %v9610_v15, %v9610_v15  ;;  %v2614_v26 = vpack.c.b16 %v2607_v47, %v2607_v47  ;;  %v2636_v48 = vsel %vm1114_vm8, %v2635_v6, %v2634_v18  ;;  %v9453_v23 = vld [vmem:[%s14015_s4 + $0x2c8] sm:$0xff]   ;;  %v15053_v20 = vld [vmem:[#allocation41_spill] sm:$0xff] }
 0x392   :  { %v12505_v10 = vunpack.c.l.b16 %v15032_v29  ;;  %2596 = vst [vmem:[#allocation3 + $0x60] sm:$0x20] %v2588_v36  ;;  %v3642_v44 = vrot.slane %v15036_v60, 4  ;;  %v2646_v30 = vpack.c.b16 %v2636_v48, %v2636_v48  ;;  %v3671_v21 = vrot.slane %v15038_v25, 3  ;;  %v15040_v36 = vld [vmem:[#allocation94_spill] sm:$0xff]  ;;  %v15041_v15 = vld [vmem:[#allocation299_spill] sm:$0xff] }
 0x393   :  { %v12514_v9 = vunpack.c.l.b16 %v15034_v55  ;;  %v12524_v57 = vunpack.c.l.b16 %v8166_v34  ;;  %2622 = vst [vmem:[#allocation3 + $0x60] sm:$0x40] %v2614_v26  ;;  %v3672_v31 = vrot.slane %v15039_v38, 2  ;;  %v3702_v18 = vrot.slane %v15040_v36, 1 }
 0x394   :  { %v3609_v24 = vrot.slane %v12505_v10, 7  ;;  %v3643_v14 = vsel %vm1048_vm13, %v3642_v44, %v3641_v0  ;;  %v8260_v6 = vcombine.high %v12507_v63, %v12507_v63  ;;  %v5269_v29 = vld [vmem:[#allocation3 + $0x30] sm:$0xff]  ;;  %2654 = vst [vmem:[#allocation3 + $0x60] sm:$0x80] %v2646_v30  ;;  %v15042_v34 = vcombine.high %v15041_v15, %v15041_v15 }
 0x395   :  { %v3610_v3 = vrot.slane %v12514_v9, 6  ;;  %15037 = vst [vmem:[#allocation117_spill] sm:$0xff] %v12524_v57  ;;  %v3648_v8 = vrot.slane %v12524_v57, 4  ;;  %v3651_v55 = vpack.c.b16 %v3643_v14, %v3643_v14  ;;  %7291 = vmatmul.mubr.bf16.vlgmr.msra.gmra.mrb[16].mxu1 %v5269_v29  ;;  %v3673_v48 = vsel %vm1080_vm4, %v3672_v31, %v3671_v21  ;;  %v9455_v29 = vld [vmem:[%s14015_s4 + $0x288] sm:$0xff]   ;;  %v15044_v31 = vld [vmem:[#allocation237_spill] sm:$0xff] }
 0x396   :  { %v12540_v0 = vunpack.c.l.b16 %v15042_v34  ;;  %v3703_v44 = vsel %vm1114_vm8, %v12524_v57, %v3702_v18  ;;  %v12545_v16 = vunpack.c.l.b16 %v8260_v6  ;;  %8758 = vmatpush3.bf16.msra.mxu1 %v9451_v39  ;;  %v4699_v18 = vrot.slane %v15044_v31, 7  ;;  %v15045_v6 = vld [vmem:[#allocation271_spill] sm:$0xff]  ;;  %v15046_v39 = vld [vmem:[#allocation238_spill] sm:$0xff] }
 0x397   :  { %v3611_v47 = vsel %vm1017_vm10, %v3610_v3, %v3609_v24  ;;  %v15043_v24 = vrot.slane %v15040_v36, 5  ;;  %3659 = vst [vmem:[#allocation3 + $0x148] sm:$0x2] %v3651_v55  ;;  %v3681_v3 = vpack.c.b16 %v3673_v48, %v3673_v48  ;;  %v3709_v14 = vpack.c.b16 %v3703_v44, %v3703_v44  ;;  %8759 = vmatprep.subr.bf16.mxu1 %v9453_v23  ;;  %v15047_v48 = vld [vmem:[#allocation272_spill] sm:$0xff] }
 0x398   :  { %v3619_v26 = vpack.c.b16 %v3611_v47, %v3611_v47  ;;  %v4670_v15 = vrot.slane %v12540_v0, 1  ;;  %v4700_v47 = vrot.slane %v15045_v6, 6  ;;  %v4729_v34 = vrot.slane %v15046_v39, 5 }
 0x399   :  { %v3649_v30 = vsel %vm1048_vm13, %v3648_v8, %v15043_v24  ;;  %v9457_v8 = vld [vmem:[%s14015_s4 + $0x2d0] sm:$0xff]   ;;  %3689 = vst [vmem:[#allocation3 + $0x148] sm:$0x4] %v3681_v3  ;;  %3717 = vst [vmem:[#allocation3 + $0x148] sm:$0x8] %v3709_v14  ;;  %v4730_v44 = vrot.slane %v15047_v48, 4  ;;  %v15054_v32 = vunpack.c.l.b16 %v15053_v20 }
 0x39a   :  { %3627 = vst [vmem:[#allocation3 + $0x148] sm:$0x1] %v3619_v26  ;;  %v3653_v21 = vpack.c.b16 %v3649_v30, %v3649_v30  ;;  %v4671_v55 = vsel %vm1017_vm10, %v12545_v16, %v4670_v15  ;;  %v15048_v26 = vld [vmem:[#allocation256_spill] sm:$0xff]  ;;  %v15049_v30 = vld [vmem:[#allocation294_spill] sm:$0xff]  ;;  %v4701_v23 = vsel %vm1048_vm13, %v4700_v47, %v4699_v18  ;;  %v9454_v18 = vld [vmem:[%s14015_s4 + $0x448] sm:$0xff]   ;;  %8760 = vmatpush3.bf16.msra.mxu1 %v9455_v29 }
 0x39b   :  { %v4761_v24 = vrot.slane %v15048_v26, 3  ;;  %v4762_v57 = vrot.slane %v15049_v30, 2  ;;  %v4677_v36 = vpack.c.b16 %v4671_v55, %v4671_v55  ;;  %v15050_v3 = vld [vmem:[#allocation18_spill] sm:$0xff]  ;;  %v15052_v15 = vld [vmem:[#allocation20_spill] sm:$0xff]  ;;  %v4709_v53 = vpack.c.b16 %v4701_v23, %v4701_v23  ;;  %8761 = vmatprep.subr.bf16.mxu1 %v9457_v8 }
 0x39c   :  { %3661 = vst.msk [vmem:[#allocation3 + $0x158] sm:$0x2] %vm1070_vm1, %v3653_v21  ;;  %v15051_v14 = vld [vmem:[#allocation38_spill] sm:$0xff]  ;;  %v4463_v26 = vsel %vm1114_vm8, %v15054_v32, %v15052_v15  ;;  %v4731_v30 = vsel %vm1080_vm4, %v4730_v44, %v4729_v34  ;;  %v9459_v55 = vld [vmem:[%s14015_s4 + $0x290] sm:$0xff]   ;;  %v3312_v23 = vrot.slane %v14901_v59, 5  ;;  %v9456_v59 = vld [vmem:[%s14015_s4 + $0x408] sm:$0xff]  }
 0x39d   :  { %v3407_v35 = vsel %vm1114_vm8, %v15051_v14, %v15050_v3  ;;  %v4763_v21 = vsel %vm1114_vm8, %v4762_v57, %v4761_v24  ;;  %v5275_v3 = vld [vmem:[#allocation3 + $0x60] sm:$0xff]  ;;  %4685 = vst [vmem:[#allocation3 + $0x148] sm:$0x10] %v4677_v36  ;;  %v4739_v20 = vpack.c.b16 %v4731_v30, %v4731_v30  ;;  %v4467_v32 = vpack.c.b16 %v4463_v26, %v4463_v26  ;;  %v9461_v57 = vld [vmem:[%s14015_s4 + $0x2d8] sm:$0xff]   ;;  %v15056_v44 = vld [vmem:[#allocation214_spill] sm:$0xff] }
 0x39e   :  { %v3411_v47 = vpack.c.b16 %v3407_v35, %v3407_v35  ;;  %v4771_v14 = vpack.c.b16 %v4763_v21, %v4763_v21  ;;  %7438 = vmatmul.mubr.bf16.vlgmr.msra.gmra.mrb[48].mxu0 %v5275_v3  ;;  %4717 = vst [vmem:[#allocation3 + $0x148] sm:$0x20] %v4709_v53  ;;  %v3313_v35 = vrot.slane %v14902_v41, 4  ;;  %v15055_v29 = vld [vmem:[#allocation120_spill] sm:$0xff]  ;;  %v3345_v36 = vrot.slane %v15056_v44, 2  ;;  %v15057_v24 = vld [vmem:[#allocation90_spill] sm:$0xff]  ;;  %8762 = vmatpush3.bf16.msra.mxu1 %v9459_v55 }
 0x39f   :  { %v3344_v34 = vrot.slane %v15055_v29, 3  ;;  %v3372_v30 = vrot.slane %v15057_v24, 1  ;;  %4747 = vst [vmem:[#allocation3 + $0x148] sm:$0x40] %v4739_v20  ;;  %8842 = vmatpush3.bf16.msra.mxu0 %v9452_v51  ;;  %4475 = vst.msk [vmem:[#allocation3 + $0x118] sm:$0x80] %vm2198_vm7, %v4467_v32  ;;  %8763 = vmatprep.subr.bf16.mxu1 %v9461_v57 }
 0x3a0   :  { %3419 = vst.msk [vmem:[#allocation3 + $0x118] sm:$0x8] %vm1136_vm11, %v3411_v47  ;;  %4779 = vst [vmem:[#allocation3 + $0x148] sm:$0x80] %v4771_v14  ;;  %v15058_v53 = vld [vmem:[#allocation91_spill] sm:$0xff]  ;;  %v15059_v26 = vld [vmem:[#allocation185_spill] sm:$0xff]  ;;  %8843 = vmatprep.subr.bf16.mxu0 %v9454_v18  ;;  %v3314_v51 = vsel %vm1017_vm10, %v3313_v35, %v3312_v23 }
 0x3a1   :  { %v3402_v8 = vrot.slane %v15058_v53, 7  ;;  %v3403_v15 = vrot.slane %v15059_v26, 6  ;;  %v15060_v41 = vld [vmem:[#allocation128_spill] sm:$0xff]  ;;  %v15061_v47 = vld [vmem:[#allocation223_spill] sm:$0xff]  ;;  %v15062_v29 = vmov 0   ;;  %v3346_v20 = vsel %vm1048_vm13, %v3345_v36, %v3344_v34  ;;  %v15064_v32 = vld [vmem:[#allocation129_spill] sm:$0xff] }
 0x3a2   :  { %v4368_v21 = vrot.slane %v15060_v41, 7  ;;  %v4369_v3 = vrot.slane %v15061_v47, 6  ;;  %5252 = vst.msk [vmem:[#allocation3 + $0x118] sm:$0xff] %vm5248_vm2, %v15062_v29  ;;  %v15063_v14 = vld [vmem:[#allocation184_spill] sm:$0xff]  ;;  %v4400_v24 = vrot.slane %v15064_v32, 5  ;;  %v9463_v18 = vld [vmem:[%s14015_s4 + $0x298] sm:$0xff]   ;;  %v3320_v26 = vpack.c.b16 %v3314_v51, %v3314_v51 }
 0x3a3   :  { %v3373_v44 = vsel %vm1080_vm4, %v15063_v14, %v3372_v30  ;;  %v9458_v53 = vld [vmem:[%s14015_s4 + $0x450] sm:$0xff]   ;;  %v3352_v41 = vpack.c.b16 %v3346_v20, %v3346_v20  ;;  %v3404_v23 = vsel %vm1114_vm8, %v3403_v15, %v3402_v8  ;;  %v9465_v35 = vld [vmem:[%s14015_s4 + $0x2e0] sm:$0xff]   ;;  %8844 = vmatpush3.bf16.msra.mxu0 %v9456_v59  ;;  %v15067_v20 = vld [vmem:[#allocation59_spill] sm:$0xff]  ;;  %v3638_v59 = vrot.slane %v12505_v10, 5  ;;  %8764 = vmatpush3.bf16.msra.mxu1 %v9463_v18 }
 0x3a4   :  { %v3378_v47 = vpack.c.b16 %v3373_v44, %v3373_v44  ;;  %v3410_v34 = vpack.c.b16 %v3404_v23, %v3404_v23  ;;  %v4370_v36 = vsel %vm1017_vm10, %v4369_v3, %v4368_v21  ;;  %v15065_v30 = vld [vmem:[#allocation224_spill] sm:$0xff]  ;;  %3328 = vst [vmem:[#allocation3 + $0x110] sm:$0x1] %v3320_v26  ;;  %v4431_v44 = vrot.slane %v15067_v20, 2  ;;  %v15068_v8 = vld [vmem:[#allocation97_spill] sm:$0xff]  ;;  %8845 = vmatprep.subr.bf16.mxu0 %v9458_v53  ;;  %v9467_v10 = vld [vmem:[%s14015_s4 + $0x2a0] sm:$0xff]  }
 0x3a5   :  { %v4401_v14 = vrot.slane %v15065_v30, 4  ;;  %v15066_v55 = vld [vmem:[#allocation96_spill] sm:$0xff]  ;;  %3360 = vst [vmem:[#allocation3 + $0x110] sm:$0x2] %v3352_v41  ;;  %v4376_v51 = vpack.c.b16 %v4370_v36, %v4370_v36  ;;  %v4460_v57 = vrot.slane %v15068_v8, 1  ;;  %v3639_v26 = vrot.slane %v12514_v9, 4  ;;  %8765 = vmatprep.subr.bf16.mxu1 %v9465_v35 }
 0x3a6   :  { %v4430_v32 = vrot.slane %v15066_v55, 3  ;;  %3386 = vst [vmem:[#allocation3 + $0x110] sm:$0x4] %v3378_v47  ;;  %v9611_v15 = vld [vmem:[#allocation2] sm:$0x88]  ;;  %v9460_v23 = vld [vmem:[%s14015_s4 + $0x410] sm:$0xff]  }
 0x3a7   :  { %v8157_v46 = vcombine.low %v9611_v15, %v9611_v15  ;;  %3418 = vst [vmem:[#allocation3 + $0x110] sm:$0x8] %v3410_v34  ;;  %v4402_v21 = vsel %vm1048_vm13, %v4401_v14, %v4400_v24  ;;  %v9612_v3 = vld [vmem:[#allocation2 + $0x38] sm:$0x88]  ;;  %4384 = vst [vmem:[#allocation3 + $0x110] sm:$0x10] %v4376_v51  ;;  %v3640_v8 = vsel %vm1048_vm13, %v3639_v26, %v3638_v59  ;;  %8846 = vmatpush3.bf16.msra.mxu0 %v9460_v23 }
 0x3a8   :  { %v8161_v30 = vcombine.low %v9612_v3, %v9612_v3  ;;  %v9462_v41 = vld [vmem:[%s14015_s4 + $0x458] sm:$0xff]   ;;  %v4408_v47 = vpack.c.b16 %v4402_v21, %v4402_v21  ;;  %v4432_v36 = vsel %vm1080_vm4, %v4431_v44, %v4430_v32  ;;  %v15069_v55 = vld [vmem:[#allocation191_spill] sm:$0xff]  ;;  %v3668_v35 = vrot.slane %v15035_v49, 3  ;;  %v9466_v23 = vld [vmem:[%s14015_s4 + $0x460] sm:$0xff]   ;;  %8766 = vmatpush3.bf16.msra.mxu1 %v9467_v10 }
 0x3a9   :  { %v4461_v34 = vsel %vm1114_vm8, %v15069_v55, %v4460_v57  ;;  %v3598_v24 = vunpack.c.l.b16 %v8157_v46  ;;  %v5304_v9 = vld [vmem:[#allocation3 + $0x148] sm:$0xff]  ;;  %v4438_v53 = vpack.c.b16 %v4432_v36, %v4432_v36  ;;  %v9469_v18 = vld [vmem:[%s14015_s4 + $0x2e8] sm:$0xff]   ;;  %v3650_v46 = vpack.c.b16 %v3640_v8, %v3640_v8  ;;  %8847 = vmatprep.subr.bf16.mxu0 %v9462_v41 }
 0x3aa   :  { %v4466_v14 = vpack.c.b16 %v4461_v34, %v4461_v34  ;;  %v3602_v20 = vunpack.c.l.b16 %v8161_v30  ;;  %7445 = vmatprep.mubr.bf16.mxu0 %v5304_v9  ;;  %v5298_v32 = vld [vmem:[#allocation3 + $0x118] sm:$0xff]  ;;  %4416 = vst [vmem:[#allocation3 + $0x110] sm:$0x20] %v4408_v47  ;;  %v3669_v44 = vrot.slane %v15036_v60, 2  ;;  %v9464_v57 = vld [vmem:[%s14015_s4 + $0x418] sm:$0xff]   ;;  %v3700_v21 = vrot.slane %v15038_v25, 1  ;;  %8767 = vmatprep.subr.bf16.mxu1 %v9469_v18 }
 0x3ab   :  { %v3606_v51 = vrot.slane %v3598_v24, 7  ;;  %7298 = vmatprep.mubr.bf16.mxu1 %v5298_v32  ;;  %4446 = vst [vmem:[#allocation3 + $0x110] sm:$0x40] %v4438_v53  ;;  %v9613_v3 = vld [vmem:[#allocation2 + $0x1c] sm:$0x11]  ;;  %v8259_v59 = vcombine.low %v12507_v63, %v12507_v63  ;;  %v4696_v47 = vrot.slane %v12540_v0, 7  ;;  %8848 = vmatpush3.bf16.msra.mxu0 %v9464_v57 }
 0x3ac   :  { %4474 = vst [vmem:[#allocation3 + $0x110] sm:$0x80] %v4466_v14  ;;  %v3607_v15 = vrot.slane %v3602_v20, 6  ;;  %v8255_v30 = vcombine.low %v9613_v3, %v9613_v3  ;;  %3658 = vst [vmem:[#allocation3 + $0x140] sm:$0x2] %v3650_v46  ;;  %v3670_v26 = vsel %vm1080_vm4, %v3669_v44, %v3668_v35  ;;  %v4697_v36 = vrot.slane %v12545_v16, 6  ;;  %8849 = vmatprep.subr.bf16.mxu0 %v9466_v23 }
 0x3ad   :  { %v4726_v55 = vrot.slane %v15044_v31, 5  ;;  %v9471_v34 = vld [vmem:[%s14015_s4 + $0x2a8] sm:$0xff]   ;;  %v3680_v41 = vpack.c.b16 %v3670_v26, %v3670_v26  ;;  %v3701_v24 = vsel %vm1114_vm8, %v15039_v38, %v3700_v21  ;;  %v9473_v0 = vld [vmem:[%s14015_s4 + $0x2f0] sm:$0xff]   ;;  %v4664_v14 = vunpack.c.l.b16 %v8259_v59  ;;  %v9468_v20 = vld [vmem:[%s14015_s4 + $0x420] sm:$0xff]  }
 0x3ae   :  { %v3608_v63 = vsel %vm1017_vm10, %v3607_v15, %v3606_v51  ;;  %v4660_v9 = vunpack.c.l.b16 %v8255_v30  ;;  %v3708_v53 = vpack.c.b16 %v3701_v24, %v3701_v24  ;;  %v4698_v10 = vsel %vm1048_vm13, %v4697_v36, %v4696_v47  ;;  %v9470_v46 = vld [vmem:[%s14015_s4 + $0x468] sm:$0xff]   ;;  %v15070_v44 = vld [vmem:[#allocation45_spill] sm:$0xff]  ;;  %v15072_v21 = vld [vmem:[#allocation140_spill] sm:$0xff]  ;;  %8768 = vmatpush3.bf16.msra.mxu1 %v9471_v34 }
 0x3af   :  { %v3618_v16 = vpack.c.b16 %v3608_v63, %v3608_v63  ;;  %3688 = vst [vmem:[#allocation3 + $0x140] sm:$0x4] %v3680_v41  ;;  %v4708_v32 = vpack.c.b16 %v4698_v10, %v4698_v10  ;;  %v4727_v51 = vrot.slane %v15045_v6, 4  ;;  %v4758_v18 = vrot.slane %v15046_v39, 3  ;;  %v15074_v59 = vld [vmem:[#allocation101_spill] sm:$0xff]  ;;  %v9475_v26 = vld [vmem:[%s14015_s4 + $0x2b0] sm:$0xff]   ;;  %8769 = vmatprep.subr.bf16.mxu1 %v9473_v0  ;;  %8850 = vmatpush3.bf16.msra.mxu0 %v9468_v20 }
 0x3b0   :  { %v4668_v8 = vrot.slane %v4660_v9, 1  ;;  %3716 = vst [vmem:[#allocation3 + $0x140] sm:$0x8] %v3708_v53  ;;  %v4759_v35 = vrot.slane %v15047_v48, 2  ;;  %v15071_v57 = vcombine.high %v15070_v44, %v15070_v44  ;;  %v15073_v3 = vcombine.high %v15072_v21, %v15072_v21  ;;  %v15075_v63 = vld [vmem:[#allocation196_spill] sm:$0xff]  ;;  %v15076_v24 = vld [vmem:[#allocation197_spill] sm:$0xff]  ;;  %8851 = vmatprep.subr.bf16.mxu0 %v9470_v46 }
 0x3b1   :  { %3626 = vst [vmem:[#allocation3 + $0x140] sm:$0x1] %v3618_v16  ;;  %v1659_v23 = vrot.slane %v15074_v59, 2  ;;  %4716 = vst [vmem:[#allocation3 + $0x140] sm:$0x20] %v4708_v32  ;;  %v4728_v36 = vsel %vm1080_vm4, %v4727_v51, %v4726_v55  ;;  %v1660_v41 = vrot.slane %v15075_v63, 1 }
 0x3b2   :  { %v12680_v15 = vunpack.c.l.b16 %v15071_v57  ;;  %v12685_v30 = vunpack.c.l.b16 %v15073_v3  ;;  %v4669_v47 = vsel %vm1017_vm10, %v4664_v14, %v4668_v8  ;;  %v1688_v9 = vrot.slane %v15076_v24, 7  ;;  %v9477_v16 = vld [vmem:[%s14015_s4 + $0x2f8] sm:$0xff]   ;;  %v9472_v55 = vld [vmem:[%s14015_s4 + $0x428] sm:$0xff]   ;;  %v15077_v32 = vld [vmem:[#allocation102_spill] sm:$0xff]  ;;  %8770 = vmatpush3.bf16.msra.mxu1 %v9475_v26 }
 0x3b3   :  { %v5297_v53 = vld [vmem:[#allocation3 + $0x110] sm:$0xff]  ;;  %v4676_v34 = vpack.c.b16 %v4669_v47, %v4669_v47  ;;  %v4738_v10 = vpack.c.b16 %v4728_v36, %v4728_v36  ;;  %v4760_v44 = vsel %vm1114_vm8, %v4759_v35, %v4758_v18  ;;  %v1661_v8 = vsel %vm1048_vm13, %v1660_v41, %v1659_v23  ;;  %v9474_v18 = vld [vmem:[%s14015_s4 + $0x470] sm:$0xff]   ;;  %v15078_v21 = vld [vmem:[#allocation73_spill] sm:$0xff]  ;;  %8771 = vmatprep.subr.bf16.mxu1 %v9477_v16 }
 0x3b4   :  { %v1627_v57 = vrot.slane %v12680_v15, 4  ;;  %7299 = vmatmul.mubr.bf16.gmra.mrb[20].mxu1 %v5297_v53  ;;  %v4770_v14 = vpack.c.b16 %v4760_v44, %v4760_v44  ;;  %v1628_v0 = vrot.slane %v12685_v30, 3  ;;  %v1689_v51 = vsel %vm1080_vm4, %v1688_v9, %v15077_v32  ;;  %v15079_v47 = vld [vmem:[#allocation165_spill] sm:$0xff]  ;;  %v15080_v41 = vld [vmem:[#allocation56_spill] sm:$0xff]  ;;  %v9481_v26 = vld [vmem:[%s14015_s4 + $0x3c0] sm:$0xff]   ;;  %8852 = vmatpush3.bf16.msra.mxu0 %v9472_v55 }
 0x3b5   :  { %4684 = vst [vmem:[#allocation3 + $0x140] sm:$0x10] %v4676_v34  ;;  %4746 = vst [vmem:[#allocation3 + $0x140] sm:$0x40] %v4738_v10  ;;  %v1669_v20 = vpack.c.b16 %v1661_v8, %v1661_v8  ;;  %v1695_v35 = vpack.c.b16 %v1689_v51, %v1689_v51  ;;  %v1717_v3 = vrot.slane %v15078_v21, 6  ;;  %v1718_v36 = vrot.slane %v15079_v47, 5  ;;  %8853 = vmatprep.subr.bf16.mxu0 %v9474_v18 }
 0x3b6   :  { %v9479_v23 = vld [vmem:[%s14015_s4 + $0x2b8] sm:$0xff]   ;;  %4778 = vst [vmem:[#allocation3 + $0x140] sm:$0x80] %v4770_v14  ;;  %v1629_v46 = vsel %vm1017_vm10, %v1628_v0, %v1627_v57  ;;  %v15081_v9 = vcombine.high %v15080_v41, %v15080_v41  ;;  %v15082_v34 = vld [vmem:[#allocation150_spill] sm:$0xff]  ;;  %v9614_v8 = vld [vmem:[#allocation2 + $0x10] sm:$0x88] }
 0x3b7   :  { %v15083_v10 = vcombine.high %v15082_v34, %v15082_v34  ;;  %v12726_v51 = vcombine.low %v9614_v8, %v9614_v8  ;;  %v1637_v14 = vpack.c.b16 %v1629_v46, %v1629_v46  ;;  %1677 = vst [vmem:[#allocation3 + $0x88] sm:$0x2] %v1669_v20  ;;  %1703 = vst [vmem:[#allocation3 + $0x88] sm:$0x4] %v1695_v35  ;;  %v15085_v0 = vld [vmem:[#allocation113_spill] sm:$0xff]  ;;  %v9476_v34 = vld [vmem:[%s14015_s4 + $0x430] sm:$0xff]   ;;  %8772 = vmatpush3.bf16.msra.mxu1 %v9479_v23 }
 0x3b8   :  { %v12719_v53 = vunpack.c.l.b16 %v15081_v9  ;;  %v1719_v57 = vsel %vm1114_vm8, %v1718_v36, %v1717_v3  ;;  %v2729_v41 = vrot.slane %v15085_v0, 4  ;;  %v15086_v9 = vld [vmem:[#allocation209_spill] sm:$0xff]  ;;  %v15087_v55 = vld [vmem:[#allocation114_spill] sm:$0xff]  ;;  %8813 = vmatprep.subr.bf16.mxu1 %v9481_v26  ;;  %8854 = vmatpush3.bf16.msra.mxu0 %v9476_v34 }
 0x3b9   :  { %v12724_v44 = vunpack.c.l.b16 %v15083_v10  ;;  %15084 = vst [vmem:[#allocation88_spill] sm:$0xff] %v12726_v51  ;;  %v2730_v21 = vrot.slane %v15086_v9, 3  ;;  %v1727_v10 = vpack.c.b16 %v1719_v57, %v1719_v57  ;;  %v14429_v46 = vunpack.c.l.b16 %v12726_v51  ;;  %v9478_v20 = vld [vmem:[%s14015_s4 + $0x478] sm:$0xff]   ;;  %1645 = vst [vmem:[#allocation3 + $0x88] sm:$0x1] %v1637_v14  ;;  %v15088_v36 = vld [vmem:[#allocation210_spill] sm:$0xff] }
 0x3ba   :  { %v2697_v16 = vrot.slane %v12719_v53, 6  ;;  %v2759_v3 = vrot.slane %v15087_v55, 2  ;;  %v2760_v47 = vrot.slane %v15088_v36, 1  ;;  %v2787_v57 = vunpack.c.h.b16 %v12726_v51  ;;  %v15089_v39 = vld [vmem:[#allocation177_spill] sm:$0xff]  ;;  %v15090_v36 = vld [vmem:[#allocation8_spill] sm:$0xff]  ;;  %8855 = vmatprep.subr.bf16.mxu0 %v9478_v20  ;;  %v9482_v34 = vld [vmem:[%s14015_s4 + $0x540] sm:$0xff]  }
 0x3bb   :  { %v2698_v8 = vrot.slane %v12724_v44, 5  ;;  %v2731_v35 = vsel %vm1048_vm13, %v2730_v21, %v2729_v41  ;;  %1735 = vst [vmem:[#allocation3 + $0x88] sm:$0x8] %v1727_v10  ;;  %v2735_v18 = vrot.slane %v14429_v46, 4  ;;  %v2791_v31 = vunpack.c.h.b16 %v15089_v39  ;;  %v9480_v41 = vld [vmem:[%s14015_s4 + $0x438] sm:$0xff]   ;;  %v15137_v55 = vld [vmem:[#allocation134_spill] sm:$0xff] }
 0x3bc   :  { %v2739_v48 = vpack.c.b16 %v2731_v35, %v2731_v35  ;;  %v2761_v21 = vsel %vm1080_vm4, %v2760_v47, %v2759_v3  ;;  %v15091_v23 = vld [vmem:[#allocation21_spill] sm:$0xff]  ;;  %v15094_v35 = vld [vmem:[#allocation180_spill] sm:$0xff]  ;;  %8856 = vmatpush3.bf16.msra.mxu0 %v9480_v41 }
 0x3bd   :  { %v2699_v6 = vsel %vm1017_vm10, %v2698_v8, %v2697_v16  ;;  %v1425_v10 = vsel %vm1114_vm8, %v15091_v23, %v15090_v36  ;;  %v15092_v16 = vld [vmem:[#allocation14_spill] sm:$0xff]  ;;  %v15093_v8 = vld [vmem:[#allocation28_spill] sm:$0xff]  ;;  %v2737_v39 = vsel %vm1048_vm13, %v15094_v35, %v2735_v18  ;;  %v2796_v26 = vrot.slane %v2791_v31, 7  ;;  %v15095_v20 = vld [vmem:[#allocation69_spill] sm:$0xff]  ;;  %8897 = vmatprep.subr.bf16.mxu0 %v9482_v34 }
 0x3be   :  { %v2707_v14 = vpack.c.b16 %v2699_v6, %v2699_v6  ;;  %v2495_v46 = vsel %vm1114_vm8, %v15093_v8, %v15092_v16  ;;  %2747 = vst [vmem:[#allocation3 + $0x88] sm:$0x20] %v2739_v48  ;;  %v2769_v6 = vpack.c.b16 %v2761_v21, %v2761_v21  ;;  %v1429_v47 = vpack.c.b16 %v1425_v10, %v1425_v10  ;;  %v5303_v3 = vld [vmem:[#allocation3 + $0x140] sm:$0xff]  ;;  %v15096_v21 = vld [vmem:[#allocation161_spill] sm:$0xff]  ;;  %v15102_v34 = vld [vmem:[#allocation170_spill] sm:$0xff] }
 0x3bf   :  { %v2741_v51 = vpack.c.b16 %v2737_v39, %v2737_v39  ;;  %v2499_v36 = vpack.c.b16 %v2495_v46, %v2495_v46  ;;  %v1330_v23 = vrot.slane %v12078_v13, 2  ;;  %v1331_v16 = vrot.slane %v14924_v42, 1  ;;  %7446 = vmatmul.mubr.bf16.gmra.mrb[52].mxu0 %v5303_v3  ;;  %v15097_v42 = vld [vmem:[#allocation70_spill] sm:$0xff] }
 0x3c0   :  { %2715 = vst [vmem:[#allocation3 + $0x88] sm:$0x10] %v2707_v14  ;;  %2777 = vst [vmem:[#allocation3 + $0x88] sm:$0x40] %v2769_v6  ;;  %v2797_v48 = vsel %vm1114_vm8, %v2796_v26, %v2787_v57  ;;  %v1360_v31 = vrot.slane %v14926_v33, 7  ;;  %v1388_v18 = vrot.slane %v15095_v20, 6  ;;  %v15100_v3 = vunpack.c.l.b16 %v14934_v56 }
 0x3c1   :  { %1437 = vst.msk [vmem:[#allocation3 + $0x58] sm:$0x8] %vm1136_vm11, %v1429_v47  ;;  %v1389_v10 = vrot.slane %v15096_v21, 5  ;;  %v2803_v39 = vpack.c.b16 %v2797_v48, %v2797_v48  ;;  %v1332_v13 = vsel %vm1017_vm10, %v1331_v16, %v1330_v23  ;;  %v1420_v46 = vrot.slane %v15097_v42, 4  ;;  %v15098_v14 = vld [vmem:[#allocation162_spill] sm:$0xff]  ;;  %v15101_v48 = vld [vmem:[#allocation79_spill] sm:$0xff] }
 0x3c2   :  { %2749 = vst.msk [vmem:[#allocation3 + $0x98] sm:$0x20] %vm2132_vm5, %v2741_v51  ;;  %v1421_v57 = vrot.slane %v15098_v14, 3  ;;  %v1338_v33 = vpack.c.b16 %v1332_v13, %v1332_v13  ;;  %v1361_v8 = vsel %vm1048_vm13, %v1360_v31, %v14925_v50  ;;  %v15099_v51 = vunpack.c.l.b16 %v14931_v2  ;;  %v15104_v21 = vld [vmem:[#allocation80_spill] sm:$0xff]  ;;  %v15106_v56 = vld [vmem:[#allocation171_spill] sm:$0xff] }
 0x3c3   :  { %2507 = vst.msk [vmem:[#allocation3 + $0x58] sm:$0x80] %vm2198_vm7, %v2499_v36  ;;  %v1390_v35 = vsel %vm1080_vm4, %v1389_v10, %v1388_v18  ;;  %2811 = vst [vmem:[#allocation3 + $0x88] sm:$0x80] %v2803_v39  ;;  %v1366_v6 = vpack.c.b16 %v1361_v8, %v1361_v8  ;;  %v2393_v36 = vrot.slane %v15100_v3, 3  ;;  %v2424_v16 = vrot.slane %v12104_v19, 2 }
 0x3c4   :  { %5253 = vst.msk [vmem:[#allocation3 + $0x58] sm:$0xff] %vm5248_vm2, %v15062_v29  ;;  %v2392_v41 = vrot.slane %v15099_v51, 4  ;;  %v1396_v26 = vpack.c.b16 %v1390_v35, %v1390_v35  ;;  %v1422_v47 = vsel %vm1114_vm8, %v1421_v57, %v1420_v46  ;;  %1346 = vst [vmem:[#allocation3 + $0x50] sm:$0x1] %v1338_v33  ;;  %v2425_v50 = vrot.slane %v14938_v52, 1  ;;  %v15108_v52 = vld [vmem:[#allocation52_spill] sm:$0xff] }
 0x3c5   :  { %v1428_v23 = vpack.c.b16 %v1422_v47, %v1422_v47  ;;  %v2448_v31 = vunpack.c.h.b16 %v15101_v48  ;;  %1374 = vst [vmem:[#allocation3 + $0x50] sm:$0x2] %v1366_v6  ;;  %v15103_v20 = vunpack.c.h.b16 %v15102_v34  ;;  %v15105_v10 = vunpack.c.l.b16 %v15104_v21  ;;  %v15110_v57 = vld [vmem:[#allocation146_spill] sm:$0xff]  ;;  %v15112_v48 = vld [vmem:[#allocation67_spill] sm:$0xff] }
 0x3c6   :  { %1404 = vst [vmem:[#allocation3 + $0x50] sm:$0x4] %v1396_v26  ;;  %v2394_v2 = vsel %vm1017_vm10, %v2393_v36, %v2392_v41  ;;  %v15107_v13 = vunpack.c.l.b16 %v15106_v56  ;;  %v2426_v19 = vsel %vm1048_vm13, %v2425_v50, %v2424_v16  ;;  %v15109_v14 = vrot.slane %v15108_v52, 4  ;;  %v12817_v21 = vld [vmem:[#allocation2 + $0x1c] sm:$0x11] }
 0x3c7   :  { %v2458_v18 = vrot.slane %v15103_v20, 7  ;;  %v2490_v39 = vrot.slane %v15105_v10, 6  ;;  %1436 = vst [vmem:[#allocation3 + $0x50] sm:$0x8] %v1428_v23  ;;  %v2400_v46 = vpack.c.b16 %v2394_v2, %v2394_v2  ;;  %v15111_v33 = vrot.slane %v15110_v57, 3 }
 0x3c8   :  { %v2491_v42 = vrot.slane %v15107_v13, 5  ;;  %v1656_v35 = vrot.slane %v12680_v15, 2  ;;  %v2432_v51 = vpack.c.b16 %v2426_v19, %v2426_v19  ;;  %v1657_v36 = vrot.slane %v12685_v30, 1 }
 0x3c9   :  { %v1626_v8 = vsel %vm1017_vm10, %v15111_v33, %v15109_v14  ;;  %v2459_v41 = vsel %vm1080_vm4, %v2458_v18, %v2448_v31  ;;  %2408 = vst [vmem:[#allocation3 + $0x50] sm:$0x10] %v2400_v46  ;;  %v1686_v23 = vrot.slane %v15075_v63, 7  ;;  %v1714_v50 = vrot.slane %v15077_v32, 6  ;;  %v15114_v31 = vld [vmem:[#allocation159_spill] sm:$0xff]  ;;  %v15116_v33 = vld [vmem:[#allocation110_spill] sm:$0xff] }
 0x3ca   :  { %v2492_v6 = vsel %vm1114_vm8, %v2491_v42, %v2490_v39  ;;  %v1636_v26 = vpack.c.b16 %v1626_v8, %v1626_v8  ;;  %v2464_v47 = vpack.c.b16 %v2459_v41, %v2459_v41  ;;  %2440 = vst [vmem:[#allocation3 + $0x50] sm:$0x20] %v2432_v51  ;;  %v1715_v15 = vrot.slane %v15076_v24, 5  ;;  %v5280_v30 = vld [vmem:[#allocation3 + $0x88] sm:$0xff]  ;;  %v15117_v51 = vld [vmem:[#allocation208_spill] sm:$0xff] }
 0x3cb   :  { %v2498_v3 = vpack.c.b16 %v2492_v6, %v2492_v6  ;;  %v5274_v16 = vld [vmem:[#allocation3 + $0x58] sm:$0xff]  ;;  %v15113_v2 = vrot.slane %v15112_v48, 6  ;;  %v15115_v34 = vrot.slane %v15114_v31, 5  ;;  %v2726_v18 = vrot.slane %v12719_v53, 4  ;;  %7535 = vmatprep.mubr.bf16.mxu0 %v5280_v30 }
 0x3cc   :  { %1644 = vst [vmem:[#allocation3 + $0x80] sm:$0x1] %v1636_v26  ;;  %7388 = vmatprep.mubr.bf16.mxu1 %v5274_v16  ;;  %2472 = vst [vmem:[#allocation3 + $0x50] sm:$0x40] %v2464_v47  ;;  %v1658_v10 = vsel %vm1048_vm13, %v1657_v36, %v1656_v35  ;;  %v1687_v39 = vsel %vm1080_vm4, %v1686_v23, %v15074_v59  ;;  %v2727_v13 = vrot.slane %v12724_v44, 3  ;;  %v2756_v53 = vrot.slane %v15085_v0, 2 }
 0x3cd   :  { %v2696_v20 = vsel %vm1017_vm10, %v15115_v34, %v15113_v2  ;;  %2506 = vst [vmem:[#allocation3 + $0x50] sm:$0x80] %v2498_v3  ;;  %v1668_v42 = vpack.c.b16 %v1658_v10, %v1658_v10  ;;  %v1694_v46 = vpack.c.b16 %v1687_v39, %v1687_v39  ;;  %v1716_v19 = vsel %vm1114_vm8, %v1715_v15, %v1714_v50  ;;  %v15119_v26 = vld [vmem:[#allocation230_spill] sm:$0xff]  ;;  %v15122_v50 = vld [vmem:[#allocation263_spill] sm:$0xff] }
 0x3ce   :  { %v2706_v56 = vpack.c.b16 %v2696_v20, %v2696_v20  ;;  %v1726_v52 = vpack.c.b16 %v1716_v19, %v1716_v19  ;;  %v2728_v14 = vsel %vm1048_vm13, %v2727_v13, %v2726_v18  ;;  %v2757_v57 = vrot.slane %v15086_v9, 1  ;;  %v15121_v23 = vld [vmem:[#allocation226_spill] sm:$0xff]  ;;  %v15123_v48 = vld [vmem:[#allocation227_spill] sm:$0xff] }
 0x3cf   :  { %v2786_v8 = vunpack.c.h.b16 %v15116_v33  ;;  %1676 = vst [vmem:[#allocation3 + $0x80] sm:$0x2] %v1668_v42  ;;  %1702 = vst [vmem:[#allocation3 + $0x80] sm:$0x4] %v1694_v46  ;;  %v2738_v35 = vpack.c.b16 %v2728_v14, %v2728_v14  ;;  %v15118_v44 = vunpack.c.h.b16 %v15117_v51  ;;  %v8172_v6 = vcombine.high %v12817_v21, %v12817_v21  ;;  %v9483_v20 = vld [vmem:[%s14015_s4 + $0x380] sm:$0xff]   ;;  %v15125_v42 = vld [vmem:[#allocation248_spill] sm:$0xff] }
 0x3d0   :  { %2714 = vst [vmem:[#allocation3 + $0x80] sm:$0x10] %v2706_v56  ;;  %v15120_v47 = vcombine.high %v15119_v26, %v15119_v26  ;;  %1734 = vst [vmem:[#allocation3 + $0x80] sm:$0x8] %v1726_v52  ;;  %v2758_v36 = vsel %vm1080_vm4, %v2757_v57, %v2756_v53  ;;  %v3787_v16 = vrot.slane %v15121_v23, 6  ;;  %v3788_v15 = vrot.slane %v15122_v50, 5 }
 0x3d1   :  { %v2794_v41 = vrot.slane %v15118_v44, 7  ;;  %v3817_v2 = vrot.slane %v15123_v48, 4  ;;  %2746 = vst [vmem:[#allocation3 + $0x80] sm:$0x20] %v2738_v35  ;;  %v2768_v31 = vpack.c.b16 %v2758_v36, %v2758_v36  ;;  %v12845_v18 = vunpack.c.l.b16 %v8172_v6  ;;  %v15124_v56 = vld [vmem:[#allocation264_spill] sm:$0xff]  ;;  %v9485_v19 = vld [vmem:[%s14015_s4 + $0x3c8] sm:$0xff]  }
 0x3d2   :  { %v12835_v3 = vunpack.c.l.b16 %v15120_v47  ;;  %v3789_v39 = vsel %vm1048_vm13, %v3788_v15, %v3787_v16  ;;  %v3818_v13 = vrot.slane %v15124_v56, 3  ;;  %v3849_v46 = vrot.slane %v15125_v42, 2  ;;  %v15126_v57 = vld [vmem:[#allocation286_spill] sm:$0xff]  ;;  %v15128_v26 = vld [vmem:[#allocation245_spill] sm:$0xff] }
 0x3d3   :  { %v2795_v34 = vsel %vm1114_vm8, %v2794_v41, %v2786_v8  ;;  %2776 = vst [vmem:[#allocation3 + $0x80] sm:$0x40] %v2768_v31  ;;  %v3797_v14 = vpack.c.b16 %v3789_v39, %v3789_v39  ;;  %v3850_v33 = vrot.slane %v15126_v57, 1  ;;  %v9615_v8 = vld [vmem:[#allocation2 + $0x24] sm:$0x22]  ;;  %v4815_v47 = vunpack.c.l.b16 %v15128_v26  ;;  %v15129_v31 = vld [vmem:[#allocation273_spill] sm:$0xff] }
 0x3d4   :  { %v3758_v30 = vrot.slane %v12835_v3, 7  ;;  %v2802_v10 = vpack.c.b16 %v2795_v34, %v2795_v34  ;;  %v5273_v53 = vld [vmem:[#allocation3 + $0x50] sm:$0xff]  ;;  %v12857_v35 = vcombine.low %v9615_v8, %v9615_v8  ;;  %v3819_v44 = vsel %vm1080_vm4, %v3818_v13, %v3817_v2  ;;  %v15127_v41 = vld [vmem:[#allocation303_spill] sm:$0xff] }
 0x3d5   :  { %7389 = vmatmul.mubr.bf16.vlgmr.msra.gmra.mrb[24].mxu1 %v5273_v53  ;;  %v4811_v6 = vunpack.c.l.b16 %v15127_v41  ;;  %3805 = vst [vmem:[#allocation3 + $0x168] sm:$0x2] %v3797_v14  ;;  %v3827_v36 = vpack.c.b16 %v3819_v44, %v3819_v44  ;;  %v3851_v16 = vsel %vm1114_vm8, %v3850_v33, %v3849_v46  ;;  %v4853_v34 = vunpack.c.h.b16 %v15129_v31  ;;  %v15130_v13 = vld [vmem:[#allocation254_spill] sm:$0xff]  ;;  %v15132_v33 = vld [vmem:[#allocation239_spill] sm:$0xff]  ;;  %v15133_v44 = vld [vmem:[#allocation277_spill] sm:$0xff] }
 0x3d6   :  { %v3759_v52 = vsel %vm1017_vm10, %v3758_v30, %v12845_v18  ;;  %2810 = vst [vmem:[#allocation3 + $0x80] sm:$0x80] %v2802_v10  ;;  %8814 = vmatpush3.bf16.msra.mxu1 %v9483_v20  ;;  %v4849_v15 = vunpack.c.h.b16 %v12857_v35  ;;  %v9487_v30 = vld [vmem:[%s14015_s4 + $0x388] sm:$0xff]   ;;  %v3859_v10 = vpack.c.b16 %v3851_v16, %v3851_v16  ;;  %v4822_v39 = vrot.slane %v4815_v47, 1  ;;  %v9489_v20 = vld [vmem:[%s14015_s4 + $0x3d0] sm:$0xff]  }
 0x3d7   :  { %v3765_v51 = vpack.c.b16 %v3759_v52, %v3759_v52  ;;  %v4821_v2 = vrot.slane %v4811_v6, 2  ;;  %v14433_v53 = vunpack.c.l.b16 %v15130_v13  ;;  %8815 = vmatprep.subr.bf16.mxu1 %v9485_v19  ;;  %3835 = vst [vmem:[#allocation3 + $0x168] sm:$0x4] %v3827_v36  ;;  %v4858_v46 = vrot.slane %v4853_v34, 7  ;;  %v15131_v52 = vld [vmem:[#allocation292_spill] sm:$0xff]  ;;  %v15136_v16 = vld [vmem:[#allocation39_spill] sm:$0xff] }
 0x3d8   :  { %v4887_v8 = vrot.slane %v15132_v33, 6  ;;  %v4888_v57 = vrot.slane %v15133_v44, 5  ;;  %3867 = vst [vmem:[#allocation3 + $0x168] sm:$0x8] %v3859_v10  ;;  %v15134_v47 = vld [vmem:[#allocation32_spill] sm:$0xff]  ;;  %v15138_v36 = vld [vmem:[#allocation281_spill] sm:$0xff]  ;;  %v15139_v10 = vunpack.c.l.b16 %v15131_v52 }
 0x3d9   :  { %3773 = vst [vmem:[#allocation3 + $0x168] sm:$0x1] %v3765_v51  ;;  %v4823_v51 = vsel %vm1017_vm10, %v4822_v39, %v4821_v2  ;;  %v4919_v6 = vrot.slane %v14433_v53, 4  ;;  %v15135_v19 = vunpack.c.l.b16 %v15134_v47  ;;  %v4619_v34 = vsel %vm1114_vm8, %v15138_v36, %v15137_v55  ;;  %v9484_v39 = vld [vmem:[%s14015_s4 + $0x500] sm:$0xff]   ;;  %v9491_v47 = vld [vmem:[%s14015_s4 + $0x390] sm:$0xff]   ;;  %v9486_v55 = vld [vmem:[%s14015_s4 + $0x548] sm:$0xff]  }
 0x3da   :  { %v4831_v14 = vpack.c.b16 %v4823_v51, %v4823_v51  ;;  %v4859_v9 = vsel %vm1048_vm13, %v4858_v46, %v4849_v15  ;;  %v4889_v0 = vsel %vm1080_vm4, %v4888_v57, %v4887_v8  ;;  %v4920_v2 = vrot.slane %v15139_v10, 3  ;;  %8816 = vmatpush3.bf16.msra.mxu1 %v9487_v30  ;;  %v9493_v46 = vld [vmem:[%s14015_s4 + $0x3d8] sm:$0xff]  }
 0x3db   :  { %v3557_v42 = vsel %vm1114_vm8, %v15136_v16, %v15135_v19  ;;  %v4865_v19 = vpack.c.b16 %v4859_v9, %v4859_v9  ;;  %v4897_v16 = vpack.c.b16 %v4889_v0, %v4889_v0  ;;  %v4623_v57 = vpack.c.b16 %v4619_v34, %v4619_v34  ;;  %8817 = vmatprep.subr.bf16.mxu1 %v9489_v20 }
 0x3dc   :  { %v3561_v15 = vpack.c.b16 %v3557_v42, %v3557_v42  ;;  %4839 = vst [vmem:[#allocation3 + $0x168] sm:$0x10] %v4831_v14  ;;  %v4921_v30 = vsel %vm1114_vm8, %v4920_v2, %v4919_v6  ;;  %v3462_v51 = vrot.slane %v14960_v62, 6  ;;  %v3463_v9 = vrot.slane %v14961_v61, 5  ;;  %v9488_v62 = vld [vmem:[%s14015_s4 + $0x508] sm:$0xff]  }
 0x3dd   :  { %v5279_v8 = vld [vmem:[#allocation3 + $0x80] sm:$0xff]  ;;  %v3494_v0 = vrot.slane %v14962_v28, 4  ;;  %4873 = vst [vmem:[#allocation3 + $0x168] sm:$0x20] %v4865_v19  ;;  %4905 = vst [vmem:[#allocation3 + $0x168] sm:$0x40] %v4897_v16  ;;  %v4929_v42 = vpack.c.b16 %v4921_v30, %v4921_v30  ;;  %v4506_v34 = vunpack.c.h.b16 %v14967_v27 }
 0x3de   :  { %7536 = vmatmul.mubr.bf16.vlgmr.msra.gmra.mrb[56].mxu0 %v5279_v8  ;;  %3569 = vst.msk [vmem:[#allocation3 + $0x138] sm:$0x8] %vm1136_vm11, %v3561_v15  ;;  %v3495_v20 = vrot.slane %v14963_v37, 3  ;;  %v3524_v14 = vrot.slane %v12206_v17, 2  ;;  %v3525_v6 = vrot.slane %v14964_v54, 1  ;;  %v3464_v61 = vsel %vm1017_vm10, %v3463_v9, %v3462_v51  ;;  %v15140_v28 = vld [vmem:[#allocation187_spill] sm:$0xff]  ;;  %8818 = vmatpush3.bf16.msra.mxu1 %v9491_v47 }
 0x3df   :  { %4631 = vst.msk [vmem:[#allocation3 + $0x138] sm:$0x80] %vm2198_vm7, %v4623_v57  ;;  %8898 = vmatpush3.bf16.msra.mxu0 %v9484_v39  ;;  %v3554_v36 = vrot.slane %v15140_v28, 7  ;;  %v4510_v37 = vunpack.c.h.b16 %v14968_v40  ;;  %v9495_v17 = vld [vmem:[%s14015_s4 + $0x398] sm:$0xff]   ;;  %4937 = vst [vmem:[#allocation3 + $0x168] sm:$0x80] %v4929_v42  ;;  %v3470_v54 = vpack.c.b16 %v3464_v61, %v3464_v61  ;;  %8819 = vmatprep.subr.bf16.mxu1 %v9493_v46 }
 0x3e0   :  { %5254 = vst.msk [vmem:[#allocation3 + $0x138] sm:$0xff] %vm5248_vm2, %v15062_v29  ;;  %8899 = vmatprep.subr.bf16.mxu0 %v9486_v55  ;;  %v3496_v10 = vsel %vm1048_vm13, %v3495_v20, %v3494_v0  ;;  %v3526_v2 = vsel %vm1080_vm4, %v3525_v6, %v3524_v14  ;;  %v4552_v39 = vrot.slane %v14969_v12, 6  ;;  %v9490_v27 = vld [vmem:[%s14015_s4 + $0x550] sm:$0xff]   ;;  %v9497_v55 = vld [vmem:[%s14015_s4 + $0x3e0] sm:$0xff]   ;;  %v4553_v8 = vrot.slane %v14970_v58, 5  ;;  %v15142_v51 = vld [vmem:[#allocation255_spill] sm:$0xff] }
 0x3e1   :  { %v3502_v40 = vpack.c.b16 %v3496_v10, %v3496_v10  ;;  %v3532_v47 = vpack.c.b16 %v3526_v2, %v3526_v2  ;;  %v15141_v19 = vld [vmem:[#allocation92_spill] sm:$0xff]  ;;  %v4516_v15 = vrot.slane %v4510_v37, 7  ;;  %3478 = vst [vmem:[#allocation3 + $0x130] sm:$0x1] %v3470_v54  ;;  %v4582_v12 = vrot.slane %v11327_v43, 4  ;;  %v15143_v0 = vld [vmem:[#allocation293_spill] sm:$0xff] }
 0x3e2   :  { %v3555_v16 = vsel %vm1114_vm8, %v3554_v36, %v15141_v19  ;;  %v4583_v30 = vrot.slane %v11549_v22, 3  ;;  %v4614_v9 = vrot.slane %v15142_v51, 2  ;;  %v4615_v42 = vrot.slane %v15143_v0, 1  ;;  %v9492_v58 = vld [vmem:[%s14015_s4 + $0x510] sm:$0xff]   ;;  %8820 = vmatpush3.bf16.msra.mxu1 %v9495_v17  ;;  %v9494_v61 = vld [vmem:[%s14015_s4 + $0x558] sm:$0xff]   ;;  %v9499_v37 = vld [vmem:[%s14015_s4 + $0x3a0] sm:$0xff]  }
 0x3e3   :  { %v3560_v57 = vpack.c.b16 %v3555_v16, %v3555_v16  ;;  %8900 = vmatpush3.bf16.msra.mxu0 %v9488_v62  ;;  %3510 = vst [vmem:[#allocation3 + $0x130] sm:$0x2] %v3502_v40  ;;  %3540 = vst [vmem:[#allocation3 + $0x130] sm:$0x4] %v3532_v47  ;;  %v4517_v46 = vsel %vm1017_vm10, %v4516_v15, %v4506_v34  ;;  %v8171_v20 = vcombine.low %v12817_v21, %v12817_v21  ;;  %v9616_v6 = vld [vmem:[#allocation2 + $0x54] sm:$0x11] }
 0x3e4   :  { %v4522_v43 = vpack.c.b16 %v4517_v46, %v4517_v46  ;;  %v4554_v22 = vsel %vm1048_vm13, %v4553_v8, %v4552_v39  ;;  %v4584_v14 = vsel %vm1080_vm4, %v4583_v30, %v4582_v12  ;;  %v8175_v62 = vcombine.low %v9616_v6, %v9616_v6  ;;  %8901 = vmatprep.subr.bf16.mxu0 %v9490_v27  ;;  %v9501_v27 = vld [vmem:[%s14015_s4 + $0x3e8] sm:$0xff]   ;;  %v9618_v12 = vld [vmem:[#allocation2 + $0x54] sm:$0x22]  ;;  %v9498_v46 = vld [vmem:[%s14015_s4 + $0x560] sm:$0xff]  }
 0x3e5   :  { %3568 = vst [vmem:[#allocation3 + $0x130] sm:$0x8] %v3560_v57  ;;  %v4560_v28 = vpack.c.b16 %v4554_v22, %v4554_v22  ;;  %v4590_v21 = vpack.c.b16 %v4584_v14, %v4584_v14  ;;  %v4616_v36 = vsel %vm1114_vm8, %v4615_v42, %v4614_v9  ;;  %v3748_v34 = vunpack.c.l.b16 %v8171_v20  ;;  %8821 = vmatprep.subr.bf16.mxu1 %v9497_v55  ;;  %v9617_v57 = vld [vmem:[#allocation2 + $0x1c] sm:$0x22]  ;;  %v9503_v20 = vld [vmem:[%s14015_s4 + $0x3a8] sm:$0xff]   ;;  %v9505_v6 = vld [vmem:[%s14015_s4 + $0x3f0] sm:$0xff]  }
 0x3e6   :  { %4530 = vst [vmem:[#allocation3 + $0x130] sm:$0x10] %v4522_v43  ;;  %v4622_v54 = vpack.c.b16 %v4616_v36, %v4616_v36  ;;  %v3752_v10 = vunpack.c.l.b16 %v8175_v62  ;;  %v3784_v2 = vrot.slane %v12845_v18, 6  ;;  %v3785_v39 = vrot.slane %v12835_v3, 5  ;;  %v5308_v40 = vld [vmem:[#allocation3 + $0x168] sm:$0xff]  ;;  %8822 = vmatpush3.bf16.msra.mxu1 %v9499_v37  ;;  %v9500_v36 = vld [vmem:[%s14015_s4 + $0x520] sm:$0xff]  }
 0x3e7   :  { %v5302_v17 = vld [vmem:[#allocation3 + $0x138] sm:$0xff]  ;;  %4568 = vst [vmem:[#allocation3 + $0x130] sm:$0x20] %v4560_v28  ;;  %4598 = vst [vmem:[#allocation3 + $0x130] sm:$0x40] %v4590_v21  ;;  %v3814_v47 = vrot.slane %v15121_v23, 4  ;;  %8902 = vmatpush3.bf16.msra.mxu0 %v9492_v58  ;;  %7543 = vmatprep.mubr.bf16.mxu0 %v5308_v40  ;;  %v8269_v8 = vcombine.low %v9617_v57, %v9617_v57  ;;  %v8273_v30 = vcombine.low %v9618_v12, %v9618_v12 }
 0x3e8   :  { %7396 = vmatprep.mubr.bf16.mxu1 %v5302_v17  ;;  %v3815_v19 = vrot.slane %v15122_v50, 3  ;;  %v3846_v16 = vrot.slane %v15123_v48, 2  ;;  %v3847_v15 = vrot.slane %v15124_v56, 1  ;;  %v9496_v3 = vld [vmem:[%s14015_s4 + $0x518] sm:$0xff]   ;;  %4630 = vst [vmem:[#allocation3 + $0x130] sm:$0x80] %v4622_v54  ;;  %v3786_v55 = vsel %vm1048_vm13, %v3785_v39, %v3784_v2  ;;  %8903 = vmatprep.subr.bf16.mxu0 %v9494_v61 }
 0x3e9   :  { %v3756_v18 = vrot.slane %v3752_v10, 7  ;;  %v3796_v51 = vpack.c.b16 %v3786_v55, %v3786_v55  ;;  %v14435_v42 = vunpack.c.l.b16 %v12857_v35  ;;  %v4810_v14 = vunpack.c.l.b16 %v8269_v8  ;;  %8823 = vmatprep.subr.bf16.mxu1 %v9501_v27  ;;  %v15144_v39 = vld [vmem:[#allocation46_spill] sm:$0xff]  ;;  %v9509_v57 = vld [vmem:[%s14015_s4 + $0x3f8] sm:$0xff]  }
 0x3ea   :  { %v3816_v9 = vsel %vm1080_vm4, %v3815_v19, %v3814_v47  ;;  %v3848_v0 = vsel %vm1114_vm8, %v3847_v15, %v3846_v16  ;;  %v4814_v61 = vunpack.c.l.b16 %v8273_v30  ;;  %v14434_v28 = vunpack.c.l.b16 %v15129_v31  ;;  %8824 = vmatpush3.bf16.msra.mxu1 %v9503_v20  ;;  %v15146_v19 = vld [vmem:[#allocation141_spill] sm:$0xff] }
 0x3eb   :  { %v3757_v58 = vsel %vm1017_vm10, %v3756_v18, %v3748_v34  ;;  %v3826_v43 = vpack.c.b16 %v3816_v9, %v3816_v9  ;;  %v3858_v22 = vpack.c.b16 %v3848_v0, %v3848_v0  ;;  %3804 = vst [vmem:[#allocation3 + $0x160] sm:$0x2] %v3796_v51  ;;  %v4848_v21 = vunpack.c.h.b16 %v15127_v41  ;;  %8904 = vmatpush3.bf16.msra.mxu0 %v9496_v3  ;;  %v15149_v18 = vld [vmem:[#allocation198_spill] sm:$0xff]  ;;  %v9504_v9 = vld [vmem:[%s14015_s4 + $0x528] sm:$0xff]  }
 0x3ec   :  { %v3764_v62 = vpack.c.b16 %v3757_v58, %v3757_v58  ;;  %v4818_v34 = vrot.slane %v4810_v14, 2  ;;  %v4852_v37 = vunpack.c.h.b16 %v15128_v26  ;;  %v4884_v17 = vrot.slane %v14435_v42, 6  ;;  %8905 = vmatprep.subr.bf16.mxu0 %v9498_v46  ;;  %v9502_v26 = vld [vmem:[%s14015_s4 + $0x568] sm:$0xff]   ;;  %8825 = vmatprep.subr.bf16.mxu1 %v9505_v6 }
 0x3ed   :  { %3834 = vst [vmem:[#allocation3 + $0x160] sm:$0x4] %v3826_v43  ;;  %3866 = vst [vmem:[#allocation3 + $0x160] sm:$0x8] %v3858_v22  ;;  %v4916_v54 = vrot.slane %v15132_v33, 4  ;;  %v4819_v10 = vrot.slane %v4814_v61, 1  ;;  %v15145_v27 = vcombine.high %v15144_v39, %v15144_v39  ;;  %v15147_v16 = vcombine.high %v15146_v19, %v15146_v19 }
 0x3ee   :  { %3772 = vst [vmem:[#allocation3 + $0x160] sm:$0x1] %v3764_v62  ;;  %v4885_v41 = vrot.slane %v14434_v28, 5  ;;  %v4917_v2 = vrot.slane %v15133_v44, 3  ;;  %v9507_v33 = vld [vmem:[%s14015_s4 + $0x3b0] sm:$0xff]   ;;  %v4856_v47 = vrot.slane %v4852_v37, 7 }
 0x3ef   :  { %v12994_v40 = vunpack.c.l.b16 %v15145_v27  ;;  %v13005_v15 = vunpack.c.l.b16 %v15147_v16  ;;  %v15148_v44 = vld [vmem:[#allocation103_spill] sm:$0xff]  ;;  %v1810_v55 = vrot.slane %v15149_v18, 2  ;;  %v5301_v8 = vld [vmem:[#allocation3 + $0x130] sm:$0xff]  ;;  %v4820_v12 = vsel %vm1017_vm10, %v4819_v10, %v4818_v34  ;;  %8906 = vmatpush3.bf16.msra.mxu0 %v9500_v36  ;;  %v9506_v22 = vld [vmem:[%s14015_s4 + $0x570] sm:$0xff]   ;;  %8826 = vmatpush3.bf16.msra.mxu1 %v9507_v33 }
 0x3f0   :  { %v1809_v3 = vrot.slane %v15148_v44, 3  ;;  %v4886_v30 = vsel %vm1080_vm4, %v4885_v41, %v4884_v17  ;;  %v4918_v46 = vsel %vm1114_vm8, %v4917_v2, %v4916_v54  ;;  %7397 = vmatmul.mubr.bf16.gmra.mrb[28].mxu1 %v5301_v8  ;;  %v4830_v0 = vpack.c.b16 %v4820_v12, %v4820_v12  ;;  %v15150_v61 = vld [vmem:[#allocation104_spill] sm:$0xff]  ;;  %8907 = vmatprep.subr.bf16.mxu0 %v9502_v26  ;;  %v9511_v34 = vld [vmem:[%s14015_s4 + $0x3b8] sm:$0xff]   ;;  %v15151_v37 = vld [vmem:[#allocation75_spill] sm:$0xff] }
 0x3f1   :  { %v1777_v51 = vrot.slane %v12994_v40, 5  ;;  %v4857_v20 = vsel %vm1048_vm13, %v4856_v47, %v4848_v21  ;;  %v4896_v58 = vpack.c.b16 %v4886_v30, %v4886_v30  ;;  %v4928_v43 = vpack.c.b16 %v4918_v46, %v4918_v46  ;;  %v15152_v54 = vld [vmem:[#allocation167_spill] sm:$0xff]  ;;  %v15153_v41 = vld [vmem:[#allocation57_spill] sm:$0xff]  ;;  %8827 = vmatprep.subr.bf16.mxu1 %v9509_v57  ;;  %v9513_v27 = vld [vmem:[%s14015_s4 + $0x4c0] sm:$0xff]  }
 0x3f2   :  { %v4864_v14 = vpack.c.b16 %v4857_v20, %v4857_v20  ;;  %v1778_v6 = vrot.slane %v13005_v15, 4  ;;  %v1811_v62 = vsel %vm1048_vm13, %v1810_v55, %v1809_v3  ;;  %v1838_v36 = vrot.slane %v15150_v61, 1  ;;  %4838 = vst [vmem:[#allocation3 + $0x160] sm:$0x10] %v4830_v0  ;;  %v15155_v33 = vld [vmem:[#allocation199_spill] sm:$0xff]  ;;  %v9508_v57 = vld [vmem:[%s14015_s4 + $0x530] sm:$0xff]  }
 0x3f3   :  { %4904 = vst [vmem:[#allocation3 + $0x160] sm:$0x40] %v4896_v58  ;;  %4936 = vst [vmem:[#allocation3 + $0x160] sm:$0x80] %v4928_v43  ;;  %v1819_v21 = vpack.c.b16 %v1811_v62, %v1811_v62  ;;  %v1867_v17 = vrot.slane %v15151_v37, 7  ;;  %v1868_v10 = vrot.slane %v15152_v54, 6  ;;  %v15154_v2 = vcombine.high %v15153_v41, %v15153_v41  ;;  %8908 = vmatpush3.bf16.msra.mxu0 %v9504_v9 }
 0x3f4   :  { %4872 = vst [vmem:[#allocation3 + $0x160] sm:$0x20] %v4864_v14  ;;  %v1779_v26 = vsel %vm1017_vm10, %v1778_v6, %v1777_v51  ;;  %v1839_v47 = vsel %vm1080_vm4, %v15155_v33, %v1838_v36  ;;  %v15156_v19 = vld [vmem:[#allocation151_spill] sm:$0xff]  ;;  %8909 = vmatprep.subr.bf16.mxu0 %v9506_v22  ;;  %v9510_v0 = vld [vmem:[%s14015_s4 + $0x578] sm:$0xff]   ;;  %8828 = vmatpush3.bf16.msra.mxu1 %v9511_v34  ;;  %v15161_v36 = vld [vmem:[#allocation116_spill] sm:$0xff] }
 0x3f5   :  { %v13034_v39 = vunpack.c.l.b16 %v15154_v2  ;;  %v15157_v16 = vcombine.high %v15156_v19, %v15156_v19  ;;  %v9619_v55 = vld [vmem:[#allocation2 + $0x48] sm:$0x88]  ;;  %v1787_v12 = vpack.c.b16 %v1779_v26, %v1779_v26  ;;  %1827 = vst [vmem:[#allocation3 + $0xa8] sm:$0x2] %v1819_v21  ;;  %v1845_v30 = vpack.c.b16 %v1839_v47, %v1839_v47  ;;  %8869 = vmatprep.subr.bf16.mxu1 %v9513_v27  ;;  %v15164_v47 = vld [vmem:[#allocation9_spill] sm:$0xff]  ;;  %v15165_v19 = vld [vmem:[#allocation22_spill] sm:$0xff] }
 0x3f6   :  { %v8096_v8 = vcombine.low %v9619_v55, %v9619_v55  ;;  %v1869_v46 = vsel %vm1114_vm8, %v1868_v10, %v1867_v17  ;;  %v15159_v43 = vld [vmem:[#allocation115_spill] sm:$0xff]  ;;  %v2915_v21 = vrot.slane %v15161_v36, 3  ;;  %v15162_v17 = vld [vmem:[#allocation212_spill] sm:$0xff]  ;;  %v15163_v10 = vld [vmem:[#allocation86_spill] sm:$0xff]  ;;  %v1575_v34 = vsel %vm1114_vm8, %v15165_v19, %v15164_v47 }
 0x3f7   :  { %v13045_v3 = vunpack.c.l.b16 %v15157_v16  ;;  %v2853_v51 = vrot.slane %v13034_v39, 7  ;;  %v1877_v20 = vpack.c.b16 %v1869_v46, %v1869_v46  ;;  %v2885_v14 = vrot.slane %v15159_v43, 5  ;;  %1795 = vst [vmem:[#allocation3 + $0xa8] sm:$0x1] %v1787_v12  ;;  %1853 = vst [vmem:[#allocation3 + $0xa8] sm:$0x4] %v1845_v30  ;;  %8910 = vmatpush3.bf16.msra.mxu0 %v9508_v57 }
 0x3f8   :  { %v13056_v9 = vunpack.c.l.b16 %v8096_v8  ;;  %v15160_v6 = vld [vmem:[#allocation211_spill] sm:$0xff]  ;;  %v2916_v22 = vrot.slane %v15162_v17, 2  ;;  %v2946_v41 = vrot.slane %v15163_v10, 1  ;;  %v15167_v55 = vld [vmem:[#allocation29_spill] sm:$0xff]  ;;  %8911 = vmatprep.subr.bf16.mxu0 %v9510_v0 }
 0x3f9   :  { %v2854_v58 = vrot.slane %v13045_v3, 6  ;;  %v2886_v62 = vrot.slane %v15160_v6, 4  ;;  %1885 = vst [vmem:[#allocation3 + $0xa8] sm:$0x8] %v1877_v20  ;;  %v15166_v16 = vld [vmem:[#allocation15_spill] sm:$0xff]  ;;  %v9512_v57 = vld [vmem:[%s14015_s4 + $0x538] sm:$0xff]  }
 0x3fa   :  { %15158 = vst [vmem:[#allocation182_spill] sm:$0xff] %v13056_v9  ;;  %v2892_v26 = vrot.slane %v13056_v9, 4  ;;  %v2645_v8 = vsel %vm1114_vm8, %v15167_v55, %v15166_v16  ;;  %v2917_v46 = vsel %vm1080_vm4, %v2916_v22, %v2915_v21  ;;  %v2947_v27 = vsel %vm1114_vm8, %v13056_v9, %v2946_v41 }
 0x3fb   :  { %v2855_v2 = vsel %vm1017_vm10, %v2854_v58, %v2853_v51  ;;  %v2887_v30 = vsel %vm1048_vm13, %v2886_v62, %v2885_v14  ;;  %v15168_v51 = vrot.slane %v15163_v10, 5  ;;  %v2925_v47 = vpack.c.b16 %v2917_v46, %v2917_v46  ;;  %v9514_v14 = vld [vmem:[%s14015_s4 + $0x640] sm:$0xff]   ;;  %v5307_v62 = vld [vmem:[#allocation3 + $0x160] sm:$0xff]  ;;  %8912 = vmatpush3.bf16.msra.mxu0 %v9512_v57 }
 0x3fc   :  { %v2863_v12 = vpack.c.b16 %v2855_v2, %v2855_v2  ;;  %v2895_v58 = vpack.c.b16 %v2887_v30, %v2887_v30  ;;  %v2953_v19 = vpack.c.b16 %v2947_v27, %v2947_v27  ;;  %v1579_v22 = vpack.c.b16 %v1575_v34, %v1575_v34  ;;  %7544 = vmatmul.mubr.bf16.gmra.mrb[60].mxu0 %v5307_v62  ;;  %v15173_v57 = vld [vmem:[#allocation112_spill] sm:$0xff] }
 0x3fd   :  { %v2893_v20 = vsel %vm1048_vm13, %v2892_v26, %v15168_v51  ;;  %v2649_v0 = vpack.c.b16 %v2645_v8, %v2645_v8  ;;  %v1480_v41 = vrot.slane %v14990_v4, 3  ;;  %2933 = vst [vmem:[#allocation3 + $0xa8] sm:$0x40] %v2925_v47  ;;  %v1481_v2 = vrot.slane %v12392_v11, 2  ;;  %v15169_v4 = vld [vmem:[#allocation72_spill] sm:$0xff]  ;;  %v15171_v11 = vld [vmem:[#allocation206_spill] sm:$0xff]  ;;  %8953 = vmatprep.subr.bf16.mxu0 %v9514_v14 }
 0x3fe   :  { %2871 = vst [vmem:[#allocation3 + $0xa8] sm:$0x10] %v2863_v12  ;;  %v2897_v21 = vpack.c.b16 %v2893_v20, %v2893_v20  ;;  %2903 = vst [vmem:[#allocation3 + $0xa8] sm:$0x20] %v2895_v58  ;;  %v1510_v26 = vrot.slane %v14991_v5, 1  ;;  %v1538_v16 = vrot.slane %v14993_v45, 7 }
 0x3ff   :  { %2961 = vst [vmem:[#allocation3 + $0xa8] sm:$0x80] %v2953_v19  ;;  %v1539_v55 = vrot.slane %v14994_v1, 6  ;;  %1587 = vst.msk [vmem:[#allocation3 + $0x78] sm:$0x8] %vm1136_vm11, %v1579_v22  ;;  %v1570_v34 = vrot.slane %v15169_v4, 5  ;;  %v1482_v5 = vsel %vm1017_vm10, %v1481_v2, %v1480_v41 }
 0x400   :  { %2905 = vst.msk [vmem:[#allocation3 + $0xb8] sm:$0x20] %vm2132_vm5, %v2897_v21  ;;  %v15170_v8 = vld [vmem:[#allocation164_spill] sm:$0xff]  ;;  %v2550_v30 = vrot.slane %v14999_v7, 5  ;;  %v2551_v46 = vrot.slane %v15171_v11, 4  ;;  %v15172_v45 = vld [vmem:[#allocation195_spill] sm:$0xff]  ;;  %v1488_v20 = vpack.c.b16 %v1482_v5, %v1482_v5 }
 0x401   :  { %2657 = vst.msk [vmem:[#allocation3 + $0x78] sm:$0x80] %vm2198_vm7, %v2649_v0  ;;  %v1571_v12 = vrot.slane %v15170_v8, 4  ;;  %v1511_v1 = vsel %vm1048_vm13, %v15172_v45, %v1510_v26  ;;  %v1540_v27 = vsel %vm1080_vm4, %v1539_v55, %v1538_v16  ;;  %v2582_v51 = vrot.slane %v15173_v57, 3  ;;  %v15174_v21 = vld [vmem:[#allocation207_spill] sm:$0xff]  ;;  %v15176_v26 = vld [vmem:[#allocation84_spill] sm:$0xff] }
 0x402   :  { %5255 = vst.msk [vmem:[#allocation3 + $0x78] sm:$0xff] %vm5248_vm2, %v15062_v29  ;;  %v1516_v58 = vpack.c.b16 %v1511_v1, %v1511_v1  ;;  %v1546_v47 = vpack.c.b16 %v1540_v27, %v1540_v27  ;;  %v2552_v62 = vsel %vm1017_vm10, %v2551_v46, %v2550_v30  ;;  %v2583_v22 = vrot.slane %v15174_v21, 2  ;;  %v15175_v0 = vld [vmem:[#allocation83_spill] sm:$0xff]  ;;  %1496 = vst [vmem:[#allocation3 + $0x70] sm:$0x1] %v1488_v20  ;;  %v15177_v55 = vld [vmem:[#allocation178_spill] sm:$0xff] }
 0x403   :  { %v1572_v7 = vsel %vm1114_vm8, %v1571_v12, %v1570_v34  ;;  %v2610_v41 = vrot.slane %v15175_v0, 1  ;;  %v2558_v2 = vpack.c.b16 %v2552_v62, %v2552_v62  ;;  %v2640_v16 = vrot.slane %v15176_v26, 7  ;;  %v15178_v4 = vld [vmem:[#allocation53_spill] sm:$0xff]  ;;  %v15180_v11 = vld [vmem:[#allocation147_spill] sm:$0xff]  ;;  %v15182_v30 = vld [vmem:[#allocation176_spill] sm:$0xff] }
 0x404   :  { %v1578_v19 = vpack.c.b16 %v1572_v7, %v1572_v7  ;;  %1524 = vst [vmem:[#allocation3 + $0x70] sm:$0x2] %v1516_v58  ;;  %1554 = vst [vmem:[#allocation3 + $0x70] sm:$0x4] %v1546_v47  ;;  %v2641_v14 = vrot.slane %v15177_v55, 6  ;;  %v15179_v8 = vrot.slane %v15178_v4, 5  ;;  %v2584_v12 = vsel %vm1048_vm13, %v2583_v22, %v2582_v51 }
 0x405   :  { %v15181_v5 = vrot.slane %v15180_v11, 4  ;;  %v2611_v46 = vsel %vm1080_vm4, %v15182_v30, %v2610_v41  ;;  %v1806_v1 = vrot.slane %v12994_v40, 3  ;;  %2566 = vst [vmem:[#allocation3 + $0x70] sm:$0x10] %v2558_v2  ;;  %v2590_v57 = vpack.c.b16 %v2584_v12, %v2584_v12  ;;  %v13123_v21 = vld [vmem:[#allocation2 + $0x54] sm:$0x11] }
 0x406   :  { %1586 = vst [vmem:[#allocation3 + $0x70] sm:$0x8] %v1578_v19  ;;  %v5284_v27 = vld [vmem:[#allocation3 + $0xa8] sm:$0xff]  ;;  %v2616_v20 = vpack.c.b16 %v2611_v46, %v2611_v46  ;;  %v2642_v58 = vsel %vm1114_vm8, %v2641_v14, %v2640_v16  ;;  %v1807_v47 = vrot.slane %v13005_v15, 2  ;;  %v1836_v19 = vrot.slane %v15148_v44, 1  ;;  %v15183_v0 = vld [vmem:[#allocation68_spill] sm:$0xff] }
 0x407   :  { %v1776_v34 = vsel %vm1017_vm10, %v15181_v5, %v15179_v8  ;;  %7633 = vmatprep.mubr.bf16.mxu0 %v5284_v27  ;;  %v2648_v7 = vpack.c.b16 %v2642_v58, %v2642_v58  ;;  %v1864_v51 = vrot.slane %v15150_v61, 7  ;;  %v1865_v62 = vrot.slane %v15155_v33, 6  ;;  %2598 = vst [vmem:[#allocation3 + $0x70] sm:$0x20] %v2590_v57  ;;  %v15185_v2 = vld [vmem:[#allocation160_spill] sm:$0xff]  ;;  %v13138_v46 = vpop.f32.mrb[0].mxu1 }
 0x408   :  { %v1786_v45 = vpack.c.b16 %v1776_v34, %v1776_v34  ;;  %2624 = vst [vmem:[#allocation3 + $0x70] sm:$0x40] %v2616_v20  ;;  %v1808_v22 = vsel %vm1048_vm13, %v1807_v47, %v1806_v1  ;;  %v15184_v41 = vrot.slane %v15183_v0, 7  ;;  %v15186_v15 = vrot.slane %v15185_v2, 6  ;;  %15187 = vst [vmem:[#allocation64_spill] sm:$0xff] %v13138_v46  ;;  %v13146_v57 = vpop.f32.mrb[1].mxu1 }
 0x409   :  { %v5278_v40 = vld [vmem:[#allocation3 + $0x78] sm:$0xff]  ;;  %v2882_v16 = vrot.slane %v13034_v39, 5  ;;  %v2883_v55 = vrot.slane %v13045_v3, 4  ;;  %2656 = vst [vmem:[#allocation3 + $0x70] sm:$0x80] %v2648_v7  ;;  %v1818_v14 = vpack.c.b16 %v1808_v22, %v1808_v22  ;;  %v1837_v4 = vsel %vm1080_vm4, %v15149_v18, %v1836_v19  ;;  %v13140_v39 = vpop.f32.mrb[32].mxu0 }
 0x40a   :  { %1794 = vst [vmem:[#allocation3 + $0xa0] sm:$0x1] %v1786_v45  ;;  %v2852_v26 = vsel %vm1017_vm10, %v15186_v15, %v15184_v41  ;;  %7486 = vmatprep.mubr.bf16.mxu1 %v5278_v40  ;;  %v1866_v8 = vsel %vm1114_vm8, %v1865_v62, %v1864_v51  ;;  %v1844_v5 = vpack.c.b16 %v1837_v4, %v1837_v4  ;;  %v2912_v30 = vrot.slane %v15159_v43, 3  ;;  %v13148_v20 = vpop.f32.mrb[33].mxu0  ;;  %v15191_v58 = vld [vmem:[#allocation35_spill] sm:$0xff]  ;;  %v15193_v19 = vld [vmem:[#allocation228_spill] sm:$0xff] }
 0x40b   :  { %v2862_v11 = vpack.c.b16 %v2852_v26, %v2852_v26  ;;  %v1876_v34 = vpack.c.b16 %v1866_v8, %v1866_v8  ;;  %v2884_v12 = vsel %vm1048_vm13, %v2883_v55, %v2882_v16  ;;  %15188 = vst [vmem:[#allocation156_spill] sm:$0xff] %v13140_v39  ;;  %1826 = vst [vmem:[#allocation3 + $0xa0] sm:$0x2] %v1818_v14  ;;  %v2913_v45 = vrot.slane %v15160_v6, 2  ;;  %v15194_v62 = vld [vmem:[#allocation265_spill] sm:$0xff]  ;;  %v15195_v22 = vld [vmem:[#allocation231_spill] sm:$0xff] }
 0x40c   :  { %v2894_v3 = vpack.c.b16 %v2884_v12, %v2884_v12  ;;  %v2944_v1 = vrot.slane %v15161_v36, 1  ;;  %v8190_v27 = vcombine.high %v13123_v21, %v13123_v21  ;;  %15189 = vst [vmem:[#allocation118_spill] sm:$0xff] %v13146_v57  ;;  %15190 = vst [vmem:[#allocation126_spill] sm:$0xff] %v13148_v20  ;;  %v15192_v47 = vcombine.high %v15191_v58, %v15191_v58  ;;  %v15196_v26 = vld [vmem:[#allocation266_spill] sm:$0xff]  ;;  %v9517_v58 = vld [vmem:[%s14015_s4 + $0x4c8] sm:$0xff]  }
 0x40d   :  { %2870 = vst [vmem:[#allocation3 + $0xa0] sm:$0x10] %v2862_v11  ;;  %1852 = vst [vmem:[#allocation3 + $0xa0] sm:$0x4] %v1844_v5  ;;  %v3937_v51 = vrot.slane %v15193_v19, 7  ;;  %v3938_v40 = vrot.slane %v15194_v62, 6  ;;  %v2914_v41 = vsel %vm1080_vm4, %v2913_v45, %v2912_v30 }
 0x40e   :  { %1884 = vst [vmem:[#allocation3 + $0xa0] sm:$0x8] %v1876_v34  ;;  %v13153_v7 = vunpack.c.l.b16 %v15192_v47  ;;  %v3967_v0 = vrot.slane %v15195_v22, 5  ;;  %2902 = vst [vmem:[#allocation3 + $0xa0] sm:$0x20] %v2894_v3  ;;  %v2945_v2 = vsel %vm1114_vm8, %v15162_v17, %v2944_v1  ;;  %v13161_v15 = vunpack.c.l.b16 %v8190_v27  ;;  %v9515_v4 = vld [vmem:[%s14015_s4 + $0x480] sm:$0xff]  }
 0x40f   :  { %v3968_v16 = vrot.slane %v15196_v26, 4  ;;  %v2924_v55 = vpack.c.b16 %v2914_v41, %v2914_v41  ;;  %v2952_v14 = vpack.c.b16 %v2945_v2, %v2945_v2  ;;  %v3939_v11 = vsel %vm1048_vm13, %v3938_v40, %v3937_v51  ;;  %v13169_v5 = vpop.f32.mrb[2].mxu1  ;;  %v13171_v34 = vpop.f32.mrb[34].mxu0  ;;  %v15199_v3 = vld [vmem:[#allocation250_spill] sm:$0xff]  ;;  %v15200_v1 = vld [vmem:[#allocation288_spill] sm:$0xff]  ;;  %v15216_v57 = vld [vmem:[#allocation135_spill] sm:$0xff] }
 0x410   :  { %v3908_v8 = vrot.slane %v13153_v7, 1  ;;  %15197 = vst [vmem:[#allocation220_spill] sm:$0xff] %v13169_v5  ;;  %15198 = vst [vmem:[#allocation60_spill] sm:$0xff] %v13171_v34  ;;  %v3947_v12 = vpack.c.b16 %v3939_v11, %v3939_v11  ;;  %v3999_v45 = vrot.slane %v15199_v3, 3  ;;  %v4000_v27 = vrot.slane %v15200_v1, 2  ;;  %v13179_v47 = vpop.f32.mrb[3].mxu1 }
 0x411   :  { %v3969_v30 = vsel %vm1080_vm4, %v3968_v16, %v3967_v0  ;;  %15201 = vst [vmem:[#allocation152_spill] sm:$0xff] %v13179_v47  ;;  %v13181_v41 = vpop.f32.mrb[35].mxu0  ;;  %v5277_v51 = vld [vmem:[#allocation3 + $0x70] sm:$0xff]  ;;  %2932 = vst [vmem:[#allocation3 + $0xa0] sm:$0x40] %v2924_v55  ;;  %v15203_v11 = vld [vmem:[#allocation300_spill] sm:$0xff] }
 0x412   :  { %15202 = vst [vmem:[#allocation194_spill] sm:$0xff] %v13181_v41  ;;  %2960 = vst [vmem:[#allocation3 + $0xa0] sm:$0x80] %v2952_v14  ;;  %v3909_v40 = vsel %vm1017_vm10, %v13161_v15, %v3908_v8  ;;  %v3977_v2 = vpack.c.b16 %v3969_v30, %v3969_v30  ;;  %v9620_v0 = vld [vmem:[#allocation2 + $0x5c] sm:$0x22]  ;;  %v15204_v53 = vcombine.high %v15203_v11, %v15203_v11  ;;  %7487 = vmatmul.mubr.bf16.vlgmr.msra.gmra.mrb[32].mxu1 %v5277_v51  ;;  %v15205_v41 = vld [vmem:[#allocation236_spill] sm:$0xff] }
 0x413   :  { %v8289_v16 = vcombine.low %v9620_v0, %v9620_v0  ;;  %v3915_v42 = vpack.c.b16 %v3909_v40, %v3909_v40  ;;  %3955 = vst [vmem:[#allocation3 + $0x188] sm:$0x2] %v3947_v12  ;;  %v4001_v34 = vsel %vm1114_vm8, %v4000_v27, %v3999_v45  ;;  %v15206_v55 = vcombine.high %v15205_v41, %v15205_v41  ;;  %v15207_v47 = vld [vmem:[#allocation240_spill] sm:$0xff]  ;;  %v15209_v11 = vld [vmem:[#allocation241_spill] sm:$0xff]  ;;  %v9519_v12 = vld [vmem:[%s14015_s4 + $0x488] sm:$0xff]  }
 0x414   :  { %v13188_v28 = vunpack.c.l.b16 %v15204_v53  ;;  %v5010_v8 = vrot.slane %v15207_v47, 1  ;;  %8870 = vmatpush3.bf16.msra.mxu1 %v9515_v4  ;;  %3985 = vst [vmem:[#allocation3 + $0x188] sm:$0x4] %v3977_v2  ;;  %v4009_v30 = vpack.c.b16 %v4001_v34, %v4001_v34  ;;  %v5037_v51 = vrot.slane %v15209_v11, 7  ;;  %v15210_v27 = vld [vmem:[#allocation278_spill] sm:$0xff]  ;;  %v15211_v40 = vld [vmem:[#allocation259_spill] sm:$0xff] }
 0x415   :  { %v13194_v14 = vunpack.c.l.b16 %v15206_v55  ;;  %v13197_v0 = vunpack.c.l.b16 %v8289_v16  ;;  %3923 = vst [vmem:[#allocation3 + $0x188] sm:$0x1] %v3915_v42  ;;  %v5038_v41 = vrot.slane %v15210_v27, 6  ;;  %v5069_v55 = vrot.slane %v15211_v40, 5  ;;  %v15212_v4 = vld [vmem:[#allocation297_spill] sm:$0xff]  ;;  %8871 = vmatprep.subr.bf16.mxu1 %v9517_v58  ;;  %v9521_v34 = vld [vmem:[%s14015_s4 + $0x4d0] sm:$0xff]  }
 0x416   :  { %v4979_v53 = vrot.slane %v13188_v28, 3  ;;  %v5070_v2 = vrot.slane %v15212_v4, 4  ;;  %4017 = vst [vmem:[#allocation3 + $0x188] sm:$0x8] %v4009_v30  ;;  %v15213_v5 = vld [vmem:[#allocation19_spill] sm:$0xff]  ;;  %v15214_v20 = vld [vmem:[#allocation40_spill] sm:$0xff] }
 0x417   :  { %15208 = vst [vmem:[#allocation119_spill] sm:$0xff] %v13197_v0  ;;  %v4980_v45 = vrot.slane %v13194_v14, 2  ;;  %v5011_v16 = vsel %vm1048_vm13, %v13197_v0, %v5010_v8  ;;  %v15215_v42 = vunpack.c.l.b16 %v15214_v20  ;;  %v15217_v46 = vld [vmem:[#allocation282_spill] sm:$0xff]  ;;  %v3612_v4 = vrot.slane %v15035_v49, 7 }
 0x418   :  { %v4769_v40 = vsel %vm1114_vm8, %v15217_v46, %v15216_v57  ;;  %v5017_v1 = vpack.c.b16 %v5011_v16, %v5011_v16  ;;  %v5039_v3 = vsel %vm1080_vm4, %v5038_v41, %v5037_v51  ;;  %v5071_v30 = vsel %vm1114_vm8, %v5070_v2, %v5069_v55  ;;  %v9516_v8 = vld [vmem:[%s14015_s4 + $0x600] sm:$0xff]   ;;  %v9518_v46 = vld [vmem:[%s14015_s4 + $0x648] sm:$0xff]   ;;  %8872 = vmatpush3.bf16.msra.mxu1 %v9519_v12  ;;  %v15219_v12 = vld [vmem:[#allocation117_spill] sm:$0xff] }
 0x419   :  { %v3707_v39 = vsel %vm1114_vm8, %v15215_v42, %v15213_v5  ;;  %v4981_v58 = vsel %vm1017_vm10, %v4980_v45, %v4979_v53  ;;  %v5047_v9 = vpack.c.b16 %v5039_v3, %v5039_v3  ;;  %v5079_v5 = vpack.c.b16 %v5071_v30, %v5071_v30  ;;  %v5283_v57 = vld [vmem:[#allocation3 + $0xa0] sm:$0xff]  ;;  %8873 = vmatprep.subr.bf16.mxu1 %v9521_v34  ;;  %v15222_v42 = vld [vmem:[#allocation238_spill] sm:$0xff] }
 0x41a   :  { %v4989_v20 = vpack.c.b16 %v4981_v58, %v4981_v58  ;;  %v3711_v49 = vpack.c.b16 %v3707_v39, %v3707_v39  ;;  %5025 = vst [vmem:[#allocation3 + $0x188] sm:$0x20] %v5017_v1  ;;  %v4773_v53 = vpack.c.b16 %v4769_v40, %v4769_v40  ;;  %v3613_v51 = vrot.slane %v15036_v60, 6  ;;  %v9523_v3 = vld [vmem:[%s14015_s4 + $0x490] sm:$0xff]   ;;  %7634 = vmatmul.mubr.bf16.vlgmr.msra.gmra.mrb[64].mxu0 %v5283_v57  ;;  %v15218_v39 = vld [vmem:[#allocation94_spill] sm:$0xff]  ;;  %v15220_v60 = vld [vmem:[#allocation95_spill] sm:$0xff] }
 0x41b   :  { %v3644_v45 = vrot.slane %v15038_v25, 5  ;;  %v3645_v41 = vrot.slane %v15039_v38, 4  ;;  %5055 = vst [vmem:[#allocation3 + $0x188] sm:$0x40] %v5047_v9  ;;  %5087 = vst [vmem:[#allocation3 + $0x188] sm:$0x80] %v5079_v5  ;;  %8954 = vmatpush3.bf16.msra.mxu0 %v9516_v8 }
 0x41c   :  { %4997 = vst [vmem:[#allocation3 + $0x188] sm:$0x10] %v4989_v20  ;;  %3719 = vst.msk [vmem:[#allocation3 + $0x158] sm:$0x8] %vm1136_vm11, %v3711_v49  ;;  %v3674_v1 = vrot.slane %v15218_v39, 3  ;;  %v3675_v40 = vrot.slane %v15219_v12, 2  ;;  %v3614_v34 = vsel %vm1017_vm10, %v3613_v51, %v3612_v4  ;;  %8955 = vmatprep.subr.bf16.mxu0 %v9518_v46  ;;  %8874 = vmatpush3.bf16.msra.mxu1 %v9523_v3 }
 0x41d   :  { %v3704_v55 = vrot.slane %v15220_v60, 1  ;;  %v15221_v25 = vld [vmem:[#allocation237_spill] sm:$0xff]  ;;  %v9520_v9 = vld [vmem:[%s14015_s4 + $0x608] sm:$0xff]   ;;  %4781 = vst.msk [vmem:[#allocation3 + $0x158] sm:$0x80] %vm2198_vm7, %v4773_v53  ;;  %v3646_v16 = vsel %vm1048_vm13, %v3645_v41, %v3644_v45  ;;  %v4702_v58 = vrot.slane %v15222_v42, 7  ;;  %v3620_v5 = vpack.c.b16 %v3614_v34, %v3614_v34 }
 0x41e   :  { %v4672_v2 = vrot.slane %v15221_v25, 1  ;;  %v9525_v38 = vld [vmem:[%s14015_s4 + $0x4d8] sm:$0xff]   ;;  %v15223_v30 = vld [vmem:[#allocation272_spill] sm:$0xff]  ;;  %5256 = vst.msk [vmem:[#allocation3 + $0x158] sm:$0xff] %vm5248_vm2, %v15062_v29  ;;  %v3652_v8 = vpack.c.b16 %v3646_v16, %v3646_v16  ;;  %v3676_v49 = vsel %vm1080_vm4, %v3675_v40, %v3674_v1  ;;  %v15224_v57 = vld [vmem:[#allocation190_spill] sm:$0xff] }
 0x41f   :  { %v4703_v20 = vrot.slane %v15223_v30, 6  ;;  %v3705_v39 = vsel %vm1114_vm8, %v15224_v57, %v3704_v55  ;;  %v9522_v4 = vld [vmem:[%s14015_s4 + $0x650] sm:$0xff]   ;;  %v3682_v53 = vpack.c.b16 %v3676_v49, %v3676_v49  ;;  %v15225_v45 = vld [vmem:[#allocation271_spill] sm:$0xff]  ;;  %v9527_v12 = vld [vmem:[%s14015_s4 + $0x498] sm:$0xff]   ;;  %3628 = vst [vmem:[#allocation3 + $0x150] sm:$0x1] %v3620_v5  ;;  %8875 = vmatprep.subr.bf16.mxu1 %v9525_v38  ;;  %8956 = vmatpush3.bf16.msra.mxu0 %v9520_v9 }
 0x420   :  { %v3710_v51 = vpack.c.b16 %v3705_v39, %v3705_v39  ;;  %v4673_v41 = vsel %vm1017_vm10, %v15225_v45, %v4672_v2  ;;  %3660 = vst [vmem:[#allocation3 + $0x150] sm:$0x2] %v3652_v8  ;;  %v15226_v60 = vld [vmem:[#allocation256_spill] sm:$0xff]  ;;  %v15227_v25 = vld [vmem:[#allocation294_spill] sm:$0xff]  ;;  %v15228_v3 = vld [vmem:[#allocation257_spill] sm:$0xff]  ;;  %v8189_v5 = vcombine.low %v13123_v21, %v13123_v21  ;;  %v3934_v9 = vrot.slane %v13153_v7, 7  ;;  %8957 = vmatprep.subr.bf16.mxu0 %v9522_v4 }
 0x421   :  { %v4704_v46 = vsel %vm1048_vm13, %v4703_v20, %v4702_v58  ;;  %v4678_v1 = vpack.c.b16 %v4673_v41, %v4673_v41  ;;  %v4732_v55 = vrot.slane %v15226_v60, 5  ;;  %v4733_v34 = vrot.slane %v15227_v25, 4  ;;  %v9529_v2 = vld [vmem:[%s14015_s4 + $0x4e0] sm:$0xff]   ;;  %3690 = vst [vmem:[#allocation3 + $0x150] sm:$0x4] %v3682_v53  ;;  %v15229_v42 = vld [vmem:[#allocation295_spill] sm:$0xff]  ;;  %8876 = vmatpush3.bf16.msra.mxu1 %v9527_v12 }
 0x422   :  { %v4710_v40 = vpack.c.b16 %v4704_v46, %v4704_v46  ;;  %3718 = vst [vmem:[#allocation3 + $0x150] sm:$0x8] %v3710_v51  ;;  %v4764_v16 = vrot.slane %v15228_v3, 3  ;;  %v4765_v58 = vrot.slane %v15229_v42, 2  ;;  %v9621_v30 = vld [vmem:[#allocation2 + $0x1c] sm:$0x11]  ;;  %v3902_v41 = vunpack.c.l.b16 %v8189_v5  ;;  %8877 = vmatprep.subr.bf16.mxu1 %v9529_v2 }
 0x423   :  { %v8185_v20 = vcombine.low %v9621_v30, %v9621_v30  ;;  %v9524_v38 = vld [vmem:[%s14015_s4 + $0x610] sm:$0xff]   ;;  %4686 = vst [vmem:[#allocation3 + $0x150] sm:$0x10] %v4678_v1  ;;  %v4734_v8 = vsel %vm1080_vm4, %v4733_v34, %v4732_v55  ;;  %v3935_v49 = vrot.slane %v13161_v15, 6  ;;  %v3964_v57 = vrot.slane %v15193_v19, 5  ;;  %v9526_v39 = vld [vmem:[%s14015_s4 + $0x658] sm:$0xff]  }
 0x424   :  { %4718 = vst [vmem:[#allocation3 + $0x150] sm:$0x20] %v4710_v40  ;;  %v5312_v21 = vld [vmem:[#allocation3 + $0x188] sm:$0xff]  ;;  %v4740_v53 = vpack.c.b16 %v4734_v8, %v4734_v8  ;;  %v4766_v51 = vsel %vm1114_vm8, %v4765_v58, %v4764_v16  ;;  %v9531_v7 = vld [vmem:[%s14015_s4 + $0x4a0] sm:$0xff]   ;;  %v3965_v4 = vrot.slane %v15194_v62, 4  ;;  %v3996_v1 = vrot.slane %v15195_v22, 3  ;;  %8958 = vmatpush3.bf16.msra.mxu0 %v9524_v38 }
 0x425   :  { %v3898_v45 = vunpack.c.l.b16 %v8185_v20  ;;  %7641 = vmatprep.mubr.bf16.mxu0 %v5312_v21  ;;  %v4772_v15 = vpack.c.b16 %v4766_v51, %v4766_v51  ;;  %v3936_v46 = vsel %vm1048_vm13, %v3935_v49, %v3934_v9  ;;  %v9533_v40 = vld [vmem:[%s14015_s4 + $0x4e8] sm:$0xff]   ;;  %v3997_v25 = vrot.slane %v15196_v26, 2  ;;  %v9622_v34 = vld [vmem:[#allocation2 + $0x1c] sm:$0x22]  ;;  %v9623_v42 = vld [vmem:[#allocation2 + $0x54] sm:$0x22]  ;;  %8959 = vmatprep.subr.bf16.mxu0 %v9526_v39 }
 0x426   :  { %v5306_v60 = vld [vmem:[#allocation3 + $0x158] sm:$0xff]  ;;  %4748 = vst [vmem:[#allocation3 + $0x150] sm:$0x40] %v4740_v53  ;;  %v3946_v55 = vpack.c.b16 %v3936_v46, %v3936_v46  ;;  %v8283_v3 = vcombine.low %v9622_v34, %v9622_v34  ;;  %v9528_v16 = vld [vmem:[%s14015_s4 + $0x618] sm:$0xff]   ;;  %v3966_v2 = vsel %vm1080_vm4, %v3965_v4, %v3964_v57  ;;  %v8287_v58 = vcombine.low %v9623_v42, %v9623_v42  ;;  %v9530_v5 = vld [vmem:[%s14015_s4 + $0x660] sm:$0xff]   ;;  %v13305_v38 = vpop.f32.mrb[4].mxu1 }
 0x427   :  { %v3906_v12 = vrot.slane %v3898_v45, 1  ;;  %7494 = vmatprep.mubr.bf16.mxu1 %v5306_v60  ;;  %4780 = vst [vmem:[#allocation3 + $0x150] sm:$0x80] %v4772_v15  ;;  %v5008_v30 = vrot.slane %v13188_v28, 1  ;;  %v5034_v20 = vrot.slane %v15207_v47, 7  ;;  %15230 = vst [vmem:[#allocation213_spill] sm:$0xff] %v13305_v38  ;;  %v3976_v9 = vpack.c.b16 %v3966_v2, %v3966_v2  ;;  %8878 = vmatpush3.bf16.msra.mxu1 %v9531_v7 }
 0x428   :  { %3954 = vst [vmem:[#allocation3 + $0x180] sm:$0x2] %v3946_v55  ;;  %v3998_v49 = vsel %vm1114_vm8, %v3997_v25, %v3996_v1  ;;  %v4968_v57 = vunpack.c.l.b16 %v8283_v3  ;;  %v9535_v28 = vld [vmem:[%s14015_s4 + $0x4a8] sm:$0xff]   ;;  %v13312_v21 = vpop.f32.mrb[5].mxu1  ;;  %v4972_v51 = vunpack.c.l.b16 %v8287_v58  ;;  %8879 = vmatprep.subr.bf16.mxu1 %v9533_v40  ;;  %v5035_v4 = vrot.slane %v13197_v0, 6  ;;  %8960 = vmatpush3.bf16.msra.mxu0 %v9528_v16  ;;  %v9532_v60 = vld [vmem:[%s14015_s4 + $0x620] sm:$0xff]  }
 0x429   :  { %v3907_v8 = vsel %vm1017_vm10, %v3902_v41, %v3906_v12  ;;  %15231 = vst [vmem:[#allocation65_spill] sm:$0xff] %v13312_v21  ;;  %v4008_v53 = vpack.c.b16 %v3998_v49, %v3998_v49  ;;  %v5009_v45 = vsel %vm1048_vm13, %v13194_v14, %v5008_v30  ;;  %v9537_v41 = vld [vmem:[%s14015_s4 + $0x4f0] sm:$0xff]   ;;  %v13319_v15 = vpop.f32.mrb[6].mxu1  ;;  %3984 = vst [vmem:[#allocation3 + $0x180] sm:$0x4] %v3976_v9  ;;  %v5066_v1 = vrot.slane %v15209_v11, 5 }
 0x42a   :  { %v3914_v39 = vpack.c.b16 %v3907_v8, %v3907_v8  ;;  %15232 = vst [vmem:[#allocation157_spill] sm:$0xff] %v13319_v15  ;;  %v4976_v7 = vrot.slane %v4968_v57, 3  ;;  %v5016_v46 = vpack.c.b16 %v5009_v45, %v5009_v45  ;;  %v13326_v14 = vpop.f32.mrb[7].mxu1  ;;  %v4977_v40 = vrot.slane %v4972_v51, 2  ;;  %v15234_v55 = vld [vmem:[#allocation47_spill] sm:$0xff]  ;;  %v15236_v3 = vld [vmem:[#allocation142_spill] sm:$0xff]  ;;  %8961 = vmatprep.subr.bf16.mxu0 %v9530_v5 }
 0x42b   :  { %15233 = vst [vmem:[#allocation125_spill] sm:$0xff] %v13326_v14  ;;  %4016 = vst [vmem:[#allocation3 + $0x180] sm:$0x8] %v4008_v53  ;;  %v5067_v12 = vrot.slane %v15210_v27, 4  ;;  %v15235_v25 = vcombine.high %v15234_v55, %v15234_v55  ;;  %v15237_v2 = vcombine.high %v15236_v3, %v15236_v3  ;;  %v9534_v42 = vld [vmem:[%s14015_s4 + $0x668] sm:$0xff]   ;;  %v5036_v58 = vsel %vm1080_vm4, %v5035_v4, %v5034_v20  ;;  %v15238_v9 = vld [vmem:[#allocation105_spill] sm:$0xff] }
 0x42c   :  { %3922 = vst [vmem:[#allocation3 + $0x180] sm:$0x1] %v3914_v39  ;;  %5024 = vst [vmem:[#allocation3 + $0x180] sm:$0x20] %v5016_v46  ;;  %v9624_v30 = vld [vmem:[#allocation2 + $0x10] sm:$0x88]  ;;  %8880 = vmatpush3.bf16.msra.mxu1 %v9535_v28  ;;  %v4978_v5 = vsel %vm1017_vm10, %v4977_v40, %v4976_v7  ;;  %v5046_v51 = vpack.c.b16 %v5036_v58, %v5036_v58  ;;  %8962 = vmatpush3.bf16.msra.mxu0 %v9532_v60 }
 0x42d   :  { %v13332_v34 = vunpack.c.l.b16 %v15235_v25  ;;  %v13337_v16 = vunpack.c.l.b16 %v15237_v2  ;;  %v8011_v8 = vcombine.low %v9624_v30, %v9624_v30  ;;  %v1959_v49 = vrot.slane %v15238_v9, 4  ;;  %v15239_v57 = vld [vmem:[#allocation200_spill] sm:$0xff]  ;;  %8881 = vmatprep.subr.bf16.mxu1 %v9537_v41  ;;  %v9541_v20 = vld [vmem:[%s14015_s4 + $0x4f8] sm:$0xff]   ;;  %v9536_v7 = vld [vmem:[%s14015_s4 + $0x628] sm:$0xff]   ;;  %8963 = vmatprep.subr.bf16.mxu0 %v9534_v42  ;;  %v13374_v42 = vpop.f32.mrb[36].mxu0 }
 0x42e   :  { %v1960_v39 = vrot.slane %v15239_v57, 3  ;;  %v9539_v53 = vld [vmem:[%s14015_s4 + $0x4b0] sm:$0xff]   ;;  %v5068_v45 = vsel %vm1114_vm8, %v5067_v12, %v5066_v1  ;;  %v5305_v4 = vld [vmem:[#allocation3 + $0x150] sm:$0xff]  ;;  %v4988_v55 = vpack.c.b16 %v4978_v5, %v4978_v5  ;;  %5054 = vst [vmem:[#allocation3 + $0x180] sm:$0x40] %v5046_v51  ;;  %v15242_v12 = vld [vmem:[#allocation201_spill] sm:$0xff] }
 0x42f   :  { %v1927_v46 = vrot.slane %v13332_v34, 6  ;;  %v5078_v25 = vpack.c.b16 %v5068_v45, %v5068_v45  ;;  %v1928_v28 = vrot.slane %v13337_v16, 5  ;;  %v13355_v3 = vunpack.c.l.b16 %v8011_v8  ;;  %7495 = vmatmul.mubr.bf16.gmra.mrb[36].mxu1 %v5305_v4  ;;  %v15241_v1 = vld [vmem:[#allocation106_spill] sm:$0xff]  ;;  %v15243_v58 = vld [vmem:[#allocation169_spill] sm:$0xff]  ;;  %v9538_v8 = vld [vmem:[%s14015_s4 + $0x670] sm:$0xff]   ;;  %15244 = vst [vmem:[#allocation43_spill] sm:$0xff] %v13374_v42 }
 0x430   :  { %v1961_v41 = vsel %vm1048_vm13, %v1960_v39, %v1959_v49  ;;  %v1989_v40 = vrot.slane %v15241_v1, 2  ;;  %v1990_v2 = vrot.slane %v15242_v12, 1  ;;  %v2020_v30 = vrot.slane %v15243_v58, 7  ;;  %4996 = vst [vmem:[#allocation3 + $0x180] sm:$0x10] %v4988_v55  ;;  %8882 = vmatpush3.bf16.msra.mxu1 %v9539_v53  ;;  %v9543_v39 = vld [vmem:[%s14015_s4 + $0x4b8] sm:$0xff]   ;;  %8964 = vmatpush3.bf16.msra.mxu0 %v9536_v7 }
 0x431   :  { %15240 = vst [vmem:[#allocation219_spill] sm:$0xff] %v13355_v3  ;;  %5086 = vst [vmem:[#allocation3 + $0x180] sm:$0x80] %v5078_v25  ;;  %v1929_v60 = vsel %vm1017_vm10, %v1928_v28, %v1927_v46  ;;  %v1965_v5 = vrot.slane %v13355_v3, 4  ;;  %v1969_v51 = vpack.c.b16 %v1961_v41, %v1961_v41  ;;  %v9625_v45 = vld [vmem:[#allocation2 + $0x1c] sm:$0x11]  ;;  %8883 = vmatprep.subr.bf16.mxu1 %v9541_v20  ;;  %8965 = vmatprep.subr.bf16.mxu0 %v9538_v8 }
 0x432   :  { %v13369_v49 = vcombine.high %v9625_v45, %v9625_v45  ;;  %v1937_v4 = vpack.c.b16 %v1929_v60, %v1929_v60  ;;  %v1991_v14 = vsel %vm1080_vm4, %v1990_v2, %v1989_v40  ;;  %v2021_v55 = vsel %vm1114_vm8, %v2020_v30, %v13355_v3  ;;  %v15245_v46 = vld [vmem:[#allocation242_spill] sm:$0xff]  ;;  %v13383_v53 = vpop.f32.mrb[37].mxu0  ;;  %v9540_v20 = vld [vmem:[%s14015_s4 + $0x630] sm:$0xff]   ;;  %v15251_v7 = vld [vmem:[#allocation261_spill] sm:$0xff] }
 0x433   :  { %v2997_v25 = vunpack.c.h.b16 %v15245_v46  ;;  %v9545_v28 = vld [vmem:[%s14015_s4 + $0x5c0] sm:$0xff]   ;;  %15246 = vst [vmem:[#allocation138_spill] sm:$0xff] %v13383_v53  ;;  %v15247_v41 = vrot.slane %v15243_v58, 3  ;;  %1977 = vst [vmem:[#allocation3 + $0xc8] sm:$0x2] %v1969_v51  ;;  %v1999_v60 = vpack.c.b16 %v1991_v14, %v1991_v14  ;;  %v2027_v15 = vpack.c.b16 %v2021_v55, %v2021_v55  ;;  %v13392_v2 = vpop.f32.mrb[38].mxu0 }
 0x434   :  { %v2993_v40 = vunpack.c.h.b16 %v13369_v49  ;;  %15248 = vst [vmem:[#allocation192_spill] sm:$0xff] %v13392_v2  ;;  %1945 = vst [vmem:[#allocation3 + $0xc8] sm:$0x1] %v1937_v4  ;;  %v15249_v58 = vld [vmem:[#allocation222_spill] sm:$0xff]  ;;  %v9542_v14 = vld [vmem:[%s14015_s4 + $0x678] sm:$0xff]   ;;  %8884 = vmatpush3.bf16.msra.mxu1 %v9543_v39  ;;  %v15258_v27 = vunpack.c.l.b16 %v15251_v7  ;;  %8966 = vmatpush3.bf16.msra.mxu0 %v9540_v20 }
 0x435   :  { %v1967_v45 = vsel %vm1048_vm13, %v15247_v41, %v1965_v5  ;;  %v3002_v3 = vrot.slane %v2997_v25, 7  ;;  %v14441_v42 = vunpack.c.l.b16 %v15249_v58  ;;  %v13399_v5 = vpop.f32.mrb[39].mxu0  ;;  %2007 = vst [vmem:[#allocation3 + $0xc8] sm:$0x4] %v1999_v60  ;;  %2035 = vst [vmem:[#allocation3 + $0xc8] sm:$0x8] %v2027_v15  ;;  %8925 = vmatprep.subr.bf16.mxu1 %v9545_v28  ;;  %8967 = vmatprep.subr.bf16.mxu0 %v9542_v14 }
 0x436   :  { %v1971_v30 = vpack.c.b16 %v1967_v45, %v1967_v45  ;;  %15250 = vst [vmem:[#allocation98_spill] sm:$0xff] %v13399_v5  ;;  %v15252_v55 = vld [vmem:[#allocation225_spill] sm:$0xff]  ;;  %v15253_v4 = vld [vmem:[#allocation262_spill] sm:$0xff]  ;;  %v15255_v21 = vld [vmem:[#allocation284_spill] sm:$0xff]  ;;  %v3038_v11 = vrot.slane %v15258_v27, 5  ;;  %v1630_v27 = vrot.slane %v15074_v59, 4 }
 0x437   :  { %v3067_v41 = vrot.slane %v15252_v55, 4  ;;  %v3068_v45 = vrot.slane %v15253_v4, 3  ;;  %v15254_v25 = vld [vmem:[#allocation246_spill] sm:$0xff]  ;;  %v3003_v8 = vsel %vm1017_vm10, %v3002_v3, %v2993_v40  ;;  %v3037_v53 = vrot.slane %v14441_v42, 6  ;;  %v15257_v15 = vld [vmem:[#allocation23_spill] sm:$0xff]  ;;  %v9544_v3 = vld [vmem:[%s14015_s4 + $0x638] sm:$0xff]  }
 0x438   :  { %v3099_v2 = vrot.slane %v15254_v25, 2  ;;  %1979 = vst.msk [vmem:[#allocation3 + $0xd8] sm:$0x2] %vm1070_vm1, %v1971_v30  ;;  %v3100_v5 = vrot.slane %v15255_v21, 1  ;;  %v15256_v60 = vld [vmem:[#allocation10_spill] sm:$0xff]  ;;  %v3009_v38 = vpack.c.b16 %v3003_v8, %v3003_v8  ;;  %v5311_v30 = vld [vmem:[#allocation3 + $0x180] sm:$0xff]  ;;  %8968 = vmatpush3.bf16.msra.mxu0 %v9544_v3 }
 0x439   :  { %v1725_v51 = vsel %vm1114_vm8, %v15257_v15, %v15256_v60  ;;  %v3069_v39 = vsel %vm1080_vm4, %v3068_v45, %v3067_v41  ;;  %v15259_v25 = vld [vmem:[#allocation31_spill] sm:$0xff]  ;;  %v15261_v28 = vld [vmem:[#allocation33_spill] sm:$0xff]  ;;  %7642 = vmatmul.mubr.bf16.gmra.mrb[68].mxu0 %v5311_v30  ;;  %v3039_v20 = vsel %vm1048_vm13, %v3038_v11, %v3037_v53  ;;  %v1631_v45 = vrot.slane %v15075_v63, 3  ;;  %v15263_v11 = vld [vmem:[#allocation74_spill] sm:$0xff] }
 0x43a   :  { %v1729_v40 = vpack.c.b16 %v1725_v51, %v1725_v51  ;;  %v3077_v42 = vpack.c.b16 %v3069_v39, %v3069_v39  ;;  %v3101_v21 = vsel %vm1114_vm8, %v3100_v5, %v3099_v2  ;;  %v15260_v60 = vunpack.c.h.b16 %v15259_v25  ;;  %3017 = vst [vmem:[#allocation3 + $0xc8] sm:$0x10] %v3009_v38  ;;  %v15262_v5 = vld [vmem:[#allocation165_spill] sm:$0xff]  ;;  %v15310_v0 = vld [vmem:[#allocation131_spill] sm:$0xff] }
 0x43b   :  { %v3109_v41 = vpack.c.b16 %v3101_v21, %v3101_v21  ;;  %v3047_v15 = vpack.c.b16 %v3039_v20, %v3039_v20  ;;  %v1662_v2 = vrot.slane %v15077_v32, 2  ;;  %v1663_v14 = vrot.slane %v15076_v24, 1  ;;  %v15264_v21 = vld [vmem:[#allocation166_spill] sm:$0xff]  ;;  %v15265_v39 = vld [vmem:[#allocation113_spill] sm:$0xff] }
 0x43c   :  { %v2801_v8 = vsel %vm1114_vm8, %v15261_v28, %v15260_v60  ;;  %1737 = vst.msk [vmem:[#allocation3 + $0x98] sm:$0x8] %vm1136_vm11, %v1729_v40  ;;  %3085 = vst [vmem:[#allocation3 + $0xc8] sm:$0x40] %v3077_v42  ;;  %v1690_v25 = vrot.slane %v15262_v5, 7  ;;  %v1632_v59 = vsel %vm1017_vm10, %v1631_v45, %v1630_v27  ;;  %v1720_v38 = vrot.slane %v15263_v11, 6 }
 0x43d   :  { %v2805_v51 = vpack.c.b16 %v2801_v8, %v2801_v8  ;;  %3117 = vst [vmem:[#allocation3 + $0xc8] sm:$0x80] %v3109_v41  ;;  %v1721_v53 = vrot.slane %v15264_v21, 5  ;;  %v2700_v63 = vrot.slane %v15265_v39, 6  ;;  %3055 = vst [vmem:[#allocation3 + $0xc8] sm:$0x20] %v3047_v15  ;;  %v1638_v32 = vpack.c.b16 %v1632_v59, %v1632_v59 }
 0x43e   :  { %v1664_v24 = vsel %vm1048_vm13, %v1663_v14, %v1662_v2  ;;  %v15266_v42 = vld [vmem:[#allocation73_spill] sm:$0xff]  ;;  %v15268_v27 = vld [vmem:[#allocation114_spill] sm:$0xff]  ;;  %v15270_v5 = vld [vmem:[#allocation88_spill] sm:$0xff] }
 0x43f   :  { %2813 = vst.msk [vmem:[#allocation3 + $0x98] sm:$0x80] %vm2198_vm7, %v2805_v51  ;;  %v1691_v3 = vsel %vm1080_vm4, %v1690_v25, %v15266_v42  ;;  %v15267_v40 = vld [vmem:[#allocation209_spill] sm:$0xff]  ;;  %v1670_v60 = vpack.c.b16 %v1664_v24, %v1664_v24  ;;  %v1722_v8 = vsel %vm1114_vm8, %v1721_v53, %v1720_v38  ;;  %v2732_v20 = vrot.slane %v15268_v27, 4  ;;  %1646 = vst [vmem:[#allocation3 + $0x90] sm:$0x1] %v1638_v32 }
 0x440   :  { %5257 = vst.msk [vmem:[#allocation3 + $0x98] sm:$0xff] %vm5248_vm2, %v15062_v29  ;;  %v2701_v30 = vrot.slane %v15267_v40, 5  ;;  %v1696_v28 = vpack.c.b16 %v1691_v3, %v1691_v3  ;;  %v1728_v41 = vpack.c.b16 %v1722_v8, %v1722_v8  ;;  %v15269_v45 = vld [vmem:[#allocation210_spill] sm:$0xff]  ;;  %v15271_v59 = vunpack.c.l.b16 %v15270_v5  ;;  %v15272_v25 = vld [vmem:[#allocation177_spill] sm:$0xff]  ;;  %v15275_v38 = vld [vmem:[#allocation179_spill] sm:$0xff] }
 0x441   :  { %v2733_v15 = vrot.slane %v15269_v45, 3  ;;  %1678 = vst [vmem:[#allocation3 + $0x90] sm:$0x2] %v1670_v60  ;;  %v15273_v11 = vunpack.c.l.b16 %v15272_v25  ;;  %v15274_v39 = vld [vmem:[#allocation85_spill] sm:$0xff]  ;;  %v15276_v53 = vunpack.c.h.b16 %v15275_v38  ;;  %v1956_v60 = vrot.slane %v13332_v34, 4 }
 0x442   :  { %v2702_v51 = vsel %vm1017_vm10, %v2701_v30, %v2700_v63  ;;  %v2762_v2 = vrot.slane %v15271_v59, 2  ;;  %1704 = vst [vmem:[#allocation3 + $0x90] sm:$0x4] %v1696_v28  ;;  %v2788_v24 = vunpack.c.h.b16 %v15274_v39  ;;  %1736 = vst [vmem:[#allocation3 + $0x90] sm:$0x8] %v1728_v41  ;;  %v15277_v63 = vld [vmem:[#allocation55_spill] sm:$0xff] }
 0x443   :  { %v2708_v14 = vpack.c.b16 %v2702_v51, %v2702_v51  ;;  %v2763_v21 = vrot.slane %v15273_v11, 1  ;;  %v2798_v42 = vrot.slane %v15276_v53, 7  ;;  %v2734_v32 = vsel %vm1048_vm13, %v2733_v15, %v2732_v20  ;;  %v15279_v40 = vld [vmem:[#allocation149_spill] sm:$0xff]  ;;  %v15281_v39 = vld [vmem:[#allocation302_spill] sm:$0xff] }
 0x444   :  { %v15278_v3 = vrot.slane %v15277_v63, 6  ;;  %v15280_v30 = vrot.slane %v15279_v40, 5  ;;  %v1957_v28 = vrot.slane %v13337_v16, 3  ;;  %v2740_v27 = vpack.c.b16 %v2734_v32, %v2734_v32  ;;  %v5288_v25 = vld [vmem:[#allocation3 + $0xc8] sm:$0xff] }
 0x445   :  { %2716 = vst [vmem:[#allocation3 + $0x90] sm:$0x10] %v2708_v14  ;;  %v2764_v51 = vsel %vm1080_vm4, %v2763_v21, %v2762_v2  ;;  %v2799_v45 = vsel %vm1114_vm8, %v2798_v42, %v2788_v24  ;;  %v1986_v15 = vrot.slane %v15238_v9, 2  ;;  %v1987_v16 = vrot.slane %v15239_v57, 1  ;;  %v15282_v2 = vld [vmem:[#allocation244_spill] sm:$0xff]  ;;  %7731 = vmatprep.mubr.bf16.mxu0 %v5288_v25 }
 0x446   :  { %v1926_v8 = vsel %vm1017_vm10, %v15280_v30, %v15278_v3  ;;  %v2770_v41 = vpack.c.b16 %v2764_v51, %v2764_v51  ;;  %v2804_v59 = vpack.c.b16 %v2799_v45, %v2799_v45  ;;  %v1958_v20 = vsel %vm1048_vm13, %v1957_v28, %v1956_v60  ;;  %2748 = vst [vmem:[#allocation3 + $0x90] sm:$0x20] %v2740_v27 }
 0x447   :  { %v1936_v5 = vpack.c.b16 %v1926_v8, %v1926_v8  ;;  %v5282_v11 = vld [vmem:[#allocation3 + $0x98] sm:$0xff]  ;;  %v1968_v34 = vpack.c.b16 %v1958_v20, %v1958_v20  ;;  %v2018_v14 = vrot.slane %v15242_v12, 7  ;;  %v15283_v21 = vrot.slane %v15282_v2, 7 }
 0x448   :  { %7584 = vmatprep.mubr.bf16.mxu1 %v5282_v11  ;;  %2778 = vst [vmem:[#allocation3 + $0x90] sm:$0x40] %v2770_v41  ;;  %2812 = vst [vmem:[#allocation3 + $0x90] sm:$0x80] %v2804_v59  ;;  %v15284_v53 = vunpack.c.l.b16 %v13369_v49  ;;  %v15285_v32 = vunpack.c.l.b16 %v15245_v46  ;;  %v15286_v3 = vunpack.c.l.b16 %v15249_v58  ;;  %v1988_v30 = vsel %vm1080_vm4, %v1987_v16, %v1986_v15  ;;  %v9626_v59 = vld [vmem:[#allocation2 + $0x24] sm:$0x22] }
 0x449   :  { %1944 = vst [vmem:[#allocation3 + $0xc0] sm:$0x1] %v1936_v5  ;;  %v3001_v24 = vsel %vm1017_vm10, %v15283_v21, %v15281_v39  ;;  %1976 = vst [vmem:[#allocation3 + $0xc0] sm:$0x2] %v1968_v34  ;;  %v2019_v8 = vsel %vm1114_vm8, %v2018_v14, %v15241_v1  ;;  %v15287_v60 = vunpack.c.l.b16 %v15251_v7  ;;  %v3096_v27 = vrot.slane %v15252_v55, 2  ;;  %v15288_v15 = vld [vmem:[#allocation4_spill] sm:$0xff] }
 0x44a   :  { %v3008_v38 = vpack.c.b16 %v3001_v24, %v3001_v24  ;;  %v3034_v42 = vrot.slane %v15284_v53, 6  ;;  %v3035_v63 = vrot.slane %v15285_v32, 5  ;;  %v3064_v40 = vrot.slane %v15286_v3, 4  ;;  %v15290_v14 = vld [vmem:[#allocation233_spill] sm:$0xff]  ;;  %v15292_v21 = vld [vmem:[#allocation267_spill] sm:$0xff] }
 0x44b   :  { %v3065_v28 = vrot.slane %v15287_v60, 3  ;;  %v1998_v51 = vpack.c.b16 %v1988_v30, %v1988_v30  ;;  %v2026_v49 = vpack.c.b16 %v2019_v8, %v2019_v8  ;;  %v3097_v45 = vrot.slane %v15253_v4, 1  ;;  %v5091_v53 = vld [vmem:[#allocation2 + $0x24] sm:$0x44]  ;;  %v15294_v30 = vld [vmem:[#allocation232_spill] sm:$0xff] }
 0x44c   :  { %3016 = vst [vmem:[#allocation3 + $0xc0] sm:$0x10] %v3008_v38  ;;  %v3036_v46 = vsel %vm1048_vm13, %v3035_v63, %v3034_v42  ;;  %v8201_v20 = vcombine.low %v9626_v59, %v9626_v59  ;;  %v15289_v25 = vcombine.high %v15288_v15, %v15288_v15  ;;  %v15291_v39 = vcombine.high %v15290_v14, %v15290_v14  ;;  %v13498_v38 = vld [vmem:[#allocation2 + $0x1c] sm:$0x44]  ;;  %v13500_v42 = vpop.f32.mrb[8].mxu1  ;;  %v9555_v59 = vld [vmem:[%s14015_s4 + $0x5c8] sm:$0xff]  }
 0x44d   :  { %v3046_v5 = vpack.c.b16 %v3036_v46, %v3036_v46  ;;  %v3066_v41 = vsel %vm1080_vm4, %v3065_v28, %v3064_v40  ;;  %2006 = vst [vmem:[#allocation3 + $0xc0] sm:$0x4] %v1998_v51  ;;  %2034 = vst [vmem:[#allocation3 + $0xc0] sm:$0x8] %v2026_v49  ;;  %v3098_v16 = vsel %vm1114_vm8, %v3097_v45, %v3096_v27  ;;  %v4090_v24 = vrot.slane %v15292_v21, 7  ;;  %v9546_v63 = vld [vmem:[%s14015_s4 + $0x580] sm:$0xff]  }
 0x44e   :  { %v13489_v11 = vunpack.c.l.b16 %v15289_v25  ;;  %v3076_v34 = vpack.c.b16 %v3066_v41, %v3066_v41  ;;  %v13495_v2 = vunpack.c.l.b16 %v15291_v39  ;;  %15293 = vst [vmem:[#allocation193_spill] sm:$0xff] %v13500_v42  ;;  %v3108_v32 = vpack.c.b16 %v3098_v16, %v3098_v16  ;;  %v13509_v60 = vld [vmem:[#allocation2 + $0x54] sm:$0x44]  ;;  %v13511_v28 = vpop.f32.mrb[9].mxu1 }
 0x44f   :  { %3054 = vst [vmem:[#allocation3 + $0xc0] sm:$0x20] %v3046_v5  ;;  %v13505_v3 = vunpack.c.l.b16 %v8201_v20  ;;  %v4117_v8 = vrot.slane %v15294_v30, 6  ;;  %15295 = vst [vmem:[#allocation49_spill] sm:$0xff] %v13511_v28  ;;  %v15296_v51 = vld [vmem:[#allocation269_spill] sm:$0xff]  ;;  %v15297_v46 = vld [vmem:[#allocation252_spill] sm:$0xff]  ;;  %v8298_v16 = vcombine.high %v13498_v38, %v13498_v38  ;;  %v13526_v14 = vcombine.low %v5091_v53, %v5091_v53 }
 0x450   :  { %v4059_v40 = vrot.slane %v13489_v11, 2  ;;  %3084 = vst [vmem:[#allocation3 + $0xc0] sm:$0x40] %v3076_v34  ;;  %v4060_v27 = vrot.slane %v13495_v2, 1  ;;  %v4118_v49 = vrot.slane %v15296_v51, 5  ;;  %v4149_v45 = vrot.slane %v15297_v46, 4 }
 0x451   :  { %v15298_v5 = vld [vmem:[#allocation290_spill] sm:$0xff]  ;;  %v13520_v20 = vpop.f32.mrb[10].mxu1  ;;  %3116 = vst [vmem:[#allocation3 + $0xc0] sm:$0x80] %v3108_v32  ;;  %v4091_v25 = vsel %vm1048_vm13, %v4090_v24, %v13505_v3  ;;  %v13528_v39 = vcombine.high %v5091_v53, %v5091_v53  ;;  %v5092_v46 = vld [vmem:[#allocation2 + $0x2c] sm:$0x44]  ;;  %v8302_v53 = vcombine.high %v13509_v60, %v13509_v60 }
 0x452   :  { %v4150_v41 = vrot.slane %v15298_v5, 3  ;;  %15299 = vst [vmem:[#allocation107_spill] sm:$0xff] %v13520_v20  ;;  %v5281_v15 = vld [vmem:[#allocation3 + $0x90] sm:$0xff]  ;;  %v13530_v28 = vpop.f32.mrb[11].mxu1  ;;  %v4061_v42 = vsel %vm1017_vm10, %v4060_v27, %v4059_v40  ;;  %v4097_v5 = vpack.c.b16 %v4091_v25, %v4091_v25  ;;  %v4119_v20 = vsel %vm1080_vm4, %v4118_v49, %v4117_v8 }
 0x453   :  { %v5095_v34 = vld [vmem:[#allocation2 + $0x5c] sm:$0x44]  ;;  %15300 = vst [vmem:[#allocation143_spill] sm:$0xff] %v13530_v28  ;;  %7585 = vmatmul.mubr.bf16.vlgmr.msra.gmra.mrb[40].mxu1 %v5281_v15  ;;  %v5096_v24 = vld [vmem:[#allocation2 + $0x64] sm:$0x44]  ;;  %v4069_v4 = vpack.c.b16 %v4061_v42, %v4061_v42  ;;  %v4127_v55 = vpack.c.b16 %v4119_v20, %v4119_v20  ;;  %v13544_v8 = vunpack.c.l.b16 %v8298_v16  ;;  %v14445_v49 = vunpack.c.l.b16 %v13526_v14  ;;  %v9557_v42 = vld [vmem:[%s14015_s4 + $0x5d0] sm:$0xff]  }
 0x454   :  { %v4151_v32 = vsel %vm1114_vm8, %v4150_v41, %v4149_v45  ;;  %8926 = vmatpush3.bf16.msra.mxu1 %v9546_v63  ;;  %v9556_v15 = vld [vmem:[%s14015_s4 + $0x588] sm:$0xff]   ;;  %4105 = vst [vmem:[#allocation3 + $0x1a8] sm:$0x2] %v4097_v5  ;;  %v13540_v40 = vcombine.low %v5095_v34, %v5095_v34  ;;  %v13542_v27 = vcombine.high %v5095_v34, %v5095_v34  ;;  %v13550_v63 = vpop.f32.mrb[40].mxu0  ;;  %v13553_v45 = vunpack.c.l.b16 %v13528_v39 }
 0x455   :  { %v4159_v7 = vpack.c.b16 %v4151_v32, %v4151_v32  ;;  %8927 = vmatprep.subr.bf16.mxu1 %v9555_v59  ;;  %15301 = vst [vmem:[#allocation203_spill] sm:$0xff] %v13550_v63  ;;  %4077 = vst [vmem:[#allocation3 + $0x1a8] sm:$0x1] %v4069_v4  ;;  %v13555_v5 = vunpack.c.l.b16 %v8302_v53  ;;  %v13557_v41 = vcombine.low %v5092_v46, %v5092_v46  ;;  %v13561_v25 = vpop.f32.mrb[41].mxu0  ;;  %v5129_v34 = vrot.slane %v13544_v8, 4  ;;  %v9558_v59 = vld [vmem:[%s14015_s4 + $0x590] sm:$0xff]  }
 0x456   :  { %4135 = vst [vmem:[#allocation3 + $0x1a8] sm:$0x4] %v4127_v55  ;;  %v13559_v20 = vcombine.low %v5096_v24, %v5096_v24  ;;  %15304 = vst [vmem:[#allocation12_spill] sm:$0xff] %v13561_v25  ;;  %v5161_v4 = vrot.slane %v14445_v49, 2  ;;  %v13567_v55 = vcombine.high %v5092_v46, %v5092_v46  ;;  %v15308_v46 = vunpack.c.l.b16 %v13540_v40 }
 0x457   :  { %4167 = vst [vmem:[#allocation3 + $0x1a8] sm:$0x8] %v4159_v7  ;;  %15302 = vst [vmem:[#allocation204_spill] sm:$0xff] %v13557_v41  ;;  %v13569_v7 = vpop.f32.mrb[42].mxu0  ;;  %v5130_v16 = vrot.slane %v13555_v5, 3  ;;  %v5156_v53 = vunpack.c.l.b16 %v13557_v41  ;;  %v5187_v58 = vunpack.c.h.b16 %v13528_v39  ;;  %v5191_v12 = vunpack.c.h.b16 %v13542_v27 }
 0x458   :  { %15303 = vst [vmem:[#allocation205_spill] sm:$0xff] %v13559_v20  ;;  %15305 = vst [vmem:[#allocation26_spill] sm:$0xff] %v13567_v55  ;;  %v5157_v28 = vunpack.c.l.b16 %v13559_v20  ;;  %8928 = vmatpush3.bf16.msra.mxu1 %v9556_v15  ;;  %v13578_v25 = vpop.f32.mrb[43].mxu0  ;;  %v5287_v49 = vld [vmem:[#allocation3 + $0xc0] sm:$0xff]  ;;  %v5162_v63 = vrot.slane %v15308_v46, 1  ;;  %v5189_v32 = vunpack.c.h.b16 %v13567_v55  ;;  %v9559_v15 = vld [vmem:[%s14015_s4 + $0x5d8] sm:$0xff]  }
 0x459   :  { %15306 = vst [vmem:[#allocation78_spill] sm:$0xff] %v13569_v7  ;;  %15307 = vst [vmem:[#allocation173_spill] sm:$0xff] %v13578_v25  ;;  %v13582_v7 = vcombine.high %v5096_v24, %v5096_v24  ;;  %8929 = vmatprep.subr.bf16.mxu1 %v9557_v42  ;;  %7732 = vmatmul.mubr.bf16.vlgmr.msra.gmra.mrb[72].mxu0 %v5287_v49  ;;  %v5131_v20 = vsel %vm1017_vm10, %v5130_v16, %v5129_v34  ;;  %v5167_v41 = vrot.slane %v5156_v53, 2  ;;  %v9560_v49 = vld [vmem:[%s14015_s4 + $0x598] sm:$0xff]  }
 0x45a   :  { %v5168_v25 = vrot.slane %v5157_v28, 1  ;;  %v5139_v1 = vpack.c.b16 %v5131_v20, %v5131_v20  ;;  %v5163_v24 = vsel %vm1048_vm13, %v5162_v63, %v5161_v4  ;;  %v5227_v39 = vrot.slane %v5156_v53, 6  ;;  %v15311_v20 = vld [vmem:[#allocation276_spill] sm:$0xff] }
 0x45b   :  { %15309 = vst [vmem:[#allocation50_spill] sm:$0xff] %v13582_v7  ;;  %v5193_v46 = vunpack.c.h.b16 %v13582_v7  ;;  %v5171_v42 = vpack.c.b16 %v5163_v24, %v5163_v24  ;;  %v5196_v57 = vrot.slane %v5191_v12, 7  ;;  %v5228_v9 = vrot.slane %v5157_v28, 5  ;;  %v15312_v4 = vld [vmem:[#allocation136_spill] sm:$0xff]  ;;  %v15313_v7 = vld [vmem:[#allocation5_spill] sm:$0xff]  ;;  %v9561_v12 = vld [vmem:[%s14015_s4 + $0x5e0] sm:$0xff]  }
 0x45c   :  { %v5169_v55 = vsel %vm1048_vm13, %v5168_v25, %v5167_v41  ;;  %8930 = vmatpush3.bf16.msra.mxu1 %v9558_v59  ;;  %5147 = vst [vmem:[#allocation3 + $0x1a8] sm:$0x10] %v5139_v1  ;;  %v3857_v63 = vsel %vm1114_vm8, %v15311_v20, %v15310_v0  ;;  %v4927_v53 = vsel %vm1114_vm8, %v15313_v7, %v15312_v4  ;;  %v3760_v7 = vrot.slane %v15122_v50, 7 }
 0x45d   :  { %v5173_v34 = vpack.c.b16 %v5169_v55, %v5169_v55  ;;  %v5200_v16 = vrot.slane %v5193_v46, 7  ;;  %8931 = vmatprep.subr.bf16.mxu1 %v9559_v15  ;;  %5179 = vst [vmem:[#allocation3 + $0x1a8] sm:$0x20] %v5171_v42  ;;  %v5197_v28 = vsel %vm1080_vm4, %v5196_v57, %v5187_v58  ;;  %v5229_v1 = vsel %vm1114_vm8, %v5228_v9, %v5227_v39  ;;  %v15314_v9 = vld [vmem:[#allocation248_spill] sm:$0xff]  ;;  %v15315_v46 = vld [vmem:[#allocation286_spill] sm:$0xff] }
 0x45e   :  { %v3861_v41 = vpack.c.b16 %v3857_v63, %v3857_v63  ;;  %v4931_v25 = vpack.c.b16 %v4927_v53, %v4927_v53  ;;  %v5203_v59 = vpack.c.b16 %v5197_v28, %v5197_v28  ;;  %v5237_v55 = vpack.c.b16 %v5229_v1, %v5229_v1 }
 0x45f   :  { %5181 = vst.msk [vmem:[#allocation3 + $0x1b8] sm:$0x20] %vm2132_vm5, %v5173_v34  ;;  %v5201_v0 = vsel %vm1080_vm4, %v5200_v16, %v5189_v32  ;;  %v3790_v24 = vrot.slane %v15123_v48, 6  ;;  %v3791_v57 = vrot.slane %v15124_v56, 5  ;;  %v3820_v58 = vrot.slane %v15314_v9, 4  ;;  %v9562_v32 = vld [vmem:[%s14015_s4 + $0x5a0] sm:$0xff]  }
 0x460   :  { %v5205_v15 = vpack.c.b16 %v5201_v0, %v5201_v0  ;;  %3869 = vst.msk [vmem:[#allocation3 + $0x178] sm:$0x8] %vm1136_vm11, %v3861_v41  ;;  %8932 = vmatpush3.bf16.msra.mxu1 %v9560_v49  ;;  %5211 = vst [vmem:[#allocation3 + $0x1a8] sm:$0x40] %v5203_v59  ;;  %v3761_v50 = vsel %vm1017_vm10, %v3760_v7, %v15121_v23  ;;  %v3821_v39 = vrot.slane %v15315_v46, 3  ;;  %v15316_v48 = vld [vmem:[#allocation249_spill] sm:$0xff]  ;;  %v15318_v63 = vunpack.c.l.b16 %v12857_v35 }
 0x461   :  { %4939 = vst.msk [vmem:[#allocation3 + $0x178] sm:$0x80] %vm2198_vm7, %v4931_v25  ;;  %5245 = vst [vmem:[#allocation3 + $0x1a8] sm:$0x80] %v5237_v55  ;;  %v3852_v42 = vrot.slane %v15316_v48, 2  ;;  %v15317_v56 = vld [vmem:[#allocation287_spill] sm:$0xff]  ;;  %8933 = vmatprep.subr.bf16.mxu1 %v9561_v12  ;;  %v3766_v16 = vpack.c.b16 %v3761_v50, %v3761_v50  ;;  %v3792_v20 = vsel %vm1048_vm13, %v3791_v57, %v3790_v24  ;;  %v15319_v23 = vunpack.c.l.b16 %v15129_v31 }
 0x462   :  { %5258 = vst.msk [vmem:[#allocation3 + $0x178] sm:$0xff] %vm5248_vm2, %v15062_v29  ;;  %v3853_v34 = vrot.slane %v15317_v56, 1  ;;  %v9563_v49 = vld [vmem:[%s14015_s4 + $0x5e8] sm:$0xff]   ;;  %v4824_v4 = vrot.slane %v15318_v63, 2  ;;  %v3798_v28 = vpack.c.b16 %v3792_v20, %v3792_v20  ;;  %v3822_v1 = vsel %vm1080_vm4, %v3821_v39, %v3820_v58  ;;  %v15320_v41 = vld [vmem:[#allocation234_spill] sm:$0xff]  ;;  %v15325_v48 = vld [vmem:[#allocation296_spill] sm:$0xff] }
 0x463   :  { %5213 = vst.msk [vmem:[#allocation3 + $0x1b8] sm:$0x40] %vm2165_vm3, %v5205_v15  ;;  %v4825_v53 = vrot.slane %v15319_v23, 1  ;;  %v4850_v25 = vunpack.c.h.b16 %v15320_v41  ;;  %3774 = vst [vmem:[#allocation3 + $0x170] sm:$0x1] %v3766_v16  ;;  %v3828_v0 = vpack.c.b16 %v3822_v1, %v3822_v1  ;;  %v15321_v7 = vld [vmem:[#allocation274_spill] sm:$0xff]  ;;  %v15322_v24 = vunpack.c.l.b16 %v15130_v13 }
 0x464   :  { %v3854_v12 = vsel %vm1114_vm8, %v3853_v34, %v3852_v42  ;;  %v4854_v15 = vunpack.c.h.b16 %v15321_v7  ;;  %8934 = vmatpush3.bf16.msra.mxu1 %v9562_v32  ;;  %v9564_v35 = vld [vmem:[%s14015_s4 + $0x5a8] sm:$0xff]   ;;  %3806 = vst [vmem:[#allocation3 + $0x170] sm:$0x2] %v3798_v28  ;;  %v15323_v9 = vunpack.c.l.b16 %v15131_v52  ;;  %v15324_v50 = vld [vmem:[#allocation258_spill] sm:$0xff]  ;;  %v4923_v32 = vrot.slane %v15325_v48, 3  ;;  %v9565_v13 = vld [vmem:[%s14015_s4 + $0x5f0] sm:$0xff]  }
 0x465   :  { %v3860_v59 = vpack.c.b16 %v3854_v12, %v3854_v12  ;;  %v4826_v55 = vsel %vm1017_vm10, %v4825_v53, %v4824_v4  ;;  %v4890_v57 = vrot.slane %v15322_v24, 6  ;;  %v4922_v46 = vrot.slane %v15324_v50, 4  ;;  %8935 = vmatprep.subr.bf16.mxu1 %v9563_v49  ;;  %3836 = vst [vmem:[#allocation3 + $0x170] sm:$0x4] %v3828_v0  ;;  %v9627_v42 = vld [vmem:[#allocation2 + $0x1c] sm:$0x22] }
 0x466   :  { %v4832_v31 = vpack.c.b16 %v4826_v55, %v4826_v55  ;;  %v4891_v58 = vrot.slane %v15323_v9, 5  ;;  %v4860_v39 = vrot.slane %v4854_v15, 7  ;;  %v8199_v56 = vcombine.low %v9627_v42, %v9627_v42  ;;  %v9628_v34 = vld [vmem:[#allocation2 + $0x54] sm:$0x22]  ;;  %v13668_v24 = vpop.f32.mrb[12].mxu1 }
 0x467   :  { %3868 = vst [vmem:[#allocation3 + $0x170] sm:$0x8] %v3860_v59  ;;  %v8203_v16 = vcombine.low %v9628_v34, %v9628_v34  ;;  %v4088_v20 = vrot.slane %v13495_v2, 7  ;;  %v4114_v49 = vrot.slane %v13505_v3, 6  ;;  %v4115_v63 = vrot.slane %v15292_v21, 5  ;;  %v9566_v41 = vld [vmem:[%s14015_s4 + $0x5b0] sm:$0xff]  }
 0x468   :  { %4840 = vst [vmem:[#allocation3 + $0x170] sm:$0x10] %v4832_v31  ;;  %v4892_v52 = vsel %vm1080_vm4, %v4891_v58, %v4890_v57  ;;  %v5316_v4 = vld [vmem:[#allocation3 + $0x1a8] sm:$0xff]  ;;  %v4861_v53 = vsel %vm1048_vm13, %v4860_v39, %v4850_v25  ;;  %v4924_v1 = vsel %vm1114_vm8, %v4923_v32, %v4922_v46  ;;  %v4048_v12 = vunpack.c.l.b16 %v8199_v56  ;;  %8936 = vmatpush3.bf16.msra.mxu1 %v9564_v35  ;;  %v13673_v50 = vpop.f32.mrb[13].mxu1 }
 0x469   :  { %v5310_v23 = vld [vmem:[#allocation3 + $0x178] sm:$0xff]  ;;  %v4898_v28 = vpack.c.b16 %v4892_v52, %v4892_v52  ;;  %7739 = vmatprep.mubr.bf16.mxu0 %v5316_v4  ;;  %v4866_v2 = vpack.c.b16 %v4861_v53, %v4861_v53  ;;  %v4930_v0 = vpack.c.b16 %v4924_v1, %v4924_v1  ;;  %v4052_v59 = vunpack.c.l.b16 %v8203_v16  ;;  %v9567_v25 = vld [vmem:[%s14015_s4 + $0x5f8] sm:$0xff]   ;;  %8937 = vmatprep.subr.bf16.mxu1 %v9565_v13  ;;  %v13685_v56 = vpop.f32.mrb[14].mxu1 }
 0x46a   :  { %7592 = vmatprep.mubr.bf16.mxu1 %v5310_v23  ;;  %v4089_v55 = vsel %vm1048_vm13, %v4088_v20, %v13489_v11  ;;  %v4056_v7 = vrot.slane %v4048_v12, 2  ;;  %v4116_v35 = vsel %vm1080_vm4, %v4115_v63, %v4114_v49  ;;  %v4146_v31 = vrot.slane %v15294_v30, 4  ;;  %v9568_v42 = vld [vmem:[%s14015_s4 + $0x5b8] sm:$0xff]  }
 0x46b   :  { %4906 = vst [vmem:[#allocation3 + $0x170] sm:$0x40] %v4898_v28  ;;  %v4096_v15 = vpack.c.b16 %v4089_v55, %v4089_v55  ;;  %4874 = vst [vmem:[#allocation3 + $0x170] sm:$0x20] %v4866_v2  ;;  %v4057_v57 = vrot.slane %v4052_v59, 1  ;;  %v4126_v9 = vpack.c.b16 %v4116_v35, %v4116_v35  ;;  %v4147_v11 = vrot.slane %v15296_v51, 3 }
 0x46c   :  { %4938 = vst [vmem:[#allocation3 + $0x170] sm:$0x80] %v4930_v0  ;;  %v8297_v58 = vcombine.low %v13498_v38, %v13498_v38  ;;  %v8301_v46 = vcombine.low %v13509_v60, %v13509_v60  ;;  %v13678_v39 = vunpack.c.l.b16 %v13542_v27  ;;  %v5158_v48 = vrot.slane %v13544_v8, 2  ;;  %8938 = vmatpush3.bf16.msra.mxu1 %v9566_v41  ;;  %v9569_v8 = vld [vmem:[%s14015_s4 + $0x6c0] sm:$0xff]   ;;  %v15327_v59 = vld [vmem:[#allocation11_spill] sm:$0xff]  ;;  %v15328_v55 = vld [vmem:[#allocation24_spill] sm:$0xff] }
 0x46d   :  { %4104 = vst [vmem:[#allocation3 + $0x1a0] sm:$0x2] %v4096_v15  ;;  %v5159_v32 = vrot.slane %v13555_v5, 1  ;;  %v4058_v38 = vsel %vm1017_vm10, %v4057_v57, %v4056_v7  ;;  %4134 = vst [vmem:[#allocation3 + $0x1a0] sm:$0x4] %v4126_v9  ;;  %v4148_v34 = vsel %vm1114_vm8, %v4147_v11, %v4146_v31  ;;  %v5186_v27 = vunpack.c.h.b16 %v13526_v14  ;;  %8939 = vmatprep.subr.bf16.mxu1 %v9567_v25  ;;  %v13693_v5 = vpop.f32.mrb[15].mxu1 }
 0x46e   :  { %v5118_v60 = vunpack.c.l.b16 %v8297_v58  ;;  %v4068_v16 = vpack.c.b16 %v4058_v38, %v4058_v38  ;;  %v4158_v13 = vpack.c.b16 %v4148_v34, %v4148_v34  ;;  %v5122_v52 = vunpack.c.l.b16 %v8301_v46  ;;  %v15329_v7 = vld [vmem:[#allocation16_spill] sm:$0xff]  ;;  %v15330_v15 = vld [vmem:[#allocation37_spill] sm:$0xff] }
 0x46f   :  { %v5136_v20 = vrot.slane %v13678_v39, 3  ;;  %v5160_v63 = vsel %vm1048_vm13, %v5159_v32, %v5158_v48  ;;  %v5190_v4 = vunpack.c.h.b16 %v13540_v40  ;;  %v5224_v23 = vrot.slane %v13553_v45, 6  ;;  %v13712_v48 = vpop.f32.mrb[44].mxu0 }
 0x470   :  { %v5126_v49 = vrot.slane %v5118_v60, 4  ;;  %4076 = vst [vmem:[#allocation3 + $0x1a0] sm:$0x1] %v4068_v16  ;;  %4166 = vst [vmem:[#allocation3 + $0x1a0] sm:$0x8] %v4158_v13  ;;  %v5127_v53 = vrot.slane %v5122_v52, 3  ;;  %v5170_v12 = vpack.c.b16 %v5160_v63, %v5160_v63  ;;  %8940 = vmatpush3.bf16.msra.mxu1 %v9568_v42  ;;  %v1875_v25 = vsel %vm1114_vm8, %v15328_v55, %v15327_v59 }
 0x471   :  { %v15326_v28 = vrot.slane %v13553_v45, 4  ;;  %v5225_v41 = vrot.slane %v13678_v39, 5  ;;  %v5194_v0 = vrot.slane %v5190_v4, 7  ;;  %v15331_v35 = vunpack.c.l.b16 %v15330_v15  ;;  %8981 = vmatprep.subr.bf16.mxu1 %v9569_v8  ;;  %v13717_v60 = vpop.f32.mrb[45].mxu0  ;;  %v15333_v63 = vld [vmem:[#allocation168_spill] sm:$0xff] }
 0x472   :  { %v5128_v9 = vsel %vm1017_vm10, %v5127_v53, %v5126_v49  ;;  %5178 = vst [vmem:[#allocation3 + $0x1a0] sm:$0x20] %v5170_v12  ;;  %v1879_v58 = vpack.c.b16 %v1875_v25, %v1875_v25  ;;  %v1780_v34 = vrot.slane %v15148_v44, 5  ;;  %v1781_v16 = vrot.slane %v15149_v18, 4  ;;  %v15334_v25 = vld [vmem:[#allocation182_spill] sm:$0xff] }
 0x473   :  { %v5137_v1 = vsel %vm1017_vm10, %v5136_v20, %v15326_v28  ;;  %v2951_v31 = vsel %vm1114_vm8, %v15331_v35, %v15329_v7  ;;  %v5309_v57 = vld [vmem:[#allocation3 + $0x170] sm:$0xff]  ;;  %v5226_v11 = vsel %vm1114_vm8, %v5225_v41, %v5224_v23  ;;  %v5138_v32 = vpack.c.b16 %v5128_v9, %v5128_v9  ;;  %v13724_v20 = vpop.f32.mrb[46].mxu0  ;;  %v15335_v7 = vld [vmem:[#allocation87_spill] sm:$0xff]  ;;  %v15336_v35 = vld [vmem:[#allocation132_spill] sm:$0xff] }
 0x474   :  { %v5141_v2 = vpack.c.b16 %v5137_v1, %v5137_v1  ;;  %v2955_v46 = vpack.c.b16 %v2951_v31, %v2951_v31  ;;  %7593 = vmatmul.mubr.bf16.gmra.mrb[44].mxu1 %v5309_v57  ;;  %v5195_v42 = vsel %vm1080_vm4, %v5194_v0, %v5186_v27  ;;  %v5236_v38 = vpack.c.b16 %v5226_v11, %v5226_v11  ;;  %v15332_v27 = vld [vmem:[#allocation76_spill] sm:$0xff]  ;;  %v13732_v18 = vpop.f32.mrb[47].mxu0  ;;  %v15337_v31 = vld [vmem:[#allocation279_spill] sm:$0xff]  ;;  %v15338_v9 = vld [vmem:[#allocation137_spill] sm:$0xff] }
 0x475   :  { %v5202_v8 = vpack.c.b16 %v5195_v42, %v5195_v42  ;;  %1887 = vst.msk [vmem:[#allocation3 + $0xb8] sm:$0x8] %vm1136_vm11, %v1879_v58  ;;  %v1812_v13 = vrot.slane %v15150_v61, 3  ;;  %v1813_v52 = vrot.slane %v15155_v33, 2  ;;  %5146 = vst [vmem:[#allocation3 + $0x1a0] sm:$0x10] %v5138_v32  ;;  %v1782_v61 = vsel %vm1017_vm10, %v1781_v16, %v1780_v34 }
 0x476   :  { %5149 = vst.msk [vmem:[#allocation3 + $0x1b8] sm:$0x10] %vm2097_vm15, %v5141_v2  ;;  %5244 = vst [vmem:[#allocation3 + $0x1a0] sm:$0x80] %v5236_v38  ;;  %v1840_v44 = vrot.slane %v15151_v37, 1  ;;  %v1870_v49 = vrot.slane %v15332_v27, 7  ;;  %v1788_v1 = vpack.c.b16 %v1782_v61, %v1782_v61  ;;  %v4007_v57 = vsel %vm1114_vm8, %v15337_v31, %v15336_v35 }
 0x477   :  { %2963 = vst.msk [vmem:[#allocation3 + $0xb8] sm:$0x80] %vm2198_vm7, %v2955_v46  ;;  %v1871_v4 = vrot.slane %v15333_v63, 6  ;;  %v2856_v23 = vrot.slane %v15159_v43, 7  ;;  %5210 = vst [vmem:[#allocation3 + $0x1a0] sm:$0x40] %v5202_v8  ;;  %v1814_v33 = vsel %vm1048_vm13, %v1813_v52, %v1812_v13  ;;  %v4011_v38 = vpack.c.b16 %v4007_v57, %v4007_v57 }
 0x478   :  { %5259 = vst.msk [vmem:[#allocation3 + $0xb8] sm:$0xff] %vm5248_vm2, %v15062_v29  ;;  %v2857_v53 = vrot.slane %v15160_v6, 6  ;;  %v2888_v28 = vrot.slane %v15161_v36, 5  ;;  %v1820_v12 = vpack.c.b16 %v1814_v33, %v1814_v33  ;;  %v1841_v37 = vsel %vm1080_vm4, %v15152_v54, %v1840_v44  ;;  %1796 = vst [vmem:[#allocation3 + $0xb0] sm:$0x1] %v1788_v1  ;;  %v15339_v11 = vld [vmem:[#allocation283_spill] sm:$0xff] }
 0x479   :  { %v1872_v41 = vsel %vm1114_vm8, %v1871_v4, %v1870_v49  ;;  %v1846_v2 = vpack.c.b16 %v1841_v37, %v1841_v37  ;;  %v2889_v59 = vrot.slane %v15162_v17, 4  ;;  %v2918_v6 = vrot.slane %v15163_v10, 3  ;;  %v15340_v32 = vld [vmem:[#allocation181_spill] sm:$0xff]  ;;  %4019 = vst.msk [vmem:[#allocation3 + $0x198] sm:$0x8] %vm1136_vm11, %v4011_v38  ;;  %v15341_v63 = vld [vmem:[#allocation250_spill] sm:$0xff] }
 0x47a   :  { %v1878_v43 = vpack.c.b16 %v1872_v41, %v1872_v41  ;;  %v2858_v0 = vsel %vm1017_vm10, %v2857_v53, %v2856_v23  ;;  %1828 = vst [vmem:[#allocation3 + $0xb0] sm:$0x2] %v1820_v12  ;;  %v2919_v36 = vrot.slane %v15334_v25, 2  ;;  %v2948_v15 = vrot.slane %v15335_v7, 1  ;;  %v15342_v23 = vld [vmem:[#allocation288_spill] sm:$0xff]  ;;  %v15344_v53 = vld [vmem:[#allocation289_spill] sm:$0xff] }
 0x47b   :  { %v2864_v55 = vpack.c.b16 %v2858_v0, %v2858_v0  ;;  %1854 = vst [vmem:[#allocation3 + $0xb0] sm:$0x4] %v1846_v2  ;;  %v2890_v54 = vsel %vm1048_vm13, %v2889_v59, %v2888_v28  ;;  %v5077_v17 = vsel %vm1114_vm8, %v15339_v11, %v15338_v9  ;;  %v3910_v58 = vrot.slane %v15193_v19, 1  ;;  %v15346_v37 = vld [vmem:[#allocation241_spill] sm:$0xff]  ;;  %v15347_v2 = vld [vmem:[#allocation259_spill] sm:$0xff]  ;;  %v15350_v9 = vld [vmem:[#allocation260_spill] sm:$0xff] }
 0x47c   :  { %1886 = vst [vmem:[#allocation3 + $0xb0] sm:$0x8] %v1878_v43  ;;  %v2896_v10 = vpack.c.b16 %v2890_v54, %v2890_v54  ;;  %v2920_v46 = vsel %vm1080_vm4, %v2919_v36, %v2918_v6  ;;  %v2949_v42 = vsel %vm1114_vm8, %v15340_v32, %v2948_v15  ;;  %v5081_v13 = vpack.c.b16 %v5077_v17, %v5077_v17  ;;  %v15348_v6 = vld [vmem:[#allocation297_spill] sm:$0xff]  ;;  %v15349_v15 = vld [vmem:[#allocation278_spill] sm:$0xff]  ;;  %v15352_v32 = vld [vmem:[#allocation64_spill] sm:$0xff] }
 0x47d   :  { %2872 = vst [vmem:[#allocation3 + $0xb0] sm:$0x10] %v2864_v55  ;;  %v2926_v8 = vpack.c.b16 %v2920_v46, %v2920_v46  ;;  %v2954_v16 = vpack.c.b16 %v2949_v42, %v2949_v42  ;;  %v3911_v52 = vsel %vm1017_vm10, %v15194_v62, %v3910_v58  ;;  %v3940_v27 = vrot.slane %v15195_v22, 7  ;;  %v15343_v62 = vld [vmem:[#allocation251_spill] sm:$0xff]  ;;  %v9570_v17 = vld [vmem:[%s14015_s4 + $0x680] sm:$0xff]  }
 0x47e   :  { %v5315_v44 = vld [vmem:[#allocation3 + $0x1a0] sm:$0xff]  ;;  %2904 = vst [vmem:[#allocation3 + $0xb0] sm:$0x20] %v2896_v10  ;;  %v3916_v19 = vpack.c.b16 %v3911_v52, %v3911_v52  ;;  %v3941_v49 = vrot.slane %v15196_v26, 6  ;;  %v3970_v4 = vrot.slane %v15341_v63, 5  ;;  %v3971_v61 = vrot.slane %v15342_v23, 4 }
 0x47f   :  { %v5286_v34 = vld [vmem:[#allocation3 + $0xb8] sm:$0xff]  ;;  %7740 = vmatmul.mubr.bf16.gmra.mrb[76].mxu0 %v5315_v44  ;;  %2934 = vst [vmem:[#allocation3 + $0xb0] sm:$0x40] %v2926_v8  ;;  %2962 = vst [vmem:[#allocation3 + $0xb0] sm:$0x80] %v2954_v16  ;;  %v4002_v33 = vrot.slane %v15343_v62, 3 }
 0x480   :  { %7682 = vmatprep.mubr.bf16.mxu1 %v5286_v34  ;;  %5089 = vst.msk [vmem:[#allocation3 + $0x198] sm:$0x80] %vm2198_vm7, %v5081_v13  ;;  %v4003_v28 = vrot.slane %v15344_v53, 2  ;;  %v4982_v1 = vrot.slane %v15207_v47, 3  ;;  %3924 = vst [vmem:[#allocation3 + $0x190] sm:$0x1] %v3916_v19  ;;  %v3942_v22 = vsel %vm1048_vm13, %v3941_v49, %v3940_v27  ;;  %v3972_v59 = vsel %vm1080_vm4, %v3971_v61, %v3970_v4 }
 0x481   :  { %5260 = vst.msk [vmem:[#allocation3 + $0x198] sm:$0xff] %vm5248_vm2, %v15062_v29  ;;  %v15345_v26 = vld [vmem:[#allocation119_spill] sm:$0xff]  ;;  %v5012_v41 = vrot.slane %v15346_v37, 1  ;;  %v5040_v43 = vrot.slane %v15347_v2, 7  ;;  %v3948_v0 = vpack.c.b16 %v3942_v22, %v3942_v22  ;;  %v5041_v25 = vrot.slane %v15348_v6, 6  ;;  %v15351_v10 = vld [vmem:[#allocation298_spill] sm:$0xff] }
 0x482   :  { %v4983_v12 = vrot.slane %v15345_v26, 2  ;;  %v4004_v55 = vsel %vm1114_vm8, %v4003_v28, %v4002_v33  ;;  %v3978_v47 = vpack.c.b16 %v3972_v59, %v3972_v59  ;;  %v5072_v11 = vrot.slane %v15350_v9, 5  ;;  %v15353_v42 = vld [vmem:[#allocation118_spill] sm:$0xff]  ;;  %v15354_v34 = vld [vmem:[#allocation156_spill] sm:$0xff]  ;;  %v9571_v13 = vld [vmem:[%s14015_s4 + $0x6c8] sm:$0xff]   ;;  %v13826_v6 = vpop.f32.mrb[16].mxu1 }
 0x483   :  { %v4010_v36 = vpack.c.b16 %v4004_v55, %v4004_v55  ;;  %v5013_v54 = vsel %vm1048_vm13, %v15349_v15, %v5012_v41  ;;  %3956 = vst [vmem:[#allocation3 + $0x190] sm:$0x2] %v3948_v0  ;;  %v5042_v57 = vsel %vm1080_vm4, %v5041_v25, %v5040_v43  ;;  %v5073_v46 = vrot.slane %v15351_v10, 4  ;;  %v15355_v8 = vld [vmem:[#allocation126_spill] sm:$0xff]  ;;  %v15356_v52 = vld [vmem:[#allocation220_spill] sm:$0xff]  ;;  %v15360_v4 = vld [vmem:[#allocation213_spill] sm:$0xff] }
 0x484   :  { %v4984_v7 = vsel %vm1017_vm10, %v4983_v12, %v4982_v1  ;;  %v5018_v31 = vpack.c.b16 %v5013_v54, %v5013_v54  ;;  %3986 = vst [vmem:[#allocation3 + $0x190] sm:$0x4] %v3978_v47  ;;  %v5048_v58 = vpack.c.b16 %v5042_v57, %v5042_v57  ;;  %v13788_v38 = vadd.f32 %v15353_v42, %v15352_v32  ;;  %v15357_v44 = vld [vmem:[#allocation152_spill] sm:$0xff]  ;;  %v15359_v49 = vld [vmem:[#allocation194_spill] sm:$0xff]  ;;  %v15361_v23 = vld [vmem:[#allocation65_spill] sm:$0xff]  ;;  %v13832_v57 = vpop.f32.mrb[17].mxu1 }
 0x485   :  { %v4990_v35 = vpack.c.b16 %v4984_v7, %v4984_v7  ;;  %4018 = vst [vmem:[#allocation3 + $0x190] sm:$0x8] %v4010_v36  ;;  %v13792_v16 = vadd.f32 %v15355_v8, %v15354_v34  ;;  %v13799_v19 = vadd.f32 %v15357_v44, %v15356_v52  ;;  %v15358_v27 = vld [vmem:[#allocation60_spill] sm:$0xff]  ;;  %v13807_v61 = vadd.f32 %v15361_v23, %v15360_v4  ;;  %v15362_v62 = vld [vmem:[#allocation43_spill] sm:$0xff]  ;;  %v15363_v33 = vld [vmem:[#allocation138_spill] sm:$0xff]  ;;  %v13840_v8 = vpop.f32.mrb[18].mxu1 }
 0x486   :  { %5026 = vst [vmem:[#allocation3 + $0x190] sm:$0x20] %v5018_v31  ;;  %v13803_v63 = vadd.f32 %v15359_v49, %v15358_v27  ;;  %v13811_v53 = vadd.f32 %v15363_v33, %v15362_v62  ;;  %v5285_v28 = vld [vmem:[#allocation3 + $0xb0] sm:$0xff]  ;;  %5056 = vst [vmem:[#allocation3 + $0x190] sm:$0x40] %v5048_v58  ;;  %v5074_v1 = vsel %vm1114_vm8, %v5073_v46, %v5072_v11  ;;  %v15364_v22 = vld [vmem:[#allocation157_spill] sm:$0xff] }
 0x487   :  { %4998 = vst [vmem:[#allocation3 + $0x190] sm:$0x10] %v4990_v35  ;;  %v15365_v26 = vld [vmem:[#allocation125_spill] sm:$0xff]  ;;  %v15366_v37 = vld [vmem:[#allocation192_spill] sm:$0xff]  ;;  %v15367_v41 = vld [vmem:[#allocation98_spill] sm:$0xff]  ;;  %7683 = vmatmul.mubr.bf16.vlgmr.msra.gmra.mrb[48].mxu1 %v5285_v28  ;;  %v5080_v47 = vpack.c.b16 %v5074_v1, %v5074_v1  ;;  %v13850_v28 = vpop.f32.mrb[19].mxu1 }
 0x488   :  { %v13816_v12 = vadd.f32 %v15365_v26, %v15364_v22  ;;  %v13820_v2 = vadd.f32 %v15367_v41, %v15366_v37  ;;  %v15368_v43 = vld [vmem:[#allocation30_spill] sm:$0xff]  ;;  %v15370_v59 = vld [vmem:[#allocation25_spill] sm:$0xff]  ;;  %v5314_v25 = vld [vmem:[#allocation3 + $0x198] sm:$0xff]  ;;  %8982 = vmatpush3.bf16.msra.mxu1 %v9570_v17 }
 0x489   :  { %v15369_v0 = vunpack.c.l.b16 %v15368_v43  ;;  %v15371_v7 = vld [vmem:[#allocation130_spill] sm:$0xff]  ;;  %v15372_v15 = vld [vmem:[#allocation275_spill] sm:$0xff]  ;;  %v15373_v35 = vld [vmem:[#allocation105_spill] sm:$0xff]  ;;  %7690 = vmatprep.mubr.bf16.mxu1 %v5314_v25  ;;  %8983 = vmatprep.subr.bf16.mxu1 %v9571_v13  ;;  %5088 = vst [vmem:[#allocation3 + $0x190] sm:$0x80] %v5080_v47 }
 0x48a   :  { %v3107_v54 = vsel %vm1114_vm8, %v15372_v15, %v15371_v7  ;;  %v1930_v31 = vrot.slane %v15373_v35, 6  ;;  %v9572_v9 = vld [vmem:[%s14015_s4 + $0x688] sm:$0xff]   ;;  %v15374_v58 = vld [vmem:[#allocation200_spill] sm:$0xff]  ;;  %v15375_v46 = vld [vmem:[#allocation106_spill] sm:$0xff] }
 0x48b   :  { %v2025_v55 = vsel %vm1114_vm8, %v15370_v59, %v15369_v0  ;;  %v3111_v11 = vpack.c.b16 %v3107_v54, %v3107_v54  ;;  %v1931_v10 = vrot.slane %v15374_v58, 5  ;;  %v1962_v32 = vrot.slane %v15375_v46, 4  ;;  %v15376_v42 = vld [vmem:[#allocation201_spill] sm:$0xff]  ;;  %v9573_v17 = vld [vmem:[%s14015_s4 + $0x6d0] sm:$0xff]   ;;  %v15377_v52 = vld [vmem:[#allocation219_spill] sm:$0xff] }
 0x48c   :  { %v2029_v36 = vpack.c.b16 %v2025_v55, %v2025_v55  ;;  %v1963_v34 = vrot.slane %v15376_v42, 3  ;;  %v1992_v44 = vrot.slane %v15377_v52, 2  ;;  %v15378_v27 = vld [vmem:[#allocation169_spill] sm:$0xff]  ;;  %v15379_v4 = vld [vmem:[#allocation172_spill] sm:$0xff]  ;;  %v15380_v62 = vld [vmem:[#allocation222_spill] sm:$0xff]  ;;  %8984 = vmatpush3.bf16.msra.mxu1 %v9572_v9  ;;  %v13874_v52 = vpop.f32.mrb[48].mxu0 }
 0x48d   :  { %v1993_v49 = vrot.slane %v15378_v27, 1  ;;  %v2022_v23 = vrot.slane %v15379_v4, 7  ;;  %v2994_v33 = vunpack.c.h.b16 %v15380_v62  ;;  %3119 = vst.msk [vmem:[#allocation3 + $0xd8] sm:$0x80] %vm2198_vm7, %v3111_v11  ;;  %v1932_v13 = vsel %vm1017_vm10, %v1931_v10, %v1930_v31  ;;  %v15381_v22 = vld [vmem:[#allocation261_spill] sm:$0xff]  ;;  %v15385_v35 = vld [vmem:[#allocation262_spill] sm:$0xff]  ;;  %8985 = vmatprep.subr.bf16.mxu1 %v9573_v17 }
 0x48e   :  { %2037 = vst.msk [vmem:[#allocation3 + $0xd8] sm:$0x8] %vm1136_vm11, %v2029_v36  ;;  %v1964_v1 = vsel %vm1048_vm13, %v1963_v34, %v1962_v32  ;;  %v15382_v26 = vunpack.c.h.b16 %v15381_v22  ;;  %v15383_v41 = vld [vmem:[#allocation225_spill] sm:$0xff]  ;;  %v1938_v0 = vpack.c.b16 %v1932_v13, %v1932_v13  ;;  %v9574_v36 = vld [vmem:[%s14015_s4 + $0x690] sm:$0xff]   ;;  %v3041_v31 = vrot.slane %v15385_v35, 5  ;;  %v15386_v10 = vld [vmem:[#allocation246_spill] sm:$0xff] }
 0x48f   :  { %v3040_v43 = vrot.slane %v15383_v41, 6  ;;  %5261 = vst.msk [vmem:[#allocation3 + $0xd8] sm:$0xff] %vm5248_vm2, %v15062_v29  ;;  %v1970_v59 = vpack.c.b16 %v1964_v1, %v1964_v1  ;;  %v1994_v55 = vsel %vm1080_vm4, %v1993_v49, %v1992_v44  ;;  %v15384_v25 = vld [vmem:[#allocation77_spill] sm:$0xff]  ;;  %v3070_v9 = vrot.slane %v15386_v10, 4  ;;  %v15387_v46 = vld [vmem:[#allocation284_spill] sm:$0xff]  ;;  %v15388_v42 = vld [vmem:[#allocation247_spill] sm:$0xff] }
 0x490   :  { %v3004_v37 = vrot.slane %v15382_v26, 7  ;;  %v2023_v47 = vsel %vm1114_vm8, %v2022_v23, %v15384_v25  ;;  %v2000_v7 = vpack.c.b16 %v1994_v55, %v1994_v55  ;;  %v9575_v11 = vld [vmem:[%s14015_s4 + $0x6d8] sm:$0xff]   ;;  %1946 = vst [vmem:[#allocation3 + $0xd0] sm:$0x1] %v1938_v0  ;;  %v3071_v32 = vrot.slane %v15387_v46, 3  ;;  %v15391_v4 = vld [vmem:[#allocation280_spill] sm:$0xff]  ;;  %8986 = vmatpush3.bf16.msra.mxu1 %v9574_v36 }
 0x491   :  { %v2028_v15 = vpack.c.b16 %v2023_v47, %v2023_v47  ;;  %1978 = vst [vmem:[#allocation3 + $0xd0] sm:$0x2] %v1970_v59  ;;  %v3102_v34 = vrot.slane %v15388_v42, 2  ;;  %v3042_v44 = vsel %vm1048_vm13, %v3041_v31, %v3040_v43  ;;  %v15389_v17 = vld [vmem:[#allocation285_spill] sm:$0xff]  ;;  %v15392_v62 = vld [vmem:[#allocation6_spill] sm:$0xff]  ;;  %v13884_v1 = vpop.f32.mrb[49].mxu0  ;;  %8987 = vmatprep.subr.bf16.mxu1 %v9575_v11 }
 0x492   :  { %v3005_v54 = vsel %vm1017_vm10, %v3004_v37, %v2994_v33  ;;  %2008 = vst [vmem:[#allocation3 + $0xd0] sm:$0x4] %v2000_v7  ;;  %v3103_v27 = vrot.slane %v15389_v17, 1  ;;  %v15390_v49 = vld [vmem:[#allocation133_spill] sm:$0xff]  ;;  %v15393_v33 = vld [vmem:[#allocation7_spill] sm:$0xff]  ;;  %v3048_v22 = vpack.c.b16 %v3042_v44, %v3042_v44  ;;  %v3072_v26 = vsel %vm1080_vm4, %v3071_v32, %v3070_v9  ;;  %v13887_v0 = vpop.f32.mrb[50].mxu0 }
 0x493   :  { %v3010_v58 = vpack.c.b16 %v3005_v54, %v3005_v54  ;;  %2036 = vst [vmem:[#allocation3 + $0xd0] sm:$0x8] %v2028_v15  ;;  %v4157_v23 = vsel %vm1114_vm8, %v15391_v4, %v15390_v49  ;;  %v5235_v13 = vsel %vm1114_vm8, %v15393_v33, %v15392_v62  ;;  %v5313_v43 = vld [vmem:[#allocation3 + $0x190] sm:$0xff]  ;;  %v9576_v59 = vld [vmem:[%s14015_s4 + $0x698] sm:$0xff]   ;;  %v3078_v55 = vpack.c.b16 %v3072_v26, %v3072_v26  ;;  %v13895_v15 = vpop.f32.mrb[51].mxu0  ;;  %v15394_v31 = vld [vmem:[#allocation252_spill] sm:$0xff] }
 0x494   :  { %v4161_v37 = vpack.c.b16 %v4157_v23, %v4157_v23  ;;  %v5239_v41 = vpack.c.b16 %v5235_v13, %v5235_v13  ;;  %v3104_v25 = vsel %vm1114_vm8, %v3103_v27, %v3102_v34  ;;  %v4062_v47 = vrot.slane %v13505_v3, 2  ;;  %7691 = vmatmul.mubr.bf16.gmra.mrb[52].mxu1 %v5313_v43  ;;  %v9577_v54 = vld [vmem:[%s14015_s4 + $0x6e0] sm:$0xff]   ;;  %3056 = vst [vmem:[#allocation3 + $0xd0] sm:$0x20] %v3048_v22  ;;  %v15396_v9 = vld [vmem:[#allocation253_spill] sm:$0xff]  ;;  %v15397_v32 = vld [vmem:[#allocation291_spill] sm:$0xff] }
 0x495   :  { %3018 = vst [vmem:[#allocation3 + $0xd0] sm:$0x10] %v3010_v58  ;;  %v4063_v7 = vrot.slane %v15292_v21, 1  ;;  %v3110_v36 = vpack.c.b16 %v3104_v25, %v3104_v25  ;;  %v4092_v35 = vrot.slane %v15296_v51, 7  ;;  %v4120_v3 = vrot.slane %v15394_v31, 6  ;;  %v15395_v58 = vld [vmem:[#allocation290_spill] sm:$0xff]  ;;  %8988 = vmatpush3.bf16.msra.mxu1 %v9576_v59 }
 0x496   :  { %4169 = vst.msk [vmem:[#allocation3 + $0x1b8] sm:$0x8] %vm1136_vm11, %v4161_v37  ;;  %v4121_v21 = vrot.slane %v15395_v58, 5  ;;  %v5290_v10 = vld [vmem:[#allocation3 + $0xd8] sm:$0xff]  ;;  %3086 = vst [vmem:[#allocation3 + $0xd0] sm:$0x40] %v3078_v55  ;;  %v15398_v34 = vunpack.c.l.b16 %v13526_v14  ;;  %v15399_v49 = vunpack.c.l.b16 %v13540_v40  ;;  %8989 = vmatprep.subr.bf16.mxu1 %v9577_v54 }
 0x497   :  { %5247 = vst.msk [vmem:[#allocation3 + $0x1b8] sm:$0x80] %vm2198_vm7, %v5239_v41  ;;  %v4064_v11 = vsel %vm1017_vm10, %v4063_v7, %v4062_v47  ;;  %v4152_v46 = vrot.slane %v15396_v9, 4  ;;  %v4153_v42 = vrot.slane %v15397_v32, 3  ;;  %7780 = vmatprep.mubr.bf16.mxu1 %v5290_v10  ;;  %3118 = vst [vmem:[#allocation3 + $0xd0] sm:$0x80] %v3110_v36  ;;  %v4093_v17 = vsel %vm1048_vm13, %v4092_v35, %v15294_v30 }
 0x498   :  { %5262 = vst.msk [vmem:[#allocation3 + $0x1b8] sm:$0xff] %vm5248_vm2, %v15062_v29  ;;  %v5132_v44 = vrot.slane %v15398_v34, 4  ;;  %v4070_v51 = vpack.c.b16 %v4064_v11, %v4064_v11  ;;  %v4122_v27 = vsel %vm1080_vm4, %v4121_v21, %v4120_v3  ;;  %v5133_v29 = vrot.slane %v15399_v49, 3  ;;  %v9578_v4 = vld [vmem:[%s14015_s4 + $0x6a0] sm:$0xff]   ;;  %v9579_v30 = vld [vmem:[%s14015_s4 + $0x6e8] sm:$0xff]   ;;  %v15400_v26 = vld [vmem:[#allocation204_spill] sm:$0xff] }
 0x499   :  { %v4098_v23 = vpack.c.b16 %v4093_v17, %v4093_v17  ;;  %v4128_v62 = vpack.c.b16 %v4122_v27, %v4122_v27  ;;  %v4154_v14 = vsel %vm1114_vm8, %v4153_v42, %v4152_v46  ;;  %v5164_v33 = vrot.slane %v13553_v45, 2  ;;  %v15401_v43 = vld [vmem:[#allocation205_spill] sm:$0xff]  ;;  %v15402_v55 = vld [vmem:[#allocation26_spill] sm:$0xff]  ;;  %v15406_v31 = vld [vmem:[#allocation203_spill] sm:$0xff]  ;;  %8990 = vmatpush3.bf16.msra.mxu1 %v9578_v4 }
 0x49a   :  { %4078 = vst [vmem:[#allocation3 + $0x1b0] sm:$0x1] %v4070_v51  ;;  %v4160_v13 = vpack.c.b16 %v4154_v14, %v4154_v14  ;;  %v5134_v40 = vsel %vm1017_vm10, %v5133_v29, %v5132_v44  ;;  %v5165_v22 = vrot.slane %v13678_v39, 1  ;;  %v5188_v37 = vunpack.c.h.b16 %v15400_v26  ;;  %v15403_v25 = vld [vmem:[#allocation50_spill] sm:$0xff]  ;;  %v15404_v54 = vld [vmem:[#allocation193_spill] sm:$0xff]  ;;  %v15407_v3 = vld [vmem:[#allocation12_spill] sm:$0xff]  ;;  %8991 = vmatprep.subr.bf16.mxu1 %v9579_v30 }
 0x49b   :  { %4106 = vst [vmem:[#allocation3 + $0x1b0] sm:$0x2] %v4098_v23  ;;  %4136 = vst [vmem:[#allocation3 + $0x1b0] sm:$0x4] %v4128_v62  ;;  %v5140_v41 = vpack.c.b16 %v5134_v40, %v5134_v40  ;;  %v5192_v59 = vunpack.c.h.b16 %v15401_v43  ;;  %v5220_v45 = vunpack.c.l.b16 %v15402_v55  ;;  %v5222_v47 = vunpack.c.l.b16 %v15403_v25  ;;  %v15405_v36 = vld [vmem:[#allocation49_spill] sm:$0xff]  ;;  %v15408_v58 = vld [vmem:[#allocation107_spill] sm:$0xff] }
 0x49c   :  { %4168 = vst [vmem:[#allocation3 + $0x1b0] sm:$0x8] %v4160_v13  ;;  %v5166_v7 = vsel %vm1048_vm13, %v5165_v22, %v5164_v33  ;;  %v8663_v35 = vadd.f32 %v15405_v36, %v15404_v54  ;;  %v8747_v39 = vadd.f32 %v15407_v3, %v15406_v31  ;;  %v15409_v21 = vld [vmem:[#allocation143_spill] sm:$0xff]  ;;  %v9581_v34 = vld [vmem:[%s14015_s4 + $0x6f0] sm:$0xff]   ;;  %v15410_v17 = vld [vmem:[#allocation78_spill] sm:$0xff]  ;;  %v8669_v29 = vadd.f32 %v13673_v50, %v13668_v24  ;;  %v8807_v43 = vpop.f32.mrb[52].mxu0 }
 0x49d   :  { %v8666_v10 = vadd.f32 %v15409_v21, %v15408_v58  ;;  %v9580_v11 = vld [vmem:[%s14015_s4 + $0x6a8] sm:$0xff]   ;;  %5148 = vst [vmem:[#allocation3 + $0x1b0] sm:$0x10] %v5140_v41  ;;  %v5172_v9 = vpack.c.b16 %v5166_v7, %v5166_v7  ;;  %v5198_v46 = vrot.slane %v5192_v59, 7  ;;  %v5230_v32 = vrot.slane %v5220_v45, 6  ;;  %v15411_v27 = vld [vmem:[#allocation173_spill] sm:$0xff] }
 0x49e   :  { %v5231_v42 = vrot.slane %v5222_v47, 5  ;;  %v7195_v44 = vadd.f32 %v8663_v35, %v13788_v38  ;;  %v8750_v49 = vadd.f32 %v15411_v27, %v15410_v17  ;;  %v8753_v62 = vadd.f32 %v13717_v60, %v13712_v48  ;;  %8992 = vmatpush3.bf16.msra.mxu1 %v9580_v11  ;;  %v9582_v24 = vld [vmem:[%s14015_s4 + $0x6b0] sm:$0xff]   ;;  %v8808_v59 = vpop.f32.mrb[53].mxu0 }
 0x49f   :  { %v7198_v51 = vadd.f32 %v8666_v10, %v13799_v19  ;;  %5180 = vst [vmem:[#allocation3 + $0x1b0] sm:$0x20] %v5172_v9  ;;  %v5199_v4 = vsel %vm1080_vm4, %v5198_v46, %v5188_v37  ;;  %v8672_v14 = vadd.f32 %v13693_v5, %v13685_v56  ;;  %v7203_v19 = vadd.f32 %v8669_v29, %v13807_v61  ;;  %v9583_v5 = vld [vmem:[%s14015_s4 + $0x6f8] sm:$0xff]   ;;  %v5289_v37 = vld [vmem:[#allocation3 + $0xd0] sm:$0xff]  ;;  %v8810_v45 = vpop.f32.mrb[54].mxu0 }
 0x4a0   :  { %v5232_v23 = vsel %vm1114_vm8, %v5231_v42, %v5230_v32  ;;  %v5204_v38 = vpack.c.b16 %v5199_v4, %v5199_v4  ;;  %v8756_v30 = vadd.f32 %v13732_v18, %v13724_v20  ;;  %v7244_v13 = vadd.f32 %v13792_v16, %v7195_v44  ;;  %8993 = vmatprep.subr.bf16.mxu1 %v9581_v34  ;;  %v8811_v25 = vpop.f32.mrb[55].mxu0 }
 0x4a1   :  { %v5238_v33 = vpack.c.b16 %v5232_v23, %v5232_v23  ;;  %v7206_v50 = vadd.f32 %v8672_v14, %v13816_v12  ;;  %v8719_v48 = vadd.f32 %v13832_v57, %v13826_v6  ;;  %v8803_v56 = vadd.f32 %v13884_v1, %v13874_v52  ;;  %v8723_v57 = vpop.f32.mrb[20].mxu1  ;;  %v9584_v52 = vld [vmem:[%s14015_s4 + $0x6b8] sm:$0xff]  }
 0x4a2   :  { %5212 = vst [vmem:[#allocation3 + $0x1b0] sm:$0x40] %v5204_v38  ;;  %v7247_v60 = vadd.f32 %v13803_v63, %v7198_v51  ;;  %v8722_v20 = vadd.f32 %v13850_v28, %v13840_v8  ;;  %v8806_v18 = vadd.f32 %v13895_v15, %v13887_v0  ;;  %v7252_v16 = vadd.f32 %v13811_v53, %v7203_v19  ;;  %v8724_v1 = vpop.f32.mrb[21].mxu1  ;;  %v5318_v53 = vld [vmem:[#allocation3 + $0x1b8] sm:$0xff] }
 0x4a3   :  { %5246 = vst [vmem:[#allocation3 + $0x1b0] sm:$0x80] %v5238_v33  ;;  %v7293_v61 = vadd.f32 %v8719_v48, %v7244_v13  ;;  %v7255_v12 = vadd.f32 %v13820_v2, %v7206_v50  ;;  %8994 = vmatpush3.bf16.msra.mxu1 %v9582_v24  ;;  %v8725_v40 = vadd.f32 %v8724_v1, %v8723_v57  ;;  %v8726_v8 = vpop.f32.mrb[22].mxu1 }
 0x4a4   :  { %v7296_v6 = vadd.f32 %v8722_v20, %v7247_v60  ;;  %8995 = vmatprep.subr.bf16.mxu1 %v9583_v5  ;;  %v8727_v22 = vpop.f32.mrb[23].mxu1  ;;  %v8809_v55 = vadd.f32 %v8808_v59, %v8807_v43  ;;  %v8812_v47 = vadd.f32 %v8811_v25, %v8810_v45 }
 0x4a5   :  { %v7342_v63 = vadd.f32 %v8747_v39, %v7293_v61  ;;  %v7301_v0 = vadd.f32 %v8725_v40, %v7252_v16  ;;  %v8728_v15 = vadd.f32 %v8727_v22, %v8726_v8 }
 0x4a6   :  { %v7345_v28 = vadd.f32 %v8750_v49, %v7296_v6 }
 0x4a7   :  { %8996 = vmatpush3.bf16.msra.mxu1 %v9584_v52  ;;  %v7304_v26 = vadd.f32 %v8728_v15, %v7255_v12  ;;  %v7350_v2 = vadd.f32 %v8753_v62, %v7301_v0 }
 0x4a8   :  { %v8773_v54 = vpop.f32.mrb[24].mxu1 }
 0x4a9   :  { %v7353_v41 = vadd.f32 %v8756_v30, %v7304_v26  ;;  %v8774_v36 = vpop.f32.mrb[25].mxu1 }
 0x4aa   :  { %7781 = vmatmul.mubr.bf16.vlgmr.msra.gmra.mrb[56].mxu1 %v5289_v37  ;;  %v5317_v7 = vld [vmem:[#allocation3 + $0x1b0] sm:$0xff]  ;;  %v8775_v35 = vadd.f32 %v8774_v36, %v8773_v54  ;;  %v8776_v31 = vpop.f32.mrb[26].mxu1 }
 0x4ab   :  { %7788 = vmatprep.mubr.bf16.mxu1 %v5318_v53  ;;  %v8777_v3 = vpop.f32.mrb[27].mxu1 }
 0x4ac   :  { %v7391_v39 = vadd.f32 %v8775_v35, %v7342_v63  ;;  %v8778_v58 = vadd.f32 %v8777_v3, %v8776_v31 }
 0x4ae   :  { %v7394_v21 = vadd.f32 %v8778_v58, %v7345_v28  ;;  %v7440_v10 = vadd.f32 %v8803_v56, %v7391_v39 }
 0x4b0   :  { %v7443_v9 = vadd.f32 %v8806_v18, %v7394_v21 }
 0x4b1   :  { %v8857_v11 = vpop.f32.mrb[56].mxu0 }
 0x4b2   :  { %7789 = vmatmul.mubr.bf16.gmra.mrb[60].mxu1 %v5317_v7  ;;  %v8858_v46 = vpop.f32.mrb[57].mxu0 }
 0x4b3   :  { %v8859_v32 = vadd.f32 %v8858_v46, %v8857_v11  ;;  %v8860_v42 = vpop.f32.mrb[58].mxu0 }
 0x4b4   :  { %v8861_v34 = vpop.f32.mrb[59].mxu0 }
 0x4b5   :  { %v8862_v44 = vadd.f32 %v8861_v34, %v8860_v42 }
 0x4c3   :  { %v8779_v51 = vpop.f32.mrb[28].mxu1 }
 0x4c4   :  { %v8780_v17 = vpop.f32.mrb[29].mxu1 }
 0x4c5   :  { %v8781_v27 = vadd.f32 %v8780_v17, %v8779_v51  ;;  %v8782_v49 = vpop.f32.mrb[30].mxu1 }
 0x4c6   :  { %v8783_v29 = vpop.f32.mrb[31].mxu1 }
 0x4c7   :  { %v7399_v4 = vadd.f32 %v8781_v27, %v7350_v2  ;;  %v8784_v23 = vadd.f32 %v8783_v29, %v8782_v49 }
 0x4c9   :  { %v7402_v62 = vadd.f32 %v8784_v23, %v7353_v41  ;;  %v7448_v14 = vadd.f32 %v8809_v55, %v7399_v4 }
 0x4cb   :  { %v7451_v38 = vadd.f32 %v8812_v47, %v7402_v62 }
 0x4cf   :  { %v8863_v33 = vpop.f32.mrb[60].mxu0 }
 0x4d0   :  { %v8864_v19 = vpop.f32.mrb[61].mxu0 }
 0x4d1   :  { %v8865_v30 = vadd.f32 %v8864_v19, %v8863_v33  ;;  %v8866_v24 = vpop.f32.mrb[62].mxu0 }
 0x4d2   :  { %v8867_v50 = vpop.f32.mrb[63].mxu0 }
 0x4d3   :  { %v8868_v13 = vadd.f32 %v8867_v50, %v8866_v24 }
 0x4e5   :  { %v8829_v48 = vpop.f32.mrb[32].mxu1 }
 0x4e6   :  { %v8830_v56 = vpop.f32.mrb[33].mxu1 }
 0x4e7   :  { %v8831_v5 = vadd.f32 %v8830_v56, %v8829_v48  ;;  %v8832_v60 = vpop.f32.mrb[34].mxu1 }
 0x4e8   :  { %v8833_v20 = vpop.f32.mrb[35].mxu1 }
 0x4e9   :  { %v7489_v18 = vadd.f32 %v8831_v5, %v7440_v10  ;;  %v8834_v16 = vadd.f32 %v8833_v20, %v8832_v60 }
 0x4eb   :  { %v7492_v61 = vadd.f32 %v8834_v16, %v7443_v9  ;;  %v7538_v12 = vadd.f32 %v8859_v32, %v7489_v18 }
 0x4ed   :  { %v8913_v6 = vpop.f32.mrb[64].mxu0  ;;  %v7541_v52 = vadd.f32 %v8862_v44, %v7492_v61 }
 0x4ee   :  { %v8914_v57 = vpop.f32.mrb[65].mxu0 }
 0x4ef   :  { %v8915_v1 = vadd.f32 %v8914_v57, %v8913_v6  ;;  %v8916_v63 = vpop.f32.mrb[66].mxu0 }
 0x4f0   :  { %v8917_v40 = vpop.f32.mrb[67].mxu0 }
 0x4f1   :  { %v8918_v8 = vadd.f32 %v8917_v40, %v8916_v63 }
 0x502   :  { %v8835_v28 = vpop.f32.mrb[36].mxu1 }
 0x503   :  { %v8836_v22 = vpop.f32.mrb[37].mxu1 }
 0x504   :  { %v8837_v0 = vadd.f32 %v8836_v22, %v8835_v28  ;;  %v8838_v15 = vpop.f32.mrb[38].mxu1 }
 0x505   :  { %v8839_v53 = vpop.f32.mrb[39].mxu1 }
 0x506   :  { %v7497_v26 = vadd.f32 %v8837_v0, %v7448_v14  ;;  %v8840_v2 = vadd.f32 %v8839_v53, %v8838_v15 }
 0x508   :  { %v7500_v37 = vadd.f32 %v8840_v2, %v7451_v38  ;;  %v7546_v41 = vadd.f32 %v8865_v30, %v7497_v26 }
 0x50a   :  { %v7549_v43 = vadd.f32 %v8868_v13, %v7500_v37 }
 0x50c   :  { %v8919_v59 = vpop.f32.mrb[68].mxu0 }
 0x50d   :  { %v8920_v55 = vpop.f32.mrb[69].mxu0 }
 0x50e   :  { %v8921_v45 = vadd.f32 %v8920_v55, %v8919_v59  ;;  %v8922_v25 = vpop.f32.mrb[70].mxu0 }
 0x50f   :  { %v8923_v47 = vpop.f32.mrb[71].mxu0 }
 0x510   :  { %v8924_v7 = vadd.f32 %v8923_v47, %v8922_v25 }
 0x526   :  { %v8885_v54 = vpop.f32.mrb[40].mxu1 }
 0x527   :  { %v8886_v36 = vpop.f32.mrb[41].mxu1 }
 0x528   :  { %v8887_v35 = vadd.f32 %v8886_v36, %v8885_v54  ;;  %v8888_v31 = vpop.f32.mrb[42].mxu1 }
 0x529   :  { %v8889_v3 = vpop.f32.mrb[43].mxu1 }
 0x52a   :  { %v7587_v39 = vadd.f32 %v8887_v35, %v7538_v12  ;;  %v8890_v58 = vadd.f32 %v8889_v3, %v8888_v31 }
 0x52c   :  { %v7590_v21 = vadd.f32 %v8890_v58, %v7541_v52  ;;  %v7636_v10 = vadd.f32 %v8915_v1, %v7587_v39  ;;  %v8969_v11 = vpop.f32.mrb[72].mxu0 }
 0x52d   :  { %v8970_v9 = vpop.f32.mrb[73].mxu0 }
 0x52e   :  { %v7639_v46 = vadd.f32 %v8918_v8, %v7590_v21  ;;  %v8971_v32 = vadd.f32 %v8970_v9, %v8969_v11  ;;  %v8972_v42 = vpop.f32.mrb[74].mxu0 }
 0x52f   :  { %v8973_v34 = vpop.f32.mrb[75].mxu0 }
 0x530   :  { %v8974_v44 = vadd.f32 %v8973_v34, %v8972_v42 }
 0x547   :  { %v8891_v51 = vpop.f32.mrb[44].mxu1 }
 0x548   :  { %v8892_v17 = vpop.f32.mrb[45].mxu1 }
 0x549   :  { %v8893_v27 = vadd.f32 %v8892_v17, %v8891_v51  ;;  %v8894_v49 = vpop.f32.mrb[46].mxu1 }
 0x54a   :  { %v8895_v29 = vpop.f32.mrb[47].mxu1 }
 0x54b   :  { %v7595_v4 = vadd.f32 %v8893_v27, %v7546_v41  ;;  %v8896_v23 = vadd.f32 %v8895_v29, %v8894_v49 }
 0x54d   :  { %v7598_v62 = vadd.f32 %v8896_v23, %v7549_v43  ;;  %v7644_v14 = vadd.f32 %v8921_v45, %v7595_v4 }
 0x54f   :  { %v7647_v38 = vadd.f32 %v8924_v7, %v7598_v62 }
 0x552   :  { %v8975_v33 = vpop.f32.mrb[76].mxu0 }
 0x553   :  { %v8976_v19 = vpop.f32.mrb[77].mxu0 }
 0x554   :  { %v8977_v30 = vadd.f32 %v8976_v19, %v8975_v33  ;;  %v8978_v24 = vpop.f32.mrb[78].mxu0 }
 0x555   :  { %v8979_v50 = vpop.f32.mrb[79].mxu0 }
 0x556   :  { %v8980_v13 = vadd.f32 %v8979_v50, %v8978_v24 }
 0x55a   :  { %v8941_v48 = vpop.f32.mrb[48].mxu1 }
 0x55b   :  { %v8942_v56 = vpop.f32.mrb[49].mxu1 }
 0x55c   :  { %v8943_v5 = vadd.f32 %v8942_v56, %v8941_v48  ;;  %v8944_v60 = vpop.f32.mrb[50].mxu1 }
 0x55d   :  { %v8945_v20 = vpop.f32.mrb[51].mxu1 }
 0x55e   :  { %v7685_v18 = vadd.f32 %v8943_v5, %v7636_v10  ;;  %v8946_v16 = vadd.f32 %v8945_v20, %v8944_v60 }
 0x560   :  { %v7688_v61 = vadd.f32 %v8946_v16, %v7639_v46  ;;  %v7734_v12 = vadd.f32 %v8971_v32, %v7685_v18 }
 0x562   :  { %v7737_v6 = vadd.f32 %v8974_v44, %v7688_v61 }
 0x567   :  { %v8947_v57 = vpop.f32.mrb[52].mxu1 }
 0x568   :  { %v8948_v52 = vpop.f32.mrb[53].mxu1 }
 0x569   :  { %v8949_v1 = vadd.f32 %v8948_v52, %v8947_v57  ;;  %v8950_v63 = vpop.f32.mrb[54].mxu1  ;;  %v8535_v57 = vld [vmem:[%s14016_s5] ss:$0 sm:$0xff] }
 0x56a   :  { %v8951_v40 = vpop.f32.mrb[55].mxu1 }
 0x56b   :  { %v7693_v8 = vadd.f32 %v8949_v1, %v7644_v14  ;;  %v8952_v28 = vadd.f32 %v8951_v40, %v8950_v63 }
 0x56d   :  { %v7696_v22 = vadd.f32 %v8952_v28, %v7647_v38  ;;  %v7742_v0 = vadd.f32 %v8977_v30, %v7693_v8  ;;  %v8536_v8 = vld [vmem:[%s14017_s6] ss:$0 sm:$0xff] }
 0x56f   :  { %v7745_v15 = vadd.f32 %v8980_v13, %v7696_v22 }
 0x57d   :  { %v8997_v53 = vpop.f32.mrb[56].mxu1 }
 0x57e   :  { %v8998_v26 = vpop.f32.mrb[57].mxu1 }
 0x57f   :  { %v8999_v2 = vadd.f32 %v8998_v26, %v8997_v53  ;;  %v9000_v37 = vpop.f32.mrb[58].mxu1 }
 0x580   :  { %v9001_v41 = vpop.f32.mrb[59].mxu1 }
 0x581   :  { %v7783_v43 = vadd.f32 %v8999_v2, %v7734_v12  ;;  %v9002_v59 = vadd.f32 %v9001_v41, %v9000_v37 }
 0x583   :  { %v7786_v55 = vadd.f32 %v9002_v59, %v7737_v6  ;;  %v7797_v45 = vsel %vm348_vm0, %v7783_v43, 0.0 }
 0x585   :  { %v7798_v25 = vsel %vm348_vm0, %v7786_v55, 0.0  ;;  %v9003_v47 = vpop.f32.mrb[60].mxu1 }
 0x586   :  { %v7799_v7 = vadd.f32 %v7798_v25, %v7797_v45  ;;  %v9004_v54 = vpop.f32.mrb[61].mxu1 }
 0x587   :  { %v9005_v36 = vadd.f32 %v9004_v54, %v9003_v47  ;;  %v9006_v35 = vpop.f32.mrb[62].mxu1 }
 0x588   :  { %v9007_v31 = vpop.f32.mrb[63].mxu1 }
 0x589   :  { %v7791_v3 = vadd.f32 %v9005_v36, %v7742_v0  ;;  %v9008_v39 = vadd.f32 %v9007_v31, %v9006_v35 }
 0x58b   :  { %v7800_v58 = vsel %vm348_vm0, %v7791_v3, 0.0  ;;  %v7794_v21 = vadd.f32 %v9008_v39, %v7745_v15 }
 0x58c   :  { %v7801_v10 = vadd.f32 %v7800_v58, %v7799_v7 }
 0x58d   :  { %v7802_v11 = vsel %vm348_vm0, %v7794_v21, 0.0 }
 0x58e   :  { %v7803_v9 = vadd.f32 %v7802_v11, %v7801_v10 }
 0x590   :  { %v7804_v46 = vrot.slane %v7803_v9, 4 }
 0x592   :  { %v7805_v32 = vadd.f32 %v7804_v46, %v7803_v9 }
 0x594   :  { %v7806_v42 = vrot.slane %v7805_v32, 2 }
 0x596   :  { %v7807_v34 = vadd.f32 %v7806_v42, %v7805_v32 }
 0x598   :  { %v7808_v44 = vrot.slane %v7807_v34, 1 }
 0x59a   :  { %v7809_v51 = vadd.f32 %v7808_v44, %v7807_v34 }
 0x59c   :  { %v7810_v17 = vmul.f32 0.03125, %v7809_v51 }
 0x59e   :  { %v7811_v27 = vsub.f32 %v7783_v43, %v7810_v17  ;;  %v7812_v49 = vsub.f32 %v7786_v55, %v7810_v17  ;;  %v7813_v29 = vsub.f32 %v7791_v3, %v7810_v17  ;;  %v7814_v4 = vsub.f32 %v7794_v21, %v7810_v17 }
 0x5a0   :  { %v7815_v23 = vmul.f32 %v7811_v27, %v7811_v27  ;;  %v7816_v62 = vmul.f32 %v7812_v49, %v7812_v49  ;;  %v7817_v14 = vmul.f32 %v7813_v29, %v7813_v29  ;;  %v7818_v38 = vmul.f32 %v7814_v4, %v7814_v4 }
 0x5a2   :  { %v7819_v33 = vsel %vm348_vm0, %v7815_v23, 0.0  ;;  %v7820_v19 = vsel %vm348_vm0, %v7816_v62, 0.0  ;;  %v7822_v24 = vsel %vm348_vm0, %v7817_v14, 0.0  ;;  %v7824_v13 = vsel %vm348_vm0, %v7818_v38, 0.0 }
 0x5a3   :  { %v7821_v30 = vadd.f32 %v7820_v19, %v7819_v33 }
 0x5a5   :  { %v7823_v50 = vadd.f32 %v7822_v24, %v7821_v30 }
 0x5a7   :  { %v7825_v48 = vadd.f32 %v7824_v13, %v7823_v50 }
 0x5a9   :  { %v7826_v56 = vrot.slane %v7825_v48, 4 }
 0x5ab   :  { %v7827_v5 = vadd.f32 %v7826_v56, %v7825_v48 }
 0x5ad   :  { %v7828_v60 = vrot.slane %v7827_v5, 2 }
 0x5af   :  { %v7829_v20 = vadd.f32 %v7828_v60, %v7827_v5 }
 0x5b1   :  { %v7830_v18 = vrot.slane %v7829_v20, 1 }
 0x5b3   :  { %v7831_v16 = vadd.f32 %v7830_v18, %v7829_v20 }
 0x5b5   :  { %v7832_v61 = vmul.f32 0.03125, %v7831_v16 }
 0x5b7   :  { %v7833_v12 = vadd.f32 1e-05, %v7832_v61 }
 0x5b9   :  { %9587 = vrsqrt.f32 %v7833_v12 }
 0x5c3   :  { %v9588_v6 = vpop.eup %9587 }
 0x5c4   :  { %v7835_v52 = vmul.f32 %v9588_v6, %v7811_v27  ;;  %v7836_v1 = vmul.f32 %v9588_v6, %v7812_v49  ;;  %v7837_v63 = vmul.f32 %v9588_v6, %v7813_v29  ;;  %v7838_v40 = vmul.f32 %v9588_v6, %v7814_v4 }
 0x5c6   :  { %v7846_v28 = vmul.f32 %v8535_v57, %v7835_v52  ;;  %v7847_v22 = vmul.f32 %v8535_v57, %v7836_v1  ;;  %v7848_v0 = vmul.f32 %v8535_v57, %v7837_v63  ;;  %v7849_v15 = vmul.f32 %v8535_v57, %v7838_v40 }
 0x5c8   :  { %v7857_v53 = vadd.f32 %v8536_v8, %v7846_v28  ;;  %v7858_v26 = vadd.f32 %v8536_v8, %v7847_v22  ;;  %v7859_v2 = vadd.f32 %v8536_v8, %v7848_v0  ;;  %v7860_v37 = vadd.f32 %v8536_v8, %v7849_v15 }
 0x5ca   :  { %7861 = vst.msk [vmem:[%s14018_s7] sm:$0xff] %vm348_vm0, %v7857_v53  ;;  %7862 = vst.msk [vmem:[%s14018_s7 + $0x8] sm:$0xff] %vm348_vm0, %v7858_v26 }
 0x5cb   :  { %7863 = vst.msk [vmem:[%s14018_s7 + $0x10] sm:$0xff] %vm348_vm0, %v7859_v2  ;;  %7864 = vst.msk [vmem:[%s14018_s7 + $0x18] sm:$0xff] %vm348_vm0, %v7860_v37 }

</bundles_post_ra>
